<compile_context>
chip_gen: v6e
topology: v6e:2x2x1
jax: 0.10.0
libtpu: 0.0.40
codegen_flags: <defaults>
</compile_context>

<pallas_src>
import functools

import jax
import jax.numpy as jnp
from jax import lax
from jax.experimental import pallas as pl
from jax.experimental.pallas import tpu as pltpu

EPS = 1e-3
KH = 3
KW = 3


def _round_up(a, b):
    return ((a + b - 1) // b) * b


def _tensorcores_per_chip():
    """2 only where a row-half split across TensorCores pays off (v7x); else 1.

    grid=(2,) on single-TC v5e/v6e is just a serial loop that recomputes the full-image BN
    statistics twice and adds a pipeline step, so we fall back to grid=(1,) there.
    """
    try:
        info = pltpu.get_tpu_info()
        for name in ("num_cores", "core_count", "num_tensorcores",
                     "tensorcores_per_chip", "cores_per_chip"):
            v = getattr(info, name, None)
            if isinstance(v, int) and 1 <= v <= 8:
                return v
    except Exception:
        pass
    try:
        kind = jax.devices()[0].device_kind.lower()
    except Exception:
        return 1
    return 2 if ("v7" in kind or "tpu7" in kind) else 1


def _bn_relu_conv3x3_kernel(x_ref, g_ref, b_ref, w_ref, o_ref, cat_ref, *,
                            H, W, Wp, Cin, half, rb, n_cores):
    # x_ref:   (H, Wp, Cin)            f32  channels-last, W zero-padded to Wp (>= W+1)
    # g_ref:   (1, Wp, Cin)            f32  BN gamma, zeroed in padded columns
    # b_ref:   (1, Wp, Cin)            f32  BN beta,  zeroed in padded columns
    # w_ref:   (KH, KW*Cin, Cout_pad)  f32  conv weight, kw folded into K, Cout padded to 128
    # o_ref:   (half*Wp, Cout_pad)     f32  this program's rows of the output
    # cat_ref: ((half+2)*Wp, KW*Cin)   f32  scratch: flat row v*Wp+j holds the 3 kw taps of
    #                                       local image row v (global row i*half + v - 1);
    #                                       local rows 0 and half+1 are zero H-halos.
    kdim = KW * Cin

    # ---- BatchNorm2d batch statistics, single pass (sum & sum of squares) --------------
    # Padded W columns of x are zero, so they do not perturb the sums; divide by H*W.
    x = x_ref[...]                                            # (H, Wp, Cin)
    s1 = jnp.sum(x, axis=(0, 1), keepdims=True)               # (1, 1, Cin)
    s2 = jnp.sum(x * x, axis=(0, 1), keepdims=True)           # (1, 1, Cin)
    inv_n = 1.0 / float(H * W)
    mean = s1 * inv_n
    var = s2 * inv_n - mean * mean                            # biased variance (PyTorch fwd)
    # gamma/beta are zero in padded columns => scale/shift (and y) are exactly 0 there.
    scale = g_ref[...] * lax.rsqrt(var + EPS)                 # (1, Wp, Cin)
    shift = b_ref[...] - mean * scale                         # (1, Wp, Cin)
    # TODO(synk): running_mean/running_var momentum update is a training-time buffer side
    # effect that does not affect the returned tensor; not reproduced here.

    # ---- strip / halo bookkeeping (valid for grid=(1,) and grid=(2,)) -------------------
    if n_cores == 1:
        strip = H                         # all rows, at local offset 1
        xs = x
        start = Wp
    else:
        i = pl.program_id(0)
        strip = half + 1                  # this half + 1 real halo row
        xs = x_ref[pl.ds((half - 1) * i, strip)]              # (strip, Wp, Cin)
        start = pl.multiple_of((1 - i) * Wp, Wp)              # 0 or Wp (sublane-aligned)

    # ---- BN + ReLU on the strip this program needs --------------------------------------
    y = jnp.maximum(xs * scale + shift, 0.0)                  # (strip, Wp, Cin)
    y2d = y.reshape(strip * Wp, Cin)                          # layout-preserving merge

    # ---- kw = +-1 taps: +-1 column == +-1 flat row of the row-major view ----------------
    # Every wrap-around lands in a zero padded column (Wp >= W+1 and y==0 there), so no
    # per-element edge masks are needed.
    left2d = pltpu.roll(y2d, shift=1, axis=0)                 # y at column j-1
    right2d = pltpu.roll(y2d, shift=strip * Wp - 1, axis=0)   # y at column j+1

    # ---- fill cat_ref: zero the two H-halo row blocks, then 3 direct column-range stores -
    zero_rows = jnp.zeros((Wp, kdim), jnp.float32)
    cat_ref[0:Wp, :] = zero_rows
    cat_ref[(half + 1) * Wp:(half + 2) * Wp, :] = zero_rows
    rows = pl.ds(start, strip * Wp)
    cat_ref[rows, 0:Cin] = left2d                             # kw = 0 tap
    cat_ref[rows, Cin:2 * Cin] = y2d                          # kw = 1 tap
    cat_ref[rows, 2 * Cin:3 * Cin] = right2d                  # kw = 2 tap

    # ---- 3x3 conv: per rb-row block, 3 accumulated (rb*Wp, 96) x (96, 128) MXU matmuls ---
    # rb=2 keeps the register accumulator at ~8 vregs (no spills); one lane-dense store
    # per block.
    for u0 in range(0, half, rb):
        acc = None
        for kh in range(KH):
            a = cat_ref[(u0 + kh) * Wp:(u0 + kh + rb) * Wp, :]          # aligned static slice
            d = jnp.dot(a, w_ref[kh], preferred_element_type=jnp.float32)
            acc = d if acc is None else acc + d
        o_ref[u0 * Wp:(u0 + rb) * Wp, :] = acc                # lane-dense (..., 128) store


def bn_relu_conv(x_nchw, gamma, beta, w_oihw, *, n_cores=None):
    """x_nchw: (1, Cin, H, W); w_oihw: (Cout, Cin, 3, 3). Returns (1, Cout, H, W)."""
    N, Cin, H, W = x_nchw.shape
    assert N == 1, "BN training-mode batch stats over the module's single-image batch"
    Cout = w_oihw.shape[0]
    assert w_oihw.shape == (Cout, Cin, KH, KW)

    if n_cores is None:
        n_cores = _tensorcores_per_chip()
    if H % n_cores != 0:
        n_cores = 1
    half = H // n_cores
    rb = 2 if half % 2 == 0 else 1                # small register accumulator per block

    Wp = _round_up(W + 1, 8)                      # >= W+1: guaranteed zero pad column(s)
    assert Wp >= W + 1                            # the roll-based kw taps rely on this
    Cout_pad = _round_up(Cout, 128)               # lane-dense output stores

    # --- wrapper-side layout plumbing ---
    # TODO(synk): if the surrounding model can produce/consume channels-last activations,
    # feed (H, W, Cin) in and return (H, W, Cout) directly to drop these two relayouts.
    x_hwc = jnp.transpose(x_nchw[0], (1, 2, 0)).astype(jnp.float32)      # (H, W, Cin)
    x_hwc = jnp.pad(x_hwc, ((0, 0), (0, Wp - W), (0, 0)))                # (H, Wp, Cin)

    # OIHW -> (KH, KW*Cin, Cout_pad): kw folded into the contraction dim, Cout zero-padded.
    w_k = jnp.transpose(w_oihw.astype(jnp.float32), (2, 3, 1, 0))        # (KH, KW, Cin, Cout)
    w_k = w_k.reshape(KH, KW * Cin, Cout)
    w_k = jnp.pad(w_k, ((0, 0), (0, 0), (0, Cout_pad - Cout)))           # (KH, 96, 128)

    # gamma/beta pre-broadcast over W with the padded columns zeroed (-> y == 0 there).
    col_ok = (jnp.arange(Wp) < W)[None, :, None]                         # (1, Wp, 1)
    g_t = jnp.where(col_ok, gamma.astype(jnp.float32)[None, None, :], 0.0)  # (1, Wp, Cin)
    b_t = jnp.where(col_ok, beta.astype(jnp.float32)[None, None, :], 0.0)   # (1, Wp, Cin)

    kernel = functools.partial(_bn_relu_conv3x3_kernel, H=H, W=W, Wp=Wp, Cin=Cin,
                               half=half, rb=rb, n_cores=n_cores)

    out2d = pl.pallas_call(
        kernel,
        out_shape=jax.ShapeDtypeStruct((H * Wp, Cout_pad), jnp.float32),
        grid_spec=pltpu.PrefetchScalarGridSpec(
            num_scalar_prefetch=0,
            grid=(n_cores,),
            in_specs=[
                pl.BlockSpec((H, Wp, Cin), lambda i: (0, 0, 0)),             # full x
                pl.BlockSpec((1, Wp, Cin), lambda i: (0, 0, 0)),             # gamma (tiled)
                pl.BlockSpec((1, Wp, Cin), lambda i: (0, 0, 0)),             # beta  (tiled)
                pl.BlockSpec((KH, KW * Cin, Cout_pad), lambda i: (0, 0, 0)),  # weight
            ],
            out_specs=pl.BlockSpec((half * Wp, Cout_pad), lambda i: (i, 0)),
            scratch_shapes=[pltpu.VMEM(((half + 2) * Wp, KW * Cin), jnp.float32)],
        ),
        # TODO(synk): on v7x, verify in a trace that this "parallel" axis is actually
        # sharded across both TensorCores; if not, switch to pltpu.CORE_PARALLEL /
        # pl.core_map(create_tensorcore_mesh(...)).
        compiler_params=pltpu.CompilerParams(dimension_semantics=("parallel",)),
    )(x_hwc, g_t, b_t, w_k)

    out = out2d.reshape(H, Wp, Cout_pad)[:, :W, :Cout]        # drop W / Cout padding
    return jnp.transpose(out, (2, 0, 1))[None]                # (1, Cout, H, W)


def reference(x_nchw, gamma, beta, w_oihw):
    """Pure-JAX reference matching the PyTorch forward semantics (training-mode BN)."""
    mean = jnp.mean(x_nchw, axis=(0, 2, 3), keepdims=True)
    var = jnp.mean(jnp.square(x_nchw - mean), axis=(0, 2, 3), keepdims=True)
    y = (x_nchw - mean) * lax.rsqrt(var + EPS) * gamma.reshape(1, -1, 1, 1) \
        + beta.reshape(1, -1, 1, 1)
    y = jnp.maximum(y, 0.0)
    return lax.conv_general_dilated(
        y, w_oihw, window_strides=(1, 1), padding=((1, 1), (1, 1)),
        dimension_numbers=("NCHW", "OIHW", "NCHW"))


if __name__ == "__main__":
    key = jax.random.PRNGKey(0)
    k_x, k_g, k_b, k_w = jax.random.split(key, 4)

    Cin, Cout, H, W = 32, 96, 28, 28                   # module shapes: x54 = (1, 32, 28, 28)
    x = jax.random.normal(k_x, (1, Cin, H, W), dtype=jnp.float32)
    gamma = 1.0 + 0.1 * jax.random.normal(k_g, (Cin,), dtype=jnp.float32)
    beta = 0.1 * jax.random.normal(k_b, (Cin,), dtype=jnp.float32)
    w = 0.1 * jax.random.normal(k_w, (Cout, Cin, 3, 3), dtype=jnp.float32)

    out = jax.block_until_ready(jax.jit(bn_relu_conv)(x, gamma, beta, w))
    ref = jax.block_until_ready(reference(x, gamma, beta, w))

    assert out.shape == (1, Cout, H, W), out.shape
    assert jnp.allclose(out, ref, rtol=1e-3, atol=1e-3), \
        float(jnp.max(jnp.abs(out - ref)))
    print("KERNEL_OK")
</pallas_src>

<mosaic_0001>
module attributes {stable_mosaic.version = 11 : i64} {
  func.func @_bn_relu_conv3x3_kernel(%arg0: i32, %arg1: memref<28x32x32xf32, #tpu.memory_space<vmem>>, %arg2: memref<1x32x32xf32, #tpu.memory_space<vmem>>, %arg3: memref<1x32x32xf32, #tpu.memory_space<vmem>>, %arg4: memref<3x96x128xf32, #tpu.memory_space<vmem>>, %arg5: memref<896x128xf32, #tpu.memory_space<vmem>>, %arg6: memref<960x96xf32, #tpu.memory_space<vmem>>) attributes {dimension_semantics = [#tpu.dimension_semantics<parallel>], iteration_bounds = array<i64: 1>, scalar_prefetch = 0 : i64, scratch_operands = 1 : i64, tpu.core_type = #tpu.core_type<tc>, window_params = [{pipeline_mode = #tpu.pipeline_mode<synchronous>, transform_indices = @transform_0, window_bounds = array<i64: 28, 32, 32>}, {pipeline_mode = #tpu.pipeline_mode<synchronous>, transform_indices = @transform_1, window_bounds = array<i64: 1, 32, 32>}, {pipeline_mode = #tpu.pipeline_mode<synchronous>, transform_indices = @transform_2, window_bounds = array<i64: 1, 32, 32>}, {pipeline_mode = #tpu.pipeline_mode<synchronous>, transform_indices = @transform_3, window_bounds = array<i64: 3, 96, 128>}, {transform_indices = @transform_4, window_bounds = array<i64: 896, 128>}]} {
    %c0 = arith.constant 0 : index
    %c0_0 = arith.constant 0 : index
    %c0_1 = arith.constant 0 : index
    %0 = vector.load %arg1[%c0, %c0_0, %c0_1] : memref<28x32x32xf32, #tpu.memory_space<vmem>>, vector<28x32x32xf32>
    %cst = arith.constant dense<0.000000e+00> : vector<32xf32>
    %1 = vector.multi_reduction <add>, %0, %cst [0, 1] : vector<28x32x32xf32> to vector<32xf32>
    %2 = vector.shape_cast %1 : vector<32xf32> to vector<1x1x32xf32>
    %3 = arith.mulf %0, %0 : vector<28x32x32xf32>
    %cst_2 = arith.constant dense<0.000000e+00> : vector<32xf32>
    %4 = vector.multi_reduction <add>, %3, %cst_2 [0, 1] : vector<28x32x32xf32> to vector<32xf32>
    %5 = vector.shape_cast %4 : vector<32xf32> to vector<1x1x32xf32>
    %cst_3 = arith.constant 0.00127551018 : f32
    %6 = vector.broadcast %cst_3 : f32 to vector<1x1x32xf32>
    %7 = arith.mulf %2, %6 : vector<1x1x32xf32>
    %cst_4 = arith.constant 0.00127551018 : f32
    %8 = vector.broadcast %cst_4 : f32 to vector<1x1x32xf32>
    %9 = arith.mulf %5, %8 : vector<1x1x32xf32>
    %10 = arith.mulf %7, %7 : vector<1x1x32xf32>
    %11 = arith.subf %9, %10 : vector<1x1x32xf32>
    %c0_5 = arith.constant 0 : index
    %c0_6 = arith.constant 0 : index
    %c0_7 = arith.constant 0 : index
    %12 = vector.load %arg2[%c0_5, %c0_6, %c0_7] : memref<1x32x32xf32, #tpu.memory_space<vmem>>, vector<1x32x32xf32>
    %cst_8 = arith.constant 1.000000e-03 : f32
    %13 = vector.broadcast %cst_8 : f32 to vector<1x1x32xf32>
    %14 = arith.addf %11, %13 : vector<1x1x32xf32>
    %15 = math.rsqrt %14 : vector<1x1x32xf32>
    %16 = vector.broadcast %15 : vector<1x1x32xf32> to vector<1x32x32xf32>
    %17 = arith.mulf %12, %16 : vector<1x32x32xf32>
    %c0_9 = arith.constant 0 : index
    %c0_10 = arith.constant 0 : index
    %c0_11 = arith.constant 0 : index
    %18 = vector.load %arg3[%c0_9, %c0_10, %c0_11] : memref<1x32x32xf32, #tpu.memory_space<vmem>>, vector<1x32x32xf32>
    %19 = vector.broadcast %7 : vector<1x1x32xf32> to vector<1x32x32xf32>
    %20 = arith.mulf %19, %17 : vector<1x32x32xf32>
    %21 = arith.subf %18, %20 : vector<1x32x32xf32>
    %22 = vector.broadcast %17 : vector<1x32x32xf32> to vector<28x32x32xf32>
    %23 = arith.mulf %0, %22 : vector<28x32x32xf32>
    %24 = vector.broadcast %21 : vector<1x32x32xf32> to vector<28x32x32xf32>
    %25 = arith.addf %23, %24 : vector<28x32x32xf32>
    %cst_12 = arith.constant 0.000000e+00 : f32
    %26 = vector.broadcast %cst_12 : f32 to vector<28x32x32xf32>
    %27 = arith.maximumf %25, %26 : vector<28x32x32xf32>
    %28 = vector.shape_cast %27 : vector<28x32x32xf32> to vector<896x32xf32>
    %c1_i32 = arith.constant 1 : i32
    %29 = tpu.dynamic_rotate %28 by %c1_i32 dim 0 : vector<896x32xf32>, i32 -> vector<896x32xf32>
    %c895_i32 = arith.constant 895 : i32
    %30 = tpu.dynamic_rotate %28 by %c895_i32 dim 0 : vector<896x32xf32>, i32 -> vector<896x32xf32>
    %cst_13 = arith.constant 0.000000e+00 : f32
    %31 = vector.broadcast %cst_13 : f32 to vector<32x96xf32>
    %c0_14 = arith.constant 0 : index
    %c0_15 = arith.constant 0 : index
    %32 = vector.load %arg6[%c0_14, %c0_15] : memref<960x96xf32, #tpu.memory_space<vmem>>, vector<32x96xf32>
    tpu.vector_store %arg6[%c0_14, %c0_15], %31 {strides = array<i32>} : memref<960x96xf32, #tpu.memory_space<vmem>>, vector<32x96xf32>,
    %c928 = arith.constant 928 : index
    %c0_16 = arith.constant 0 : index
    %33 = vector.load %arg6[%c928, %c0_16] : memref<960x96xf32, #tpu.memory_space<vmem>>, vector<32x96xf32>
    tpu.vector_store %arg6[%c928, %c0_16], %31 {strides = array<i32>} : memref<960x96xf32, #tpu.memory_space<vmem>>, vector<32x96xf32>,
    %c32 = arith.constant 32 : index
    %c0_17 = arith.constant 0 : index
    %34 = vector.load %arg6[%c32, %c0_17] : memref<960x96xf32, #tpu.memory_space<vmem>>, vector<896x32xf32>
    tpu.vector_store %arg6[%c32, %c0_17], %29 {strides = array<i32>} : memref<960x96xf32, #tpu.memory_space<vmem>>, vector<896x32xf32>,
    %c32_18 = arith.constant 32 : index
    %c32_19 = arith.constant 32 : index
    %35 = vector.load %arg6[%c32_18, %c32_19] : memref<960x96xf32, #tpu.memory_space<vmem>>, vector<896x32xf32>
    tpu.vector_store %arg6[%c32_18, %c32_19], %28 {strides = array<i32>} : memref<960x96xf32, #tpu.memory_space<vmem>>, vector<896x32xf32>,
    %c32_20 = arith.constant 32 : index
    %c64 = arith.constant 64 : index
    %36 = vector.load %arg6[%c32_20, %c64] : memref<960x96xf32, #tpu.memory_space<vmem>>, vector<896x32xf32>
    tpu.vector_store %arg6[%c32_20, %c64], %30 {strides = array<i32>} : memref<960x96xf32, #tpu.memory_space<vmem>>, vector<896x32xf32>,
    %c0_21 = arith.constant 0 : index
    %c0_22 = arith.constant 0 : index
    %37 = vector.load %arg6[%c0_21, %c0_22] : memref<960x96xf32, #tpu.memory_space<vmem>>, vector<64x96xf32>
    %c0_23 = arith.constant 0 : index
    %c0_24 = arith.constant 0 : index
    %c0_25 = arith.constant 0 : index
    %38 = vector.load %arg4[%c0_23, %c0_24, %c0_25] : memref<3x96x128xf32, #tpu.memory_space<vmem>>, vector<1x96x128xf32>
    %39 = vector.shape_cast %38 : vector<1x96x128xf32> to vector<96x128xf32>
    %cst_26 = arith.constant dense<0.000000e+00> : vector<64x128xf32>
    %40 = tpu.matmul %37, %39, %cst_26 {dimension_numbers = #tpu.dot_dimension_numbers<[1], [0], [0], [1], [0, 0, 1, 1], [], []>} : vector<64x96xf32>, vector<96x128xf32>, vector<64x128xf32> -> vector<64x128xf32>
    %c32_27 = arith.constant 32 : index
    %c0_28 = arith.constant 0 : index
    %41 = vector.load %arg6[%c32_27, %c0_28] : memref<960x96xf32, #tpu.memory_space<vmem>>, vector<64x96xf32>
    %c1 = arith.constant 1 : index
    %c0_29 = arith.constant 0 : index
    %c0_30 = arith.constant 0 : index
    %42 = vector.load %arg4[%c1, %c0_29, %c0_30] : memref<3x96x128xf32, #tpu.memory_space<vmem>>, vector<1x96x128xf32>
    %43 = vector.shape_cast %42 : vector<1x96x128xf32> to vector<96x128xf32>
    %cst_31 = arith.constant dense<0.000000e+00> : vector<64x128xf32>
    %44 = tpu.matmul %41, %43, %cst_31 {dimension_numbers = #tpu.dot_dimension_numbers<[1], [0], [0], [1], [0, 0, 1, 1], [], []>} : vector<64x96xf32>, vector<96x128xf32>, vector<64x128xf32> -> vector<64x128xf32>
    %45 = arith.addf %40, %44 : vector<64x128xf32>
    %c64_32 = arith.constant 64 : index
    %c0_33 = arith.constant 0 : index
    %46 = vector.load %arg6[%c64_32, %c0_33] : memref<960x96xf32, #tpu.memory_space<vmem>>, vector<64x96xf32>
    %c2 = arith.constant 2 : index
    %c0_34 = arith.constant 0 : index
    %c0_35 = arith.constant 0 : index
    %47 = vector.load %arg4[%c2, %c0_34, %c0_35] : memref<3x96x128xf32, #tpu.memory_space<vmem>>, vector<1x96x128xf32>
    %48 = vector.shape_cast %47 : vector<1x96x128xf32> to vector<96x128xf32>
    %cst_36 = arith.constant dense<0.000000e+00> : vector<64x128xf32>
    %49 = tpu.matmul %46, %48, %cst_36 {dimension_numbers = #tpu.dot_dimension_numbers<[1], [0], [0], [1], [0, 0, 1, 1], [], []>} : vector<64x96xf32>, vector<96x128xf32>, vector<64x128xf32> -> vector<64x128xf32>
    %50 = arith.addf %45, %49 : vector<64x128xf32>
    %c0_37 = arith.constant 0 : index
    %c0_38 = arith.constant 0 : index
    %51 = vector.load %arg5[%c0_37, %c0_38] : memref<896x128xf32, #tpu.memory_space<vmem>>, vector<64x128xf32>
    tpu.vector_store %arg5[%c0_37, %c0_38], %50 {strides = array<i32>} : memref<896x128xf32, #tpu.memory_space<vmem>>, vector<64x128xf32>,
    %c64_39 = arith.constant 64 : index
    %c0_40 = arith.constant 0 : index
    %52 = vector.load %arg6[%c64_39, %c0_40] : memref<960x96xf32, #tpu.memory_space<vmem>>, vector<64x96xf32>
    %c0_41 = arith.constant 0 : index
    %c0_42 = arith.constant 0 : index
    %c0_43 = arith.constant 0 : index
    %53 = vector.load %arg4[%c0_41, %c0_42, %c0_43] : memref<3x96x128xf32, #tpu.memory_space<vmem>>, vector<1x96x128xf32>
    %54 = vector.shape_cast %53 : vector<1x96x128xf32> to vector<96x128xf32>
    %cst_44 = arith.constant dense<0.000000e+00> : vector<64x128xf32>
    %55 = tpu.matmul %52, %54, %cst_44 {dimension_numbers = #tpu.dot_dimension_numbers<[1], [0], [0], [1], [0, 0, 1, 1], [], []>} : vector<64x96xf32>, vector<96x128xf32>, vector<64x128xf32> -> vector<64x128xf32>
    %c96 = arith.constant 96 : index
    %c0_45 = arith.constant 0 : index
    %56 = vector.load %arg6[%c96, %c0_45] : memref<960x96xf32, #tpu.memory_space<vmem>>, vector<64x96xf32>
    %c1_46 = arith.constant 1 : index
    %c0_47 = arith.constant 0 : index
    %c0_48 = arith.constant 0 : index
    %57 = vector.load %arg4[%c1_46, %c0_47, %c0_48] : memref<3x96x128xf32, #tpu.memory_space<vmem>>, vector<1x96x128xf32>
    %58 = vector.shape_cast %57 : vector<1x96x128xf32> to vector<96x128xf32>
    %cst_49 = arith.constant dense<0.000000e+00> : vector<64x128xf32>
    %59 = tpu.matmul %56, %58, %cst_49 {dimension_numbers = #tpu.dot_dimension_numbers<[1], [0], [0], [1], [0, 0, 1, 1], [], []>} : vector<64x96xf32>, vector<96x128xf32>, vector<64x128xf32> -> vector<64x128xf32>
    %60 = arith.addf %55, %59 : vector<64x128xf32>
    %c128 = arith.constant 128 : index
    %c0_50 = arith.constant 0 : index
    %61 = vector.load %arg6[%c128, %c0_50] : memref<960x96xf32, #tpu.memory_space<vmem>>, vector<64x96xf32>
    %c2_51 = arith.constant 2 : index
    %c0_52 = arith.constant 0 : index
    %c0_53 = arith.constant 0 : index
    %62 = vector.load %arg4[%c2_51, %c0_52, %c0_53] : memref<3x96x128xf32, #tpu.memory_space<vmem>>, vector<1x96x128xf32>
    %63 = vector.shape_cast %62 : vector<1x96x128xf32> to vector<96x128xf32>
    %cst_54 = arith.constant dense<0.000000e+00> : vector<64x128xf32>
    %64 = tpu.matmul %61, %63, %cst_54 {dimension_numbers = #tpu.dot_dimension_numbers<[1], [0], [0], [1], [0, 0, 1, 1], [], []>} : vector<64x96xf32>, vector<96x128xf32>, vector<64x128xf32> -> vector<64x128xf32>
    %65 = arith.addf %60, %64 : vector<64x128xf32>
    %c64_55 = arith.constant 64 : index
    %c0_56 = arith.constant 0 : index
    %66 = vector.load %arg5[%c64_55, %c0_56] : memref<896x128xf32, #tpu.memory_space<vmem>>, vector<64x128xf32>
    tpu.vector_store %arg5[%c64_55, %c0_56], %65 {strides = array<i32>} : memref<896x128xf32, #tpu.memory_space<vmem>>, vector<64x128xf32>,
    %c128_57 = arith.constant 128 : index
    %c0_58 = arith.constant 0 : index
    %67 = vector.load %arg6[%c128_57, %c0_58] : memref<960x96xf32, #tpu.memory_space<vmem>>, vector<64x96xf32>
    %c0_59 = arith.constant 0 : index
    %c0_60 = arith.constant 0 : index
    %c0_61 = arith.constant 0 : index
    %68 = vector.load %arg4[%c0_59, %c0_60, %c0_61] : memref<3x96x128xf32, #tpu.memory_space<vmem>>, vector<1x96x128xf32>
    %69 = vector.shape_cast %68 : vector<1x96x128xf32> to vector<96x128xf32>
    %cst_62 = arith.constant dense<0.000000e+00> : vector<64x128xf32>
    %70 = tpu.matmul %67, %69, %cst_62 {dimension_numbers = #tpu.dot_dimension_numbers<[1], [0], [0], [1], [0, 0, 1, 1], [], []>} : vector<64x96xf32>, vector<96x128xf32>, vector<64x128xf32> -> vector<64x128xf32>
    %c160 = arith.constant 160 : index
    %c0_63 = arith.constant 0 : index
    %71 = vector.load %arg6[%c160, %c0_63] : memref<960x96xf32, #tpu.memory_space<vmem>>, vector<64x96xf32>
    %c1_64 = arith.constant 1 : index
    %c0_65 = arith.constant 0 : index
    %c0_66 = arith.constant 0 : index
    %72 = vector.load %arg4[%c1_64, %c0_65, %c0_66] : memref<3x96x128xf32, #tpu.memory_space<vmem>>, vector<1x96x128xf32>
    %73 = vector.shape_cast %72 : vector<1x96x128xf32> to vector<96x128xf32>
    %cst_67 = arith.constant dense<0.000000e+00> : vector<64x128xf32>
    %74 = tpu.matmul %71, %73, %cst_67 {dimension_numbers = #tpu.dot_dimension_numbers<[1], [0], [0], [1], [0, 0, 1, 1], [], []>} : vector<64x96xf32>, vector<96x128xf32>, vector<64x128xf32> -> vector<64x128xf32>
    %75 = arith.addf %70, %74 : vector<64x128xf32>
    %c192 = arith.constant 192 : index
    %c0_68 = arith.constant 0 : index
    %76 = vector.load %arg6[%c192, %c0_68] : memref<960x96xf32, #tpu.memory_space<vmem>>, vector<64x96xf32>
    %c2_69 = arith.constant 2 : index
    %c0_70 = arith.constant 0 : index
    %c0_71 = arith.constant 0 : index
    %77 = vector.load %arg4[%c2_69, %c0_70, %c0_71] : memref<3x96x128xf32, #tpu.memory_space<vmem>>, vector<1x96x128xf32>
    %78 = vector.shape_cast %77 : vector<1x96x128xf32> to vector<96x128xf32>
    %cst_72 = arith.constant dense<0.000000e+00> : vector<64x128xf32>
    %79 = tpu.matmul %76, %78, %cst_72 {dimension_numbers = #tpu.dot_dimension_numbers<[1], [0], [0], [1], [0, 0, 1, 1], [], []>} : vector<64x96xf32>, vector<96x128xf32>, vector<64x128xf32> -> vector<64x128xf32>
    %80 = arith.addf %75, %79 : vector<64x128xf32>
    %c128_73 = arith.constant 128 : index
    %c0_74 = arith.constant 0 : index
    %81 = vector.load %arg5[%c128_73, %c0_74] : memref<896x128xf32, #tpu.memory_space<vmem>>, vector<64x128xf32>
    tpu.vector_store %arg5[%c128_73, %c0_74], %80 {strides = array<i32>} : memref<896x128xf32, #tpu.memory_space<vmem>>, vector<64x128xf32>,
    %c192_75 = arith.constant 192 : index
    %c0_76 = arith.constant 0 : index
    %82 = vector.load %arg6[%c192_75, %c0_76] : memref<960x96xf32, #tpu.memory_space<vmem>>, vector<64x96xf32>
    %c0_77 = arith.constant 0 : index
    %c0_78 = arith.constant 0 : index
    %c0_79 = arith.constant 0 : index
    %83 = vector.load %arg4[%c0_77, %c0_78, %c0_79] : memref<3x96x128xf32, #tpu.memory_space<vmem>>, vector<1x96x128xf32>
    %84 = vector.shape_cast %83 : vector<1x96x128xf32> to vector<96x128xf32>
    %cst_80 = arith.constant dense<0.000000e+00> : vector<64x128xf32>
    %85 = tpu.matmul %82, %84, %cst_80 {dimension_numbers = #tpu.dot_dimension_numbers<[1], [0], [0], [1], [0, 0, 1, 1], [], []>} : vector<64x96xf32>, vector<96x128xf32>, vector<64x128xf32> -> vector<64x128xf32>
    %c224 = arith.constant 224 : index
    %c0_81 = arith.constant 0 : index
    %86 = vector.load %arg6[%c224, %c0_81] : memref<960x96xf32, #tpu.memory_space<vmem>>, vector<64x96xf32>
    %c1_82 = arith.constant 1 : index
    %c0_83 = arith.constant 0 : index
    %c0_84 = arith.constant 0 : index
    %87 = vector.load %arg4[%c1_82, %c0_83, %c0_84] : memref<3x96x128xf32, #tpu.memory_space<vmem>>, vector<1x96x128xf32>
    %88 = vector.shape_cast %87 : vector<1x96x128xf32> to vector<96x128xf32>
    %cst_85 = arith.constant dense<0.000000e+00> : vector<64x128xf32>
    %89 = tpu.matmul %86, %88, %cst_85 {dimension_numbers = #tpu.dot_dimension_numbers<[1], [0], [0], [1], [0, 0, 1, 1], [], []>} : vector<64x96xf32>, vector<96x128xf32>, vector<64x128xf32> -> vector<64x128xf32>
    %90 = arith.addf %85, %89 : vector<64x128xf32>
    %c256 = arith.constant 256 : index
    %c0_86 = arith.constant 0 : index
    %91 = vector.load %arg6[%c256, %c0_86] : memref<960x96xf32, #tpu.memory_space<vmem>>, vector<64x96xf32>
    %c2_87 = arith.constant 2 : index
    %c0_88 = arith.constant 0 : index
    %c0_89 = arith.constant 0 : index
    %92 = vector.load %arg4[%c2_87, %c0_88, %c0_89] : memref<3x96x128xf32, #tpu.memory_space<vmem>>, vector<1x96x128xf32>
    %93 = vector.shape_cast %92 : vector<1x96x128xf32> to vector<96x128xf32>
    %cst_90 = arith.constant dense<0.000000e+00> : vector<64x128xf32>
    %94 = tpu.matmul %91, %93, %cst_90 {dimension_numbers = #tpu.dot_dimension_numbers<[1], [0], [0], [1], [0, 0, 1, 1], [], []>} : vector<64x96xf32>, vector<96x128xf32>, vector<64x128xf32> -> vector<64x128xf32>
    %95 = arith.addf %90, %94 : vector<64x128xf32>
    %c192_91 = arith.constant 192 : index
    %c0_92 = arith.constant 0 : index
    %96 = vector.load %arg5[%c192_91, %c0_92] : memref<896x128xf32, #tpu.memory_space<vmem>>, vector<64x128xf32>
    tpu.vector_store %arg5[%c192_91, %c0_92], %95 {strides = array<i32>} : memref<896x128xf32, #tpu.memory_space<vmem>>, vector<64x128xf32>,
    %c256_93 = arith.constant 256 : index
    %c0_94 = arith.constant 0 : index
    %97 = vector.load %arg6[%c256_93, %c0_94] : memref<960x96xf32, #tpu.memory_space<vmem>>, vector<64x96xf32>
    %c0_95 = arith.constant 0 : index
    %c0_96 = arith.constant 0 : index
    %c0_97 = arith.constant 0 : index
    %98 = vector.load %arg4[%c0_95, %c0_96, %c0_97] : memref<3x96x128xf32, #tpu.memory_space<vmem>>, vector<1x96x128xf32>
    %99 = vector.shape_cast %98 : vector<1x96x128xf32> to vector<96x128xf32>
    %cst_98 = arith.constant dense<0.000000e+00> : vector<64x128xf32>
    %100 = tpu.matmul %97, %99, %cst_98 {dimension_numbers = #tpu.dot_dimension_numbers<[1], [0], [0], [1], [0, 0, 1, 1], [], []>} : vector<64x96xf32>, vector<96x128xf32>, vector<64x128xf32> -> vector<64x128xf32>
    %c288 = arith.constant 288 : index
    %c0_99 = arith.constant 0 : index
    %101 = vector.load %arg6[%c288, %c0_99] : memref<960x96xf32, #tpu.memory_space<vmem>>, vector<64x96xf32>
    %c1_100 = arith.constant 1 : index
    %c0_101 = arith.constant 0 : index
    %c0_102 = arith.constant 0 : index
    %102 = vector.load %arg4[%c1_100, %c0_101, %c0_102] : memref<3x96x128xf32, #tpu.memory_space<vmem>>, vector<1x96x128xf32>
    %103 = vector.shape_cast %102 : vector<1x96x128xf32> to vector<96x128xf32>
    %cst_103 = arith.constant dense<0.000000e+00> : vector<64x128xf32>
    %104 = tpu.matmul %101, %103, %cst_103 {dimension_numbers = #tpu.dot_dimension_numbers<[1], [0], [0], [1], [0, 0, 1, 1], [], []>} : vector<64x96xf32>, vector<96x128xf32>, vector<64x128xf32> -> vector<64x128xf32>
    %105 = arith.addf %100, %104 : vector<64x128xf32>
    %c320 = arith.constant 320 : index
    %c0_104 = arith.constant 0 : index
    %106 = vector.load %arg6[%c320, %c0_104] : memref<960x96xf32, #tpu.memory_space<vmem>>, vector<64x96xf32>
    %c2_105 = arith.constant 2 : index
    %c0_106 = arith.constant 0 : index
    %c0_107 = arith.constant 0 : index
    %107 = vector.load %arg4[%c2_105, %c0_106, %c0_107] : memref<3x96x128xf32, #tpu.memory_space<vmem>>, vector<1x96x128xf32>
    %108 = vector.shape_cast %107 : vector<1x96x128xf32> to vector<96x128xf32>
    %cst_108 = arith.constant dense<0.000000e+00> : vector<64x128xf32>
    %109 = tpu.matmul %106, %108, %cst_108 {dimension_numbers = #tpu.dot_dimension_numbers<[1], [0], [0], [1], [0, 0, 1, 1], [], []>} : vector<64x96xf32>, vector<96x128xf32>, vector<64x128xf32> -> vector<64x128xf32>
    %110 = arith.addf %105, %109 : vector<64x128xf32>
    %c256_109 = arith.constant 256 : index
    %c0_110 = arith.constant 0 : index
    %111 = vector.load %arg5[%c256_109, %c0_110] : memref<896x128xf32, #tpu.memory_space<vmem>>, vector<64x128xf32>
    tpu.vector_store %arg5[%c256_109, %c0_110], %110 {strides = array<i32>} : memref<896x128xf32, #tpu.memory_space<vmem>>, vector<64x128xf32>,
    %c320_111 = arith.constant 320 : index
    %c0_112 = arith.constant 0 : index
    %112 = vector.load %arg6[%c320_111, %c0_112] : memref<960x96xf32, #tpu.memory_space<vmem>>, vector<64x96xf32>
    %c0_113 = arith.constant 0 : index
    %c0_114 = arith.constant 0 : index
    %c0_115 = arith.constant 0 : index
    %113 = vector.load %arg4[%c0_113, %c0_114, %c0_115] : memref<3x96x128xf32, #tpu.memory_space<vmem>>, vector<1x96x128xf32>
    %114 = vector.shape_cast %113 : vector<1x96x128xf32> to vector<96x128xf32>
    %cst_116 = arith.constant dense<0.000000e+00> : vector<64x128xf32>
    %115 = tpu.matmul %112, %114, %cst_116 {dimension_numbers = #tpu.dot_dimension_numbers<[1], [0], [0], [1], [0, 0, 1, 1], [], []>} : vector<64x96xf32>, vector<96x128xf32>, vector<64x128xf32> -> vector<64x128xf32>
    %c352 = arith.constant 352 : index
    %c0_117 = arith.constant 0 : index
    %116 = vector.load %arg6[%c352, %c0_117] : memref<960x96xf32, #tpu.memory_space<vmem>>, vector<64x96xf32>
    %c1_118 = arith.constant 1 : index
    %c0_119 = arith.constant 0 : index
    %c0_120 = arith.constant 0 : index
    %117 = vector.load %arg4[%c1_118, %c0_119, %c0_120] : memref<3x96x128xf32, #tpu.memory_space<vmem>>, vector<1x96x128xf32>
    %118 = vector.shape_cast %117 : vector<1x96x128xf32> to vector<96x128xf32>
    %cst_121 = arith.constant dense<0.000000e+00> : vector<64x128xf32>
    %119 = tpu.matmul %116, %118, %cst_121 {dimension_numbers = #tpu.dot_dimension_numbers<[1], [0], [0], [1], [0, 0, 1, 1], [], []>} : vector<64x96xf32>, vector<96x128xf32>, vector<64x128xf32> -> vector<64x128xf32>
    %120 = arith.addf %115, %119 : vector<64x128xf32>
    %c384 = arith.constant 384 : index
    %c0_122 = arith.constant 0 : index
    %121 = vector.load %arg6[%c384, %c0_122] : memref<960x96xf32, #tpu.memory_space<vmem>>, vector<64x96xf32>
    %c2_123 = arith.constant 2 : index
    %c0_124 = arith.constant 0 : index
    %c0_125 = arith.constant 0 : index
    %122 = vector.load %arg4[%c2_123, %c0_124, %c0_125] : memref<3x96x128xf32, #tpu.memory_space<vmem>>, vector<1x96x128xf32>
    %123 = vector.shape_cast %122 : vector<1x96x128xf32> to vector<96x128xf32>
    %cst_126 = arith.constant dense<0.000000e+00> : vector<64x128xf32>
    %124 = tpu.matmul %121, %123, %cst_126 {dimension_numbers = #tpu.dot_dimension_numbers<[1], [0], [0], [1], [0, 0, 1, 1], [], []>} : vector<64x96xf32>, vector<96x128xf32>, vector<64x128xf32> -> vector<64x128xf32>
    %125 = arith.addf %120, %124 : vector<64x128xf32>
    %c320_127 = arith.constant 320 : index
    %c0_128 = arith.constant 0 : index
    %126 = vector.load %arg5[%c320_127, %c0_128] : memref<896x128xf32, #tpu.memory_space<vmem>>, vector<64x128xf32>
    tpu.vector_store %arg5[%c320_127, %c0_128], %125 {strides = array<i32>} : memref<896x128xf32, #tpu.memory_space<vmem>>, vector<64x128xf32>,
    %c384_129 = arith.constant 384 : index
    %c0_130 = arith.constant 0 : index
    %127 = vector.load %arg6[%c384_129, %c0_130] : memref<960x96xf32, #tpu.memory_space<vmem>>, vector<64x96xf32>
    %c0_131 = arith.constant 0 : index
    %c0_132 = arith.constant 0 : index
    %c0_133 = arith.constant 0 : index
    %128 = vector.load %arg4[%c0_131, %c0_132, %c0_133] : memref<3x96x128xf32, #tpu.memory_space<vmem>>, vector<1x96x128xf32>
    %129 = vector.shape_cast %128 : vector<1x96x128xf32> to vector<96x128xf32>
    %cst_134 = arith.constant dense<0.000000e+00> : vector<64x128xf32>
    %130 = tpu.matmul %127, %129, %cst_134 {dimension_numbers = #tpu.dot_dimension_numbers<[1], [0], [0], [1], [0, 0, 1, 1], [], []>} : vector<64x96xf32>, vector<96x128xf32>, vector<64x128xf32> -> vector<64x128xf32>
    %c416 = arith.constant 416 : index
    %c0_135 = arith.constant 0 : index
    %131 = vector.load %arg6[%c416, %c0_135] : memref<960x96xf32, #tpu.memory_space<vmem>>, vector<64x96xf32>
    %c1_136 = arith.constant 1 : index
    %c0_137 = arith.constant 0 : index
    %c0_138 = arith.constant 0 : index
    %132 = vector.load %arg4[%c1_136, %c0_137, %c0_138] : memref<3x96x128xf32, #tpu.memory_space<vmem>>, vector<1x96x128xf32>
    %133 = vector.shape_cast %132 : vector<1x96x128xf32> to vector<96x128xf32>
    %cst_139 = arith.constant dense<0.000000e+00> : vector<64x128xf32>
    %134 = tpu.matmul %131, %133, %cst_139 {dimension_numbers = #tpu.dot_dimension_numbers<[1], [0], [0], [1], [0, 0, 1, 1], [], []>} : vector<64x96xf32>, vector<96x128xf32>, vector<64x128xf32> -> vector<64x128xf32>
    %135 = arith.addf %130, %134 : vector<64x128xf32>
    %c448 = arith.constant 448 : index
    %c0_140 = arith.constant 0 : index
    %136 = vector.load %arg6[%c448, %c0_140] : memref<960x96xf32, #tpu.memory_space<vmem>>, vector<64x96xf32>
    %c2_141 = arith.constant 2 : index
    %c0_142 = arith.constant 0 : index
    %c0_143 = arith.constant 0 : index
    %137 = vector.load %arg4[%c2_141, %c0_142, %c0_143] : memref<3x96x128xf32, #tpu.memory_space<vmem>>, vector<1x96x128xf32>
    %138 = vector.shape_cast %137 : vector<1x96x128xf32> to vector<96x128xf32>
    %cst_144 = arith.constant dense<0.000000e+00> : vector<64x128xf32>
    %139 = tpu.matmul %136, %138, %cst_144 {dimension_numbers = #tpu.dot_dimension_numbers<[1], [0], [0], [1], [0, 0, 1, 1], [], []>} : vector<64x96xf32>, vector<96x128xf32>, vector<64x128xf32> -> vector<64x128xf32>
    %140 = arith.addf %135, %139 : vector<64x128xf32>
    %c384_145 = arith.constant 384 : index
    %c0_146 = arith.constant 0 : index
    %141 = vector.load %arg5[%c384_145, %c0_146] : memref<896x128xf32, #tpu.memory_space<vmem>>, vector<64x128xf32>
    tpu.vector_store %arg5[%c384_145, %c0_146], %140 {strides = array<i32>} : memref<896x128xf32, #tpu.memory_space<vmem>>, vector<64x128xf32>,
    %c448_147 = arith.constant 448 : index
    %c0_148 = arith.constant 0 : index
    %142 = vector.load %arg6[%c448_147, %c0_148] : memref<960x96xf32, #tpu.memory_space<vmem>>, vector<64x96xf32>
    %c0_149 = arith.constant 0 : index
    %c0_150 = arith.constant 0 : index
    %c0_151 = arith.constant 0 : index
    %143 = vector.load %arg4[%c0_149, %c0_150, %c0_151] : memref<3x96x128xf32, #tpu.memory_space<vmem>>, vector<1x96x128xf32>
    %144 = vector.shape_cast %143 : vector<1x96x128xf32> to vector<96x128xf32>
    %cst_152 = arith.constant dense<0.000000e+00> : vector<64x128xf32>
    %145 = tpu.matmul %142, %144, %cst_152 {dimension_numbers = #tpu.dot_dimension_numbers<[1], [0], [0], [1], [0, 0, 1, 1], [], []>} : vector<64x96xf32>, vector<96x128xf32>, vector<64x128xf32> -> vector<64x128xf32>
    %c480 = arith.constant 480 : index
    %c0_153 = arith.constant 0 : index
    %146 = vector.load %arg6[%c480, %c0_153] : memref<960x96xf32, #tpu.memory_space<vmem>>, vector<64x96xf32>
    %c1_154 = arith.constant 1 : index
    %c0_155 = arith.constant 0 : index
    %c0_156 = arith.constant 0 : index
    %147 = vector.load %arg4[%c1_154, %c0_155, %c0_156] : memref<3x96x128xf32, #tpu.memory_space<vmem>>, vector<1x96x128xf32>
    %148 = vector.shape_cast %147 : vector<1x96x128xf32> to vector<96x128xf32>
    %cst_157 = arith.constant dense<0.000000e+00> : vector<64x128xf32>
    %149 = tpu.matmul %146, %148, %cst_157 {dimension_numbers = #tpu.dot_dimension_numbers<[1], [0], [0], [1], [0, 0, 1, 1], [], []>} : vector<64x96xf32>, vector<96x128xf32>, vector<64x128xf32> -> vector<64x128xf32>
    %150 = arith.addf %145, %149 : vector<64x128xf32>
    %c512 = arith.constant 512 : index
    %c0_158 = arith.constant 0 : index
    %151 = vector.load %arg6[%c512, %c0_158] : memref<960x96xf32, #tpu.memory_space<vmem>>, vector<64x96xf32>
    %c2_159 = arith.constant 2 : index
    %c0_160 = arith.constant 0 : index
    %c0_161 = arith.constant 0 : index
    %152 = vector.load %arg4[%c2_159, %c0_160, %c0_161] : memref<3x96x128xf32, #tpu.memory_space<vmem>>, vector<1x96x128xf32>
    %153 = vector.shape_cast %152 : vector<1x96x128xf32> to vector<96x128xf32>
    %cst_162 = arith.constant dense<0.000000e+00> : vector<64x128xf32>
    %154 = tpu.matmul %151, %153, %cst_162 {dimension_numbers = #tpu.dot_dimension_numbers<[1], [0], [0], [1], [0, 0, 1, 1], [], []>} : vector<64x96xf32>, vector<96x128xf32>, vector<64x128xf32> -> vector<64x128xf32>
    %155 = arith.addf %150, %154 : vector<64x128xf32>
    %c448_163 = arith.constant 448 : index
    %c0_164 = arith.constant 0 : index
    %156 = vector.load %arg5[%c448_163, %c0_164] : memref<896x128xf32, #tpu.memory_space<vmem>>, vector<64x128xf32>
    tpu.vector_store %arg5[%c448_163, %c0_164], %155 {strides = array<i32>} : memref<896x128xf32, #tpu.memory_space<vmem>>, vector<64x128xf32>,
    %c512_165 = arith.constant 512 : index
    %c0_166 = arith.constant 0 : index
    %157 = vector.load %arg6[%c512_165, %c0_166] : memref<960x96xf32, #tpu.memory_space<vmem>>, vector<64x96xf32>
    %c0_167 = arith.constant 0 : index
    %c0_168 = arith.constant 0 : index
    %c0_169 = arith.constant 0 : index
    %158 = vector.load %arg4[%c0_167, %c0_168, %c0_169] : memref<3x96x128xf32, #tpu.memory_space<vmem>>, vector<1x96x128xf32>
    %159 = vector.shape_cast %158 : vector<1x96x128xf32> to vector<96x128xf32>
    %cst_170 = arith.constant dense<0.000000e+00> : vector<64x128xf32>
    %160 = tpu.matmul %157, %159, %cst_170 {dimension_numbers = #tpu.dot_dimension_numbers<[1], [0], [0], [1], [0, 0, 1, 1], [], []>} : vector<64x96xf32>, vector<96x128xf32>, vector<64x128xf32> -> vector<64x128xf32>
    %c544 = arith.constant 544 : index
    %c0_171 = arith.constant 0 : index
    %161 = vector.load %arg6[%c544, %c0_171] : memref<960x96xf32, #tpu.memory_space<vmem>>, vector<64x96xf32>
    %c1_172 = arith.constant 1 : index
    %c0_173 = arith.constant 0 : index
    %c0_174 = arith.constant 0 : index
    %162 = vector.load %arg4[%c1_172, %c0_173, %c0_174] : memref<3x96x128xf32, #tpu.memory_space<vmem>>, vector<1x96x128xf32>
    %163 = vector.shape_cast %162 : vector<1x96x128xf32> to vector<96x128xf32>
    %cst_175 = arith.constant dense<0.000000e+00> : vector<64x128xf32>
    %164 = tpu.matmul %161, %163, %cst_175 {dimension_numbers = #tpu.dot_dimension_numbers<[1], [0], [0], [1], [0, 0, 1, 1], [], []>} : vector<64x96xf32>, vector<96x128xf32>, vector<64x128xf32> -> vector<64x128xf32>
    %165 = arith.addf %160, %164 : vector<64x128xf32>
    %c576 = arith.constant 576 : index
    %c0_176 = arith.constant 0 : index
    %166 = vector.load %arg6[%c576, %c0_176] : memref<960x96xf32, #tpu.memory_space<vmem>>, vector<64x96xf32>
    %c2_177 = arith.constant 2 : index
    %c0_178 = arith.constant 0 : index
    %c0_179 = arith.constant 0 : index
    %167 = vector.load %arg4[%c2_177, %c0_178, %c0_179] : memref<3x96x128xf32, #tpu.memory_space<vmem>>, vector<1x96x128xf32>
    %168 = vector.shape_cast %167 : vector<1x96x128xf32> to vector<96x128xf32>
    %cst_180 = arith.constant dense<0.000000e+00> : vector<64x128xf32>
    %169 = tpu.matmul %166, %168, %cst_180 {dimension_numbers = #tpu.dot_dimension_numbers<[1], [0], [0], [1], [0, 0, 1, 1], [], []>} : vector<64x96xf32>, vector<96x128xf32>, vector<64x128xf32> -> vector<64x128xf32>
    %170 = arith.addf %165, %169 : vector<64x128xf32>
    %c512_181 = arith.constant 512 : index
    %c0_182 = arith.constant 0 : index
    %171 = vector.load %arg5[%c512_181, %c0_182] : memref<896x128xf32, #tpu.memory_space<vmem>>, vector<64x128xf32>
    tpu.vector_store %arg5[%c512_181, %c0_182], %170 {strides = array<i32>} : memref<896x128xf32, #tpu.memory_space<vmem>>, vector<64x128xf32>,
    %c576_183 = arith.constant 576 : index
    %c0_184 = arith.constant 0 : index
    %172 = vector.load %arg6[%c576_183, %c0_184] : memref<960x96xf32, #tpu.memory_space<vmem>>, vector<64x96xf32>
    %c0_185 = arith.constant 0 : index
    %c0_186 = arith.constant 0 : index
    %c0_187 = arith.constant 0 : index
    %173 = vector.load %arg4[%c0_185, %c0_186, %c0_187] : memref<3x96x128xf32, #tpu.memory_space<vmem>>, vector<1x96x128xf32>
    %174 = vector.shape_cast %173 : vector<1x96x128xf32> to vector<96x128xf32>
    %cst_188 = arith.constant dense<0.000000e+00> : vector<64x128xf32>
    %175 = tpu.matmul %172, %174, %cst_188 {dimension_numbers = #tpu.dot_dimension_numbers<[1], [0], [0], [1], [0, 0, 1, 1], [], []>} : vector<64x96xf32>, vector<96x128xf32>, vector<64x128xf32> -> vector<64x128xf32>
    %c608 = arith.constant 608 : index
    %c0_189 = arith.constant 0 : index
    %176 = vector.load %arg6[%c608, %c0_189] : memref<960x96xf32, #tpu.memory_space<vmem>>, vector<64x96xf32>
    %c1_190 = arith.constant 1 : index
    %c0_191 = arith.constant 0 : index
    %c0_192 = arith.constant 0 : index
    %177 = vector.load %arg4[%c1_190, %c0_191, %c0_192] : memref<3x96x128xf32, #tpu.memory_space<vmem>>, vector<1x96x128xf32>
    %178 = vector.shape_cast %177 : vector<1x96x128xf32> to vector<96x128xf32>
    %cst_193 = arith.constant dense<0.000000e+00> : vector<64x128xf32>
    %179 = tpu.matmul %176, %178, %cst_193 {dimension_numbers = #tpu.dot_dimension_numbers<[1], [0], [0], [1], [0, 0, 1, 1], [], []>} : vector<64x96xf32>, vector<96x128xf32>, vector<64x128xf32> -> vector<64x128xf32>
    %180 = arith.addf %175, %179 : vector<64x128xf32>
    %c640 = arith.constant 640 : index
    %c0_194 = arith.constant 0 : index
    %181 = vector.load %arg6[%c640, %c0_194] : memref<960x96xf32, #tpu.memory_space<vmem>>, vector<64x96xf32>
    %c2_195 = arith.constant 2 : index
    %c0_196 = arith.constant 0 : index
    %c0_197 = arith.constant 0 : index
    %182 = vector.load %arg4[%c2_195, %c0_196, %c0_197] : memref<3x96x128xf32, #tpu.memory_space<vmem>>, vector<1x96x128xf32>
    %183 = vector.shape_cast %182 : vector<1x96x128xf32> to vector<96x128xf32>
    %cst_198 = arith.constant dense<0.000000e+00> : vector<64x128xf32>
    %184 = tpu.matmul %181, %183, %cst_198 {dimension_numbers = #tpu.dot_dimension_numbers<[1], [0], [0], [1], [0, 0, 1, 1], [], []>} : vector<64x96xf32>, vector<96x128xf32>, vector<64x128xf32> -> vector<64x128xf32>
    %185 = arith.addf %180, %184 : vector<64x128xf32>
    %c576_199 = arith.constant 576 : index
    %c0_200 = arith.constant 0 : index
    %186 = vector.load %arg5[%c576_199, %c0_200] : memref<896x128xf32, #tpu.memory_space<vmem>>, vector<64x128xf32>
    tpu.vector_store %arg5[%c576_199, %c0_200], %185 {strides = array<i32>} : memref<896x128xf32, #tpu.memory_space<vmem>>, vector<64x128xf32>,
    %c640_201 = arith.constant 640 : index
    %c0_202 = arith.constant 0 : index
    %187 = vector.load %arg6[%c640_201, %c0_202] : memref<960x96xf32, #tpu.memory_space<vmem>>, vector<64x96xf32>
    %c0_203 = arith.constant 0 : index
    %c0_204 = arith.constant 0 : index
    %c0_205 = arith.constant 0 : index
    %188 = vector.load %arg4[%c0_203, %c0_204, %c0_205] : memref<3x96x128xf32, #tpu.memory_space<vmem>>, vector<1x96x128xf32>
    %189 = vector.shape_cast %188 : vector<1x96x128xf32> to vector<96x128xf32>
    %cst_206 = arith.constant dense<0.000000e+00> : vector<64x128xf32>
    %190 = tpu.matmul %187, %189, %cst_206 {dimension_numbers = #tpu.dot_dimension_numbers<[1], [0], [0], [1], [0, 0, 1, 1], [], []>} : vector<64x96xf32>, vector<96x128xf32>, vector<64x128xf32> -> vector<64x128xf32>
    %c672 = arith.constant 672 : index
    %c0_207 = arith.constant 0 : index
    %191 = vector.load %arg6[%c672, %c0_207] : memref<960x96xf32, #tpu.memory_space<vmem>>, vector<64x96xf32>
    %c1_208 = arith.constant 1 : index
    %c0_209 = arith.constant 0 : index
    %c0_210 = arith.constant 0 : index
    %192 = vector.load %arg4[%c1_208, %c0_209, %c0_210] : memref<3x96x128xf32, #tpu.memory_space<vmem>>, vector<1x96x128xf32>
    %193 = vector.shape_cast %192 : vector<1x96x128xf32> to vector<96x128xf32>
    %cst_211 = arith.constant dense<0.000000e+00> : vector<64x128xf32>
    %194 = tpu.matmul %191, %193, %cst_211 {dimension_numbers = #tpu.dot_dimension_numbers<[1], [0], [0], [1], [0, 0, 1, 1], [], []>} : vector<64x96xf32>, vector<96x128xf32>, vector<64x128xf32> -> vector<64x128xf32>
    %195 = arith.addf %190, %194 : vector<64x128xf32>
    %c704 = arith.constant 704 : index
    %c0_212 = arith.constant 0 : index
    %196 = vector.load %arg6[%c704, %c0_212] : memref<960x96xf32, #tpu.memory_space<vmem>>, vector<64x96xf32>
    %c2_213 = arith.constant 2 : index
    %c0_214 = arith.constant 0 : index
    %c0_215 = arith.constant 0 : index
    %197 = vector.load %arg4[%c2_213, %c0_214, %c0_215] : memref<3x96x128xf32, #tpu.memory_space<vmem>>, vector<1x96x128xf32>
    %198 = vector.shape_cast %197 : vector<1x96x128xf32> to vector<96x128xf32>
    %cst_216 = arith.constant dense<0.000000e+00> : vector<64x128xf32>
    %199 = tpu.matmul %196, %198, %cst_216 {dimension_numbers = #tpu.dot_dimension_numbers<[1], [0], [0], [1], [0, 0, 1, 1], [], []>} : vector<64x96xf32>, vector<96x128xf32>, vector<64x128xf32> -> vector<64x128xf32>
    %200 = arith.addf %195, %199 : vector<64x128xf32>
    %c640_217 = arith.constant 640 : index
    %c0_218 = arith.constant 0 : index
    %201 = vector.load %arg5[%c640_217, %c0_218] : memref<896x128xf32, #tpu.memory_space<vmem>>, vector<64x128xf32>
    tpu.vector_store %arg5[%c640_217, %c0_218], %200 {strides = array<i32>} : memref<896x128xf32, #tpu.memory_space<vmem>>, vector<64x128xf32>,
    %c704_219 = arith.constant 704 : index
    %c0_220 = arith.constant 0 : index
    %202 = vector.load %arg6[%c704_219, %c0_220] : memref<960x96xf32, #tpu.memory_space<vmem>>, vector<64x96xf32>
    %c0_221 = arith.constant 0 : index
    %c0_222 = arith.constant 0 : index
    %c0_223 = arith.constant 0 : index
    %203 = vector.load %arg4[%c0_221, %c0_222, %c0_223] : memref<3x96x128xf32, #tpu.memory_space<vmem>>, vector<1x96x128xf32>
    %204 = vector.shape_cast %203 : vector<1x96x128xf32> to vector<96x128xf32>
    %cst_224 = arith.constant dense<0.000000e+00> : vector<64x128xf32>
    %205 = tpu.matmul %202, %204, %cst_224 {dimension_numbers = #tpu.dot_dimension_numbers<[1], [0], [0], [1], [0, 0, 1, 1], [], []>} : vector<64x96xf32>, vector<96x128xf32>, vector<64x128xf32> -> vector<64x128xf32>
    %c736 = arith.constant 736 : index
    %c0_225 = arith.constant 0 : index
    %206 = vector.load %arg6[%c736, %c0_225] : memref<960x96xf32, #tpu.memory_space<vmem>>, vector<64x96xf32>
    %c1_226 = arith.constant 1 : index
    %c0_227 = arith.constant 0 : index
    %c0_228 = arith.constant 0 : index
    %207 = vector.load %arg4[%c1_226, %c0_227, %c0_228] : memref<3x96x128xf32, #tpu.memory_space<vmem>>, vector<1x96x128xf32>
    %208 = vector.shape_cast %207 : vector<1x96x128xf32> to vector<96x128xf32>
    %cst_229 = arith.constant dense<0.000000e+00> : vector<64x128xf32>
    %209 = tpu.matmul %206, %208, %cst_229 {dimension_numbers = #tpu.dot_dimension_numbers<[1], [0], [0], [1], [0, 0, 1, 1], [], []>} : vector<64x96xf32>, vector<96x128xf32>, vector<64x128xf32> -> vector<64x128xf32>
    %210 = arith.addf %205, %209 : vector<64x128xf32>
    %c768 = arith.constant 768 : index
    %c0_230 = arith.constant 0 : index
    %211 = vector.load %arg6[%c768, %c0_230] : memref<960x96xf32, #tpu.memory_space<vmem>>, vector<64x96xf32>
    %c2_231 = arith.constant 2 : index
    %c0_232 = arith.constant 0 : index
    %c0_233 = arith.constant 0 : index
    %212 = vector.load %arg4[%c2_231, %c0_232, %c0_233] : memref<3x96x128xf32, #tpu.memory_space<vmem>>, vector<1x96x128xf32>
    %213 = vector.shape_cast %212 : vector<1x96x128xf32> to vector<96x128xf32>
    %cst_234 = arith.constant dense<0.000000e+00> : vector<64x128xf32>
    %214 = tpu.matmul %211, %213, %cst_234 {dimension_numbers = #tpu.dot_dimension_numbers<[1], [0], [0], [1], [0, 0, 1, 1], [], []>} : vector<64x96xf32>, vector<96x128xf32>, vector<64x128xf32> -> vector<64x128xf32>
    %215 = arith.addf %210, %214 : vector<64x128xf32>
    %c704_235 = arith.constant 704 : index
    %c0_236 = arith.constant 0 : index
    %216 = vector.load %arg5[%c704_235, %c0_236] : memref<896x128xf32, #tpu.memory_space<vmem>>, vector<64x128xf32>
    tpu.vector_store %arg5[%c704_235, %c0_236], %215 {strides = array<i32>} : memref<896x128xf32, #tpu.memory_space<vmem>>, vector<64x128xf32>,
    %c768_237 = arith.constant 768 : index
    %c0_238 = arith.constant 0 : index
    %217 = vector.load %arg6[%c768_237, %c0_238] : memref<960x96xf32, #tpu.memory_space<vmem>>, vector<64x96xf32>
    %c0_239 = arith.constant 0 : index
    %c0_240 = arith.constant 0 : index
    %c0_241 = arith.constant 0 : index
    %218 = vector.load %arg4[%c0_239, %c0_240, %c0_241] : memref<3x96x128xf32, #tpu.memory_space<vmem>>, vector<1x96x128xf32>
    %219 = vector.shape_cast %218 : vector<1x96x128xf32> to vector<96x128xf32>
    %cst_242 = arith.constant dense<0.000000e+00> : vector<64x128xf32>
    %220 = tpu.matmul %217, %219, %cst_242 {dimension_numbers = #tpu.dot_dimension_numbers<[1], [0], [0], [1], [0, 0, 1, 1], [], []>} : vector<64x96xf32>, vector<96x128xf32>, vector<64x128xf32> -> vector<64x128xf32>
    %c800 = arith.constant 800 : index
    %c0_243 = arith.constant 0 : index
    %221 = vector.load %arg6[%c800, %c0_243] : memref<960x96xf32, #tpu.memory_space<vmem>>, vector<64x96xf32>
    %c1_244 = arith.constant 1 : index
    %c0_245 = arith.constant 0 : index
    %c0_246 = arith.constant 0 : index
    %222 = vector.load %arg4[%c1_244, %c0_245, %c0_246] : memref<3x96x128xf32, #tpu.memory_space<vmem>>, vector<1x96x128xf32>
    %223 = vector.shape_cast %222 : vector<1x96x128xf32> to vector<96x128xf32>
    %cst_247 = arith.constant dense<0.000000e+00> : vector<64x128xf32>
    %224 = tpu.matmul %221, %223, %cst_247 {dimension_numbers = #tpu.dot_dimension_numbers<[1], [0], [0], [1], [0, 0, 1, 1], [], []>} : vector<64x96xf32>, vector<96x128xf32>, vector<64x128xf32> -> vector<64x128xf32>
    %225 = arith.addf %220, %224 : vector<64x128xf32>
    %c832 = arith.constant 832 : index
    %c0_248 = arith.constant 0 : index
    %226 = vector.load %arg6[%c832, %c0_248] : memref<960x96xf32, #tpu.memory_space<vmem>>, vector<64x96xf32>
    %c2_249 = arith.constant 2 : index
    %c0_250 = arith.constant 0 : index
    %c0_251 = arith.constant 0 : index
    %227 = vector.load %arg4[%c2_249, %c0_250, %c0_251] : memref<3x96x128xf32, #tpu.memory_space<vmem>>, vector<1x96x128xf32>
    %228 = vector.shape_cast %227 : vector<1x96x128xf32> to vector<96x128xf32>
    %cst_252 = arith.constant dense<0.000000e+00> : vector<64x128xf32>
    %229 = tpu.matmul %226, %228, %cst_252 {dimension_numbers = #tpu.dot_dimension_numbers<[1], [0], [0], [1], [0, 0, 1, 1], [], []>} : vector<64x96xf32>, vector<96x128xf32>, vector<64x128xf32> -> vector<64x128xf32>
    %230 = arith.addf %225, %229 : vector<64x128xf32>
    %c768_253 = arith.constant 768 : index
    %c0_254 = arith.constant 0 : index
    %231 = vector.load %arg5[%c768_253, %c0_254] : memref<896x128xf32, #tpu.memory_space<vmem>>, vector<64x128xf32>
    tpu.vector_store %arg5[%c768_253, %c0_254], %230 {strides = array<i32>} : memref<896x128xf32, #tpu.memory_space<vmem>>, vector<64x128xf32>,
    %c832_255 = arith.constant 832 : index
    %c0_256 = arith.constant 0 : index
    %232 = vector.load %arg6[%c832_255, %c0_256] : memref<960x96xf32, #tpu.memory_space<vmem>>, vector<64x96xf32>
    %c0_257 = arith.constant 0 : index
    %c0_258 = arith.constant 0 : index
    %c0_259 = arith.constant 0 : index
    %233 = vector.load %arg4[%c0_257, %c0_258, %c0_259] : memref<3x96x128xf32, #tpu.memory_space<vmem>>, vector<1x96x128xf32>
    %234 = vector.shape_cast %233 : vector<1x96x128xf32> to vector<96x128xf32>
    %cst_260 = arith.constant dense<0.000000e+00> : vector<64x128xf32>
    %235 = tpu.matmul %232, %234, %cst_260 {dimension_numbers = #tpu.dot_dimension_numbers<[1], [0], [0], [1], [0, 0, 1, 1], [], []>} : vector<64x96xf32>, vector<96x128xf32>, vector<64x128xf32> -> vector<64x128xf32>
    %c864 = arith.constant 864 : index
    %c0_261 = arith.constant 0 : index
    %236 = vector.load %arg6[%c864, %c0_261] : memref<960x96xf32, #tpu.memory_space<vmem>>, vector<64x96xf32>
    %c1_262 = arith.constant 1 : index
    %c0_263 = arith.constant 0 : index
    %c0_264 = arith.constant 0 : index
    %237 = vector.load %arg4[%c1_262, %c0_263, %c0_264] : memref<3x96x128xf32, #tpu.memory_space<vmem>>, vector<1x96x128xf32>
    %238 = vector.shape_cast %237 : vector<1x96x128xf32> to vector<96x128xf32>
    %cst_265 = arith.constant dense<0.000000e+00> : vector<64x128xf32>
    %239 = tpu.matmul %236, %238, %cst_265 {dimension_numbers = #tpu.dot_dimension_numbers<[1], [0], [0], [1], [0, 0, 1, 1], [], []>} : vector<64x96xf32>, vector<96x128xf32>, vector<64x128xf32> -> vector<64x128xf32>
    %240 = arith.addf %235, %239 : vector<64x128xf32>
    %c896 = arith.constant 896 : index
    %c0_266 = arith.constant 0 : index
    %241 = vector.load %arg6[%c896, %c0_266] : memref<960x96xf32, #tpu.memory_space<vmem>>, vector<64x96xf32>
    %c2_267 = arith.constant 2 : index
    %c0_268 = arith.constant 0 : index
    %c0_269 = arith.constant 0 : index
    %242 = vector.load %arg4[%c2_267, %c0_268, %c0_269] : memref<3x96x128xf32, #tpu.memory_space<vmem>>, vector<1x96x128xf32>
    %243 = vector.shape_cast %242 : vector<1x96x128xf32> to vector<96x128xf32>
    %cst_270 = arith.constant dense<0.000000e+00> : vector<64x128xf32>
    %244 = tpu.matmul %241, %243, %cst_270 {dimension_numbers = #tpu.dot_dimension_numbers<[1], [0], [0], [1], [0, 0, 1, 1], [], []>} : vector<64x96xf32>, vector<96x128xf32>, vector<64x128xf32> -> vector<64x128xf32>
    %245 = arith.addf %240, %244 : vector<64x128xf32>
    %c832_271 = arith.constant 832 : index
    %c0_272 = arith.constant 0 : index
    %246 = vector.load %arg5[%c832_271, %c0_272] : memref<896x128xf32, #tpu.memory_space<vmem>>, vector<64x128xf32>
    tpu.vector_store %arg5[%c832_271, %c0_272], %245 {strides = array<i32>} : memref<896x128xf32, #tpu.memory_space<vmem>>, vector<64x128xf32>,
    return
  }
  func.func @transform_0(%arg0: i32) -> (i32, i32, i32) {
    %c0_i32 = arith.constant 0 : i32
    %c0_i32_0 = arith.constant 0 : i32
    %c0_i32_1 = arith.constant 0 : i32
    %c0_i32_2 = arith.constant 0 : i32
    return %c0_i32, %c0_i32_0, %c0_i32_1 : i32, i32, i32
  }
  func.func @transform_1(%arg0: i32) -> (i32, i32, i32) {
    %c0_i32 = arith.constant 0 : i32
    %c0_i32_0 = arith.constant 0 : i32
    %c0_i32_1 = arith.constant 0 : i32
    %c0_i32_2 = arith.constant 0 : i32
    return %c0_i32, %c0_i32_0, %c0_i32_1 : i32, i32, i32
  }
  func.func @transform_2(%arg0: i32) -> (i32, i32, i32) {
    %c0_i32 = arith.constant 0 : i32
    %c0_i32_0 = arith.constant 0 : i32
    %c0_i32_1 = arith.constant 0 : i32
    %c0_i32_2 = arith.constant 0 : i32
    return %c0_i32, %c0_i32_0, %c0_i32_1 : i32, i32, i32
  }
  func.func @transform_3(%arg0: i32) -> (i32, i32, i32) {
    %c0_i32 = arith.constant 0 : i32
    %c0_i32_0 = arith.constant 0 : i32
    %c0_i32_1 = arith.constant 0 : i32
    %c0_i32_2 = arith.constant 0 : i32
    return %c0_i32, %c0_i32_0, %c0_i32_1 : i32, i32, i32
  }
  func.func @transform_4(%arg0: i32) -> (i32, i32) {
    %c0_i32 = arith.constant 0 : i32
    %c0_i32_0 = arith.constant 0 : i32
    return %arg0, %c0_i32 : i32, i32
  }
}

</mosaic_0001>

<bundles_post_ra>
// kernel: bn_relu_conv.1
= control target key start
LH: loop header
LB: loop body
LE: loop exit
PB: predicated region body
PF: predicated region fallthrough
CT: control target
= control target key end

     0   :  { %vm129_vm0 = vcmask 261120   ;;  %vm1514_vm1 = vcmask 785408   ;;  %s12174_s16 = smov 32   ;;  %s12175_s28 = smov 64   ;;  %vm2083_vm4 = vcmask 523520   ;;  %vm2644_vm5 = vcmask 785920   ;;  %s19267_s0 = inlined_call_operand.vmem [shape: f32[28,32,32], index: 0, kind: input, shape index: {}]   ;;  %s19268_s3 = inlined_call_operand.vmem [shape: f32[3,96,128], index: 3, kind: input, shape index: {}]   ;;  %s19269_s1 = inlined_call_operand.vmem [shape: f32[1,32,32], index: 1, kind: input, shape index: {}]   ;;  %s19270_s2 = inlined_call_operand.vmem [shape: f32[1,32,32], index: 2, kind: input, shape index: {}]   ;;  %s19271_s4 = inlined_call_operand.vmem [shape: f32[896,128], index: 4, kind: output, shape index: {}]  }
   0x1   :  { %v12204_v0 = vld [vmem:[%s19267_s0] sm:$0xff]  ;;  %v12209_v1 = vld [vmem:[%s19267_s0 + $0x8] sm:$0xff]  ;;  %v12214_v2 = vld [vmem:[%s19267_s0 + $0x10] sm:$0xff] }
   0x2   :  { %v12219_v3 = vld [vmem:[%s19267_s0 + $0x18] sm:$0xff]  ;;  %v130_v4 = vsel %vm129_vm0, %v12204_v0, 0.0  ;;  %v131_v5 = vsel %vm129_vm0, %v12209_v1, 0.0  ;;  %v133_v6 = vsel %vm129_vm0, %v12214_v2, 0.0  ;;  %v12230_v7 = vld [vmem:[%s19267_s0 + $0x20] sm:$0xff]  ;;  %v12237_v10 = vld [vmem:[%s19267_s0 + $0x28] sm:$0xff] }
   0x3   :  { %v132_v8 = vadd.f32 %v131_v5, %v130_v4  ;;  %v135_v9 = vsel %vm129_vm0, %v12219_v3, 0.0  ;;  %v137_v12 = vsel %vm129_vm0, %v12230_v7, 0.0  ;;  %v12244_v13 = vld [vmem:[%s19267_s0 + $0x30] sm:$0xff]  ;;  %v139_v15 = vsel %vm129_vm0, %v12237_v10, 0.0  ;;  %v12251_v16 = vld [vmem:[%s19267_s0 + $0x38] sm:$0xff]  ;;  %v12258_v19 = vld [vmem:[%s19267_s0 + $0x40] sm:$0xff] }
   0x4   :  { %v141_v18 = vsel %vm129_vm0, %v12244_v13, 0.0  ;;  %v143_v21 = vsel %vm129_vm0, %v12251_v16, 0.0  ;;  %v12265_v22 = vld [vmem:[%s19267_s0 + $0x48] sm:$0xff]  ;;  %v145_v24 = vsel %vm129_vm0, %v12258_v19, 0.0  ;;  %v12272_v25 = vld [vmem:[%s19267_s0 + $0x50] sm:$0xff]  ;;  %v12279_v28 = vld [vmem:[%s19267_s0 + $0x58] sm:$0xff] }
   0x5   :  { %v134_v11 = vadd.f32 %v133_v6, %v132_v8  ;;  %v147_v27 = vsel %vm129_vm0, %v12265_v22, 0.0  ;;  %v149_v30 = vsel %vm129_vm0, %v12272_v25, 0.0  ;;  %v12286_v31 = vld [vmem:[%s19267_s0 + $0x60] sm:$0xff]  ;;  %v151_v33 = vsel %vm129_vm0, %v12279_v28, 0.0  ;;  %v12293_v34 = vld [vmem:[%s19267_s0 + $0x68] sm:$0xff]  ;;  %v12300_v37 = vld [vmem:[%s19267_s0 + $0x70] sm:$0xff] }
   0x6   :  { %v153_v36 = vsel %vm129_vm0, %v12286_v31, 0.0  ;;  %v155_v39 = vsel %vm129_vm0, %v12293_v34, 0.0  ;;  %v12307_v40 = vld [vmem:[%s19267_s0 + $0x78] sm:$0xff]  ;;  %v157_v42 = vsel %vm129_vm0, %v12300_v37, 0.0  ;;  %v12314_v43 = vld [vmem:[%s19267_s0 + $0x80] sm:$0xff]  ;;  %v12321_v46 = vld [vmem:[%s19267_s0 + $0x88] sm:$0xff] }
   0x7   :  { %v136_v14 = vadd.f32 %v135_v9, %v134_v11  ;;  %v159_v45 = vsel %vm129_vm0, %v12307_v40, 0.0  ;;  %v161_v48 = vsel %vm129_vm0, %v12314_v43, 0.0  ;;  %v12328_v49 = vld [vmem:[%s19267_s0 + $0x90] sm:$0xff]  ;;  %v163_v51 = vsel %vm129_vm0, %v12321_v46, 0.0  ;;  %v12335_v52 = vld [vmem:[%s19267_s0 + $0x98] sm:$0xff]  ;;  %v12342_v55 = vld [vmem:[%s19267_s0 + $0xa0] sm:$0xff] }
   0x8   :  { %v165_v54 = vsel %vm129_vm0, %v12328_v49, 0.0  ;;  %v167_v57 = vsel %vm129_vm0, %v12335_v52, 0.0  ;;  %v12349_v58 = vld [vmem:[%s19267_s0 + $0xa8] sm:$0xff]  ;;  %v169_v60 = vsel %vm129_vm0, %v12342_v55, 0.0  ;;  %v12356_v61 = vld [vmem:[%s19267_s0 + $0xb0] sm:$0xff]  ;;  %v12363_v4 = vld [vmem:[%s19267_s0 + $0xb8] sm:$0xff] }
   0x9   :  { %v138_v17 = vadd.f32 %v137_v12, %v136_v14  ;;  %v171_v63 = vsel %vm129_vm0, %v12349_v58, 0.0  ;;  %v173_v6 = vsel %vm129_vm0, %v12356_v61, 0.0  ;;  %v12370_v8 = vld [vmem:[%s19267_s0 + $0xc0] sm:$0xff]  ;;  %v175_v11 = vsel %vm129_vm0, %v12363_v4, 0.0  ;;  %v12377_v12 = vld [vmem:[%s19267_s0 + $0xc8] sm:$0xff] }
   0xb   :  { %v140_v20 = vadd.f32 %v139_v15, %v138_v17  ;;  %v177_v15 = vsel %vm129_vm0, %v12370_v8, 0.0  ;;  %v12384_v17 = vld [vmem:[%s19267_s0 + $0xd0] sm:$0xff] }
   0xd   :  { %v142_v23 = vadd.f32 %v141_v18, %v140_v20  ;;  %v179_v20 = vsel %vm129_vm0, %v12377_v12, 0.0 }
   0xf   :  { %v144_v26 = vadd.f32 %v143_v21, %v142_v23  ;;  %v12391_v21 = vld [vmem:[%s19267_s0 + $0xd8] sm:$0xff] }
  0x11   :  { %v146_v29 = vadd.f32 %v145_v24, %v144_v26  ;;  %v181_v24 = vsel %vm129_vm0, %v12384_v17, 0.0  ;;  %v359_v26 = vmul.f32 %v12204_v0, %v12204_v0  ;;  %v12413_v0 = vld [vmem:[%s19267_s0 + $0xe8] sm:$0xff] }
  0x13   :  { %v148_v32 = vadd.f32 %v147_v27, %v146_v29  ;;  %v360_v27 = vmul.f32 %v12209_v1, %v12209_v1  ;;  %v361_v29 = vmul.f32 %v12214_v2, %v12214_v2  ;;  %v363_v2 = vmul.f32 %v12230_v7, %v12230_v7 }
  0x14   :  { %v364_v7 = vmul.f32 %v12237_v10, %v12237_v10  ;;  %v12445_v10 = vld [vmem:[%s19267_s0 + $0x100] sm:$0xff] }
  0x15   :  { %v150_v35 = vadd.f32 %v149_v30, %v148_v32  ;;  %v12404_v30 = vld [vmem:[%s19267_s0 + $0xe0] sm:$0xff] }
  0x17   :  { %v152_v38 = vadd.f32 %v151_v33, %v150_v35  ;;  %v183_v33 = vsel %vm129_vm0, %v12391_v21, 0.0  ;;  %v362_v35 = vmul.f32 %v12219_v3, %v12219_v3  ;;  %v12425_v3 = vld [vmem:[%s19267_s0 + $0xf0] sm:$0xff] }
  0x19   :  { %v154_v41 = vadd.f32 %v153_v36, %v152_v38  ;;  %v185_v36 = vsel %vm129_vm0, %v12404_v30, 0.0  ;;  %v471_v38 = vsel %vm129_vm0, %v359_v26, 0.0 }
  0x1b   :  { %v156_v44 = vadd.f32 %v155_v39, %v154_v41  ;;  %v472_v39 = vsel %vm129_vm0, %v360_v27, 0.0  ;;  %v474_v41 = vsel %vm129_vm0, %v361_v29, 0.0 }
  0x1d   :  { %v158_v47 = vadd.f32 %v157_v42, %v156_v44  ;;  %v473_v44 = vadd.f32 %v472_v39, %v471_v38 }
  0x1f   :  { %v160_v50 = vadd.f32 %v159_v45, %v158_v47  ;;  %v187_v45 = vsel %vm129_vm0, %v12413_v0, 0.0  ;;  %v476_v47 = vsel %vm129_vm0, %v362_v35, 0.0 }
  0x21   :  { %v162_v53 = vadd.f32 %v161_v48, %v160_v50  ;;  %v12435_v48 = vld [vmem:[%s19267_s0 + $0xf8] sm:$0xff] }
  0x23   :  { %v164_v56 = vadd.f32 %v163_v51, %v162_v53  ;;  %v475_v51 = vadd.f32 %v474_v41, %v473_v44  ;;  %v189_v53 = vsel %vm129_vm0, %v12425_v3, 0.0  ;;  %v371_v44 = vmul.f32 %v12286_v31, %v12286_v31  ;;  %v12515_v31 = vld [vmem:[%s19267_s0 + $0x138] sm:$0xff] }
  0x25   :  { %v166_v59 = vadd.f32 %v165_v54, %v164_v56  ;;  %v365_v54 = vmul.f32 %v12244_v13, %v12244_v13  ;;  %v478_v56 = vsel %vm129_vm0, %v363_v2, 0.0  ;;  %v12455_v13 = vld [vmem:[%s19267_s0 + $0x108] sm:$0xff] }
  0x27   :  { %v168_v62 = vadd.f32 %v167_v57, %v166_v59  ;;  %v477_v59 = vadd.f32 %v476_v47, %v475_v51  ;;  %v372_v51 = vmul.f32 %v12293_v34, %v12293_v34  ;;  %v12525_v34 = vld [vmem:[%s19267_s0 + $0x140] sm:$0xff] }
  0x29   :  { %v170_v5 = vadd.f32 %v169_v60, %v168_v62  ;;  %v191_v60 = vsel %vm129_vm0, %v12435_v48, 0.0  ;;  %v366_v62 = vmul.f32 %v12251_v16, %v12251_v16  ;;  %v12465_v16 = vld [vmem:[%s19267_s0 + $0x110] sm:$0xff] }
  0x2a   :  { %v197_v29 = vsel %vm129_vm0, %v12465_v16, 0.0 }
  0x2b   :  { %v172_v9 = vadd.f32 %v171_v63, %v170_v5  ;;  %v480_v63 = vsel %vm129_vm0, %v364_v7, 0.0 }
  0x2d   :  { %v174_v14 = vadd.f32 %v173_v6, %v172_v9  ;;  %v479_v6 = vadd.f32 %v478_v56, %v477_v59  ;;  %v193_v9 = vsel %vm129_vm0, %v12445_v10, 0.0  ;;  %v373_v59 = vmul.f32 %v12300_v37, %v12300_v37  ;;  %v12535_v37 = vld [vmem:[%s19267_s0 + $0x148] sm:$0xff] }
  0x2f   :  { %v176_v18 = vadd.f32 %v175_v11, %v174_v14  ;;  %v367_v11 = vmul.f32 %v12258_v19, %v12258_v19  ;;  %v482_v14 = vsel %vm129_vm0, %v365_v54, 0.0  ;;  %v12475_v19 = vld [vmem:[%s19267_s0 + $0x118] sm:$0xff] }
  0x30   :  { %v199_v2 = vsel %vm129_vm0, %v12475_v19, 0.0 }
  0x31   :  { %v178_v23 = vadd.f32 %v177_v15, %v176_v18  ;;  %v481_v18 = vadd.f32 %v480_v63, %v479_v6  ;;  %v374_v6 = vmul.f32 %v12307_v40, %v12307_v40  ;;  %v12545_v40 = vld [vmem:[%s19267_s0 + $0x150] sm:$0xff] }
  0x33   :  { %v180_v32 = vadd.f32 %v179_v20, %v178_v23  ;;  %v195_v20 = vsel %vm129_vm0, %v12455_v13, 0.0  ;;  %v368_v23 = vmul.f32 %v12265_v22, %v12265_v22  ;;  %v483_v27 = vadd.f32 %v482_v14, %v481_v18  ;;  %v12485_v22 = vld [vmem:[%s19267_s0 + $0x120] sm:$0xff] }
  0x34   :  { %v375_v18 = vmul.f32 %v12314_v43, %v12314_v43  ;;  %v12555_v43 = vld [vmem:[%s19267_s0 + $0x158] sm:$0xff] }
  0x35   :  { %v182_v1 = vadd.f32 %v181_v24, %v180_v32  ;;  %v484_v24 = vsel %vm129_vm0, %v366_v62, 0.0  ;;  %v369_v32 = vmul.f32 %v12272_v25, %v12272_v25  ;;  %v488_v38 = vsel %vm129_vm0, %v368_v23, 0.0  ;;  %v12495_v25 = vld [vmem:[%s19267_s0 + $0x128] sm:$0xff] }
  0x37   :  { %v184_v42 = vadd.f32 %v183_v33, %v182_v1  ;;  %v486_v33 = vsel %vm129_vm0, %v367_v11, 0.0  ;;  %v485_v1 = vadd.f32 %v484_v24, %v483_v27  ;;  %v376_v27 = vmul.f32 %v12321_v46, %v12321_v46  ;;  %v12565_v46 = vld [vmem:[%s19267_s0 + $0x160] sm:$0xff] }
  0x39   :  { %v186_v50 = vadd.f32 %v185_v36, %v184_v42  ;;  %v370_v36 = vmul.f32 %v12279_v28, %v12279_v28  ;;  %v487_v41 = vadd.f32 %v486_v33, %v485_v1  ;;  %v201_v42 = vsel %vm129_vm0, %v12485_v22, 0.0  ;;  %v12505_v28 = vld [vmem:[%s19267_s0 + $0x130] sm:$0xff] }
  0x3a   :  { %v377_v1 = vmul.f32 %v12328_v49, %v12328_v49  ;;  %v12575_v49 = vld [vmem:[%s19267_s0 + $0x168] sm:$0xff] }
  0x3b   :  { %v188_v57 = vadd.f32 %v187_v45, %v186_v50  ;;  %v490_v45 = vsel %vm129_vm0, %v369_v32, 0.0  ;;  %v489_v47 = vadd.f32 %v488_v38, %v487_v41  ;;  %v203_v50 = vsel %vm129_vm0, %v12495_v25, 0.0 }
  0x3c   :  { %v378_v41 = vmul.f32 %v12335_v52, %v12335_v52  ;;  %v12585_v52 = vld [vmem:[%s19267_s0 + $0x170] sm:$0xff] }
  0x3d   :  { %v190_v5 = vadd.f32 %v189_v53, %v188_v57  ;;  %v492_v53 = vsel %vm129_vm0, %v370_v36, 0.0  ;;  %v491_v56 = vadd.f32 %v490_v45, %v489_v47  ;;  %v205_v57 = vsel %vm129_vm0, %v12505_v28, 0.0 }
  0x3e   :  { %v379_v47 = vmul.f32 %v12342_v55, %v12342_v55  ;;  %v12595_v55 = vld [vmem:[%s19267_s0 + $0x178] sm:$0xff] }
  0x3f   :  { %v192_v15 = vadd.f32 %v191_v60, %v190_v5  ;;  %v494_v60 = vsel %vm129_vm0, %v371_v44, 0.0  ;;  %v493_v63 = vadd.f32 %v492_v53, %v491_v56  ;;  %v207_v5 = vsel %vm129_vm0, %v12515_v31, 0.0 }
  0x40   :  { %v380_v56 = vmul.f32 %v12349_v58, %v12349_v58  ;;  %v12605_v58 = vld [vmem:[%s19267_s0 + $0x180] sm:$0xff] }
  0x41   :  { %v194_v26 = vadd.f32 %v193_v9, %v192_v15  ;;  %v496_v9 = vsel %vm129_vm0, %v372_v51, 0.0  ;;  %v495_v14 = vadd.f32 %v494_v60, %v493_v63  ;;  %v209_v15 = vsel %vm129_vm0, %v12525_v34, 0.0 }
  0x42   :  { %v381_v63 = vmul.f32 %v12356_v61, %v12356_v61  ;;  %v12615_v61 = vld [vmem:[%s19267_s0 + $0x188] sm:$0xff] }
  0x43   :  { %v196_v35 = vadd.f32 %v195_v20, %v194_v26  ;;  %v498_v20 = vsel %vm129_vm0, %v373_v59, 0.0  ;;  %v497_v24 = vadd.f32 %v496_v9, %v495_v14  ;;  %v211_v26 = vsel %vm129_vm0, %v12535_v37, 0.0 }
  0x44   :  { %v382_v14 = vmul.f32 %v12363_v4, %v12363_v4  ;;  %v12625_v4 = vld [vmem:[%s19267_s0 + $0x190] sm:$0xff] }
  0x45   :  { %v198_v39 = vadd.f32 %v197_v29, %v196_v35  ;;  %v500_v29 = vsel %vm129_vm0, %v374_v6, 0.0  ;;  %v499_v33 = vadd.f32 %v498_v20, %v497_v24  ;;  %v213_v35 = vsel %vm129_vm0, %v12545_v40, 0.0 }
  0x46   :  { %v383_v24 = vmul.f32 %v12370_v8, %v12370_v8  ;;  %v12635_v8 = vld [vmem:[%s19267_s0 + $0x198] sm:$0xff] }
  0x47   :  { %v200_v7 = vadd.f32 %v199_v2, %v198_v39  ;;  %v502_v2 = vsel %vm129_vm0, %v375_v18, 0.0  ;;  %v501_v38 = vadd.f32 %v500_v29, %v499_v33  ;;  %v215_v39 = vsel %vm129_vm0, %v12555_v43, 0.0 }
  0x48   :  { %v384_v33 = vmul.f32 %v12377_v12, %v12377_v12  ;;  %v12645_v12 = vld [vmem:[%s19267_s0 + $0x1a0] sm:$0xff] }
  0x49   :  { %v202_v54 = vadd.f32 %v201_v42, %v200_v7  ;;  %v504_v42 = vsel %vm129_vm0, %v376_v27, 0.0  ;;  %v503_v45 = vadd.f32 %v502_v2, %v501_v38  ;;  %v217_v7 = vsel %vm129_vm0, %v12565_v46, 0.0 }
  0x4a   :  { %v385_v38 = vmul.f32 %v12384_v17, %v12384_v17  ;;  %v12655_v17 = vld [vmem:[%s19267_s0 + $0x1a8] sm:$0xff] }
  0x4b   :  { %v204_v62 = vadd.f32 %v203_v50, %v202_v54  ;;  %v506_v50 = vsel %vm129_vm0, %v377_v1, 0.0  ;;  %v505_v53 = vadd.f32 %v504_v42, %v503_v45  ;;  %v219_v54 = vsel %vm129_vm0, %v12575_v49, 0.0 }
  0x4c   :  { %v386_v45 = vmul.f32 %v12391_v21, %v12391_v21  ;;  %v12665_v21 = vld [vmem:[%s19267_s0 + $0x1b0] sm:$0xff] }
  0x4d   :  { %v206_v11 = vadd.f32 %v205_v57, %v204_v62  ;;  %v508_v57 = vsel %vm129_vm0, %v378_v41, 0.0  ;;  %v507_v60 = vadd.f32 %v506_v50, %v505_v53  ;;  %v221_v62 = vsel %vm129_vm0, %v12585_v52, 0.0 }
  0x4e   :  { %v387_v53 = vmul.f32 %v12404_v30, %v12404_v30  ;;  %v12675_v30 = vld [vmem:[%s19267_s0 + $0x1b8] sm:$0xff] }
  0x4f   :  { %v208_v23 = vadd.f32 %v207_v5, %v206_v11  ;;  %v510_v5 = vsel %vm129_vm0, %v379_v47, 0.0  ;;  %v509_v9 = vadd.f32 %v508_v57, %v507_v60  ;;  %v223_v11 = vsel %vm129_vm0, %v12595_v55, 0.0 }
  0x50   :  { %v388_v60 = vmul.f32 %v12413_v0, %v12413_v0  ;;  %v12685_v0 = vld [vmem:[%s19267_s0 + $0x1c0] sm:$0xff] }
  0x51   :  { %v210_v32 = vadd.f32 %v209_v15, %v208_v23  ;;  %v512_v15 = vsel %vm129_vm0, %v380_v56, 0.0  ;;  %v511_v20 = vadd.f32 %v510_v5, %v509_v9  ;;  %v225_v23 = vsel %vm129_vm0, %v12605_v58, 0.0 }
  0x52   :  { %v389_v9 = vmul.f32 %v12425_v3, %v12425_v3  ;;  %v12695_v3 = vld [vmem:[%s19267_s0 + $0x1c8] sm:$0xff] }
  0x53   :  { %v212_v36 = vadd.f32 %v211_v26, %v210_v32  ;;  %v514_v26 = vsel %vm129_vm0, %v381_v63, 0.0  ;;  %v513_v29 = vadd.f32 %v512_v15, %v511_v20  ;;  %v227_v32 = vsel %vm129_vm0, %v12615_v61, 0.0 }
  0x54   :  { %v390_v20 = vmul.f32 %v12435_v48, %v12435_v48  ;;  %v12705_v48 = vld [vmem:[%s19267_s0 + $0x1d0] sm:$0xff] }
  0x55   :  { %v214_v44 = vadd.f32 %v213_v35, %v212_v36  ;;  %v516_v35 = vsel %vm129_vm0, %v382_v14, 0.0  ;;  %v515_v2 = vadd.f32 %v514_v26, %v513_v29  ;;  %v229_v36 = vsel %vm129_vm0, %v12625_v4, 0.0 }
  0x56   :  { %v391_v29 = vmul.f32 %v12445_v10, %v12445_v10  ;;  %v12715_v10 = vld [vmem:[%s19267_s0 + $0x1d8] sm:$0xff] }
  0x57   :  { %v216_v51 = vadd.f32 %v215_v39, %v214_v44  ;;  %v518_v39 = vsel %vm129_vm0, %v383_v24, 0.0  ;;  %v517_v42 = vadd.f32 %v516_v35, %v515_v2  ;;  %v231_v44 = vsel %vm129_vm0, %v12635_v8, 0.0 }
  0x58   :  { %v392_v2 = vmul.f32 %v12455_v13, %v12455_v13  ;;  %v12725_v13 = vld [vmem:[%s19267_s0 + $0x1e0] sm:$0xff] }
  0x59   :  { %v218_v59 = vadd.f32 %v217_v7, %v216_v51  ;;  %v520_v7 = vsel %vm129_vm0, %v384_v33, 0.0  ;;  %v519_v50 = vadd.f32 %v518_v39, %v517_v42  ;;  %v233_v51 = vsel %vm129_vm0, %v12645_v12, 0.0 }
  0x5a   :  { %v393_v42 = vmul.f32 %v12465_v16, %v12465_v16  ;;  %v12735_v16 = vld [vmem:[%s19267_s0 + $0x1e8] sm:$0xff] }
  0x5b   :  { %v220_v6 = vadd.f32 %v219_v54, %v218_v59  ;;  %v522_v54 = vsel %vm129_vm0, %v385_v38, 0.0  ;;  %v521_v57 = vadd.f32 %v520_v7, %v519_v50  ;;  %v235_v59 = vsel %vm129_vm0, %v12655_v17, 0.0 }
  0x5c   :  { %v394_v50 = vmul.f32 %v12475_v19, %v12475_v19  ;;  %v12745_v19 = vld [vmem:[%s19267_s0 + $0x1f0] sm:$0xff] }
  0x5d   :  { %v222_v18 = vadd.f32 %v221_v62, %v220_v6  ;;  %v524_v62 = vsel %vm129_vm0, %v386_v45, 0.0  ;;  %v523_v5 = vadd.f32 %v522_v54, %v521_v57  ;;  %v237_v6 = vsel %vm129_vm0, %v12665_v21, 0.0 }
  0x5e   :  { %v395_v57 = vmul.f32 %v12485_v22, %v12485_v22  ;;  %v12755_v22 = vld [vmem:[%s19267_s0 + $0x1f8] sm:$0xff] }
  0x5f   :  { %v224_v27 = vadd.f32 %v223_v11, %v222_v18  ;;  %v526_v11 = vsel %vm129_vm0, %v387_v53, 0.0  ;;  %v525_v15 = vadd.f32 %v524_v62, %v523_v5  ;;  %v239_v18 = vsel %vm129_vm0, %v12675_v30, 0.0 }
  0x60   :  { %v396_v5 = vmul.f32 %v12495_v25, %v12495_v25  ;;  %v12765_v25 = vld [vmem:[%s19267_s0 + $0x200] sm:$0xff] }
  0x61   :  { %v226_v1 = vadd.f32 %v225_v23, %v224_v27  ;;  %v528_v23 = vsel %vm129_vm0, %v388_v60, 0.0  ;;  %v527_v26 = vadd.f32 %v526_v11, %v525_v15  ;;  %v241_v27 = vsel %vm129_vm0, %v12685_v0, 0.0 }
  0x62   :  { %v397_v15 = vmul.f32 %v12505_v28, %v12505_v28  ;;  %v12775_v28 = vld [vmem:[%s19267_s0 + $0x208] sm:$0xff] }
  0x63   :  { %v228_v41 = vadd.f32 %v227_v32, %v226_v1  ;;  %v530_v32 = vsel %vm129_vm0, %v389_v9, 0.0  ;;  %v529_v35 = vadd.f32 %v528_v23, %v527_v26  ;;  %v243_v1 = vsel %vm129_vm0, %v12695_v3, 0.0 }
  0x64   :  { %v398_v26 = vmul.f32 %v12515_v31, %v12515_v31  ;;  %v12785_v31 = vld [vmem:[%s19267_s0 + $0x210] sm:$0xff] }
  0x65   :  { %v230_v47 = vadd.f32 %v229_v36, %v228_v41  ;;  %v532_v36 = vsel %vm129_vm0, %v390_v20, 0.0  ;;  %v531_v39 = vadd.f32 %v530_v32, %v529_v35  ;;  %v245_v41 = vsel %vm129_vm0, %v12705_v48, 0.0 }
  0x66   :  { %v399_v35 = vmul.f32 %v12525_v34, %v12525_v34  ;;  %v12795_v34 = vld [vmem:[%s19267_s0 + $0x218] sm:$0xff] }
  0x67   :  { %v232_v56 = vadd.f32 %v231_v44, %v230_v47  ;;  %v534_v44 = vsel %vm129_vm0, %v391_v29, 0.0  ;;  %v533_v7 = vadd.f32 %v532_v36, %v531_v39  ;;  %v247_v47 = vsel %vm129_vm0, %v12715_v10, 0.0 }
  0x68   :  { %v400_v39 = vmul.f32 %v12535_v37, %v12535_v37  ;;  %v12805_v37 = vld [vmem:[%s19267_s0 + $0x220] sm:$0xff] }
  0x69   :  { %v234_v63 = vadd.f32 %v233_v51, %v232_v56  ;;  %v536_v51 = vsel %vm129_vm0, %v392_v2, 0.0  ;;  %v535_v54 = vadd.f32 %v534_v44, %v533_v7  ;;  %v249_v56 = vsel %vm129_vm0, %v12725_v13, 0.0 }
  0x6a   :  { %v401_v7 = vmul.f32 %v12545_v40, %v12545_v40  ;;  %v12815_v40 = vld [vmem:[%s19267_s0 + $0x228] sm:$0xff] }
  0x6b   :  { %v236_v14 = vadd.f32 %v235_v59, %v234_v63  ;;  %v538_v59 = vsel %vm129_vm0, %v393_v42, 0.0  ;;  %v537_v62 = vadd.f32 %v536_v51, %v535_v54  ;;  %v251_v63 = vsel %vm129_vm0, %v12735_v16, 0.0 }
  0x6c   :  { %v402_v54 = vmul.f32 %v12555_v43, %v12555_v43  ;;  %v12825_v43 = vld [vmem:[%s19267_s0 + $0x230] sm:$0xff] }
  0x6d   :  { %v238_v24 = vadd.f32 %v237_v6, %v236_v14  ;;  %v540_v6 = vsel %vm129_vm0, %v394_v50, 0.0  ;;  %v539_v11 = vadd.f32 %v538_v59, %v537_v62  ;;  %v253_v14 = vsel %vm129_vm0, %v12745_v19, 0.0 }
  0x6e   :  { %v403_v62 = vmul.f32 %v12565_v46, %v12565_v46  ;;  %v12835_v46 = vld [vmem:[%s19267_s0 + $0x238] sm:$0xff] }
  0x6f   :  { %v240_v33 = vadd.f32 %v239_v18, %v238_v24  ;;  %v542_v18 = vsel %vm129_vm0, %v395_v57, 0.0  ;;  %v541_v23 = vadd.f32 %v540_v6, %v539_v11  ;;  %v255_v24 = vsel %vm129_vm0, %v12755_v22, 0.0 }
  0x70   :  { %v404_v11 = vmul.f32 %v12575_v49, %v12575_v49  ;;  %v12845_v49 = vld [vmem:[%s19267_s0 + $0x240] sm:$0xff] }
  0x71   :  { %v242_v38 = vadd.f32 %v241_v27, %v240_v33  ;;  %v544_v27 = vsel %vm129_vm0, %v396_v5, 0.0  ;;  %v543_v32 = vadd.f32 %v542_v18, %v541_v23  ;;  %v257_v33 = vsel %vm129_vm0, %v12765_v25, 0.0 }
  0x72   :  { %v405_v23 = vmul.f32 %v12585_v52, %v12585_v52  ;;  %v12855_v52 = vld [vmem:[%s19267_s0 + $0x248] sm:$0xff] }
  0x73   :  { %v244_v45 = vadd.f32 %v243_v1, %v242_v38  ;;  %v546_v1 = vsel %vm129_vm0, %v397_v15, 0.0  ;;  %v545_v36 = vadd.f32 %v544_v27, %v543_v32  ;;  %v259_v38 = vsel %vm129_vm0, %v12775_v28, 0.0 }
  0x74   :  { %v406_v32 = vmul.f32 %v12595_v55, %v12595_v55  ;;  %v12865_v55 = vld [vmem:[%s19267_s0 + $0x250] sm:$0xff] }
  0x75   :  { %v246_v53 = vadd.f32 %v245_v41, %v244_v45  ;;  %v548_v41 = vsel %vm129_vm0, %v398_v26, 0.0  ;;  %v547_v44 = vadd.f32 %v546_v1, %v545_v36  ;;  %v261_v45 = vsel %vm129_vm0, %v12785_v31, 0.0 }
  0x76   :  { %v407_v36 = vmul.f32 %v12605_v58, %v12605_v58  ;;  %v12875_v58 = vld [vmem:[%s19267_s0 + $0x258] sm:$0xff] }
  0x77   :  { %v248_v60 = vadd.f32 %v247_v47, %v246_v53  ;;  %v550_v47 = vsel %vm129_vm0, %v399_v35, 0.0  ;;  %v549_v51 = vadd.f32 %v548_v41, %v547_v44  ;;  %v263_v53 = vsel %vm129_vm0, %v12795_v34, 0.0 }
  0x78   :  { %v408_v44 = vmul.f32 %v12615_v61, %v12615_v61  ;;  %v12885_v61 = vld [vmem:[%s19267_s0 + $0x260] sm:$0xff] }
  0x79   :  { %v250_v9 = vadd.f32 %v249_v56, %v248_v60  ;;  %v552_v56 = vsel %vm129_vm0, %v400_v39, 0.0  ;;  %v551_v59 = vadd.f32 %v550_v47, %v549_v51  ;;  %v265_v60 = vsel %vm129_vm0, %v12805_v37, 0.0 }
  0x7a   :  { %v409_v51 = vmul.f32 %v12625_v4, %v12625_v4  ;;  %v12895_v4 = vld [vmem:[%s19267_s0 + $0x268] sm:$0xff] }
  0x7b   :  { %v252_v20 = vadd.f32 %v251_v63, %v250_v9  ;;  %v554_v63 = vsel %vm129_vm0, %v401_v7, 0.0  ;;  %v553_v6 = vadd.f32 %v552_v56, %v551_v59  ;;  %v267_v9 = vsel %vm129_vm0, %v12815_v40, 0.0 }
  0x7c   :  { %v410_v59 = vmul.f32 %v12635_v8, %v12635_v8  ;;  %v12905_v8 = vld [vmem:[%s19267_s0 + $0x270] sm:$0xff] }
  0x7d   :  { %v254_v29 = vadd.f32 %v253_v14, %v252_v20  ;;  %v556_v14 = vsel %vm129_vm0, %v402_v54, 0.0  ;;  %v555_v18 = vadd.f32 %v554_v63, %v553_v6  ;;  %v269_v20 = vsel %vm129_vm0, %v12825_v43, 0.0 }
  0x7e   :  { %v411_v6 = vmul.f32 %v12645_v12, %v12645_v12  ;;  %v12915_v12 = vld [vmem:[%s19267_s0 + $0x278] sm:$0xff] }
  0x7f   :  { %v256_v2 = vadd.f32 %v255_v24, %v254_v29  ;;  %v558_v24 = vsel %vm129_vm0, %v403_v62, 0.0  ;;  %v557_v27 = vadd.f32 %v556_v14, %v555_v18  ;;  %v271_v29 = vsel %vm129_vm0, %v12835_v46, 0.0 }
  0x80   :  { %v412_v18 = vmul.f32 %v12655_v17, %v12655_v17  ;;  %v12925_v17 = vld [vmem:[%s19267_s0 + $0x280] sm:$0xff] }
  0x81   :  { %v258_v42 = vadd.f32 %v257_v33, %v256_v2  ;;  %v560_v33 = vsel %vm129_vm0, %v404_v11, 0.0  ;;  %v559_v1 = vadd.f32 %v558_v24, %v557_v27  ;;  %v273_v2 = vsel %vm129_vm0, %v12845_v49, 0.0 }
  0x82   :  { %v413_v27 = vmul.f32 %v12665_v21, %v12665_v21  ;;  %v12935_v21 = vld [vmem:[%s19267_s0 + $0x288] sm:$0xff] }
  0x83   :  { %v260_v50 = vadd.f32 %v259_v38, %v258_v42  ;;  %v562_v38 = vsel %vm129_vm0, %v405_v23, 0.0  ;;  %v561_v41 = vadd.f32 %v560_v33, %v559_v1  ;;  %v275_v42 = vsel %vm129_vm0, %v12855_v52, 0.0 }
  0x84   :  { %v414_v1 = vmul.f32 %v12675_v30, %v12675_v30  ;;  %v12945_v30 = vld [vmem:[%s19267_s0 + $0x290] sm:$0xff] }
  0x85   :  { %v262_v57 = vadd.f32 %v261_v45, %v260_v50  ;;  %v564_v45 = vsel %vm129_vm0, %v406_v32, 0.0  ;;  %v563_v47 = vadd.f32 %v562_v38, %v561_v41  ;;  %v277_v50 = vsel %vm129_vm0, %v12865_v55, 0.0 }
  0x86   :  { %v415_v41 = vmul.f32 %v12685_v0, %v12685_v0  ;;  %v12955_v0 = vld [vmem:[%s19267_s0 + $0x298] sm:$0xff] }
  0x87   :  { %v264_v5 = vadd.f32 %v263_v53, %v262_v57  ;;  %v566_v53 = vsel %vm129_vm0, %v407_v36, 0.0  ;;  %v565_v56 = vadd.f32 %v564_v45, %v563_v47  ;;  %v279_v57 = vsel %vm129_vm0, %v12875_v58, 0.0 }
  0x88   :  { %v416_v47 = vmul.f32 %v12695_v3, %v12695_v3  ;;  %v12965_v3 = vld [vmem:[%s19267_s0 + $0x2a0] sm:$0xff] }
  0x89   :  { %v266_v15 = vadd.f32 %v265_v60, %v264_v5  ;;  %v568_v60 = vsel %vm129_vm0, %v408_v44, 0.0  ;;  %v567_v63 = vadd.f32 %v566_v53, %v565_v56  ;;  %v281_v5 = vsel %vm129_vm0, %v12885_v61, 0.0 }
  0x8a   :  { %v417_v56 = vmul.f32 %v12705_v48, %v12705_v48  ;;  %v12975_v48 = vld [vmem:[%s19267_s0 + $0x2a8] sm:$0xff] }
  0x8b   :  { %v268_v26 = vadd.f32 %v267_v9, %v266_v15  ;;  %v570_v9 = vsel %vm129_vm0, %v409_v51, 0.0  ;;  %v569_v14 = vadd.f32 %v568_v60, %v567_v63  ;;  %v283_v15 = vsel %vm129_vm0, %v12895_v4, 0.0 }
  0x8c   :  { %v418_v63 = vmul.f32 %v12715_v10, %v12715_v10  ;;  %v12985_v10 = vld [vmem:[%s19267_s0 + $0x2b0] sm:$0xff] }
  0x8d   :  { %v270_v35 = vadd.f32 %v269_v20, %v268_v26  ;;  %v572_v20 = vsel %vm129_vm0, %v410_v59, 0.0  ;;  %v571_v24 = vadd.f32 %v570_v9, %v569_v14  ;;  %v285_v26 = vsel %vm129_vm0, %v12905_v8, 0.0 }
  0x8e   :  { %v419_v14 = vmul.f32 %v12725_v13, %v12725_v13  ;;  %v12995_v13 = vld [vmem:[%s19267_s0 + $0x2b8] sm:$0xff] }
  0x8f   :  { %v272_v39 = vadd.f32 %v271_v29, %v270_v35  ;;  %v574_v29 = vsel %vm129_vm0, %v411_v6, 0.0  ;;  %v573_v33 = vadd.f32 %v572_v20, %v571_v24  ;;  %v287_v35 = vsel %vm129_vm0, %v12915_v12, 0.0 }
  0x90   :  { %v420_v24 = vmul.f32 %v12735_v16, %v12735_v16  ;;  %v13005_v16 = vld [vmem:[%s19267_s0 + $0x2c0] sm:$0xff] }
  0x91   :  { %v274_v7 = vadd.f32 %v273_v2, %v272_v39  ;;  %v576_v2 = vsel %vm129_vm0, %v412_v18, 0.0  ;;  %v575_v38 = vadd.f32 %v574_v29, %v573_v33  ;;  %v289_v39 = vsel %vm129_vm0, %v12925_v17, 0.0 }
  0x92   :  { %v421_v33 = vmul.f32 %v12745_v19, %v12745_v19  ;;  %v13015_v19 = vld [vmem:[%s19267_s0 + $0x2c8] sm:$0xff] }
  0x93   :  { %v276_v54 = vadd.f32 %v275_v42, %v274_v7  ;;  %v578_v42 = vsel %vm129_vm0, %v413_v27, 0.0  ;;  %v577_v45 = vadd.f32 %v576_v2, %v575_v38  ;;  %v291_v7 = vsel %vm129_vm0, %v12935_v21, 0.0 }
  0x94   :  { %v422_v38 = vmul.f32 %v12755_v22, %v12755_v22  ;;  %v13025_v22 = vld [vmem:[%s19267_s0 + $0x2d0] sm:$0xff] }
  0x95   :  { %v278_v62 = vadd.f32 %v277_v50, %v276_v54  ;;  %v580_v50 = vsel %vm129_vm0, %v414_v1, 0.0  ;;  %v579_v53 = vadd.f32 %v578_v42, %v577_v45  ;;  %v293_v54 = vsel %vm129_vm0, %v12945_v30, 0.0 }
  0x96   :  { %v423_v45 = vmul.f32 %v12765_v25, %v12765_v25  ;;  %v13035_v25 = vld [vmem:[%s19267_s0 + $0x2d8] sm:$0xff] }
  0x97   :  { %v280_v11 = vadd.f32 %v279_v57, %v278_v62  ;;  %v582_v57 = vsel %vm129_vm0, %v415_v41, 0.0  ;;  %v581_v60 = vadd.f32 %v580_v50, %v579_v53  ;;  %v295_v62 = vsel %vm129_vm0, %v12955_v0, 0.0 }
  0x98   :  { %v424_v53 = vmul.f32 %v12775_v28, %v12775_v28  ;;  %v13045_v28 = vld [vmem:[%s19267_s0 + $0x2e0] sm:$0xff] }
  0x99   :  { %v282_v23 = vadd.f32 %v281_v5, %v280_v11  ;;  %v584_v5 = vsel %vm129_vm0, %v416_v47, 0.0  ;;  %v583_v9 = vadd.f32 %v582_v57, %v581_v60  ;;  %v297_v11 = vsel %vm129_vm0, %v12965_v3, 0.0 }
  0x9a   :  { %v425_v60 = vmul.f32 %v12785_v31, %v12785_v31  ;;  %v13055_v31 = vld [vmem:[%s19267_s0 + $0x2e8] sm:$0xff] }
  0x9b   :  { %v284_v32 = vadd.f32 %v283_v15, %v282_v23  ;;  %v586_v15 = vsel %vm129_vm0, %v417_v56, 0.0  ;;  %v585_v20 = vadd.f32 %v584_v5, %v583_v9  ;;  %v299_v23 = vsel %vm129_vm0, %v12975_v48, 0.0 }
  0x9c   :  { %v426_v9 = vmul.f32 %v12795_v34, %v12795_v34  ;;  %v13065_v34 = vld [vmem:[%s19267_s0 + $0x2f0] sm:$0xff] }
  0x9d   :  { %v286_v36 = vadd.f32 %v285_v26, %v284_v32  ;;  %v588_v26 = vsel %vm129_vm0, %v418_v63, 0.0  ;;  %v587_v29 = vadd.f32 %v586_v15, %v585_v20  ;;  %v301_v32 = vsel %vm129_vm0, %v12985_v10, 0.0 }
  0x9e   :  { %v427_v20 = vmul.f32 %v12805_v37, %v12805_v37  ;;  %v13075_v37 = vld [vmem:[%s19267_s0 + $0x2f8] sm:$0xff] }
  0x9f   :  { %v288_v44 = vadd.f32 %v287_v35, %v286_v36  ;;  %v590_v35 = vsel %vm129_vm0, %v419_v14, 0.0  ;;  %v589_v2 = vadd.f32 %v588_v26, %v587_v29  ;;  %v303_v36 = vsel %vm129_vm0, %v12995_v13, 0.0 }
  0xa0   :  { %v428_v29 = vmul.f32 %v12815_v40, %v12815_v40  ;;  %v319_v40 = vsel %vm129_vm0, %v13075_v37, 0.0 }
  0xa1   :  { %v290_v51 = vadd.f32 %v289_v39, %v288_v44  ;;  %v592_v39 = vsel %vm129_vm0, %v420_v24, 0.0  ;;  %v591_v42 = vadd.f32 %v590_v35, %v589_v2  ;;  %v305_v44 = vsel %vm129_vm0, %v13005_v16, 0.0 }
  0xa2   :  { %v429_v2 = vmul.f32 %v12825_v43, %v12825_v43  ;;  %v431_v43 = vmul.f32 %v12845_v49, %v12845_v49  ;;  %v433_v49 = vmul.f32 %v12865_v55, %v12865_v55  ;;  %v435_v55 = vmul.f32 %v12885_v61, %v12885_v61 }
  0xa3   :  { %v292_v59 = vadd.f32 %v291_v7, %v290_v51  ;;  %v594_v7 = vsel %vm129_vm0, %v421_v33, 0.0  ;;  %v593_v50 = vadd.f32 %v592_v39, %v591_v42  ;;  %v307_v51 = vsel %vm129_vm0, %v13015_v19, 0.0 }
  0xa4   :  { %v608_v42 = vsel %vm129_vm0, %v428_v29, 0.0  ;;  %v437_v61 = vmul.f32 %v12905_v8, %v12905_v8  ;;  %v439_v8 = vmul.f32 %v12925_v17, %v12925_v17  ;;  %v441_v17 = vmul.f32 %v12945_v30, %v12945_v30 }
  0xa5   :  { %v294_v6 = vadd.f32 %v293_v54, %v292_v59  ;;  %v596_v54 = vsel %vm129_vm0, %v422_v38, 0.0  ;;  %v595_v57 = vadd.f32 %v594_v7, %v593_v50  ;;  %v309_v59 = vsel %vm129_vm0, %v13025_v22, 0.0 }
  0xa6   :  { %v443_v30 = vmul.f32 %v12965_v3, %v12965_v3  ;;  %v445_v3 = vmul.f32 %v12985_v10, %v12985_v10  ;;  %v447_v10 = vmul.f32 %v13005_v16, %v13005_v16  ;;  %v449_v16 = vmul.f32 %v13025_v22, %v13025_v22 }
  0xa7   :  { %v296_v18 = vadd.f32 %v295_v62, %v294_v6  ;;  %v598_v62 = vsel %vm129_vm0, %v423_v45, 0.0  ;;  %v597_v5 = vadd.f32 %v596_v54, %v595_v57  ;;  %v311_v6 = vsel %vm129_vm0, %v13035_v25, 0.0 }
  0xa8   :  { %v451_v22 = vmul.f32 %v13045_v28, %v13045_v28 }
  0xa9   :  { %v298_v27 = vadd.f32 %v297_v11, %v296_v18  ;;  %v600_v11 = vsel %vm129_vm0, %v424_v53, 0.0  ;;  %v599_v15 = vadd.f32 %v598_v62, %v597_v5  ;;  %v313_v18 = vsel %vm129_vm0, %v13045_v28, 0.0 }
  0xaa   :  { %v654_v28 = vsel %vm129_vm0, %v451_v22, 0.0 }
  0xab   :  { %v300_v1 = vadd.f32 %v299_v23, %v298_v27  ;;  %v602_v23 = vsel %vm129_vm0, %v425_v60, 0.0  ;;  %v601_v26 = vadd.f32 %v600_v11, %v599_v15  ;;  %v315_v27 = vsel %vm129_vm0, %v13055_v31, 0.0 }
  0xac   :  { %v618_v11 = vsel %vm129_vm0, %v433_v49, 0.0 }
  0xad   :  { %v302_v41 = vadd.f32 %v301_v32, %v300_v1  ;;  %v604_v32 = vsel %vm129_vm0, %v426_v9, 0.0  ;;  %v603_v35 = vadd.f32 %v602_v23, %v601_v26  ;;  %v317_v1 = vsel %vm129_vm0, %v13065_v34, 0.0  ;;  %v13129_v23 = vld [vmem:[%s19267_s0 + $0x318] sm:$0xff] }
  0xae   :  { %v622_v26 = vsel %vm129_vm0, %v435_v55, 0.0 }
  0xaf   :  { %v304_v47 = vadd.f32 %v303_v36, %v302_v41  ;;  %v606_v36 = vsel %vm129_vm0, %v427_v20, 0.0  ;;  %v605_v39 = vadd.f32 %v604_v32, %v603_v35  ;;  %v430_v41 = vmul.f32 %v12835_v46, %v12835_v46  ;;  %v13142_v35 = vld [vmem:[%s19267_s0 + $0x320] sm:$0xff] }
  0xb0   :  { %v432_v46 = vmul.f32 %v12855_v52, %v12855_v52  ;;  %v434_v52 = vmul.f32 %v12875_v58, %v12875_v58  ;;  %v436_v58 = vmul.f32 %v12895_v4, %v12895_v4  ;;  %v327_v32 = vsel %vm129_vm0, %v13129_v23, 0.0 }
  0xb1   :  { %v306_v56 = vadd.f32 %v305_v44, %v304_v47  ;;  %v13090_v44 = vld [vmem:[%s19267_s0 + $0x300] sm:$0xff]  ;;  %v607_v7 = vadd.f32 %v606_v36, %v605_v39  ;;  %v610_v47 = vsel %vm129_vm0, %v429_v2, 0.0  ;;  %v612_v54 = vsel %vm129_vm0, %v430_v41, 0.0  ;;  %v13155_v41 = vld [vmem:[%s19267_s0 + $0x328] sm:$0xff] }
  0xb2   :  { %v321_v53 = vsel %vm129_vm0, %v13090_v44, 0.0  ;;  %v616_v5 = vsel %vm129_vm0, %v432_v46, 0.0  ;;  %v620_v20 = vsel %vm129_vm0, %v434_v52, 0.0  ;;  %v438_v4 = vmul.f32 %v12915_v12, %v12915_v12 }
  0xb3   :  { %v308_v63 = vadd.f32 %v307_v51, %v306_v56  ;;  %v609_v51 = vadd.f32 %v608_v42, %v607_v7  ;;  %v13103_v56 = vld [vmem:[%s19267_s0 + $0x308] sm:$0xff]  ;;  %v626_v2 = vsel %vm129_vm0, %v437_v61, 0.0  ;;  %v329_v39 = vsel %vm129_vm0, %v13142_v35, 0.0 }
  0xb4   :  { %v440_v12 = vmul.f32 %v12935_v21, %v12935_v21  ;;  %v442_v21 = vmul.f32 %v12955_v0, %v12955_v0  ;;  %v634_v46 = vsel %vm129_vm0, %v441_v17, 0.0  ;;  %v444_v0 = vmul.f32 %v12975_v48, %v12975_v48  ;;  %v13207_v61 = vld [vmem:[%s19267_s0 + $0x348] sm:$0xff] }
  0xb5   :  { %v310_v14 = vadd.f32 %v309_v59, %v308_v63  ;;  %v611_v57 = vadd.f32 %v610_v47, %v609_v51  ;;  %v614_v59 = vsel %vm129_vm0, %v431_v43, 0.0  ;;  %v323_v63 = vsel %vm129_vm0, %v13103_v56, 0.0  ;;  %v13168_v51 = vld [vmem:[%s19267_s0 + $0x330] sm:$0xff] }
  0xb6   :  { %v331_v47 = vsel %vm129_vm0, %v13155_v41, 0.0  ;;  %v333_v49 = vsel %vm129_vm0, %v13168_v51, 0.0  ;;  %v446_v48 = vmul.f32 %v12995_v13, %v12995_v13  ;;  %v640_v55 = vsel %vm129_vm0, %v444_v0, 0.0 }
  0xb7   :  { %v312_v24 = vadd.f32 %v311_v6, %v310_v14  ;;  %v613_v62 = vadd.f32 %v612_v54, %v611_v57  ;;  %v13116_v6 = vld [vmem:[%s19267_s0 + $0x310] sm:$0xff]  ;;  %v448_v13 = vmul.f32 %v13015_v19, %v13015_v19  ;;  %v450_v19 = vmul.f32 %v13035_v25, %v13035_v25 }
  0xb8   :  { %v453_v17 = vmul.f32 %v13065_v34, %v13065_v34 }
  0xb9   :  { %v314_v33 = vadd.f32 %v313_v18, %v312_v24  ;;  %v615_v9 = vadd.f32 %v614_v59, %v613_v62  ;;  %v325_v18 = vsel %vm129_vm0, %v13116_v6, 0.0  ;;  %v636_v59 = vsel %vm129_vm0, %v442_v21, 0.0  ;;  %v125_v21 = vld [vmem:[%s19267_s0 + $0x360] sm:$0xff] }
  0xba   :  { %v652_v25 = vsel %vm129_vm0, %v450_v19, 0.0  ;;  %v658_v34 = vsel %vm129_vm0, %v453_v17, 0.0  ;;  %v464_v19 = vmul.f32 %v13207_v61, %v13207_v61 }
  0xbb   :  { %v316_v38 = vadd.f32 %v315_v27, %v314_v33  ;;  %v617_v15 = vadd.f32 %v616_v5, %v615_v9  ;;  %v624_v33 = vsel %vm129_vm0, %v436_v58, 0.0 }
  0xbd   :  { %v318_v45 = vadd.f32 %v317_v1, %v316_v38  ;;  %v619_v24 = vadd.f32 %v618_v11, %v617_v15  ;;  %v13194_v11 = vld [vmem:[%s19267_s0 + $0x340] sm:$0xff]  ;;  %v642_v15 = vsel %vm129_vm0, %v445_v3, 0.0 }
  0xbf   :  { %v320_v50 = vadd.f32 %v319_v40, %v318_v45  ;;  %v621_v29 = vadd.f32 %v620_v20, %v619_v24  ;;  %v628_v40 = vsel %vm129_vm0, %v438_v4, 0.0  ;;  %v630_v45 = vsel %vm129_vm0, %v439_v8, 0.0 }
  0xc0   :  { %v337_v20 = vsel %vm129_vm0, %v13194_v11, 0.0  ;;  %v644_v24 = vsel %vm129_vm0, %v446_v48, 0.0  ;;  %v339_v4 = vsel %vm129_vm0, %v13207_v61, 0.0  ;;  %v459_v48 = vmul.f32 %v13142_v35, %v13142_v35 }
  0xc1   :  { %v322_v60 = vadd.f32 %v321_v53, %v320_v50  ;;  %v623_v1 = vadd.f32 %v622_v26, %v621_v29  ;;  %v632_v50 = vsel %vm129_vm0, %v440_v12, 0.0  ;;  %v452_v12 = vmul.f32 %v13055_v31, %v13055_v31 }
  0xc2   :  { %v461_v35 = vmul.f32 %v13168_v51, %v13168_v51 }
  0xc3   :  { %v324_v14 = vadd.f32 %v323_v63, %v322_v60  ;;  %v625_v38 = vadd.f32 %v624_v33, %v623_v1  ;;  %v13181_v60 = vld [vmem:[%s19267_s0 + $0x338] sm:$0xff]  ;;  %v638_v63 = vsel %vm129_vm0, %v443_v30, 0.0  ;;  %v648_v33 = vsel %vm129_vm0, %v448_v13, 0.0  ;;  %v123_v1 = vld [vmem:[%s19267_s0 + $0x350] sm:$0xff] }
  0xc4   :  { %v335_v9 = vsel %vm129_vm0, %v13181_v60, 0.0  ;;  %v656_v31 = vsel %vm129_vm0, %v452_v12, 0.0  ;;  %v465_v22 = vmul.f32 %v123_v1, %v123_v1 }
  0xc5   :  { %v326_v27 = vadd.f32 %v325_v18, %v324_v14  ;;  %v627_v42 = vadd.f32 %v626_v2, %v625_v38  ;;  %v650_v2 = vsel %vm129_vm0, %v449_v16, 0.0 }
  0xc7   :  { %v328_v36 = vadd.f32 %v327_v32, %v326_v27  ;;  %v629_v43 = vadd.f32 %v628_v40, %v627_v42  ;;  %v646_v27 = vsel %vm129_vm0, %v447_v10, 0.0  ;;  %v124_v40 = vld [vmem:[%s19267_s0 + $0x358] sm:$0xff] }
  0xc9   :  { %v330_v7 = vadd.f32 %v329_v39, %v328_v36  ;;  %v631_v53 = vadd.f32 %v630_v45, %v629_v43  ;;  %v341_v39 = vsel %vm129_vm0, %v123_v1, 0.0  ;;  %v343_v43 = vsel %vm129_vm0, %v124_v40, 0.0 }
  0xcb   :  { %v332_v54 = vadd.f32 %v331_v47, %v330_v7  ;;  %v633_v57 = vadd.f32 %v632_v50, %v631_v53  ;;  %v454_v47 = vmul.f32 %v13075_v37, %v13075_v37  ;;  %v455_v53 = vmul.f32 %v13090_v44, %v13090_v44 }
  0xcd   :  { %v635_v62 = vadd.f32 %v634_v46, %v633_v57  ;;  %v334_v52 = vadd.f32 %v333_v49, %v332_v54  ;;  %v345_v54 = vsel %vm129_vm0, %v125_v21, 0.0  ;;  %v456_v57 = vmul.f32 %v13103_v56, %v13103_v56  ;;  %v126_v49 = vld [vmem:[%s19267_s0 + $0x368] sm:$0xff] }
  0xce   :  { %v660_v37 = vsel %vm129_vm0, %v454_v47, 0.0  ;;  %v662_v44 = vsel %vm129_vm0, %v455_v53, 0.0 }
  0xcf   :  { %v637_v5 = vadd.f32 %v636_v59, %v635_v62  ;;  %v336_v18 = vadd.f32 %v335_v9, %v334_v52  ;;  %v457_v59 = vmul.f32 %v13116_v6, %v13116_v6  ;;  %v458_v52 = vmul.f32 %v13129_v23, %v13129_v23 }
  0xd0   :  { %v664_v56 = vsel %vm129_vm0, %v456_v57, 0.0 }
  0xd1   :  { %v639_v14 = vadd.f32 %v638_v63, %v637_v5  ;;  %v338_v29 = vadd.f32 %v337_v20, %v336_v18  ;;  %v347_v63 = vsel %vm129_vm0, %v126_v49, 0.0  ;;  %v127_v5 = vld [vmem:[%s19267_s0 + $0x370] sm:$0xff]  ;;  %v666_v6 = vsel %vm129_vm0, %v457_v59, 0.0  ;;  %v13270_v18 = vld [vmem:[%s19267_s0 + $0x378] sm:$0xff] }
  0xd2   :  { %v349_v10 = vsel %vm129_vm0, %v127_v5, 0.0  ;;  %v668_v23 = vsel %vm129_vm0, %v458_v52, 0.0  ;;  %v670_v20 = vsel %vm129_vm0, %v459_v48, 0.0  ;;  %v2775_v48 = vld [vmem:[%s19268_s3 + $0x50] sm:$0xff] }
  0xd3   :  { %v641_v58 = vadd.f32 %v640_v55, %v639_v14  ;;  %v340_v36 = vadd.f32 %v339_v4, %v338_v29  ;;  %v463_v29 = vmul.f32 %v13194_v11, %v13194_v11  ;;  %v467_v11 = vmul.f32 %v125_v21, %v125_v21 }
  0xd5   :  { %v643_v26 = vadd.f32 %v642_v15, %v641_v58  ;;  %v342_v45 = vadd.f32 %v341_v39, %v340_v36  ;;  %v460_v15 = vmul.f32 %v13155_v41, %v13155_v41  ;;  %v462_v41 = vmul.f32 %v13181_v60, %v13181_v60 }
  0xd6   :  { %v680_v39 = vsel %vm129_vm0, %v464_v19, 0.0  ;;  %v686_v1 = vsel %vm129_vm0, %v467_v11, 0.0  ;;  %v12050_v11 = vld [vmem:[%s19267_s0 + $0x18] sm:$0xff] }
  0xd7   :  { %v645_v32 = vadd.f32 %v644_v24, %v643_v26  ;;  %v344_v30 = vadd.f32 %v343_v43, %v342_v45  ;;  %v351_v26 = vsel %vm129_vm0, %v13270_v18, 0.0  ;;  %v672_v16 = vsel %vm129_vm0, %v460_v15, 0.0  ;;  %v2772_v15 = vld [vmem:[%s19268_s3 + $0x38] sm:$0xff] }
  0xd9   :  { %v647_v8 = vadd.f32 %v646_v27, %v645_v32  ;;  %v346_v62 = vadd.f32 %v345_v54, %v344_v30  ;;  %v674_v32 = vsel %vm129_vm0, %v461_v35, 0.0  ;;  %v704_v35 = vld [vmem:[%s19269_s1] sm:$0xff] }
  0xdb   :  { %v649_v38 = vadd.f32 %v648_v33, %v647_v8  ;;  %v348_v55 = vadd.f32 %v347_v63, %v346_v62  ;;  %v676_v33 = vsel %vm129_vm0, %v462_v41, 0.0  ;;  %v707_v41 = vld [vmem:[%s19269_s1 + $0x18] sm:$0xff] }
  0xdd   :  { %v651_v42 = vadd.f32 %v650_v2, %v649_v38  ;;  %v350_v13 = vadd.f32 %v349_v10, %v348_v55  ;;  %v678_v2 = vsel %vm129_vm0, %v463_v29, 0.0  ;;  %v466_v38 = vmul.f32 %v124_v40, %v124_v40  ;;  %v2774_v55 = vld [vmem:[%s19268_s3 + $0x48] sm:$0xff]  ;;  %v13315_v10 = vld [vmem:[%s19268_s3 + $0xb8] sm:$0xff] }
  0xde   :  { %v470_v40 = vmul.f32 %v13270_v18, %v13270_v18  ;;  %10533 = vmatprep.subr.mxu0 %v13315_v10 }
  0xdf   :  { %v653_v7 = vadd.f32 %v652_v25, %v651_v42  ;;  %v352_v4 = vadd.f32 %v351_v26, %v350_v13  ;;  %v682_v25 = vsel %vm129_vm0, %v465_v22, 0.0  ;;  %v684_v61 = vsel %vm129_vm0, %v466_v38, 0.0  ;;  %10534 = vmatpush3.msra.mxu0 %v13315_v10  ;;  %v706_v13 = vld [vmem:[%s19269_s1 + $0x10] sm:$0xff]  ;;  %v2770_v26 = vld [vmem:[%s19268_s3 + $0x28] sm:$0xff] }
  0xe0   :  { %v692_v30 = vsel %vm129_vm0, %v470_v40, 0.0  ;;  %v12173_v22 = vmov 0.0   ;;  %v1174_v38 = vlaneseq }
  0xe1   :  { %v655_v50 = vadd.f32 %v654_v28, %v653_v7  ;;  %v353_v60 = vrot.slane %v352_v4, 4  ;;  %v468_v28 = vmul.f32 %v126_v49, %v126_v49  ;;  %v469_v7 = vmul.f32 %v127_v5, %v127_v5  ;;  %1515 = vst.msk [vmem:[#allocation2] sm:$0xff] %vm1514_vm1, %v12173_v22  ;;  %1516 = vst.msk [vmem:[#allocation2 + $0x8] sm:$0xff] %vm1514_vm1, %v12173_v22 }
  0xe2   :  { %1517 = vst.msk [vmem:[#allocation2 + $0x10] sm:$0xff] %vm1514_vm1, %v12173_v22  ;;  %1518 = vst.msk [vmem:[#allocation2 + $0x18] sm:$0xff] %vm1514_vm1, %v12173_v22 }
  0xe3   :  { %v657_v46 = vadd.f32 %v656_v31, %v655_v50  ;;  %v354_v42 = vadd.f32 %v353_v60, %v352_v4  ;;  %v688_v31 = vsel %vm129_vm0, %v468_v28, 0.0  ;;  %v690_v21 = vsel %vm129_vm0, %v469_v7, 0.0  ;;  %1519 = vst.msk [vmem:[#allocation2 + $0x3a0] sm:$0xff] %vm1514_vm1, %v12173_v22  ;;  %1520 = vst.msk [vmem:[#allocation2 + $0x3a8] sm:$0xff] %vm1514_vm1, %v12173_v22  ;;  %v715_v60 = vld [vmem:[%s19270_s2 + $0x8] sm:$0xff]  ;;  %v13414_v28 = vld [vmem:[%s19268_s3 + $0x90] sm:$0xff] }
  0xe4   :  { %1521 = vst.msk [vmem:[#allocation2 + $0x3b0] sm:$0xff] %vm1514_vm1, %v12173_v22  ;;  %1522 = vst.msk [vmem:[#allocation2 + $0x3b8] sm:$0xff] %vm1514_vm1, %v12173_v22  ;;  %v13518_v22 = vld [vmem:[%s19268_s3 + $0x70] sm:$0xff] }
  0xe5   :  { %v659_v0 = vadd.f32 %v658_v34, %v657_v46  ;;  %v355_v43 = vrot.slane %v354_v42, 2 }
  0xe7   :  { %v661_v3 = vadd.f32 %v660_v37, %v659_v0  ;;  %v356_v53 = vadd.f32 %v355_v43, %v354_v42 }
  0xe9   :  { %v663_v9 = vadd.f32 %v662_v44, %v661_v3  ;;  %v357_v54 = vrot.slane %v356_v53, 1 }
  0xeb   :  { %v665_v14 = vadd.f32 %v664_v56, %v663_v9  ;;  %v358_v49 = vadd.f32 %v357_v54, %v356_v53  ;;  %v2776_v9 = vld [vmem:[%s19268_s3 + $0x58] sm:$0xff]  ;;  %v13450_v54 = vld [vmem:[%s19268_s3 + $0x88] sm:$0xff] }
  0xec   :  { %10569 = vmatprep.subr.mxu1 %v2776_v9 }
  0xed   :  { %v667_v58 = vadd.f32 %v666_v6, %v665_v14  ;;  %v13296_v62 = vmul.f32 0.0012755102, %v358_v49  ;;  %10570 = vmatpush3.msra.mxu1 %v2776_v9  ;;  %v2773_v14 = vld [vmem:[%s19268_s3 + $0x40] sm:$0xff] }
  0xee   :  { %10571 = vmatprep.subr.mxu1 %v2775_v48 }
  0xef   :  { %v669_v24 = vadd.f32 %v668_v23, %v667_v58  ;;  %v702_v52 = vmul.f32 %v13296_v62, %v13296_v62  ;;  %10572 = vmatpush3.msra.mxu1 %v2775_v48  ;;  %v13323_v23 = vld [vmem:[%s19268_s3 + $0xb0] sm:$0xff]  ;;  %v12055_v48 = vld [vmem:[%s19267_s0 + $0x20] sm:$0xff] }
  0xf0   :  { %10573 = vmatprep.subr.mxu1 %v2774_v55  ;;  %v2771_v58 = vld [vmem:[%s19268_s3 + $0x30] sm:$0xff]  ;;  %10535 = vmatprep.subr.mxu0 %v13323_v23 }
  0xf1   :  { %v671_v27 = vadd.f32 %v670_v20, %v669_v24  ;;  %10574 = vmatpush3.msra.mxu1 %v2774_v55  ;;  %10536 = vmatpush3.msra.mxu0 %v13323_v23  ;;  %v705_v20 = vld [vmem:[%s19269_s1 + $0x8] sm:$0xff]  ;;  %v2757_v55 = vld [vmem:[#allocation2] sm:$0xff] }
  0xf2   :  { %10575 = vmatprep.subr.mxu1 %v2773_v14  ;;  %v13344_v24 = vld [vmem:[%s19268_s3 + $0xa8] sm:$0xff]  ;;  %10593 = vmatprep.mubr.msk.f32.mxu1 %vm1514_vm1, %v2757_v55 }
  0xf3   :  { %v673_v51 = vadd.f32 %v672_v16, %v671_v27  ;;  %10576 = vmatpush3.msra.mxu1 %v2773_v14  ;;  %10537 = vmatprep.subr.mxu0 %v13344_v24  ;;  %v13356_v16 = vld [vmem:[%s19268_s3 + $0xa0] sm:$0xff] }
  0xf4   :  { %10577 = vmatprep.subr.mxu1 %v2772_v15  ;;  %v2769_v27 = vld [vmem:[%s19268_s3 + $0x20] sm:$0xff]  ;;  %10538 = vmatpush3.msra.mxu0 %v13344_v24 }
  0xf5   :  { %v675_v8 = vadd.f32 %v674_v32, %v673_v51  ;;  %10578 = vmatpush3.msra.mxu1 %v2772_v15  ;;  %10539 = vmatprep.subr.mxu0 %v13356_v16 }
  0xf6   :  { %10579 = vmatprep.subr.mxu1 %v2771_v58  ;;  %10540 = vmatpush3.msra.mxu0 %v13356_v16 }
  0xf7   :  { %v677_v36 = vadd.f32 %v676_v33, %v675_v8  ;;  %10580 = vmatpush3.msra.mxu1 %v2771_v58  ;;  %v13375_v33 = vld [vmem:[%s19268_s3 + $0x98] sm:$0xff] }
  0xf8   :  { %10581 = vmatprep.subr.mxu1 %v2770_v26  ;;  %v2768_v8 = vld [vmem:[%s19268_s3 + $0x18] sm:$0xff]  ;;  %10541 = vmatprep.subr.mxu0 %v13375_v33 }
  0xf9   :  { %v679_v12 = vadd.f32 %v678_v2, %v677_v36  ;;  %10582 = vmatpush3.msra.mxu1 %v2770_v26  ;;  %v714_v2 = vld [vmem:[%s19270_s2] sm:$0xff]  ;;  %v717_v36 = vld [vmem:[%s19270_s2 + $0x18] sm:$0xff]  ;;  %10542 = vmatpush3.msra.mxu0 %v13375_v33 }
  0xfa   :  { %10583 = vmatprep.subr.mxu1 %v2769_v27  ;;  %10543 = vmatprep.subr.mxu0 %v13414_v28 }
  0xfb   :  { %v681_v17 = vadd.f32 %v680_v39, %v679_v12  ;;  %10584 = vmatpush3.msra.mxu1 %v2769_v27  ;;  %v716_v39 = vld [vmem:[%s19270_s2 + $0x10] sm:$0xff]  ;;  %10544 = vmatpush3.msra.mxu0 %v13414_v28 }
  0xfc   :  { %10585 = vmatprep.subr.mxu1 %v2768_v8  ;;  %10545 = vmatprep.subr.mxu0 %v13450_v54 }
  0xfd   :  { %v683_v45 = vadd.f32 %v682_v25, %v681_v17  ;;  %10586 = vmatpush3.msra.mxu1 %v2768_v8  ;;  %10546 = vmatpush3.msra.mxu0 %v13450_v54 }
  0xff   :  { %v685_v47 = vadd.f32 %v684_v61, %v683_v45  ;;  %v12051_v45 = vld [vmem:[%s19267_s0] sm:$0xff] }
 0x101   :  { %v687_v50 = vadd.f32 %v686_v1, %v685_v47  ;;  %v12052_v1 = vld [vmem:[%s19267_s0 + $0x28] sm:$0xff] }
 0x102   :  { %v12053_v47 = vld [vmem:[%s19267_s0 + $0x8] sm:$0xff] }
 0x103   :  { %v689_v34 = vadd.f32 %v688_v31, %v687_v50  ;;  %v2767_v31 = vld [vmem:[%s19268_s3 + $0x10] sm:$0xff] }
 0x104   :  { %10587 = vmatprep.subr.mxu1 %v2767_v31 }
 0x105   :  { %v691_v46 = vadd.f32 %v690_v21, %v689_v34  ;;  %v12054_v34 = vld [vmem:[%s19267_s0 + $0x10] sm:$0xff]  ;;  %10588 = vmatpush3.msra.mxu1 %v2767_v31 }
 0x107   :  { %v693_v57 = vadd.f32 %v692_v30, %v691_v46 }
 0x109   :  { %v694_v37 = vrot.slane %v693_v57, 4 }
 0x10b   :  { %v695_v0 = vadd.f32 %v694_v37, %v693_v57 }
 0x10d   :  { %v696_v59 = vrot.slane %v695_v0, 2 }
 0x10f   :  { %v697_v44 = vadd.f32 %v696_v59, %v695_v0  ;;  %v2766_v59 = vld [vmem:[%s19268_s3 + $0x8] sm:$0xff] }
 0x110   :  { %10589 = vmatprep.subr.mxu1 %v2766_v59 }
 0x111   :  { %v698_v3 = vrot.slane %v697_v44, 1  ;;  %10590 = vmatpush3.msra.mxu1 %v2766_v59  ;;  %v12061_v59 = vld [vmem:[%s19267_s0 + $0x58] sm:$0xff] }
 0x113   :  { %v699_v63 = vadd.f32 %v698_v3, %v697_v44 }
 0x115   :  { %v701_v56 = vmul.f32 0.0012755102, %v699_v63 }
 0x117   :  { %v703_v5 = vsub.f32 %v701_v56, %v702_v52  ;;  %v13467_v52 = vshrl.u32 %v1174_v38, 7  ;;  %v13473_v56 = vld [vmem:[%s19268_s3 + $0x80] sm:$0xff] }
 0x118   :  { %10547 = vmatprep.subr.mxu0 %v13473_v56 }
 0x119   :  { %v708_v6 = vadd.f32 0.001, %v703_v5  ;;  %v2765_v5 = vld [vmem:[%s19268_s3] sm:$0xff]  ;;  %vm1401_vm2 = vcmp.lt.s32.totalorder %v13467_v52, 7  ;;  %10548 = vmatpush3.msra.mxu0 %v13473_v56  ;;  %vm1176_vm3 = vcmp.lt.s32.totalorder %v13467_v52, 1 }
 0x11a   :  { %10591 = vmatprep.subr.mxu1 %v2765_v5 }
 0x11b   :  { %12048 = vrsqrt.f32 %v708_v6  ;;  %10592 = vmatpush3.msra.mxu1 %v2765_v5 }
 0x11c   :  { %10641 = vmatprep.subr.mxu1 %v13315_v10 }
 0x128   :  { %v12049_v29 = vpop.eup %12048 }
 0x129   :  { %v13363_v32 = vmul.f32 %v12049_v29, %v707_v41  ;;  %v13365_v4 = vmul.f32 %v12049_v29, %v704_v35  ;;  %v13367_v51 = vmul.f32 %v12049_v29, %v705_v20  ;;  %v13369_v19 = vmul.f32 %v12049_v29, %v706_v13  ;;  %v13499_v35 = vld [vmem:[%s19268_s3 + $0x78] sm:$0xff]  ;;  %v2758_v20 = vld [vmem:[#allocation2 + $0x8] sm:$0xff]  ;;  %v12056_v13 = vld [vmem:[%s19267_s0 + $0x30] sm:$0xff] }
 0x12a   :  { %v2759_v41 = vld [vmem:[#allocation2 + $0x10] sm:$0xff]  ;;  %v12057_v29 = vld [vmem:[%s19267_s0 + $0x38] sm:$0xff]  ;;  %10549 = vmatprep.subr.mxu0 %v13499_v35  ;;  %10594 = vmatmul.mubr.msk.f32.vlgmr.msra.gmra.mxu1 %vm1514_vm1, %v2758_v20 }
 0x12b   :  { %v721_v12 = vmul.f32 %v13363_v32, %v13296_v62  ;;  %v729_v25 = vmul.f32 %v12050_v11, %v13363_v32  ;;  %v718_v42 = vmul.f32 %v13365_v4, %v13296_v62  ;;  %v719_v17 = vmul.f32 %v13367_v51, %v13296_v62  ;;  %10550 = vmatpush3.msra.mxu0 %v13499_v35 }
 0x12c   :  { %v720_v61 = vmul.f32 %v13369_v19, %v13296_v62  ;;  %v726_v7 = vmul.f32 %v12051_v45, %v13365_v4  ;;  %v731_v43 = vmul.f32 %v12052_v1, %v13367_v51  ;;  %v727_v40 = vmul.f32 %v12053_v47, %v13367_v51  ;;  %10596 = vmatprep.mubr.msk.f32.mxu1 %vm1514_vm1, %v2759_v41  ;;  %v12062_v41 = vld [vmem:[%s19267_s0 + $0x60] sm:$0xff] }
 0x12d   :  { %v13434_v50 = vsub.f32 %v717_v36, %v721_v12  ;;  %v13436_v21 = vsub.f32 %v714_v2, %v718_v42  ;;  %v13438_v53 = vsub.f32 %v715_v60, %v719_v17  ;;  %v728_v30 = vmul.f32 %v12054_v34, %v13369_v19  ;;  %v2760_v36 = vld [vmem:[#allocation2 + $0x18] sm:$0xff]  ;;  %10551 = vmatprep.subr.mxu0 %v13518_v22  ;;  %v12059_v17 = vld [vmem:[%s19267_s0 + $0x48] sm:$0xff] }
 0x12e   :  { %v13444_v46 = vsub.f32 %v716_v39, %v720_v61  ;;  %v730_v6 = vmul.f32 %v12055_v48, %v13365_v4  ;;  %v732_v26 = vmul.f32 %v12056_v13, %v13369_v19  ;;  %v733_v8 = vmul.f32 %v12057_v29, %v13363_v32  ;;  %v13534_v39 = vld [vmem:[%s19268_s3 + $0x68] sm:$0xff]  ;;  %10552 = vmatpush3.msra.mxu0 %v13518_v22 }
 0x12f   :  { %v841_v57 = vadd.f32 %v729_v25, %v13434_v50  ;;  %v838_v37 = vadd.f32 %v726_v7, %v13436_v21  ;;  %v843_v49 = vadd.f32 %v731_v43, %v13438_v53  ;;  %v839_v0 = vadd.f32 %v727_v40, %v13438_v53  ;;  %v12058_v25 = vld [vmem:[%s19267_s0 + $0x40] sm:$0xff]  ;;  %10597 = vmatmul.mubr.msk.f32.gmra.mxu1 %vm1514_vm1, %v2760_v36  ;;  %v12063_v29 = vld [vmem:[%s19267_s0 + $0x68] sm:$0xff] }
 0x130   :  { %v840_v44 = vadd.f32 %v728_v30, %v13444_v46  ;;  %v842_v27 = vadd.f32 %v730_v6, %v13436_v21  ;;  %v844_v38 = vadd.f32 %v732_v26, %v13444_v46  ;;  %v845_v11 = vadd.f32 %v733_v8, %v13434_v50  ;;  %10553 = vmatprep.subr.mxu0 %v13534_v39  ;;  %v13559_v7 = vld [vmem:[%s19268_s3 + $0x60] sm:$0xff] }
 0x131   :  { %v13461_v62 = vmax.f32 %v841_v57, 0.0  ;;  %v13463_v3 = vmax.f32 %v838_v37, 0.0  ;;  %v13465_v63 = vmax.f32 %v839_v0, 0.0  ;;  %v13483_v9 = vmax.f32 %v843_v49, 0.0  ;;  %10642 = vmatpush3.msra.mxu1 %v13315_v10  ;;  %10554 = vmatpush3.msra.mxu0 %v13534_v39  ;;  %v13576_v10 = vld [vmem:[%s19268_s3 + $0x118] sm:$0xff] }
 0x132   :  { %v13489_v14 = vmax.f32 %v840_v44, 0.0  ;;  %v13540_v12 = vmax.f32 %v842_v27, 0.0  ;;  %v734_v42 = vmul.f32 %v12058_v25, %v13365_v4  ;;  %v735_v61 = vmul.f32 %v12059_v17, %v13367_v51  ;;  %10643 = vmatprep.subr.mxu1 %v13323_v23  ;;  %10555 = vmatprep.subr.mxu0 %v13559_v7 }
 0x133   :  { %19338 = vst [vmem:[#allocation3_spill] sm:$0xff] %v13463_v3  ;;  %1753 = vrot.lane.b32.xlu1 %v13461_v62, %s12174_s16  ;;  %1747 = vrot.lane.b32.xlu0 %v13463_v3, %s12174_s16  ;;  %v19273_v15 = vrot.slane %v13463_v3, 1  ;;  %v1290_v58 = vrot.slane %v13465_v63, 1  ;;  %v13567_v1 = vmax.f32 %v844_v38, 0.0  ;;  %v13569_v43 = vmax.f32 %v845_v11, 0.0 }
 0x134   :  { %v1291_v60 = vrot.slane %v13489_v14, 1  ;;  %v846_v47 = vadd.f32 %v734_v42, %v13436_v21  ;;  %v847_v40 = vadd.f32 %v735_v61, %v13438_v53  ;;  %10644 = vmatpush3.msra.mxu1 %v13323_v23  ;;  %10556 = vmatpush3.msra.mxu0 %v13559_v7  ;;  %v1292_v23 = vrot.slane %v13461_v62, 1 }
 0x135   :  { %v1512_v2 = vsel %vm1401_vm2, %v19273_v15, %v1290_v58  ;;  %10645 = vmatprep.subr.mxu1 %v13344_v24  ;;  %10605 = vmatprep.subr.mxu0 %v13576_v10  ;;  %v1293_v30 = vrot.slane %v13540_v12, 1  ;;  %v1294_v37 = vrot.slane %v13483_v9, 1  ;;  %v1295_v49 = vrot.slane %v13567_v1, 1 }
 0x136   :  { %v1511_v45 = vsel %vm1401_vm2, %v1290_v58, %v1291_v60  ;;  %10646 = vmatpush3.msra.mxu1 %v13344_v24  ;;  %v13588_v31 = vmax.f32 %v846_v47, 0.0  ;;  %v13590_v34 = vmax.f32 %v847_v40, 0.0  ;;  %v1510_v24 = vsel %vm1401_vm2, %v1291_v60, %v1292_v23 }
 0x137   :  { %1757 = vrot.lane.b32.xlu1 %v13483_v9, %s12174_s16  ;;  %1749 = vrot.lane.b32.xlu0 %v13465_v63, %s12174_s16  ;;  %v1509_v57 = vsel %vm1401_vm2, %v1292_v23, %v1293_v30  ;;  %v1508_v44 = vsel %vm1401_vm2, %v1293_v30, %v1294_v37  ;;  %v1507_v5 = vsel %vm1401_vm2, %v1294_v37, %v1295_v49  ;;  %v1296_v48 = vrot.slane %v13569_v43, 1 }
 0x138   :  { %10647 = vmatprep.subr.mxu1 %v13356_v16  ;;  %v1064_v13 = vrot.slane %v13489_v14, 7  ;;  %v738_v27 = vmul.f32 %v12062_v41, %v13365_v4  ;;  %v1063_v8 = vrot.slane %v13465_v63, 7  ;;  %v1298_v60 = vrot.slane %v13590_v34, 1  ;;  %v12064_v63 = vld [vmem:[%s19267_s0 + $0x70] sm:$0xff] }
 0x139   :  { %10648 = vmatpush3.msra.mxu1 %v13356_v16  ;;  %v12060_v16 = vld [vmem:[%s19267_s0 + $0x50] sm:$0xff]  ;;  %v1506_v58 = vsel %vm1401_vm2, %v1295_v49, %v1296_v48  ;;  %v837_v42 = vmul.f32 %v13363_v32, %v13270_v18  ;;  %v1068_v18 = vrot.slane %v13567_v1, 7  ;;  %v1069_v23 = vrot.slane %v13569_v43, 7 }
 0x13a   :  { %10649 = vmatprep.subr.mxu1 %v13375_v33  ;;  %v736_v0 = vmul.f32 %v12060_v16, %v13369_v19  ;;  %v850_v38 = vadd.f32 %v738_v27, %v13436_v21  ;;  %v1071_v49 = vrot.slane %v13590_v34, 7 }
 0x13b   :  { %1751 = vrot.lane.b32.xlu0 %v13489_v14, %s12174_s16  ;;  %2308 = vrot.lane.b32.xlu1 %v1512_v2, %s12175_s28  ;;  %v1066_v2 = vrot.slane %v13540_v12, 7  ;;  %v949_v40 = vadd.f32 %v837_v42, %v13434_v50 }
 0x13c   :  { %10650 = vmatpush3.msra.mxu1 %v13375_v33  ;;  %v737_v33 = vmul.f32 %v12061_v59, %v13363_v32  ;;  %v848_v6 = vadd.f32 %v736_v0, %v13444_v46  ;;  %v13702_v30 = vmax.f32 %v850_v38, 0.0  ;;  %v12069_v38 = vld [vmem:[%s19267_s0 + $0x98] sm:$0xff] }
 0x13d   :  { %10651 = vmatprep.subr.mxu1 %v13414_v28 }
 0x13e   :  { %10652 = vmatpush3.msra.mxu1 %v13414_v28  ;;  %v1297_v28 = vrot.slane %v13588_v31, 1  ;;  %v849_v55 = vadd.f32 %v737_v33, %v13434_v50  ;;  %v13641_v26 = vmax.f32 %v848_v6, 0.0  ;;  %v1281_v6 = vsel %vm1176_vm3, %v1068_v18, %v1069_v23 }
 0x13f   :  { %1755 = vrot.lane.b32.xlu0 %v13540_v12, %s12174_s16  ;;  %2310 = vrot.lane.b32.xlu1 %v1511_v45, %s12175_s28  ;;  %v12065_v12 = vld [vmem:[%s19267_s0 + $0x78] sm:$0xff]  ;;  %1530 = vst.msk [vmem:[#allocation2 + $0x58] sm:$0xff] %vm129_vm0, %v1281_v6 }
 0x140   :  { %10653 = vmatprep.subr.mxu1 %v13450_v54  ;;  %v1505_v20 = vsel %vm1401_vm2, %v1296_v48, %v1297_v28  ;;  %v13656_v14 = vmax.f32 %v849_v55, 0.0  ;;  %v1299_v36 = vrot.slane %v13641_v26, 1  ;;  %v741_v25 = vmul.f32 %v12065_v12, %v13363_v32 }
 0x141   :  { %10654 = vmatpush3.msra.mxu1 %v13450_v54  ;;  %v1065_v54 = vrot.slane %v13461_v62, 7  ;;  %v1067_v62 = vrot.slane %v13483_v9, 7  ;;  %v1062_v9 = vrot.slane %v13463_v3, 7  ;;  %v1504_v17 = vsel %vm1401_vm2, %v1297_v28, %v1298_v60 }
 0x142   :  { %10655 = vmatprep.subr.mxu1 %v13473_v56  ;;  %v1503_v61 = vsel %vm1401_vm2, %v1298_v60, %v1299_v36  ;;  %v853_v37 = vadd.f32 %v741_v25, %v13434_v50  ;;  %v1072_v33 = vrot.slane %v13641_v26, 7  ;;  %v1301_v55 = vrot.slane %v13702_v30, 1 }
 0x143   :  { %1759 = vrot.lane.b32.xlu0 %v13567_v1, %s12174_s16  ;;  %1761 = vrot.lane.b32.xlu1 %v13569_v43, %s12174_s16  ;;  %v1283_v45 = vsel %vm1176_vm3, %v1066_v2, %v1067_v62  ;;  %v1287_v47 = vsel %vm1176_vm3, %v1062_v9, %v1063_v8  ;;  %v13713_v1 = vmax.f32 %v949_v40, 0.0  ;;  %v1070_v43 = vrot.slane %v13588_v31, 7 }
 0x144   :  { %10656 = vmatpush3.msra.mxu1 %v13473_v56  ;;  %v739_v56 = vmul.f32 %v12063_v29, %v13367_v51  ;;  %1528 = vst.msk [vmem:[#allocation2 + $0x48] sm:$0xff] %vm129_vm0, %v1283_v45  ;;  %1524 = vst.msk [vmem:[#allocation2 + $0x28] sm:$0xff] %vm129_vm0, %v1287_v47  ;;  %v1284_v0 = vsel %vm1176_vm3, %v1065_v54, %v1066_v2  ;;  %v13736_v48 = vmax.f32 %v853_v37, 0.0  ;;  %v12067_v2 = vld [vmem:[%s19267_s0 + $0x88] sm:$0xff] }
 0x145   :  { %10657 = vmatprep.subr.mxu1 %v13499_v35  ;;  %19339 = vst [vmem:[#allocation4_spill] sm:$0xff] %v13713_v1  ;;  %v19272_v59 = vrot.slane %v13713_v1, 7  ;;  %1527 = vst.msk [vmem:[#allocation2 + $0x40] sm:$0xff] %vm129_vm0, %v1284_v0  ;;  %v1278_v41 = vsel %vm1176_vm3, %v1071_v49, %v1072_v33  ;;  %v12130_v1 = vld [vmem:[%s19267_s0 + $0x220] sm:$0xff] }
 0x146   :  { %10658 = vmatpush3.msra.mxu1 %v13499_v35  ;;  %v1285_v35 = vsel %vm1176_vm3, %v1064_v13, %v1065_v54  ;;  %v851_v11 = vadd.f32 %v739_v56, %v13438_v53  ;;  %v1279_v54 = vsel %vm1176_vm3, %v1070_v43, %v1071_v49  ;;  %1533 = vst.msk [vmem:[#allocation2 + $0x70] sm:$0xff] %vm129_vm0, %v1278_v41  ;;  %v1304_v12 = vrot.slane %v13736_v48, 1 }
 0x147   :  { %1763 = vrot.lane.b32.xlu0 %v13588_v31, %s12174_s16  ;;  %1765 = vrot.lane.b32.xlu1 %v13590_v34, %s12174_s16  ;;  %1526 = vst.msk [vmem:[#allocation2 + $0x38] sm:$0xff] %vm129_vm0, %v1285_v35  ;;  %v1073_v31 = vrot.slane %v13656_v14, 7  ;;  %v1300_v34 = vrot.slane %v13656_v14, 1  ;;  %v1288_v28 = vsel %vm1176_vm3, %v19272_v59, %v1062_v9  ;;  %1532 = vst.msk [vmem:[#allocation2 + $0x68] sm:$0xff] %vm129_vm0, %v1279_v54 }
 0x148   :  { %10659 = vmatprep.subr.mxu1 %v13518_v22  ;;  %1523 = vst.msk [vmem:[#allocation2 + $0x20] sm:$0xff] %vm129_vm0, %v1288_v28 }
 0x149   :  { %10660 = vmatpush3.msra.mxu1 %v13518_v22  ;;  %v740_v22 = vmul.f32 %v12064_v63, %v13369_v19  ;;  %v1277_v27 = vsel %vm1176_vm3, %v1072_v33, %v1073_v31  ;;  %v1502_v29 = vsel %vm1401_vm2, %v1299_v36, %v1300_v34  ;;  %v12068_v36 = vld [vmem:[%s19267_s0 + $0x90] sm:$0xff] }
 0x14a   :  { %10661 = vmatprep.subr.mxu1 %v13534_v39  ;;  %1534 = vst.msk [vmem:[#allocation2 + $0x78] sm:$0xff] %vm129_vm0, %v1277_v27  ;;  %v744_v35 = vmul.f32 %v12068_v36, %v13369_v19 }
 0x14b   :  { %2312 = vrot.lane.b32.xlu0 %v1510_v24, %s12175_s28  ;;  %2314 = vrot.lane.b32.xlu1 %v1509_v57, %s12175_s28  ;;  %v1286_v24 = vsel %vm1176_vm3, %v1063_v8, %v1064_v13  ;;  %v852_v57 = vadd.f32 %v740_v22, %v13444_v46  ;;  %v1074_v13 = vrot.slane %v13702_v30, 7  ;;  %v1077_v22 = vrot.slane %v13736_v48, 7 }
 0x14c   :  { %10662 = vmatpush3.msra.mxu1 %v13534_v39  ;;  %v13709_v39 = vmax.f32 %v851_v11, 0.0  ;;  %1525 = vst.msk [vmem:[#allocation2 + $0x30] sm:$0xff] %vm129_vm0, %v1286_v24  ;;  %v745_v11 = vmul.f32 %v12069_v38, %v13363_v32  ;;  %v856_v45 = vadd.f32 %v744_v35, %v13444_v46 }
 0x14d   :  { %10663 = vmatprep.subr.mxu1 %v13559_v7  ;;  %v1276_v9 = vsel %vm1176_vm3, %v1073_v31, %v1074_v13 }
 0x14e   :  { %10664 = vmatpush3.msra.mxu1 %v13559_v7  ;;  %v12066_v7 = vld [vmem:[%s19267_s0 + $0x80] sm:$0xff]  ;;  %v1302_v56 = vrot.slane %v13709_v39, 1  ;;  %v1075_v60 = vrot.slane %v13709_v39, 7  ;;  %1535 = vst.msk [vmem:[#allocation2 + $0x80] sm:$0xff] %vm129_vm0, %v1276_v9  ;;  %v857_v40 = vadd.f32 %v745_v11, %v13434_v50  ;;  %v12075_v11 = vld [vmem:[%s19267_s0 + $0xc8] sm:$0xff] }
 0x14f   :  { %2316 = vrot.lane.b32.xlu0 %v1508_v44, %s12175_s28  ;;  %2318 = vrot.lane.b32.xlu1 %v1507_v5, %s12175_s28  ;;  %v742_v16 = vmul.f32 %v12066_v7, %v13365_v4  ;;  %v1282_v44 = vsel %vm1176_vm3, %v1067_v62, %v1068_v18  ;;  %v964_v5 = vmax.f32 %v852_v57, 0.0  ;;  %v1501_v62 = vsel %vm1401_vm2, %v1300_v34, %v1301_v55  ;;  %v12074_v9 = vld [vmem:[%s19267_s0 + $0xc0] sm:$0xff] }
 0x150   :  { %10713 = vmatprep.subr.mxu1 %v13576_v10  ;;  %1529 = vst.msk [vmem:[#allocation2 + $0x50] sm:$0xff] %vm129_vm0, %v1282_v44  ;;  %v1500_v25 = vsel %vm1401_vm2, %v1301_v55, %v1302_v56  ;;  %v1275_v47 = vsel %vm1176_vm3, %v1074_v13, %v1075_v60  ;;  %v13818_v7 = vmax.f32 %v857_v40, 0.0  ;;  %v750_v38 = vmul.f32 %v12074_v9, %v13365_v4 }
 0x151   :  { %v1076_v63 = vrot.slane %v964_v5, 7  ;;  %1536 = vst.msk [vmem:[#allocation2 + $0x88] sm:$0xff] %vm129_vm0, %v1275_v47 }
 0x152   :  { %v1081_v33 = vrot.slane %v13818_v7, 7  ;;  %v1308_v41 = vrot.slane %v13818_v7, 1 }
 0x153   :  { %2320 = vrot.lane.b32.xlu0 %v1506_v58, %s12175_s28  ;;  %2322 = vrot.lane.b32.xlu1 %v1505_v20, %s12175_s28  ;;  %v854_v58 = vadd.f32 %v742_v16, %v13436_v21  ;;  %v1280_v20 = vsel %vm1176_vm3, %v1069_v23, %v1070_v43  ;;  %v1274_v23 = vsel %vm1176_vm3, %v1075_v60, %v1076_v63  ;;  %v968_v43 = vmax.f32 %v856_v45, 0.0 }
 0x154   :  { %1531 = vst.msk [vmem:[#allocation2 + $0x60] sm:$0xff] %vm129_vm0, %v1280_v20  ;;  %1537 = vst.msk [vmem:[#allocation2 + $0x90] sm:$0xff] %vm129_vm0, %v1274_v23  ;;  %v1273_v37 = vsel %vm1176_vm3, %v1076_v63, %v1077_v22  ;;  %v751_v63 = vmul.f32 %v12075_v11, %v13367_v51 }
 0x155   :  { %v966_v8 = vmax.f32 %v854_v58, 0.0  ;;  %1538 = vst.msk [vmem:[#allocation2 + $0x98] sm:$0xff] %vm129_vm0, %v1273_v37  ;;  %v1080_v16 = vrot.slane %v968_v43, 7  ;;  %v1307_v28 = vrot.slane %v968_v43, 1  ;;  %v12071_v58 = vld [vmem:[%s19267_s0 + $0xa8] sm:$0xff]  ;;  %v12077_v37 = vld [vmem:[%s19267_s0 + $0xd8] sm:$0xff] }
 0x156   :  { %v747_v20 = vmul.f32 %v12071_v58, %v13367_v51 }
 0x157   :  { %1767 = vrot.lane.b32.xlu0 %v13641_v26, %s12174_s16  ;;  %1769 = vrot.lane.b32.xlu1 %v13656_v14, %s12174_s16  ;;  %v1303_v14 = vrot.slane %v964_v5, 1  ;;  %v743_v26 = vmul.f32 %v12067_v2, %v13367_v51  ;;  %v1078_v0 = vrot.slane %v966_v8, 7  ;;  %v1269_v55 = vsel %vm1176_vm3, %v1080_v16, %v1081_v33 }
 0x158   :  { %1542 = vst.msk [vmem:[#allocation2 + $0xb8] sm:$0xff] %vm129_vm0, %v1269_v55  ;;  %v1494_v2 = vsel %vm1401_vm2, %v1307_v28, %v1308_v41 }
 0x159   :  { %v1499_v42 = vsel %vm1401_vm2, %v1302_v56, %v1303_v14  ;;  %v1498_v18 = vsel %vm1401_vm2, %v1303_v14, %v1304_v12  ;;  %v1272_v34 = vsel %vm1176_vm3, %v1077_v22, %v1078_v0  ;;  %v12073_v14 = vld [vmem:[%s19267_s0 + $0xb8] sm:$0xff] }
 0x15a   :  { %1539 = vst.msk [vmem:[#allocation2 + $0xa0] sm:$0xff] %vm129_vm0, %v1272_v34 }
 0x15b   :  { %2324 = vrot.lane.b32.xlu0 %v1504_v17, %s12175_s28  ;;  %2326 = vrot.lane.b32.xlu1 %v1503_v61, %s12175_s28  ;;  %v1305_v17 = vrot.slane %v966_v8, 1  ;;  %v855_v61 = vadd.f32 %v743_v26, %v13438_v53 }
 0x15d   :  { %v967_v24 = vmax.f32 %v855_v61, 0.0 }
 0x15f   :  { %1771 = vrot.lane.b32.xlu0 %v13702_v30, %s12174_s16  ;;  %1773 = vrot.lane.b32.xlu1 %v13709_v39, %s12174_s16  ;;  %v1497_v30 = vsel %vm1401_vm2, %v1304_v12, %v1305_v17  ;;  %v12070_v39 = vld [vmem:[%s19267_s0 + $0xa0] sm:$0xff]  ;;  %v1079_v49 = vrot.slane %v967_v24, 7 }
 0x160   :  { %v746_v57 = vmul.f32 %v12070_v39, %v13365_v4 }
 0x161   :  { %v1271_v44 = vsel %vm1176_vm3, %v1078_v0, %v1079_v49 }
 0x162   :  { %v858_v31 = vadd.f32 %v746_v57, %v13436_v21  ;;  %1540 = vst.msk [vmem:[#allocation2 + $0xa8] sm:$0xff] %vm129_vm0, %v1271_v44 }
 0x163   :  { %1775 = vrot.lane.b32.xlu0 %v964_v5, %s12174_s16  ;;  %1777 = vrot.lane.b32.xlu1 %v13736_v48, %s12174_s16  ;;  %v1270_v5 = vsel %vm1176_vm3, %v1079_v49, %v1080_v16  ;;  %v1306_v48 = vrot.slane %v967_v24, 1 }
 0x164   :  { %v970_v6 = vmax.f32 %v858_v31, 0.0  ;;  %1541 = vst.msk [vmem:[#allocation2 + $0xb0] sm:$0xff] %vm129_vm0, %v1270_v5 }
 0x165   :  { %v1496_v54 = vsel %vm1401_vm2, %v1305_v17, %v1306_v48  ;;  %v1495_v13 = vsel %vm1401_vm2, %v1306_v48, %v1307_v28  ;;  %v12078_v28 = vld [vmem:[%s19267_s0 + $0xe0] sm:$0xff] }
 0x166   :  { %v1309_v27 = vrot.slane %v970_v6, 1 }
 0x167   :  { %2328 = vrot.lane.b32.xlu0 %v1502_v29, %s12175_s28  ;;  %2330 = vrot.lane.b32.xlu1 %v1501_v62, %s12175_s28  ;;  %v12072_v29 = vld [vmem:[%s19267_s0 + $0xb0] sm:$0xff]  ;;  %v859_v62 = vadd.f32 %v747_v20, %v13438_v53  ;;  %v12079_v20 = vld [vmem:[%s19267_s0 + $0xe8] sm:$0xff] }
 0x168   :  { %v748_v56 = vmul.f32 %v12072_v29, %v13369_v19  ;;  %v1493_v26 = vsel %vm1401_vm2, %v1308_v41, %v1309_v27 }
 0x169   :  { %v971_v36 = vmax.f32 %v859_v62, 0.0 }
 0x16a   :  { %v860_v60 = vadd.f32 %v748_v56, %v13444_v46 }
 0x16b   :  { %2332 = vrot.lane.b32.xlu0 %v1500_v25, %s12175_s28  ;;  %2334 = vrot.lane.b32.xlu1 %v1499_v42, %s12175_s28  ;;  %v862_v25 = vadd.f32 %v750_v38, %v13436_v21  ;;  %v863_v42 = vadd.f32 %v751_v63, %v13438_v53  ;;  %v1310_v45 = vrot.slane %v971_v36, 1  ;;  %v1083_v40 = vrot.slane %v971_v36, 7 }
 0x16c   :  { %v972_v22 = vmax.f32 %v860_v60, 0.0  ;;  %v12081_v60 = vld [vmem:[%s19267_s0 + $0xf8] sm:$0xff] }
 0x16d   :  { %v974_v17 = vmax.f32 %v862_v25, 0.0  ;;  %v13885_v61 = vmax.f32 %v863_v42, 0.0  ;;  %v1492_v39 = vsel %vm1401_vm2, %v1309_v27, %v1310_v45  ;;  %v12082_v25 = vld [vmem:[%s19267_s0 + $0x100] sm:$0xff] }
 0x16e   :  { %v1311_v47 = vrot.slane %v972_v22, 1  ;;  %v758_v42 = vmul.f32 %v12082_v25, %v13365_v4 }
 0x16f   :  { %2336 = vrot.lane.b32.xlu0 %v1498_v18, %s12175_s28  ;;  %2338 = vrot.lane.b32.xlu1 %v1497_v30, %s12175_s28  ;;  %v12076_v18 = vld [vmem:[%s19267_s0 + $0xd0] sm:$0xff]  ;;  %v1082_v30 = vrot.slane %v970_v6, 7  ;;  %v1313_v16 = vrot.slane %v974_v17, 1  ;;  %v1086_v55 = vrot.slane %v974_v17, 7  ;;  %v1087_v41 = vrot.slane %v13885_v61, 7 }
 0x170   :  { %v752_v23 = vmul.f32 %v12076_v18, %v13369_v19  ;;  %v1491_v57 = vsel %vm1401_vm2, %v1310_v45, %v1311_v47  ;;  %v1314_v29 = vrot.slane %v13885_v61, 1 }
 0x171   :  { %v1268_v0 = vsel %vm1176_vm3, %v1081_v33, %v1082_v30  ;;  %v1267_v31 = vsel %vm1176_vm3, %v1082_v30, %v1083_v40 }
 0x172   :  { %1543 = vst.msk [vmem:[#allocation2 + $0xc0] sm:$0xff] %vm129_vm0, %v1268_v0  ;;  %1544 = vst.msk [vmem:[#allocation2 + $0xc8] sm:$0xff] %vm129_vm0, %v1267_v31  ;;  %v864_v44 = vadd.f32 %v752_v23, %v13444_v46  ;;  %v1488_v9 = vsel %vm1401_vm2, %v1313_v16, %v1314_v29 }
 0x173   :  { %1779 = vrot.lane.b32.xlu0 %v966_v8, %s12174_s16  ;;  %1781 = vrot.lane.b32.xlu1 %v967_v24, %s12174_s16  ;;  %v749_v8 = vmul.f32 %v12073_v14, %v13363_v32  ;;  %v1084_v24 = vrot.slane %v972_v22, 7 }
 0x174   :  { %v13925_v58 = vmax.f32 %v864_v44, 0.0 }
 0x175   :  { %v861_v35 = vadd.f32 %v749_v8, %v13434_v50  ;;  %v1266_v48 = vsel %vm1176_vm3, %v1083_v40, %v1084_v24  ;;  %v870_v40 = vadd.f32 %v758_v42, %v13436_v21 }
 0x176   :  { %1545 = vst.msk [vmem:[#allocation2 + $0xd0] sm:$0xff] %vm129_vm0, %v1266_v48  ;;  %v1315_v56 = vrot.slane %v13925_v58, 1  ;;  %v1088_v18 = vrot.slane %v13925_v58, 7 }
 0x177   :  { %1783 = vrot.lane.b32.xlu0 %v968_v43, %s12174_s16  ;;  %1785 = vrot.lane.b32.xlu1 %v13818_v7, %s12174_s16  ;;  %v973_v12 = vmax.f32 %v861_v35, 0.0  ;;  %v753_v43 = vmul.f32 %v12077_v37, %v13363_v32  ;;  %v1263_v35 = vsel %vm1176_vm3, %v1086_v55, %v1087_v41 }
 0x178   :  { %v1487_v38 = vsel %vm1401_vm2, %v1314_v29, %v1315_v56  ;;  %1548 = vst.msk [vmem:[#allocation2 + $0xe8] sm:$0xff] %vm129_vm0, %v1263_v35  ;;  %v1262_v31 = vsel %vm1176_vm3, %v1087_v41, %v1088_v18 }
 0x179   :  { %v1312_v49 = vrot.slane %v973_v12, 1  ;;  %v1085_v34 = vrot.slane %v973_v12, 7  ;;  %v865_v5 = vadd.f32 %v753_v43, %v13434_v50  ;;  %1549 = vst.msk [vmem:[#allocation2 + $0xf0] sm:$0xff] %vm129_vm0, %v1262_v31 }
 0x17b   :  { %2340 = vrot.lane.b32.xlu0 %v1496_v54, %s12175_s28  ;;  %2342 = vrot.lane.b32.xlu1 %v1495_v13, %s12175_s28  ;;  %v1490_v7 = vsel %vm1401_vm2, %v1311_v47, %v1312_v49  ;;  %v1489_v33 = vsel %vm1401_vm2, %v1312_v49, %v1313_v16  ;;  %v755_v54 = vmul.f32 %v12079_v20, %v13367_v51  ;;  %v13936_v27 = vmax.f32 %v865_v5, 0.0  ;;  %v12083_v16 = vld [vmem:[%s19267_s0 + $0x108] sm:$0xff]  ;;  %v12085_v20 = vld [vmem:[%s19267_s0 + $0x118] sm:$0xff] }
 0x17c   :  { %v1265_v13 = vsel %vm1176_vm3, %v1084_v24, %v1085_v34  ;;  %v1264_v8 = vsel %vm1176_vm3, %v1085_v34, %v1086_v55  ;;  %v759_v0 = vmul.f32 %v12083_v16, %v13367_v51  ;;  %v12084_v55 = vld [vmem:[%s19267_s0 + $0x110] sm:$0xff] }
 0x17d   :  { %1546 = vst.msk [vmem:[#allocation2 + $0xd8] sm:$0xff] %vm129_vm0, %v1265_v13  ;;  %v867_v14 = vadd.f32 %v755_v54, %v13438_v53  ;;  %1547 = vst.msk [vmem:[#allocation2 + $0xe0] sm:$0xff] %vm129_vm0, %v1264_v8  ;;  %v1316_v45 = vrot.slane %v13936_v27, 1  ;;  %v1089_v37 = vrot.slane %v13936_v27, 7  ;;  %v761_v54 = vmul.f32 %v12085_v20, %v13363_v32  ;;  %v14094_v16 = vld [vmem:[%s19268_s3 + $0x110] sm:$0xff] }
 0x17f   :  { %2344 = vrot.lane.b32.xlu0 %v1494_v2, %s12175_s28  ;;  %2346 = vrot.lane.b32.xlu1 %v1493_v26, %s12175_s28  ;;  %v12080_v2 = vld [vmem:[%s19267_s0 + $0xf0] sm:$0xff]  ;;  %v13969_v63 = vmax.f32 %v867_v14, 0.0  ;;  %v1486_v23 = vsel %vm1401_vm2, %v1315_v56, %v1316_v45  ;;  %v12086_v56 = vld [vmem:[%s19267_s0 + $0x120] sm:$0xff] }
 0x180   :  { %v756_v26 = vmul.f32 %v12080_v2, %v13369_v19  ;;  %v873_v2 = vadd.f32 %v761_v54, %v13434_v50  ;;  %v14144_v54 = vld [vmem:[%s19268_s3 + $0xf8] sm:$0xff] }
 0x181   :  { %v1318_v24 = vrot.slane %v13969_v63, 1 }
 0x183   :  { %1787 = vrot.lane.b32.xlu0 %v970_v6, %s12174_s16  ;;  %1789 = vrot.lane.b32.xlu1 %v971_v36, %s12174_s16  ;;  %v754_v6 = vmul.f32 %v12078_v28, %v13365_v4  ;;  %v757_v36 = vmul.f32 %v12081_v60, %v13363_v32  ;;  %v1261_v28 = vsel %vm1176_vm3, %v1088_v18, %v1089_v37 }
 0x184   :  { %1550 = vst.msk [vmem:[#allocation2 + $0xf8] sm:$0xff] %vm129_vm0, %v1261_v28 }
 0x185   :  { %v866_v62 = vadd.f32 %v754_v6, %v13436_v21  ;;  %v871_v6 = vadd.f32 %v759_v0, %v13438_v53 }
 0x187   :  { %1791 = vrot.lane.b32.xlu0 %v972_v22, %s12174_s16  ;;  %1793 = vrot.lane.b32.xlu1 %v973_v12, %s12174_s16  ;;  %v13967_v11 = vmax.f32 %v866_v62, 0.0  ;;  %v868_v22 = vadd.f32 %v756_v26, %v13444_v46  ;;  %v869_v12 = vadd.f32 %v757_v36, %v13434_v50  ;;  %v762_v62 = vmul.f32 %v12086_v56, %v13365_v4 }
 0x188   :  { %v14047_v14 = vmax.f32 %v871_v6, 0.0  ;;  %v14127_v6 = vld [vmem:[%s19268_s3 + $0x100] sm:$0xff] }
 0x189   :  { %v1317_v47 = vrot.slane %v13967_v11, 1  ;;  %v1090_v26 = vrot.slane %v13967_v11, 7  ;;  %v874_v35 = vadd.f32 %v762_v62, %v13436_v21  ;;  %v14159_v62 = vld [vmem:[%s19268_s3 + $0xf0] sm:$0xff] }
 0x18b   :  { %1795 = vrot.lane.b32.xlu0 %v974_v17, %s12174_s16  ;;  %1797 = vrot.lane.b32.xlu1 %v13885_v61, %s12174_s16  ;;  %v13981_v17 = vmax.f32 %v868_v22, 0.0  ;;  %v13983_v61 = vmax.f32 %v869_v12, 0.0  ;;  %v1485_v30 = vsel %vm1401_vm2, %v1316_v45, %v1317_v47  ;;  %v1484_v34 = vsel %vm1401_vm2, %v1317_v47, %v1318_v24 }
 0x18c   :  { %v14062_v22 = vmax.f32 %v873_v2, 0.0  ;;  %v14066_v45 = vmax.f32 %v874_v35, 0.0  ;;  %v1260_v47 = vsel %vm1176_vm3, %v1089_v37, %v1090_v26  ;;  %v12090_v2 = vld [vmem:[%s19267_s0 + $0x140] sm:$0xff] }
 0x18d   :  { %v1320_v5 = vrot.slane %v13983_v61, 1  ;;  %1551 = vst.msk [vmem:[#allocation2 + $0x100] sm:$0xff] %vm129_vm0, %v1260_v47 }
 0x18e   :  { %v1325_v31 = vrot.slane %v14066_v45, 1 }
 0x18f   :  { %2348 = vrot.lane.b32.xlu0 %v1492_v39, %s12175_s28  ;;  %2350 = vrot.lane.b32.xlu1 %v1491_v57, %s12175_s28  ;;  %v1319_v39 = vrot.slane %v13981_v17, 1  ;;  %v13999_v57 = vmax.f32 %v870_v40, 0.0  ;;  %v1092_v40 = vrot.slane %v13981_v17, 7 }
 0x191   :  { %v1483_v44 = vsel %vm1401_vm2, %v1318_v24, %v1319_v39  ;;  %v1482_v13 = vsel %vm1401_vm2, %v1319_v39, %v1320_v5  ;;  %v12087_v24 = vld [vmem:[%s19267_s0 + $0x128] sm:$0xff] }
 0x192   :  { %v763_v39 = vmul.f32 %v12087_v24, %v13367_v51 }
 0x193   :  { %2352 = vrot.lane.b32.xlu0 %v1490_v7, %s12175_s28  ;;  %2354 = vrot.lane.b32.xlu1 %v1489_v33, %s12175_s28  ;;  %v1321_v7 = vrot.slane %v13999_v57, 1 }
 0x195   :  { %v1481_v41 = vsel %vm1401_vm2, %v1320_v5, %v1321_v7 }
 0x197   :  { %1799 = vrot.lane.b32.xlu0 %v13925_v58, %s12174_s16  ;;  %1801 = vrot.lane.b32.xlu1 %v13936_v27, %s12174_s16  ;;  %v760_v58 = vmul.f32 %v12084_v55, %v13369_v19 }
 0x199   :  { %v872_v8 = vadd.f32 %v760_v58, %v13444_v46  ;;  %v12088_v58 = vld [vmem:[%s19267_s0 + $0x130] sm:$0xff] }
 0x19a   :  { %v764_v20 = vmul.f32 %v12088_v58, %v13369_v19  ;;  %v14258_v58 = vld [vmem:[%s19268_s3 + $0xc0] sm:$0xff] }
 0x19b   :  { %2356 = vrot.lane.b32.xlu0 %v1488_v9, %s12175_s28  ;;  %2358 = vrot.lane.b32.xlu1 %v1487_v38, %s12175_s28  ;;  %v1091_v9 = vrot.slane %v13969_v63, 7  ;;  %v14060_v38 = vmax.f32 %v872_v8, 0.0 }
 0x19c   :  { %v876_v8 = vadd.f32 %v764_v20, %v13444_v46 }
 0x19d   :  { %v1259_v18 = vsel %vm1176_vm3, %v1090_v26, %v1091_v9  ;;  %v766_v26 = vmul.f32 %v12090_v2, %v13365_v4 }
 0x19e   :  { %1552 = vst.msk [vmem:[#allocation2 + $0x108] sm:$0xff] %vm129_vm0, %v1259_v18  ;;  %v14205_v18 = vld [vmem:[%s19268_s3 + $0xd8] sm:$0xff] }
 0x19f   :  { %1803 = vrot.lane.b32.xlu0 %v13967_v11, %s12174_s16  ;;  %1805 = vrot.lane.b32.xlu1 %v13969_v63, %s12174_s16  ;;  %v1322_v11 = vrot.slane %v14047_v14, 1  ;;  %v1323_v63 = vrot.slane %v14060_v38, 1 }
 0x1a1   :  { %v1479_v0 = vsel %vm1401_vm2, %v1322_v11, %v1323_v63 }
 0x1a3   :  { %1807 = vrot.lane.b32.xlu0 %v13981_v17, %s12174_s16  ;;  %1809 = vrot.lane.b32.xlu1 %v13983_v61, %s12174_s16  ;;  %v1480_v17 = vsel %vm1401_vm2, %v1321_v7, %v1322_v11 }
 0x1a5   :  { %v1754_v43 = vpop.permute.xlu1 %1753  ;;  %v1748_v49 = vpop.permute.xlu0 %1747 }
 0x1a6   :  { %2087 = vst.msk [vmem:[#allocation2 + $0x38] sm:$0xff] %vm2083_vm4, %v1754_v43  ;;  %2084 = vst.msk [vmem:[#allocation2 + $0x20] sm:$0xff] %vm2083_vm4, %v1748_v49 }
 0x1a7   :  { %2360 = vrot.lane.b32.xlu0 %v1486_v23, %s12175_s28  ;;  %2362 = vrot.lane.b32.xlu1 %v1485_v30, %s12175_s28  ;;  %v1093_v23 = vrot.slane %v13983_v61, 7  ;;  %v1324_v30 = vrot.slane %v14062_v22, 1 }
 0x1a9   :  { %v1758_v33 = vpop.permute.xlu1 %1757  ;;  %v1750_v48 = vpop.permute.xlu0 %1749  ;;  %v1257_v5 = vsel %vm1176_vm3, %v1092_v40, %v1093_v23  ;;  %v1478_v7 = vsel %vm1401_vm2, %v1323_v63, %v1324_v30  ;;  %v1477_v55 = vsel %vm1401_vm2, %v1324_v30, %v1325_v31  ;;  %v12091_v63 = vld [vmem:[%s19267_s0 + $0x148] sm:$0xff] }
 0x1aa   :  { %2089 = vst.msk [vmem:[#allocation2 + $0x48] sm:$0xff] %vm2083_vm4, %v1758_v33  ;;  %2085 = vst.msk [vmem:[#allocation2 + $0x28] sm:$0xff] %vm2083_vm4, %v1750_v48  ;;  %v875_v33 = vadd.f32 %v763_v39, %v13438_v53  ;;  %v767_v47 = vmul.f32 %v12091_v63, %v13367_v51  ;;  %v1095_v63 = vrot.slane %v14047_v14, 7 }
 0x1ab   :  { %2364 = vrot.lane.b32.xlu0 %v1484_v34, %s12175_s28  ;;  %2366 = vrot.lane.b32.xlu1 %v1483_v44, %s12175_s28  ;;  %v1258_v34 = vsel %vm1176_vm3, %v1091_v9, %v1092_v40  ;;  %v14109_v44 = vld [vmem:[%s19268_s3 + $0x108] sm:$0xff]  ;;  %1554 = vst.msk [vmem:[#allocation2 + $0x118] sm:$0xff] %vm129_vm0, %v1257_v5  ;;  %v14196_v40 = vld [vmem:[%s19268_s3 + $0xe0] sm:$0xff] }
 0x1ac   :  { %1553 = vst.msk [vmem:[#allocation2 + $0x110] sm:$0xff] %vm129_vm0, %v1258_v34  ;;  %v14237_v5 = vld [vmem:[%s19268_s3 + $0xc8] sm:$0xff] }
 0x1ad   :  { %v1752_v27 = vpop.permute.xlu0 %1751  ;;  %v2309_v29 = vpop.permute.xlu1 %2308 }
 0x1ae   :  { %2086 = vst.msk [vmem:[#allocation2 + $0x30] sm:$0xff] %vm2083_vm4, %v1752_v27 }
 0x1af   :  { %2645 = vst.msk [vmem:[#allocation2 + $0x20] sm:$0xff] %vm2644_vm5, %v2309_v29  ;;  %2368 = vrot.lane.b32.xlu0 %v1482_v13, %s12175_s28  ;;  %2370 = vrot.lane.b32.xlu1 %v1481_v41, %s12175_s28  ;;  %v14149_v13 = vmax.f32 %v875_v33, 0.0  ;;  %v12089_v41 = vld [vmem:[%s19267_s0 + $0x138] sm:$0xff] }
 0x1b0   :  { %v765_v27 = vmul.f32 %v12089_v41, %v13363_v32 }
 0x1b1   :  { %v1756_v60 = vpop.permute.xlu0 %1755  ;;  %v2311_v36 = vpop.permute.xlu1 %2310  ;;  %v1326_v34 = vrot.slane %v14149_v13, 1 }
 0x1b2   :  { %2088 = vst.msk [vmem:[#allocation2 + $0x40] sm:$0xff] %vm2083_vm4, %v1756_v60  ;;  %v14176_v60 = vld [vmem:[%s19268_s3 + $0xe8] sm:$0xff] }
 0x1b3   :  { %2646 = vst.msk [vmem:[#allocation2 + $0x28] sm:$0xff] %vm2644_vm5, %v2311_v36  ;;  %1811 = vrot.lane.b32.xlu0 %v13999_v57, %s12174_s16  ;;  %1813 = vrot.lane.b32.xlu1 %v14047_v14, %s12174_s16  ;;  %v877_v36 = vadd.f32 %v765_v27, %v13434_v50  ;;  %v1476_v41 = vsel %vm1401_vm2, %v1325_v31, %v1326_v34 }
 0x1b5   :  { %v1760_v12 = vpop.permute.xlu0 %1759  ;;  %v1762_v25 = vpop.permute.xlu1 %1761 }
 0x1b6   :  { %v2761_v42 = vld [vmem:[#allocation2 + $0x20] sm:$0xff]  ;;  %2090 = vst.msk [vmem:[#allocation2 + $0x50] sm:$0xff] %vm2083_vm4, %v1760_v12  ;;  %2091 = vst.msk [vmem:[#allocation2 + $0x58] sm:$0xff] %vm2083_vm4, %v1762_v25  ;;  %v14182_v25 = vmax.f32 %v876_v8, 0.0  ;;  %v12093_v8 = vld [vmem:[%s19268_s3 + $0x50] sm:$0xff] }
 0x1b7   :  { %10557 = vmatprep.mubr.msk.f32.mxu0 %vm1514_vm1, %v2761_v42  ;;  %10599 = vmatprep.mubr.msk.f32.mxu1 %vm1514_vm1, %v2761_v42  ;;  %v878_v42 = vadd.f32 %v766_v26, %v13436_v21 }
 0x1b8   :  { %1815 = vrot.lane.b32.xlu0 %v14060_v38, %s12174_s16  ;;  %1817 = vrot.lane.b32.xlu1 %v14062_v22, %s12174_s16  ;;  %v1327_v20 = vrot.slane %v14182_v25, 1 }
 0x1b9   :  { %v1764_v37 = vpop.permute.xlu0 %1763  ;;  %v1766_v43 = vpop.permute.xlu1 %1765 }
 0x1ba   :  { %v2762_v49 = vld [vmem:[#allocation2 + $0x28] sm:$0xff]  ;;  %2092 = vst.msk [vmem:[#allocation2 + $0x60] sm:$0xff] %vm2083_vm4, %v1764_v37  ;;  %2093 = vst.msk [vmem:[#allocation2 + $0x68] sm:$0xff] %vm2083_vm4, %v1766_v43  ;;  %v14216_v43 = vmax.f32 %v878_v42, 0.0  ;;  %v1475_v31 = vsel %vm1401_vm2, %v1326_v34, %v1327_v20  ;;  %v1094_v34 = vrot.slane %v13999_v57, 7 }
 0x1bb   :  { %10558 = vmatmul.mubr.msk.f32.vlgmr.msra.gmra.mxu0 %vm1514_vm1, %v2762_v49  ;;  %10600 = vmatmul.mubr.msk.f32.gmra.mxu1 %vm1514_vm1, %v2762_v49  ;;  %v879_v49 = vadd.f32 %v767_v47, %v13438_v53 }
 0x1bc   :  { %10606 = vmatpush3.msra.mxu0 %v13576_v10  ;;  %2372 = vrot.lane.b32.xlu0 %v1480_v17, %s12175_s28  ;;  %v14207_v17 = vmax.f32 %v877_v36, 0.0  ;;  %v1329_v14 = vrot.slane %v14216_v43, 1  ;;  %v1256_v57 = vsel %vm1176_vm3, %v1093_v23, %v1094_v34  ;;  %v12099_v23 = vld [vmem:[%s19268_s3 + $0x30] sm:$0xff] }
 0x1bd   :  { %10607 = vmatprep.subr.mxu0 %v14094_v16  ;;  %2374 = vrot.lane.b32.xlu1 %v1479_v0, %s12175_s28  ;;  %v2313_v48 = vpop.permute.xlu0 %2312  ;;  %v2315_v28 = vpop.permute.xlu1 %2314  ;;  %v14227_v0 = vld [vmem:[%s19268_s3 + $0xd0] sm:$0xff]  ;;  %1555 = vst.msk [vmem:[#allocation2 + $0x120] sm:$0xff] %vm129_vm0, %v1256_v57 }
 0x1be   :  { %10608 = vmatpush3.msra.mxu0 %v14094_v16  ;;  %2647 = vst.msk [vmem:[#allocation2 + $0x30] sm:$0xff] %vm2644_vm5, %v2313_v48  ;;  %2648 = vst.msk [vmem:[#allocation2 + $0x38] sm:$0xff] %vm2644_vm5, %v2315_v28 }
 0x1bf   :  { %10609 = vmatprep.subr.mxu0 %v14109_v44 }
 0x1c0   :  { %10610 = vmatpush3.msra.mxu0 %v14109_v44  ;;  %2376 = vrot.lane.b32.xlu0 %v1478_v7, %s12175_s28 }
 0x1c1   :  { %10611 = vmatprep.subr.mxu0 %v14127_v6  ;;  %2378 = vrot.lane.b32.xlu1 %v1477_v55, %s12175_s28  ;;  %v2317_v29 = vpop.permute.xlu0 %2316  ;;  %v2319_v56 = vpop.permute.xlu1 %2318  ;;  %v14248_v55 = vmax.f32 %v879_v49, 0.0 }
 0x1c2   :  { %10612 = vmatpush3.msra.mxu0 %v14127_v6  ;;  %2649 = vst.msk [vmem:[#allocation2 + $0x40] sm:$0xff] %vm2644_vm5, %v2317_v29  ;;  %2650 = vst.msk [vmem:[#allocation2 + $0x48] sm:$0xff] %vm2644_vm5, %v2319_v56  ;;  %v12092_v56 = vld [vmem:[%s19268_s3 + $0x58] sm:$0xff] }
 0x1c3   :  { %10613 = vmatprep.subr.mxu0 %v14144_v54 }
 0x1c4   :  { %10614 = vmatpush3.msra.mxu0 %v14144_v54  ;;  %1819 = vrot.lane.b32.xlu0 %v14066_v45, %s12174_s16 }
 0x1c5   :  { %10615 = vmatprep.subr.mxu0 %v14159_v62  ;;  %1821 = vrot.lane.b32.xlu1 %v14149_v13, %s12174_s16  ;;  %v2321_v35 = vpop.permute.xlu0 %2320  ;;  %v2323_v9 = vpop.permute.xlu1 %2322  ;;  %v2763_v11 = vld [vmem:[#allocation2 + $0x30] sm:$0xff]  ;;  %v2764_v12 = vld [vmem:[#allocation2 + $0x38] sm:$0xff] }
 0x1c6   :  { %10616 = vmatpush3.msra.mxu0 %v14159_v62  ;;  %2651 = vst.msk [vmem:[#allocation2 + $0x50] sm:$0xff] %vm2644_vm5, %v2321_v35  ;;  %2652 = vst.msk [vmem:[#allocation2 + $0x58] sm:$0xff] %vm2644_vm5, %v2323_v9  ;;  %10560 = vmatprep.mubr.msk.f32.mxu0 %vm1514_vm1, %v2763_v11  ;;  %v12094_v9 = vld [vmem:[%s19268_s3 + $0x48] sm:$0xff] }
 0x1c7   :  { %10602 = vmatprep.mubr.msk.f32.mxu1 %vm1514_vm1, %v2763_v11  ;;  %10617 = vmatprep.subr.mxu0 %v14176_v60  ;;  %v1328_v11 = vrot.slane %v14207_v17, 1 }
 0x1c8   :  { %10561 = vmatmul.mubr.msk.f32.gmra.mxu0 %vm1514_vm1, %v2764_v12  ;;  %10603 = vmatmul.mubr.msk.f32.gmra.mxu1 %vm1514_vm1, %v2764_v12  ;;  %v12095_v12 = vld [vmem:[%s19267_s0 + $0x150] sm:$0xff] }
 0x1c9   :  { %10618 = vmatpush3.msra.mxu0 %v14176_v60  ;;  %v1768_v30 = vpop.permute.xlu0 %1767  ;;  %v1770_v24 = vpop.permute.xlu1 %1769  ;;  %v14210_v39 = vld [vmem:[#allocation2 + $0x40] sm:$0xff]  ;;  %v14212_v37 = vld [vmem:[#allocation2 + $0x48] sm:$0xff]  ;;  %1823 = vrot.lane.b32.xlu0 %v14182_v25, %s12174_s16  ;;  %v768_v42 = vmul.f32 %v12095_v12, %v13369_v19 }
 0x1ca   :  { %10619 = vmatprep.subr.mxu0 %v14196_v40  ;;  %2094 = vst.msk [vmem:[#allocation2 + $0x70] sm:$0xff] %vm2083_vm4, %v1768_v30  ;;  %2095 = vst.msk [vmem:[#allocation2 + $0x78] sm:$0xff] %vm2083_vm4, %v1770_v24  ;;  %10563 = vmatprep.mubr.msk.f32.mxu0 %vm1514_vm1, %v14210_v39  ;;  %v12096_v24 = vld [vmem:[%s19268_s3 + $0x40] sm:$0xff] }
 0x1cb   :  { %10620 = vmatpush3.msra.mxu0 %v14196_v40  ;;  %1825 = vrot.lane.b32.xlu1 %v14207_v17, %s12174_s16 }
 0x1cc   :  { %10621 = vmatprep.subr.mxu0 %v14205_v18  ;;  %10564 = vmatmul.mubr.msk.f32.gmra.mxu0 %vm1514_vm1, %v14212_v37 }
 0x1cd   :  { %10622 = vmatpush3.msra.mxu0 %v14205_v18  ;;  %v2325_v7 = vpop.permute.xlu0 %2324  ;;  %v2327_v33 = vpop.permute.xlu1 %2326  ;;  %v14242_v48 = vld [vmem:[#allocation2 + $0x50] sm:$0xff]  ;;  %v14244_v28 = vld [vmem:[#allocation2 + $0x58] sm:$0xff]  ;;  %1827 = vrot.lane.b32.xlu0 %v14216_v43, %s12174_s16 }
 0x1ce   :  { %10623 = vmatprep.subr.mxu0 %v14227_v0  ;;  %2653 = vst.msk [vmem:[#allocation2 + $0x60] sm:$0xff] %vm2644_vm5, %v2325_v7  ;;  %2654 = vst.msk [vmem:[#allocation2 + $0x68] sm:$0xff] %vm2644_vm5, %v2327_v33  ;;  %10566 = vmatprep.mubr.msk.f32.mxu0 %vm1514_vm1, %v14242_v48  ;;  %v12098_v7 = vld [vmem:[%s19268_s3 + $0x38] sm:$0xff]  ;;  %v1474_v33 = vsel %vm1401_vm2, %v1327_v20, %v1328_v11 }
 0x1cf   :  { %10624 = vmatpush3.msra.mxu0 %v14227_v0  ;;  %1829 = vrot.lane.b32.xlu1 %v14248_v55, %s12174_s16 }
 0x1d0   :  { %10625 = vmatprep.subr.mxu0 %v14237_v5  ;;  %10567 = vmatmul.mubr.msk.f32.gmra.mxu0 %vm1514_vm1, %v14244_v28 }
 0x1d1   :  { %10626 = vmatpush3.msra.mxu0 %v14237_v5  ;;  %10629 = vmatprep.mubr.msk.f32.mxu0 %vm1514_vm1, %v14210_v39  ;;  %v1772_v27 = vpop.permute.xlu0 %1771  ;;  %v1774_v29 = vpop.permute.xlu1 %1773 }
 0x1d2   :  { %10627 = vmatprep.subr.mxu0 %v14258_v58  ;;  %2096 = vst.msk [vmem:[#allocation2 + $0x80] sm:$0xff] %vm2083_vm4, %v1772_v27  ;;  %2097 = vst.msk [vmem:[#allocation2 + $0x88] sm:$0xff] %vm2083_vm4, %v1774_v29  ;;  %2380 = vrot.lane.b32.xlu0 %v1476_v41, %s12175_s28  ;;  %v880_v41 = vadd.f32 %v768_v42, %v13444_v46  ;;  %v1255_v29 = vsel %vm1176_vm3, %v1094_v34, %v1095_v63  ;;  %v1330_v42 = vrot.slane %v14248_v55, 1 }
 0x1d3   :  { %10628 = vmatpush3.msra.mxu0 %v14258_v58  ;;  %2382 = vrot.lane.b32.xlu1 %v1475_v31, %s12175_s28  ;;  %v1096_v31 = vrot.slane %v14060_v38, 7  ;;  %1556 = vst.msk [vmem:[#allocation2 + $0x128] sm:$0xff] %vm129_vm0, %v1255_v29  ;;  %v1097_v38 = vrot.slane %v14062_v22, 7 }
 0x1d4   :  { %10677 = vmatprep.subr.mxu0 %v12092_v56  ;;  %10630 = vmatmul.mubr.msk.f32.vlgmr.msra.gmra.mxu0 %vm1514_vm1, %v14212_v37  ;;  %v14361_v20 = vmax.f32 %v880_v41, 0.0 }
 0x1d5   :  { %10678 = vmatpush3.msra.mxu0 %v12092_v56  ;;  %10632 = vmatprep.mubr.msk.f32.mxu0 %vm1514_vm1, %v14242_v48  ;;  %v1776_v2 = vpop.permute.xlu0 %1775  ;;  %v1778_v26 = vpop.permute.xlu1 %1777  ;;  %v14290_v36 = vld [vmem:[#allocation2 + $0x60] sm:$0xff]  ;;  %v14292_v35 = vld [vmem:[#allocation2 + $0x68] sm:$0xff]  ;;  %v1253_v12 = vsel %vm1176_vm3, %v1096_v31, %v1097_v38 }
 0x1d6   :  { %10679 = vmatprep.subr.mxu0 %v12093_v8  ;;  %2098 = vst.msk [vmem:[#allocation2 + $0x90] sm:$0xff] %vm2083_vm4, %v1776_v2  ;;  %2099 = vst.msk [vmem:[#allocation2 + $0x98] sm:$0xff] %vm2083_vm4, %v1778_v26  ;;  %10665 = vmatprep.mubr.msk.f32.mxu1 %vm1514_vm1, %v14290_v36  ;;  %v12100_v56 = vld [vmem:[%s19268_s3 + $0x28] sm:$0xff] }
 0x1d7   :  { %10680 = vmatpush3.msra.mxu0 %v12093_v8  ;;  %10666 = vmatmul.mubr.msk.f32.vlgmr.msra.gmra.mxu1 %vm1514_vm1, %v14292_v35  ;;  %1558 = vst.msk [vmem:[#allocation2 + $0x138] sm:$0xff] %vm129_vm0, %v1253_v12 }
 0x1d8   :  { %10681 = vmatprep.subr.mxu0 %v12094_v9  ;;  %10633 = vmatmul.mubr.msk.f32.gmra.mxu0 %vm1514_vm1, %v14244_v28 }
 0x1d9   :  { %10682 = vmatpush3.msra.mxu0 %v12094_v9  ;;  %10714 = vmatpush3.msra.mxu1 %v13576_v10  ;;  %v2329_v47 = vpop.permute.xlu0 %2328  ;;  %v2331_v30 = vpop.permute.xlu1 %2330  ;;  %v12097_v10 = vld [vmem:[%s19267_s0 + $0x158] sm:$0xff]  ;;  %v12101_v9 = vld [vmem:[%s19268_s3 + $0x20] sm:$0xff] }
 0x1da   :  { %10635 = vmatprep.mubr.msk.f32.mxu0 %vm1514_vm1, %v14290_v36  ;;  %10683 = vmatprep.subr.mxu0 %v12096_v24  ;;  %2655 = vst.msk [vmem:[#allocation2 + $0x70] sm:$0xff] %vm2644_vm5, %v2329_v47  ;;  %2656 = vst.msk [vmem:[#allocation2 + $0x78] sm:$0xff] %vm2644_vm5, %v2331_v30  ;;  %v769_v49 = vmul.f32 %v12097_v10, %v13363_v32  ;;  %v1331_v30 = vrot.slane %v14361_v20, 1  ;;  %v12103_v10 = vld [vmem:[%s19268_s3 + $0x18] sm:$0xff] }
 0x1db   :  { %10715 = vmatprep.subr.mxu1 %v14094_v16  ;;  %10684 = vmatpush3.msra.mxu0 %v12096_v24 }
 0x1dc   :  { %10716 = vmatpush3.msra.mxu1 %v14094_v16  ;;  %10685 = vmatprep.subr.mxu0 %v12098_v7  ;;  %v881_v61 = vadd.f32 %v769_v49, %v13434_v50  ;;  %v12104_v49 = vld [vmem:[%s19267_s0 + $0x168] sm:$0xff] }
 0x1dd   :  { %10717 = vmatprep.subr.mxu1 %v14109_v44  ;;  %10636 = vmatmul.mubr.msk.f32.gmra.mxu0 %vm1514_vm1, %v14292_v35  ;;  %v2333_v16 = vpop.permute.xlu0 %2332  ;;  %v2335_v27 = vpop.permute.xlu1 %2334  ;;  %v771_v34 = vmul.f32 %v12104_v49, %v13367_v51  ;;  %v14504_v49 = vld [vmem:[%s19268_s3 + $0xb0] sm:$0xff] }
 0x1de   :  { %10718 = vmatpush3.msra.mxu1 %v14109_v44  ;;  %10686 = vmatpush3.msra.mxu0 %v12098_v7  ;;  %2657 = vst.msk [vmem:[#allocation2 + $0x80] sm:$0xff] %vm2644_vm5, %v2333_v16  ;;  %v1473_v44 = vsel %vm1401_vm2, %v1328_v11, %v1329_v14  ;;  %2658 = vst.msk [vmem:[#allocation2 + $0x88] sm:$0xff] %vm2644_vm5, %v2335_v27  ;;  %v14369_v26 = vmax.f32 %v881_v61, 0.0  ;;  %v1472_v7 = vsel %vm1401_vm2, %v1329_v14, %v1330_v42  ;;  %v12105_v16 = vld [vmem:[%s19268_s3 + $0x10] sm:$0xff] }
 0x1df   :  { %10719 = vmatprep.subr.mxu1 %v14127_v6  ;;  %10687 = vmatprep.subr.mxu0 %v12099_v23  ;;  %v1471_v27 = vsel %vm1401_vm2, %v1330_v42, %v1331_v30  ;;  %v883_v14 = vadd.f32 %v771_v34, %v13438_v53  ;;  %v14527_v34 = vld [vmem:[%s19268_s3 + $0x58] sm:$0xff] }
 0x1e0   :  { %2384 = vrot.lane.b32.xlu0 %v1474_v33, %s12175_s28  ;;  %10688 = vmatpush3.msra.mxu0 %v12099_v23  ;;  %v12107_v23 = vld [vmem:[%s19268_s3 + $0x8] sm:$0xff] }
 0x1e1   :  { %10720 = vmatpush3.msra.mxu1 %v14127_v6  ;;  %2386 = vrot.lane.b32.xlu1 %v1473_v44, %s12175_s28  ;;  %v2337_v8 = vpop.permute.xlu0 %2336  ;;  %v2339_v2 = vpop.permute.xlu1 %2338  ;;  %v1254_v6 = vsel %vm1176_vm3, %v1095_v63, %v1096_v31  ;;  %v14378_v11 = vld [vmem:[#allocation2 + $0x70] sm:$0xff] }
 0x1e2   :  { %10689 = vmatprep.subr.mxu0 %v12100_v56  ;;  %10721 = vmatprep.subr.mxu1 %v14144_v54  ;;  %2659 = vst.msk [vmem:[#allocation2 + $0x90] sm:$0xff] %vm2644_vm5, %v2337_v8  ;;  %2660 = vst.msk [vmem:[#allocation2 + $0x98] sm:$0xff] %vm2644_vm5, %v2339_v2  ;;  %v12106_v31 = vld [vmem:[%s19267_s0 + $0x170] sm:$0xff]  ;;  %v12108_v8 = vld [vmem:[%s19267_s0 + $0x178] sm:$0xff] }
 0x1e3   :  { %10690 = vmatpush3.msra.mxu0 %v12100_v56  ;;  %10722 = vmatpush3.msra.mxu1 %v14144_v54  ;;  %1557 = vst.msk [vmem:[#allocation2 + $0x130] sm:$0xff] %vm129_vm0, %v1254_v6  ;;  %v14390_v54 = vld [vmem:[#allocation2 + $0x78] sm:$0xff]  ;;  %v773_v2 = vmul.f32 %v12108_v8, %v13363_v32  ;;  %v12109_v6 = vld [vmem:[%s19268_s3] sm:$0xff] }
 0x1e4   :  { %10691 = vmatprep.subr.mxu0 %v12101_v9  ;;  %10723 = vmatprep.subr.mxu1 %v14159_v62 }
 0x1e5   :  { %1831 = vrot.lane.b32.xlu0 %v14361_v20, %s12174_s16  ;;  %10692 = vmatpush3.msra.mxu0 %v12101_v9  ;;  %v1780_v63 = vpop.permute.xlu0 %1779  ;;  %v1782_v47 = vpop.permute.xlu1 %1781  ;;  %v14440_v29 = vld [vmem:[#allocation2 + $0x88] sm:$0xff] }
 0x1e6   :  { %10724 = vmatpush3.msra.mxu1 %v14159_v62  ;;  %1833 = vrot.lane.b32.xlu1 %v14369_v26, %s12174_s16  ;;  %2100 = vst.msk [vmem:[#allocation2 + $0xa0] sm:$0xff] %vm2083_vm4, %v1780_v63  ;;  %2101 = vst.msk [vmem:[#allocation2 + $0xa8] sm:$0xff] %vm2083_vm4, %v1782_v47  ;;  %v12102_v62 = vld [vmem:[%s19267_s0 + $0x160] sm:$0xff] }
 0x1e7   :  { %10638 = vmatprep.mubr.msk.f32.mxu0 %vm1514_vm1, %v14378_v11  ;;  %v770_v24 = vmul.f32 %v12102_v62, %v13365_v4  ;;  %10668 = vmatprep.mubr.msk.f32.mxu1 %vm1514_vm1, %v14378_v11  ;;  %v885_v62 = vadd.f32 %v773_v2, %v13434_v50 }
 0x1e8   :  { %10693 = vmatprep.subr.mxu0 %v12103_v10  ;;  %10725 = vmatprep.subr.mxu1 %v14176_v60 }
 0x1e9   :  { %10639 = vmatmul.mubr.msk.f32.gmra.mxu0 %vm1514_vm1, %v14390_v54  ;;  %10669 = vmatmul.mubr.msk.f32.gmra.mxu1 %vm1514_vm1, %v14390_v54  ;;  %v1784_v33 = vpop.permute.xlu0 %1783  ;;  %v1786_v41 = vpop.permute.xlu1 %1785  ;;  %v882_v57 = vadd.f32 %v770_v24, %v13436_v21  ;;  %v14471_v9 = vld [vmem:[#allocation2 + $0x90] sm:$0xff]  ;;  %v14486_v47 = vld [vmem:[#allocation2 + $0x98] sm:$0xff] }
 0x1ea   :  { %10694 = vmatpush3.msra.mxu0 %v12103_v10  ;;  %10726 = vmatpush3.msra.mxu1 %v14176_v60  ;;  %2102 = vst.msk [vmem:[#allocation2 + $0xb0] sm:$0xff] %vm2083_vm4, %v1784_v33  ;;  %2103 = vst.msk [vmem:[#allocation2 + $0xb8] sm:$0xff] %vm2083_vm4, %v1786_v41  ;;  %v14436_v60 = vld [vmem:[#allocation2 + $0x80] sm:$0xff] }
 0x1eb   :  { %10695 = vmatprep.subr.mxu0 %v12105_v16  ;;  %10701 = vmatprep.mubr.msk.f32.mxu0 %vm1514_vm1, %v14210_v39  ;;  %v772_v39 = vmul.f32 %v12106_v31, %v13369_v19  ;;  %v14453_v56 = vmax.f32 %v882_v57, 0.0 }
 0x1ec   :  { %10727 = vmatprep.subr.mxu1 %v14196_v40  ;;  %2388 = vrot.lane.b32.xlu0 %v1472_v7, %s12175_s28  ;;  %v1332_v7 = vrot.slane %v14369_v26, 1 }
 0x1ed   :  { %10696 = vmatpush3.msra.mxu0 %v12105_v16  ;;  %10728 = vmatpush3.msra.mxu1 %v14196_v40  ;;  %v2341_v44 = vpop.permute.xlu0 %2340  ;;  %v2343_v61 = vpop.permute.xlu1 %2342  ;;  %v14460_v40 = vmax.f32 %v883_v14, 0.0  ;;  %v884_v12 = vadd.f32 %v772_v39, %v13444_v46  ;;  %v1098_v16 = vrot.slane %v14066_v45, 7  ;;  %v14559_v45 = vld [vmem:[%s19268_s3 + $0x50] sm:$0xff]  ;;  %v1106_v15 = vrot.slane %v14453_v56, 7 }
 0x1ee   :  { %2390 = vrot.lane.b32.xlu1 %v1471_v27, %s12175_s28  ;;  %10671 = vmatprep.mubr.msk.f32.mxu1 %vm1514_vm1, %v14436_v60  ;;  %2661 = vst.msk [vmem:[#allocation2 + $0xa0] sm:$0xff] %vm2644_vm5, %v2341_v44  ;;  %2662 = vst.msk [vmem:[#allocation2 + $0xa8] sm:$0xff] %vm2644_vm5, %v2343_v61  ;;  %v12110_v27 = vld [vmem:[%s19267_s0 + $0x180] sm:$0xff]  ;;  %v1470_v14 = vsel %vm1401_vm2, %v1331_v30, %v1332_v7  ;;  %v1101_v44 = vrot.slane %v14207_v17, 7  ;;  %v14588_v17 = vld [vmem:[%s19268_s3 + $0x98] sm:$0xff] }
 0x1ef   :  { %10697 = vmatprep.subr.mxu0 %v12107_v23  ;;  %10729 = vmatprep.subr.mxu1 %v14205_v18  ;;  %v14495_v24 = vmax.f32 %v884_v12, 0.0  ;;  %v774_v57 = vmul.f32 %v12110_v27, %v13365_v4  ;;  %v1334_v30 = vrot.slane %v14460_v40, 1  ;;  %v1102_v12 = vrot.slane %v14216_v43, 7  ;;  %v14617_v43 = vld [vmem:[%s19268_s3 + $0x90] sm:$0xff] }
 0x1f0   :  { %10672 = vmatmul.mubr.msk.f32.gmra.mxu1 %vm1514_vm1, %v14440_v29  ;;  %10698 = vmatpush3.msra.mxu0 %v12107_v23 }
 0x1f1   :  { %10730 = vmatpush3.msra.mxu1 %v14205_v18  ;;  %10699 = vmatprep.subr.mxu0 %v12109_v6  ;;  %v2345_v42 = vpop.permute.xlu0 %2344  ;;  %v2347_v63 = vpop.permute.xlu1 %2346  ;;  %v14479_v18 = vld [vmem:[%s19268_s3 + $0xb8] sm:$0xff]  ;;  %v886_v61 = vadd.f32 %v774_v57, %v13436_v21  ;;  %v1335_v23 = vrot.slane %v14495_v24, 1 }
 0x1f2   :  { %10731 = vmatprep.subr.mxu1 %v14227_v0  ;;  %1835 = vrot.lane.b32.xlu0 %v14453_v56, %s12174_s16  ;;  %2663 = vst.msk [vmem:[#allocation2 + $0xb0] sm:$0xff] %vm2644_vm5, %v2345_v42  ;;  %2664 = vst.msk [vmem:[#allocation2 + $0xb8] sm:$0xff] %vm2644_vm5, %v2347_v63  ;;  %v1103_v63 = vrot.slane %v14248_v55, 7 }
 0x1f3   :  { %10700 = vmatpush3.msra.mxu0 %v12109_v6  ;;  %10732 = vmatpush3.msra.mxu1 %v14227_v0 }
 0x1f4   :  { %1837 = vrot.lane.b32.xlu1 %v14460_v40, %s12174_s16  ;;  %10674 = vmatprep.mubr.msk.f32.mxu1 %vm1514_vm1, %v14471_v9  ;;  %v1247_v27 = vsel %vm1176_vm3, %v1102_v12, %v1103_v63 }
 0x1f5   :  { %10702 = vmatmul.mubr.msk.f32.vlgmr.msra.gmra.mxu0 %vm1514_vm1, %v14212_v37  ;;  %10733 = vmatprep.subr.mxu1 %v14237_v5  ;;  %v1788_v0 = vpop.permute.xlu0 %1787  ;;  %v1790_v10 = vpop.permute.xlu1 %1789  ;;  %v14510_v37 = vmax.f32 %v885_v62, 0.0  ;;  %v14665_v57 = vld [vmem:[#allocation2 + $0xa8] sm:$0xff]  ;;  %1564 = vst.msk [vmem:[#allocation2 + $0x168] sm:$0xff] %vm129_vm0, %v1247_v27  ;;  %v12112_v27 = vld [vmem:[%s19267_s0 + $0x190] sm:$0xff] }
 0x1f6   :  { %10749 = vmatprep.subr.mxu0 %v14479_v18  ;;  %10675 = vmatmul.mubr.msk.f32.gmra.mxu1 %vm1514_vm1, %v14486_v47  ;;  %2104 = vst.msk [vmem:[#allocation2 + $0xc0] sm:$0xff] %vm2083_vm4, %v1788_v0  ;;  %2105 = vst.msk [vmem:[#allocation2 + $0xc8] sm:$0xff] %vm2083_vm4, %v1790_v10  ;;  %v14631_v0 = vmax.f32 %v886_v61, 0.0  ;;  %v1467_v10 = vsel %vm1401_vm2, %v1334_v30, %v1335_v23 }
 0x1f7   :  { %10704 = vmatprep.mubr.msk.f32.mxu0 %vm1514_vm1, %v14242_v48  ;;  %10734 = vmatpush3.msra.mxu1 %v14237_v5  ;;  %v1099_v48 = vrot.slane %v14149_v13, 7  ;;  %v14522_v5 = vld [vmem:[%s19268_s3 + $0xa8] sm:$0xff]  ;;  %v1333_v13 = vrot.slane %v14453_v56, 1 }
 0x1f8   :  { %10750 = vmatpush3.msra.mxu0 %v14479_v18  ;;  %10735 = vmatprep.subr.mxu1 %v14258_v58 }
 0x1f9   :  { %10737 = vmatprep.mubr.msk.f32.mxu1 %vm1514_vm1, %v14436_v60  ;;  %10751 = vmatprep.subr.mxu0 %v14504_v49  ;;  %v1792_v33 = vpop.permute.xlu0 %1791  ;;  %v1794_v41 = vpop.permute.xlu1 %1793  ;;  %v1469_v22 = vsel %vm1401_vm2, %v1332_v7, %v1333_v13  ;;  %v1468_v62 = vsel %vm1401_vm2, %v1333_v13, %v1334_v30  ;;  %v14651_v13 = vld [vmem:[%s19268_s3 + $0x88] sm:$0xff] }
 0x1fa   :  { %1839 = vrot.lane.b32.xlu0 %v14495_v24, %s12174_s16  ;;  %10736 = vmatpush3.msra.mxu1 %v14258_v58  ;;  %2106 = vst.msk [vmem:[#allocation2 + $0xd0] sm:$0xff] %vm2083_vm4, %v1792_v33  ;;  %2107 = vst.msk [vmem:[#allocation2 + $0xd8] sm:$0xff] %vm2083_vm4, %v1794_v41  ;;  %v14545_v58 = vld [vmem:[%s19268_s3 + $0xa0] sm:$0xff]  ;;  %v1336_v33 = vrot.slane %v14510_v37, 1  ;;  %v1248_v41 = vsel %vm1176_vm3, %v1101_v44, %v1102_v12  ;;  %v14710_v30 = vld [vmem:[%s19268_s3 + $0x28] sm:$0xff] }
 0x1fb   :  { %10752 = vmatpush3.msra.mxu0 %v14504_v49  ;;  %1841 = vrot.lane.b32.xlu1 %v14510_v37, %s12174_s16  ;;  %1563 = vst.msk [vmem:[#allocation2 + $0x160] sm:$0xff] %vm129_vm0, %v1248_v41 }
 0x1fc   :  { %10705 = vmatmul.mubr.msk.f32.gmra.mxu0 %vm1514_vm1, %v14244_v28  ;;  %10753 = vmatprep.subr.mxu0 %v14522_v5  ;;  %v1100_v28 = vrot.slane %v14182_v25, 7  ;;  %v1252_v25 = vsel %vm1176_vm3, %v1097_v38, %v1098_v16  ;;  %v14593_v38 = vld [vmem:[%s19268_s3 + $0x48] sm:$0xff] }
 0x1fd   :  { %10785 = vmatprep.subr.mxu1 %v14527_v34  ;;  %10707 = vmatprep.mubr.msk.f32.mxu0 %vm1514_vm1, %v14290_v36  ;;  %v1796_v31 = vpop.permute.xlu0 %1795  ;;  %v1798_v39 = vpop.permute.xlu1 %1797  ;;  %v1251_v36 = vsel %vm1176_vm3, %v1098_v16, %v1099_v48  ;;  %1559 = vst.msk [vmem:[#allocation2 + $0x140] sm:$0xff] %vm129_vm0, %v1252_v25  ;;  %v14656_v16 = vld [vmem:[%s19268_s3 + $0x38] sm:$0xff]  ;;  %v14683_v25 = vld [vmem:[%s19268_s3 + $0x30] sm:$0xff] }
 0x1fe   :  { %10738 = vmatmul.mubr.msk.f32.vlgmr.msra.gmra.mxu1 %vm1514_vm1, %v14440_v29  ;;  %10754 = vmatpush3.msra.mxu0 %v14522_v5  ;;  %2108 = vst.msk [vmem:[#allocation2 + $0xe0] sm:$0xff] %vm2083_vm4, %v1796_v31  ;;  %2109 = vst.msk [vmem:[#allocation2 + $0xe8] sm:$0xff] %vm2083_vm4, %v1798_v39  ;;  %v1250_v6 = vsel %vm1176_vm3, %v1099_v48, %v1100_v28  ;;  %v1249_v42 = vsel %vm1176_vm3, %v1100_v28, %v1101_v44  ;;  %v1337_v28 = vrot.slane %v14631_v0, 1  ;;  %v14698_v44 = vld [vmem:[#allocation2 + $0xb0] sm:$0xff] }
 0x1ff   :  { %10786 = vmatpush3.msra.mxu1 %v14527_v34  ;;  %1560 = vst.msk [vmem:[#allocation2 + $0x148] sm:$0xff] %vm129_vm0, %v1251_v36  ;;  %10740 = vmatprep.mubr.msk.f32.mxu1 %vm1514_vm1, %v14471_v9  ;;  %1561 = vst.msk [vmem:[#allocation2 + $0x150] sm:$0xff] %vm129_vm0, %v1250_v6  ;;  %v12111_v6 = vld [vmem:[%s19267_s0 + $0x188] sm:$0xff] }
 0x200   :  { %10755 = vmatprep.subr.mxu0 %v14545_v58  ;;  %10787 = vmatprep.subr.mxu1 %v14559_v45  ;;  %1562 = vst.msk [vmem:[#allocation2 + $0x158] sm:$0xff] %vm129_vm0, %v1249_v42  ;;  %v1465_v36 = vsel %vm1401_vm2, %v1336_v33, %v1337_v28  ;;  %v775_v12 = vmul.f32 %v12111_v6, %v13367_v51  ;;  %v14735_v42 = vld [vmem:[%s19268_s3 + $0x20] sm:$0xff]  ;;  %v14792_v6 = vld [vmem:[%s19268_s3 + $0x8] sm:$0xff] }
 0x201   :  { %2392 = vrot.lane.b32.xlu0 %v1470_v14, %s12175_s28  ;;  %10756 = vmatpush3.msra.mxu0 %v14545_v58  ;;  %v2349_v8 = vpop.permute.xlu0 %2348  ;;  %v2351_v2 = vpop.permute.xlu1 %2350  ;;  %v14676_v14 = vld [vmem:[%s19268_s3 + $0x80] sm:$0xff] }
 0x202   :  { %10788 = vmatpush3.msra.mxu1 %v14559_v45  ;;  %2394 = vrot.lane.b32.xlu1 %v1469_v22, %s12175_s28  ;;  %2665 = vst.msk [vmem:[#allocation2 + $0xc0] sm:$0xff] %vm2644_vm5, %v2349_v8  ;;  %2666 = vst.msk [vmem:[#allocation2 + $0xc8] sm:$0xff] %vm2644_vm5, %v2351_v2  ;;  %v14705_v22 = vld [vmem:[%s19268_s3 + $0x78] sm:$0xff]  ;;  %v14724_v2 = vld [vmem:[%s19268_s3 + $0x70] sm:$0xff]  ;;  %v887_v41 = vadd.f32 %v775_v12, %v13438_v53 }
 0x203   :  { %10708 = vmatmul.mubr.msk.f32.gmra.mxu0 %vm1514_vm1, %v14292_v35  ;;  %10757 = vmatprep.subr.mxu0 %v14588_v17  ;;  %v14622_v35 = vld [vmem:[%s19268_s3 + $0x40] sm:$0xff]  ;;  %v14714_v8 = vld [vmem:[#allocation2 + $0xb8] sm:$0xff] }
 0x204   :  { %10789 = vmatprep.subr.mxu1 %v14593_v38  ;;  %10710 = vmatprep.mubr.msk.f32.mxu0 %vm1514_vm1, %v14378_v11  ;;  %v14639_v11 = vld [vmem:[#allocation2 + $0xa0] sm:$0xff]  ;;  %v14794_v12 = vmax.f32 %v887_v41, 0.0 }
 0x205   :  { %10741 = vmatmul.mubr.msk.f32.gmra.mxu1 %vm1514_vm1, %v14486_v47  ;;  %10758 = vmatpush3.msra.mxu0 %v14588_v17  ;;  %v2353_v48 = vpop.permute.xlu0 %2352  ;;  %v2355_v7 = vpop.permute.xlu1 %2354 }
 0x206   :  { %10790 = vmatpush3.msra.mxu1 %v14593_v38  ;;  %10759 = vmatprep.subr.mxu0 %v14617_v43  ;;  %2667 = vst.msk [vmem:[#allocation2 + $0xd0] sm:$0xff] %vm2644_vm5, %v2353_v48  ;;  %2668 = vst.msk [vmem:[#allocation2 + $0xd8] sm:$0xff] %vm2644_vm5, %v2355_v7  ;;  %v14745_v48 = vld [vmem:[%s19268_s3 + $0x68] sm:$0xff]  ;;  %v1104_v7 = vrot.slane %v14361_v20, 7  ;;  %v14768_v20 = vld [vmem:[%s19268_s3 + $0x60] sm:$0xff] }
 0x207   :  { %10791 = vmatprep.subr.mxu1 %v14622_v35  ;;  %2396 = vrot.lane.b32.xlu0 %v1468_v62, %s12175_s28 }
 0x208   :  { %10760 = vmatpush3.msra.mxu0 %v14617_v43  ;;  %10792 = vmatpush3.msra.mxu1 %v14622_v35 }
 0x209   :  { %2398 = vrot.lane.b32.xlu1 %v1467_v10, %s12175_s28  ;;  %10711 = vmatmul.mubr.msk.f32.gmra.mxu0 %vm1514_vm1, %v14390_v54  ;;  %v1800_v31 = vpop.permute.xlu0 %1799  ;;  %v1802_v39 = vpop.permute.xlu1 %1801  ;;  %v1466_v54 = vsel %vm1401_vm2, %v1335_v23, %v1336_v33  ;;  %v14756_v33 = vld [vmem:[%s19268_s3 + $0x18] sm:$0xff] }
 0x20a   :  { %10743 = vmatprep.mubr.msk.f32.mxu1 %vm1514_vm1, %v14639_v11  ;;  %10761 = vmatprep.subr.mxu0 %v14651_v13  ;;  %2110 = vst.msk [vmem:[#allocation2 + $0xf0] sm:$0xff] %vm2083_vm4, %v1800_v31  ;;  %2111 = vst.msk [vmem:[#allocation2 + $0xf8] sm:$0xff] %vm2083_vm4, %v1802_v39  ;;  %v776_v31 = vmul.f32 %v12112_v27, %v13369_v19  ;;  %v14777_v39 = vld [vmem:[%s19268_s3 + $0x10] sm:$0xff]  ;;  %v14806_v27 = vld [vmem:[%s19268_s3 + $0x118] sm:$0xff] }
 0x20b   :  { %10793 = vmatprep.subr.mxu1 %v14656_v16  ;;  %10744 = vmatmul.mubr.msk.f32.gmra.mxu1 %vm1514_vm1, %v14665_v57 }
 0x20c   :  { %10762 = vmatpush3.msra.mxu0 %v14651_v13  ;;  %10794 = vmatpush3.msra.mxu1 %v14656_v16 }
 0x20d   :  { %10763 = vmatprep.subr.mxu0 %v14676_v14  ;;  %10795 = vmatprep.subr.mxu1 %v14683_v25  ;;  %v2357_v61 = vpop.permute.xlu0 %2356  ;;  %v2359_v23 = vpop.permute.xlu1 %2358 }
 0x20e   :  { %2400 = vrot.lane.b32.xlu0 %v1466_v54, %s12175_s28  ;;  %10764 = vmatpush3.msra.mxu0 %v14676_v14  ;;  %2669 = vst.msk [vmem:[#allocation2 + $0xe0] sm:$0xff] %vm2644_vm5, %v2357_v61  ;;  %2670 = vst.msk [vmem:[#allocation2 + $0xe8] sm:$0xff] %vm2644_vm5, %v2359_v23  ;;  %v12113_v61 = vld [vmem:[%s19267_s0 + $0x198] sm:$0xff] }
 0x20f   :  { %10796 = vmatpush3.msra.mxu1 %v14683_v25  ;;  %2402 = vrot.lane.b32.xlu1 %v1465_v36, %s12175_s28  ;;  %v777_v23 = vmul.f32 %v12113_v61, %v13363_v32  ;;  %v12114_v61 = vld [vmem:[%s19267_s0 + $0x1a0] sm:$0xff] }
 0x210   :  { %10746 = vmatprep.mubr.msk.f32.mxu1 %vm1514_vm1, %v14698_v44  ;;  %10765 = vmatprep.subr.mxu0 %v14705_v22 }
 0x211   :  { %10797 = vmatprep.subr.mxu1 %v14710_v30  ;;  %10747 = vmatmul.mubr.msk.f32.gmra.mxu1 %vm1514_vm1, %v14714_v8  ;;  %v1804_v62 = vpop.permute.xlu0 %1803  ;;  %v1806_v10 = vpop.permute.xlu1 %1805 }
 0x212   :  { %10766 = vmatpush3.msra.mxu0 %v14705_v22  ;;  %10798 = vmatpush3.msra.mxu1 %v14710_v30  ;;  %2112 = vst.msk [vmem:[#allocation2 + $0x100] sm:$0xff] %vm2083_vm4, %v1804_v62  ;;  %2113 = vst.msk [vmem:[#allocation2 + $0x108] sm:$0xff] %vm2083_vm4, %v1806_v10  ;;  %v888_v62 = vadd.f32 %v776_v31, %v13444_v46  ;;  %v1246_v10 = vsel %vm1176_vm3, %v1103_v63, %v1104_v7  ;;  %v14822_v31 = vld [vmem:[%s19268_s3] sm:$0xff] }
 0x213   :  { %10767 = vmatprep.subr.mxu0 %v14724_v2  ;;  %10799 = vmatprep.subr.mxu1 %v14735_v42  ;;  %1565 = vst.msk [vmem:[#allocation2 + $0x170] sm:$0xff] %vm129_vm0, %v1246_v10 }
 0x214   :  { %10809 = vmatprep.mubr.msk.f32.mxu1 %vm1514_vm1, %v14436_v60  ;;  %10768 = vmatpush3.msra.mxu0 %v14724_v2  ;;  %v1105_v60 = vrot.slane %v14369_v26, 7 }
 0x215   :  { %10800 = vmatpush3.msra.mxu1 %v14735_v42  ;;  %10769 = vmatprep.subr.mxu0 %v14745_v48  ;;  %v1808_v54 = vpop.permute.xlu0 %1807  ;;  %v1810_v36 = vpop.permute.xlu1 %1809 }
 0x216   :  { %10773 = vmatprep.mubr.msk.f32.mxu0 %vm1514_vm1, %v14639_v11  ;;  %10801 = vmatprep.subr.mxu1 %v14756_v33  ;;  %2114 = vst.msk [vmem:[#allocation2 + $0x110] sm:$0xff] %vm2083_vm4, %v1808_v54  ;;  %2115 = vst.msk [vmem:[#allocation2 + $0x118] sm:$0xff] %vm2083_vm4, %v1810_v36  ;;  %v1245_v63 = vsel %vm1176_vm3, %v1104_v7, %v1105_v60  ;;  %v889_v54 = vadd.f32 %v777_v23, %v13434_v50  ;;  %v14834_v7 = vld [vmem:[%s19268_s3 + $0x110] sm:$0xff]  ;;  %v14836_v36 = vmax.f32 %v888_v62, 0.0  ;;  %v14852_v62 = vld [vmem:[%s19268_s3 + $0x108] sm:$0xff] }
 0x217   :  { %10770 = vmatpush3.msra.mxu0 %v14745_v48  ;;  %10802 = vmatpush3.msra.mxu1 %v14756_v33  ;;  %1566 = vst.msk [vmem:[#allocation2 + $0x178] sm:$0xff] %vm129_vm0, %v1245_v63  ;;  %v778_v23 = vmul.f32 %v12114_v61, %v13365_v4  ;;  %v1338_v63 = vrot.slane %v14794_v12, 1  ;;  %v14872_v61 = vld [vmem:[%s19268_s3 + $0x100] sm:$0xff] }
 0x218   :  { %10771 = vmatprep.subr.mxu0 %v14768_v20  ;;  %10803 = vmatprep.subr.mxu1 %v14777_v39 }
 0x219   :  { %10772 = vmatpush3.msra.mxu0 %v14768_v20  ;;  %10804 = vmatpush3.msra.mxu1 %v14777_v39  ;;  %v2361_v55 = vpop.permute.xlu0 %2360  ;;  %v2363_v41 = vpop.permute.xlu1 %2362  ;;  %v1464_v56 = vsel %vm1401_vm2, %v1337_v28, %v1338_v63 }
 0x21a   :  { %1843 = vrot.lane.b32.xlu0 %v14631_v0, %s12174_s16  ;;  %10774 = vmatmul.mubr.msk.f32.vlgmr.msra.gmra.mxu0 %vm1514_vm1, %v14665_v57  ;;  %2671 = vst.msk [vmem:[#allocation2 + $0xf0] sm:$0xff] %vm2644_vm5, %v2361_v55  ;;  %2672 = vst.msk [vmem:[#allocation2 + $0xf8] sm:$0xff] %vm2644_vm5, %v2363_v41  ;;  %v14854_v41 = vmax.f32 %v889_v54, 0.0  ;;  %v890_v54 = vadd.f32 %v778_v23, %v13436_v21 }
 0x21b   :  { %10805 = vmatprep.subr.mxu1 %v14792_v6  ;;  %10821 = vmatprep.subr.mxu0 %v14806_v27 }
 0x21c   :  { %1845 = vrot.lane.b32.xlu1 %v14794_v12, %s12174_s16  ;;  %10776 = vmatprep.mubr.msk.f32.mxu0 %vm1514_vm1, %v14698_v44  ;;  %v1340_v23 = vrot.slane %v14854_v41, 1 }
 0x21d   :  { %10806 = vmatpush3.msra.mxu1 %v14792_v6  ;;  %10822 = vmatpush3.msra.mxu0 %v14806_v27  ;;  %v2365_v10 = vpop.permute.xlu0 %2364  ;;  %v2367_v55 = vpop.permute.xlu1 %2366 }
 0x21e   :  { %10807 = vmatprep.subr.mxu1 %v14822_v31  ;;  %10823 = vmatprep.subr.mxu0 %v14834_v7  ;;  %2673 = vst.msk [vmem:[#allocation2 + $0x100] sm:$0xff] %vm2644_vm5, %v2365_v10  ;;  %2674 = vst.msk [vmem:[#allocation2 + $0x108] sm:$0xff] %vm2644_vm5, %v2367_v55  ;;  %v1339_v10 = vrot.slane %v14836_v36, 1 }
 0x21f   :  { %10808 = vmatpush3.msra.mxu1 %v14822_v31  ;;  %10824 = vmatpush3.msra.mxu0 %v14834_v7 }
 0x220   :  { %1847 = vrot.lane.b32.xlu0 %v14836_v36, %s12174_s16  ;;  %10777 = vmatmul.mubr.msk.f32.gmra.mxu0 %vm1514_vm1, %v14714_v8 }
 0x221   :  { %10810 = vmatmul.mubr.msk.f32.vlgmr.msra.gmra.mxu1 %vm1514_vm1, %v14440_v29  ;;  %10825 = vmatprep.subr.mxu0 %v14852_v62  ;;  %v2369_v55 = vpop.permute.xlu0 %2368  ;;  %v2371_v59 = vpop.permute.xlu1 %2370  ;;  %v1107_v29 = vrot.slane %v14460_v40, 7  ;;  %v1463_v40 = vsel %vm1401_vm2, %v1338_v63, %v1339_v10  ;;  %v1108_v63 = vrot.slane %v14495_v24, 7  ;;  %v14929_v24 = vld [vmem:[#allocation2 + $0xc8] sm:$0xff] }
 0x222   :  { %10857 = vmatprep.subr.mxu1 %v14479_v18  ;;  %1849 = vrot.lane.b32.xlu1 %v14854_v41, %s12174_s16  ;;  %2675 = vst.msk [vmem:[#allocation2 + $0x110] sm:$0xff] %vm2644_vm5, %v2369_v55  ;;  %2676 = vst.msk [vmem:[#allocation2 + $0x118] sm:$0xff] %vm2644_vm5, %v2371_v59  ;;  %v14896_v59 = vmax.f32 %v890_v54, 0.0  ;;  %v14915_v54 = vld [vmem:[#allocation2 + $0xc0] sm:$0xff] }
 0x223   :  { %10812 = vmatprep.mubr.msk.f32.mxu1 %vm1514_vm1, %v14471_v9  ;;  %10826 = vmatpush3.msra.mxu0 %v14852_v62  ;;  %v14894_v9 = vld [vmem:[%s19268_s3 + $0xf8] sm:$0xff]  ;;  %v1243_v26 = vsel %vm1176_vm3, %v1106_v15, %v1107_v29 }
 0x224   :  { %10858 = vmatpush3.msra.mxu1 %v14479_v18  ;;  %10827 = vmatprep.subr.mxu0 %v14872_v61  ;;  %v1341_v55 = vrot.slane %v14896_v59, 1  ;;  %1568 = vst.msk [vmem:[#allocation2 + $0x188] sm:$0xff] %vm129_vm0, %v1243_v26  ;;  %v14995_v26 = vld [vmem:[%s19268_s3 + $0xd8] sm:$0xff] }
 0x225   :  { %10859 = vmatprep.subr.mxu1 %v14504_v49  ;;  %10828 = vmatpush3.msra.mxu0 %v14872_v61  ;;  %v1812_v18 = vpop.permute.xlu0 %1811  ;;  %v1814_v28 = vpop.permute.xlu1 %1813 }
 0x226   :  { %10860 = vmatpush3.msra.mxu1 %v14504_v49  ;;  %2404 = vrot.lane.b32.xlu0 %v1464_v56, %s12175_s28  ;;  %2116 = vst.msk [vmem:[#allocation2 + $0x120] sm:$0xff] %vm2083_vm4, %v1812_v18  ;;  %2117 = vst.msk [vmem:[#allocation2 + $0x128] sm:$0xff] %vm2083_vm4, %v1814_v28  ;;  %v1244_v49 = vsel %vm1176_vm3, %v1105_v60, %v1106_v15  ;;  %v1109_v60 = vrot.slane %v14510_v37, 7  ;;  %v1462_v15 = vsel %vm1401_vm2, %v1339_v10, %v1340_v23 }
 0x227   :  { %10813 = vmatmul.mubr.msk.f32.gmra.mxu1 %vm1514_vm1, %v14486_v47  ;;  %10829 = vmatprep.subr.mxu0 %v14894_v9  ;;  %v14920_v47 = vld [vmem:[%s19268_s3 + $0xf0] sm:$0xff]  ;;  %1567 = vst.msk [vmem:[#allocation2 + $0x180] sm:$0xff] %vm129_vm0, %v1244_v49  ;;  %v1461_v10 = vsel %vm1401_vm2, %v1340_v23, %v1341_v55  ;;  %v14978_v49 = vld [vmem:[%s19268_s3 + $0xe0] sm:$0xff] }
 0x228   :  { %10861 = vmatprep.subr.mxu1 %v14522_v5  ;;  %2406 = vrot.lane.b32.xlu1 %v1463_v40, %s12175_s28  ;;  %v1241_v40 = vsel %vm1176_vm3, %v1108_v63, %v1109_v60  ;;  %v14973_v23 = vld [vmem:[#allocation2 + $0xd0] sm:$0xff] }
 0x229   :  { %10815 = vmatprep.mubr.msk.f32.mxu1 %vm1514_vm1, %v14639_v11  ;;  %10830 = vmatpush3.msra.mxu0 %v14894_v9  ;;  %v1242_v11 = vsel %vm1176_vm3, %v1107_v29, %v1108_v63  ;;  %1570 = vst.msk [vmem:[#allocation2 + $0x198] sm:$0xff] %vm129_vm0, %v1241_v40  ;;  %v14984_v63 = vld [vmem:[#allocation2 + $0xd8] sm:$0xff]  ;;  %v15019_v40 = vld [vmem:[%s19268_s3 + $0xd0] sm:$0xff] }
 0x22a   :  { %10862 = vmatpush3.msra.mxu1 %v14522_v5  ;;  %v1816_v56 = vpop.permute.xlu0 %1815  ;;  %v1818_v18 = vpop.permute.xlu1 %1817  ;;  %10779 = vmatprep.mubr.msk.f32.mxu0 %vm1514_vm1, %v14915_v54  ;;  %v14948_v5 = vld [vmem:[%s19268_s3 + $0xe8] sm:$0xff]  ;;  %1569 = vst.msk [vmem:[#allocation2 + $0x190] sm:$0xff] %vm129_vm0, %v1242_v11 }
 0x22b   :  { %10831 = vmatprep.subr.mxu0 %v14920_v47  ;;  %2118 = vst.msk [vmem:[#allocation2 + $0x130] sm:$0xff] %vm2083_vm4, %v1816_v56  ;;  %2119 = vst.msk [vmem:[#allocation2 + $0x138] sm:$0xff] %vm2083_vm4, %v1818_v18  ;;  %10863 = vmatprep.subr.mxu1 %v14545_v58  ;;  %v12116_v56 = vld [vmem:[%s19267_s0 + $0x1b0] sm:$0xff] }
 0x22c   :  { %10780 = vmatmul.mubr.msk.f32.gmra.mxu0 %vm1514_vm1, %v14929_v24  ;;  %10864 = vmatpush3.msra.mxu1 %v14545_v58  ;;  %v12115_v58 = vld [vmem:[%s19267_s0 + $0x1a8] sm:$0xff]  ;;  %v780_v18 = vmul.f32 %v12116_v56, %v13369_v19  ;;  %v15052_v56 = vld [vmem:[%s19268_s3 + $0xc0] sm:$0xff] }
 0x22d   :  { %10832 = vmatpush3.msra.mxu0 %v14920_v47  ;;  %2408 = vrot.lane.b32.xlu0 %v1462_v15, %s12175_s28  ;;  %v779_v29 = vmul.f32 %v12115_v58, %v13367_v51 }
 0x22e   :  { %10816 = vmatmul.mubr.msk.f32.gmra.mxu1 %vm1514_vm1, %v14665_v57  ;;  %v2373_v28 = vpop.permute.xlu0 %2372  ;;  %10833 = vmatprep.subr.mxu0 %v14948_v5 }
 0x22f   :  { %10865 = vmatprep.subr.mxu1 %v14588_v17  ;;  %2677 = vst.msk [vmem:[#allocation2 + $0x120] sm:$0xff] %vm2644_vm5, %v2373_v28  ;;  %v2375_v57 = vpop.permute.xlu1 %2374  ;;  %2410 = vrot.lane.b32.xlu1 %v1461_v10, %s12175_s28 }
 0x230   :  { %10818 = vmatprep.mubr.msk.f32.mxu1 %vm1514_vm1, %v14698_v44  ;;  %2678 = vst.msk [vmem:[#allocation2 + $0x128] sm:$0xff] %vm2644_vm5, %v2375_v57  ;;  %10834 = vmatpush3.msra.mxu0 %v14948_v5  ;;  %v891_v44 = vadd.f32 %v779_v29, %v13438_v53  ;;  %v15036_v57 = vld [vmem:[%s19268_s3 + $0xc8] sm:$0xff] }
 0x231   :  { %10866 = vmatpush3.msra.mxu1 %v14588_v17  ;;  %10782 = vmatprep.mubr.msk.f32.mxu0 %vm1514_vm1, %v14973_v23  ;;  %v12117_v17 = vld [vmem:[%s19267_s0 + $0x1b8] sm:$0xff] }
 0x232   :  { %10835 = vmatprep.subr.mxu0 %v14978_v49  ;;  %v2377_v15 = vpop.permute.xlu0 %2376  ;;  %10867 = vmatprep.subr.mxu1 %v14617_v43  ;;  %v781_v11 = vmul.f32 %v12117_v17, %v13363_v32  ;;  %v15024_v58 = vmax.f32 %v891_v44, 0.0  ;;  %v12118_v44 = vld [vmem:[%s19267_s0 + $0x1c0] sm:$0xff] }
 0x233   :  { %10783 = vmatmul.mubr.msk.f32.gmra.mxu0 %vm1514_vm1, %v14984_v63  ;;  %2679 = vst.msk [vmem:[#allocation2 + $0x130] sm:$0xff] %vm2644_vm5, %v2377_v15  ;;  %v2379_v10 = vpop.permute.xlu1 %2378  ;;  %10868 = vmatpush3.msra.mxu1 %v14617_v43  ;;  %v892_v43 = vadd.f32 %v780_v18, %v13444_v46  ;;  %v12119_v15 = vld [vmem:[%s19267_s0 + $0x1c8] sm:$0xff] }
 0x234   :  { %10836 = vmatpush3.msra.mxu0 %v14978_v49  ;;  %2680 = vst.msk [vmem:[#allocation2 + $0x138] sm:$0xff] %vm2644_vm5, %v2379_v10  ;;  %10819 = vmatmul.mubr.msk.f32.gmra.mxu1 %vm1514_vm1, %v14714_v8  ;;  %v893_v8 = vadd.f32 %v781_v11, %v13434_v50  ;;  %v783_v17 = vmul.f32 %v12119_v15, %v13367_v51 }
 0x235   :  { %10837 = vmatprep.subr.mxu0 %v14995_v26  ;;  %10845 = vmatprep.mubr.msk.f32.mxu0 %vm1514_vm1, %v14915_v54  ;;  %v15054_v18 = vmax.f32 %v892_v43, 0.0 }
 0x236   :  { %10869 = vmatprep.subr.mxu1 %v14651_v13  ;;  %v1820_v29 = vpop.permute.xlu0 %1819  ;;  %10838 = vmatpush3.msra.mxu0 %v14995_v26  ;;  %v895_v43 = vadd.f32 %v783_v17, %v13438_v53 }
 0x237   :  { %10870 = vmatpush3.msra.mxu1 %v14651_v13  ;;  %2120 = vst.msk [vmem:[#allocation2 + $0x140] sm:$0xff] %vm2083_vm4, %v1820_v29  ;;  %v1822_v28 = vpop.permute.xlu1 %1821  ;;  %10839 = vmatprep.subr.mxu0 %v15019_v40  ;;  %v782_v13 = vmul.f32 %v12118_v44, %v13365_v4  ;;  %v15098_v44 = vld [vmem:[#allocation2 + $0xe8] sm:$0xff] }
 0x238   :  { %10871 = vmatprep.subr.mxu1 %v14676_v14  ;;  %2121 = vst.msk [vmem:[#allocation2 + $0x148] sm:$0xff] %vm2083_vm4, %v1822_v28  ;;  %1851 = vrot.lane.b32.xlu0 %v14896_v59, %s12174_s16  ;;  %v15091_v28 = vmax.f32 %v895_v43, 0.0 }
 0x239   :  { %10840 = vmatpush3.msra.mxu0 %v15019_v40  ;;  %10872 = vmatpush3.msra.mxu1 %v14676_v14  ;;  %v15062_v14 = vmax.f32 %v893_v8, 0.0  ;;  %v894_v11 = vadd.f32 %v782_v13, %v13436_v21  ;;  %v1342_v13 = vrot.slane %v15024_v58, 1 }
 0x23a   :  { %1853 = vrot.lane.b32.xlu1 %v15024_v58, %s12174_s16  ;;  %10841 = vmatprep.subr.mxu0 %v15036_v57 }
 0x23b   :  { %10873 = vmatprep.subr.mxu1 %v14705_v22  ;;  %10842 = vmatpush3.msra.mxu0 %v15036_v57  ;;  %v1824_v10 = vpop.permute.xlu0 %1823  ;;  %v15080_v29 = vmax.f32 %v894_v11, 0.0  ;;  %v1344_v11 = vrot.slane %v15062_v14, 1 }
 0x23c   :  { %10874 = vmatpush3.msra.mxu1 %v14705_v22  ;;  %10843 = vmatprep.subr.mxu0 %v15052_v56  ;;  %2122 = vst.msk [vmem:[#allocation2 + $0x150] sm:$0xff] %vm2083_vm4, %v1824_v10  ;;  %v1111_v10 = vrot.slane %v14794_v12, 7 }
 0x23d   :  { %10875 = vmatprep.subr.mxu1 %v14724_v2  ;;  %1855 = vrot.lane.b32.xlu0 %v15054_v18, %s12174_s16  ;;  %v1826_v22 = vpop.permute.xlu1 %1825 }
 0x23e   :  { %10844 = vmatpush3.msra.mxu0 %v15052_v56  ;;  %10876 = vmatpush3.msra.mxu1 %v14724_v2  ;;  %2123 = vst.msk [vmem:[#allocation2 + $0x158] sm:$0xff] %vm2083_vm4, %v1826_v22  ;;  %v15089_v2 = vld [vmem:[#allocation2 + $0xe0] sm:$0xff] }
 0x23f   :  { %1857 = vrot.lane.b32.xlu1 %v15062_v14, %s12174_s16  ;;  %10846 = vmatmul.mubr.msk.f32.vlgmr.msra.gmra.mxu0 %vm1514_vm1, %v14929_v24  ;;  %v1828_v8 = vpop.permute.xlu0 %1827 }
 0x240   :  { %10877 = vmatprep.subr.mxu1 %v14745_v48  ;;  %10893 = vmatprep.subr.mxu0 %v14527_v34  ;;  %2124 = vst.msk [vmem:[#allocation2 + $0x160] sm:$0xff] %vm2083_vm4, %v1828_v8  ;;  %v15156_v8 = vld [vmem:[#allocation2 + $0xf8] sm:$0xff] }
 0x241   :  { %10848 = vmatprep.mubr.msk.f32.mxu0 %vm1514_vm1, %v14973_v23  ;;  %10878 = vmatpush3.msra.mxu1 %v14745_v48  ;;  %v1830_v48 = vpop.permute.xlu1 %1829 }
 0x242   :  { %10894 = vmatpush3.msra.mxu0 %v14527_v34  ;;  %10879 = vmatprep.subr.mxu1 %v14768_v20  ;;  %v1343_v34 = vrot.slane %v15054_v18, 1  ;;  %2125 = vst.msk [vmem:[#allocation2 + $0x168] sm:$0xff] %vm2083_vm4, %v1830_v48  ;;  %v15186_v48 = vld [vmem:[#allocation2 + $0x100] sm:$0xff] }
 0x243   :  { %10895 = vmatprep.subr.mxu0 %v14559_v45  ;;  %1859 = vrot.lane.b32.xlu0 %v15080_v29, %s12174_s16 }
 0x244   :  { %10880 = vmatpush3.msra.mxu1 %v14768_v20  ;;  %10881 = vmatprep.mubr.msk.f32.mxu1 %vm1514_vm1, %v15089_v2  ;;  %v2381_v15 = vpop.permute.xlu0 %2380  ;;  %v1459_v17 = vsel %vm1401_vm2, %v1342_v13, %v1343_v34  ;;  %v1458_v12 = vsel %vm1401_vm2, %v1343_v34, %v1344_v11 }
 0x245   :  { %10896 = vmatpush3.msra.mxu0 %v14559_v45  ;;  %1861 = vrot.lane.b32.xlu1 %v15091_v28, %s12174_s16  ;;  %2681 = vst.msk [vmem:[#allocation2 + $0x140] sm:$0xff] %vm2644_vm5, %v2381_v15  ;;  %v1460_v45 = vsel %vm1401_vm2, %v1341_v55, %v1342_v13  ;;  %v2383_v20 = vpop.permute.xlu1 %2382  ;;  %v12120_v55 = vld [vmem:[%s19267_s0 + $0x1d0] sm:$0xff] }
 0x246   :  { %10849 = vmatmul.mubr.msk.f32.gmra.mxu0 %vm1514_vm1, %v14984_v63  ;;  %10882 = vmatmul.mubr.msk.f32.vlgmr.msra.gmra.mxu1 %vm1514_vm1, %v15098_v44  ;;  %2682 = vst.msk [vmem:[#allocation2 + $0x148] sm:$0xff] %vm2644_vm5, %v2383_v20  ;;  %v784_v43 = vmul.f32 %v12120_v55, %v13369_v19 }
 0x247   :  { %10897 = vmatprep.subr.mxu0 %v14593_v38  ;;  %10929 = vmatprep.subr.mxu1 %v14806_v27 }
 0x248   :  { %10851 = vmatprep.mubr.msk.f32.mxu0 %vm1514_vm1, %v15089_v2  ;;  %10898 = vmatpush3.msra.mxu0 %v14593_v38  ;;  %v15134_v38 = vld [vmem:[#allocation2 + $0xf0] sm:$0xff]  ;;  %v896_v13 = vadd.f32 %v784_v43, %v13444_v46 }
 0x249   :  { %10930 = vmatpush3.msra.mxu1 %v14806_v27  ;;  %10899 = vmatprep.subr.mxu0 %v14622_v35  ;;  %v1345_v27 = vrot.slane %v15080_v29, 1  ;;  %v15229_v43 = vld [vmem:[#allocation2 + $0x110] sm:$0xff] }
 0x24a   :  { %10931 = vmatprep.subr.mxu1 %v14834_v7  ;;  %2412 = vrot.lane.b32.xlu0 %v1460_v45, %s12175_s28  ;;  %v15188_v34 = vmax.f32 %v896_v13, 0.0  ;;  %v15198_v45 = vld [vmem:[#allocation2 + $0x108] sm:$0xff] }
 0x24b   :  { %10900 = vmatpush3.msra.mxu0 %v14622_v35  ;;  %10932 = vmatpush3.msra.mxu1 %v14834_v7  ;;  %v1110_v35 = vrot.slane %v14631_v0, 7  ;;  %v12121_v7 = vld [vmem:[%s19267_s0 + $0x1d8] sm:$0xff] }
 0x24c   :  { %2414 = vrot.lane.b32.xlu1 %v1459_v17, %s12175_s28  ;;  %10852 = vmatmul.mubr.msk.f32.gmra.mxu0 %vm1514_vm1, %v15098_v44  ;;  %v785_v22 = vmul.f32 %v12121_v7, %v13363_v32 }
 0x24d   :  { %10901 = vmatprep.subr.mxu0 %v14656_v16  ;;  %10933 = vmatprep.subr.mxu1 %v14852_v62  ;;  %v1240_v0 = vsel %vm1176_vm3, %v1109_v60, %v1110_v35 }
 0x24e   :  { %10902 = vmatpush3.msra.mxu0 %v14656_v16  ;;  %10934 = vmatpush3.msra.mxu1 %v14852_v62  ;;  %v1239_v16 = vsel %vm1176_vm3, %v1110_v35, %v1111_v10  ;;  %v1457_v62 = vsel %vm1401_vm2, %v1344_v11, %v1345_v27  ;;  %1571 = vst.msk [vmem:[#allocation2 + $0x1a0] sm:$0xff] %vm129_vm0, %v1240_v0  ;;  %v12123_v35 = vld [vmem:[%s19267_s0 + $0x1e8] sm:$0xff] }
 0x24f   :  { %10884 = vmatprep.mubr.msk.f32.mxu1 %vm1514_vm1, %v15134_v38  ;;  %10903 = vmatprep.subr.mxu0 %v14683_v25  ;;  %1572 = vst.msk [vmem:[#allocation2 + $0x1a8] sm:$0xff] %vm129_vm0, %v1239_v16  ;;  %v897_v37 = vadd.f32 %v785_v22, %v13434_v50 }
 0x250   :  { %10935 = vmatprep.subr.mxu1 %v14872_v61  ;;  %2416 = vrot.lane.b32.xlu0 %v1458_v12, %s12175_s28  ;;  %v787_v12 = vmul.f32 %v12123_v35, %v13367_v51  ;;  %v1115_v35 = vrot.slane %v15024_v58, 7  ;;  %v15385_v58 = vld [vmem:[%s19268_s3 + $0x98] sm:$0xff] }
 0x251   :  { %10854 = vmatprep.mubr.msk.f32.mxu0 %vm1514_vm1, %v15134_v38  ;;  %10885 = vmatmul.mubr.msk.f32.gmra.mxu1 %vm1514_vm1, %v15156_v8  ;;  %v15200_v20 = vmax.f32 %v897_v37, 0.0 }
 0x252   :  { %10904 = vmatpush3.msra.mxu0 %v14683_v25  ;;  %v2385_v60 = vpop.permute.xlu0 %2384  ;;  %10936 = vmatpush3.msra.mxu1 %v14872_v61  ;;  %v1112_v25 = vrot.slane %v14836_v36, 7  ;;  %v1113_v61 = vrot.slane %v14854_v41, 7 }
 0x253   :  { %2418 = vrot.lane.b32.xlu1 %v1457_v62, %s12175_s28  ;;  %2683 = vst.msk [vmem:[#allocation2 + $0x150] sm:$0xff] %vm2644_vm5, %v2385_v60  ;;  %10855 = vmatmul.mubr.msk.f32.gmra.mxu0 %vm1514_vm1, %v15156_v8  ;;  %v2387_v15 = vpop.permute.xlu1 %2386  ;;  %v12125_v62 = vld [vmem:[%s19267_s0 + $0x1f8] sm:$0xff] }
 0x254   :  { %10905 = vmatprep.subr.mxu0 %v14710_v30  ;;  %10937 = vmatprep.subr.mxu1 %v14894_v9  ;;  %2684 = vst.msk [vmem:[#allocation2 + $0x158] sm:$0xff] %vm2644_vm5, %v2387_v15  ;;  %v1238_v36 = vsel %vm1176_vm3, %v1111_v10, %v1112_v25  ;;  %v1347_v10 = vrot.slane %v15188_v34, 1  ;;  %v789_v13 = vmul.f32 %v12125_v62, %v13363_v32  ;;  %v15290_v60 = vld [vmem:[%s19268_s3 + $0xb8] sm:$0xff] }
 0x255   :  { %10906 = vmatpush3.msra.mxu0 %v14710_v30  ;;  %10917 = vmatprep.mubr.msk.f32.mxu0 %vm1514_vm1, %v14915_v54  ;;  %v1346_v30 = vrot.slane %v15091_v28, 1  ;;  %1573 = vst.msk [vmem:[#allocation2 + $0x1b0] sm:$0xff] %vm129_vm0, %v1238_v36  ;;  %v12122_v54 = vld [vmem:[%s19267_s0 + $0x1e0] sm:$0xff] }
 0x256   :  { %10938 = vmatpush3.msra.mxu1 %v14894_v9  ;;  %10887 = vmatprep.mubr.msk.f32.mxu1 %vm1514_vm1, %v15186_v48  ;;  %v1237_v9 = vsel %vm1176_vm3, %v1112_v25, %v1113_v61  ;;  %v786_v11 = vmul.f32 %v12122_v54, %v13365_v4 }
 0x257   :  { %10907 = vmatprep.subr.mxu0 %v14735_v42  ;;  %v1832_v17 = vpop.permute.xlu0 %1831  ;;  %10939 = vmatprep.subr.mxu1 %v14920_v47  ;;  %1574 = vst.msk [vmem:[#allocation2 + $0x1b8] sm:$0xff] %vm129_vm0, %v1237_v9  ;;  %v1455_v22 = vsel %vm1401_vm2, %v1346_v30, %v1347_v10  ;;  %v12126_v9 = vld [vmem:[%s19267_s0 + $0x200] sm:$0xff] }
 0x258   :  { %1863 = vrot.lane.b32.xlu0 %v15188_v34, %s12174_s16  ;;  %2126 = vst.msk [vmem:[#allocation2 + $0x170] sm:$0xff] %vm2083_vm4, %v1832_v17  ;;  %10888 = vmatmul.mubr.msk.f32.gmra.mxu1 %vm1514_vm1, %v15198_v45  ;;  %v1834_v55 = vpop.permute.xlu1 %1833  ;;  %v898_v7 = vadd.f32 %v786_v11, %v13436_v21  ;;  %v1114_v17 = vrot.slane %v14896_v59, 7  ;;  %v15358_v59 = vld [vmem:[%s19268_s3 + $0x50] sm:$0xff] }
 0x259   :  { %10908 = vmatpush3.msra.mxu0 %v14735_v42  ;;  %10940 = vmatpush3.msra.mxu1 %v14920_v47  ;;  %2127 = vst.msk [vmem:[#allocation2 + $0x178] sm:$0xff] %vm2083_vm4, %v1834_v55  ;;  %v1456_v42 = vsel %vm1401_vm2, %v1345_v27, %v1346_v30  ;;  %v15244_v47 = vld [vmem:[#allocation2 + $0x118] sm:$0xff] }
 0x25a   :  { %1865 = vrot.lane.b32.xlu1 %v15200_v20, %s12174_s16  ;;  %10909 = vmatprep.subr.mxu0 %v14756_v33  ;;  %v15266_v16 = vmax.f32 %v898_v7, 0.0  ;;  %v1236_v55 = vsel %vm1176_vm3, %v1113_v61, %v1114_v17 }
 0x25b   :  { %10941 = vmatprep.subr.mxu1 %v14948_v5  ;;  %10910 = vmatpush3.msra.mxu0 %v14756_v33  ;;  %v899_v33 = vadd.f32 %v787_v12, %v13438_v53  ;;  %1575 = vst.msk [vmem:[#allocation2 + $0x1c0] sm:$0xff] %vm129_vm0, %v1236_v55  ;;  %v15395_v12 = vld [vmem:[%s19268_s3 + $0x48] sm:$0xff] }
 0x25c   :  { %10942 = vmatpush3.msra.mxu1 %v14948_v5  ;;  %10890 = vmatprep.mubr.msk.f32.mxu1 %vm1514_vm1, %v15229_v43  ;;  %v12124_v5 = vld [vmem:[%s19267_s0 + $0x1f0] sm:$0xff]  ;;  %v1349_v36 = vrot.slane %v15266_v16, 1 }
 0x25d   :  { %10911 = vmatprep.subr.mxu0 %v14777_v39  ;;  %10943 = vmatprep.subr.mxu1 %v14978_v49  ;;  %v788_v27 = vmul.f32 %v12124_v5, %v13369_v19  ;;  %v15409_v5 = vld [vmem:[%s19268_s3 + $0x90] sm:$0xff] }
 0x25e   :  { %2420 = vrot.lane.b32.xlu0 %v1456_v42, %s12175_s28  ;;  %10891 = vmatmul.mubr.msk.f32.gmra.mxu1 %vm1514_vm1, %v15244_v47  ;;  %v2389_v0 = vpop.permute.xlu0 %2388  ;;  %v1116_v42 = vrot.slane %v15054_v18, 7  ;;  %v15414_v18 = vld [vmem:[%s19268_s3 + $0x40] sm:$0xff] }
 0x25f   :  { %10912 = vmatpush3.msra.mxu0 %v14777_v39  ;;  %10944 = vmatpush3.msra.mxu1 %v14978_v49  ;;  %2685 = vst.msk [vmem:[#allocation2 + $0x160] sm:$0xff] %vm2644_vm5, %v2389_v0  ;;  %v15279_v39 = vmax.f32 %v899_v33, 0.0  ;;  %v900_v49 = vadd.f32 %v788_v27, %v13444_v46  ;;  %v1117_v33 = vrot.slane %v15062_v14, 7  ;;  %v15424_v27 = vld [vmem:[#allocation2 + $0x120] sm:$0xff] }
 0x260   :  { %2422 = vrot.lane.b32.xlu1 %v1455_v22, %s12175_s28  ;;  %v2391_v37 = vpop.permute.xlu1 %2390  ;;  %10913 = vmatprep.subr.mxu0 %v14792_v6  ;;  %v1234_v14 = vsel %vm1176_vm3, %v1115_v35, %v1116_v42 }
 0x261   :  { %10945 = vmatprep.subr.mxu1 %v14995_v26  ;;  %2686 = vst.msk [vmem:[#allocation2 + $0x168] sm:$0xff] %vm2644_vm5, %v2391_v37  ;;  %10953 = vmatprep.mubr.msk.f32.mxu1 %vm1514_vm1, %v15186_v48  ;;  %v1350_v61 = vrot.slane %v15279_v39, 1 }
 0x262   :  { %10914 = vmatpush3.msra.mxu0 %v14792_v6  ;;  %10946 = vmatpush3.msra.mxu1 %v14995_v26  ;;  %v901_v6 = vadd.f32 %v789_v13, %v13434_v50  ;;  %v15299_v26 = vmax.f32 %v900_v49, 0.0  ;;  %1577 = vst.msk [vmem:[#allocation2 + $0x1d0] sm:$0xff] %vm129_vm0, %v1234_v14  ;;  %v1233_v13 = vsel %vm1176_vm3, %v1116_v42, %v1117_v33  ;;  %v1118_v49 = vrot.slane %v15080_v29, 7  ;;  %v15457_v29 = vld [vmem:[%s19268_s3 + $0x38] sm:$0xff] }
 0x263   :  { %10915 = vmatprep.subr.mxu0 %v14822_v31  ;;  %10947 = vmatprep.subr.mxu1 %v15019_v40  ;;  %1578 = vst.msk [vmem:[#allocation2 + $0x1d8] sm:$0xff] %vm129_vm0, %v1233_v13 }
 0x264   :  { %1867 = vrot.lane.b32.xlu0 %v15266_v16, %s12174_s16  ;;  %10916 = vmatpush3.msra.mxu0 %v14822_v31  ;;  %v1836_v15 = vpop.permute.xlu0 %1835  ;;  %v15307_v31 = vld [vmem:[%s19268_s3 + $0xb0] sm:$0xff]  ;;  %v1351_v7 = vrot.slane %v15299_v26, 1 }
 0x265   :  { %10948 = vmatpush3.msra.mxu1 %v15019_v40  ;;  %1869 = vrot.lane.b32.xlu1 %v15279_v39, %s12174_s16  ;;  %2128 = vst.msk [vmem:[#allocation2 + $0x180] sm:$0xff] %vm2083_vm4, %v1836_v15  ;;  %v15323_v40 = vld [vmem:[%s19268_s3 + $0xa8] sm:$0xff] }
 0x266   :  { %10918 = vmatmul.mubr.msk.f32.vlgmr.msra.gmra.mxu0 %vm1514_vm1, %v14929_v24  ;;  %v1838_v25 = vpop.permute.xlu1 %1837  ;;  %10949 = vmatprep.subr.mxu1 %v15036_v57  ;;  %v15313_v24 = vmax.f32 %v901_v6, 0.0  ;;  %v15444_v6 = vld [vmem:[#allocation2 + $0x128] sm:$0xff] }
 0x267   :  { %10965 = vmatprep.subr.mxu0 %v15290_v60  ;;  %2129 = vst.msk [vmem:[#allocation2 + $0x188] sm:$0xff] %vm2083_vm4, %v1838_v25  ;;  %10920 = vmatprep.mubr.msk.f32.mxu0 %vm1514_vm1, %v14973_v23  ;;  %v1348_v23 = vrot.slane %v15200_v20, 1  ;;  %v15449_v15 = vld [vmem:[%s19268_s3 + $0x88] sm:$0xff]  ;;  %v1119_v25 = vrot.slane %v15091_v28, 7  ;;  %v15629_v28 = vld [vmem:[%s19268_s3 + $0x110] sm:$0xff] }
 0x268   :  { %10950 = vmatpush3.msra.mxu1 %v15036_v57  ;;  %10966 = vmatpush3.msra.mxu0 %v15290_v60  ;;  %v15331_v57 = vld [vmem:[%s19268_s3 + $0x58] sm:$0xff]  ;;  %v1352_v37 = vrot.slane %v15313_v24, 1 }
 0x269   :  { %10951 = vmatprep.subr.mxu1 %v15052_v56  ;;  %10967 = vmatprep.subr.mxu0 %v15307_v31  ;;  %v1454_v54 = vsel %vm1401_vm2, %v1347_v10, %v1348_v23  ;;  %v1453_v41 = vsel %vm1401_vm2, %v1348_v23, %v1349_v36 }
 0x26a   :  { %1871 = vrot.lane.b32.xlu0 %v15299_v26, %s12174_s16  ;;  %10952 = vmatpush3.msra.mxu1 %v15052_v56  ;;  %v15345_v56 = vld [vmem:[%s19268_s3 + $0xa0] sm:$0xff] }
 0x26b   :  { %10968 = vmatpush3.msra.mxu0 %v15307_v31  ;;  %1873 = vrot.lane.b32.xlu1 %v15313_v24, %s12174_s16 }
 0x26c   :  { %10921 = vmatmul.mubr.msk.f32.gmra.mxu0 %vm1514_vm1, %v14984_v63  ;;  %v1840_v30 = vpop.permute.xlu0 %1839  ;;  %10954 = vmatmul.mubr.msk.f32.vlgmr.msra.gmra.mxu1 %vm1514_vm1, %v15198_v45  ;;  %v790_v63 = vmul.f32 %v12126_v9, %v13365_v4  ;;  %v1231_v9 = vsel %vm1176_vm3, %v1118_v49, %v1119_v25 }
 0x26d   :  { %10969 = vmatprep.subr.mxu0 %v15323_v40  ;;  %2130 = vst.msk [vmem:[#allocation2 + $0x190] sm:$0xff] %vm2083_vm4, %v1840_v30  ;;  %11001 = vmatprep.subr.mxu1 %v15331_v57  ;;  %v1842_v11 = vpop.permute.xlu1 %1841  ;;  %v15468_v30 = vld [vmem:[%s19268_s3 + $0x80] sm:$0xff] }
 0x26e   :  { %10923 = vmatprep.mubr.msk.f32.mxu0 %vm1514_vm1, %v15089_v2  ;;  %10956 = vmatprep.mubr.msk.f32.mxu1 %vm1514_vm1, %v15229_v43  ;;  %2131 = vst.msk [vmem:[#allocation2 + $0x198] sm:$0xff] %vm2083_vm4, %v1842_v11  ;;  %v1235_v2 = vsel %vm1176_vm3, %v1114_v17, %v1115_v35  ;;  %v902_v10 = vadd.f32 %v790_v63, %v13436_v21  ;;  %v15489_v11 = vld [vmem:[#allocation2 + $0x130] sm:$0xff]  ;;  %v15500_v35 = vld [vmem:[#allocation2 + $0x138] sm:$0xff] }
 0x26f   :  { %10970 = vmatpush3.msra.mxu0 %v15323_v40  ;;  %11002 = vmatpush3.msra.mxu1 %v15331_v57  ;;  %1576 = vst.msk [vmem:[#allocation2 + $0x1c8] sm:$0xff] %vm129_vm0, %v1235_v2  ;;  %v1450_v63 = vsel %vm1401_vm2, %v1351_v7, %v1352_v37  ;;  %1580 = vst.msk [vmem:[#allocation2 + $0x1e8] sm:$0xff] %vm129_vm0, %v1231_v9  ;;  %v15513_v2 = vld [vmem:[%s19268_s3 + $0x28] sm:$0xff] }
 0x270   :  { %10971 = vmatprep.subr.mxu0 %v15345_v56  ;;  %11003 = vmatprep.subr.mxu1 %v15358_v59  ;;  %v15426_v0 = vmax.f32 %v902_v10, 0.0  ;;  %19341 = vst [vmem:[#allocation6_spill] sm:$0xff] %v15513_v2 }
 0x271   :  { %2424 = vrot.lane.b32.xlu0 %v1454_v54, %s12175_s28  ;;  %10972 = vmatpush3.msra.mxu0 %v15345_v56 }
 0x272   :  { %11004 = vmatpush3.msra.mxu1 %v15358_v59  ;;  %2426 = vrot.lane.b32.xlu1 %v1453_v41, %s12175_s28  ;;  %v19274_v23 = vrot.slane %v15426_v0, 1  ;;  %v15505_v41 = vld [vmem:[%s19268_s3 + $0x78] sm:$0xff] }
 0x273   :  { %10924 = vmatmul.mubr.msk.f32.gmra.mxu0 %vm1514_vm1, %v15098_v44  ;;  %v2393_v22 = vpop.permute.xlu0 %2392  ;;  %10957 = vmatmul.mubr.msk.f32.gmra.mxu1 %vm1514_vm1, %v15244_v47  ;;  %v1452_v44 = vsel %vm1401_vm2, %v1349_v36, %v1350_v61  ;;  %v1232_v36 = vsel %vm1176_vm3, %v1117_v33, %v1118_v49  ;;  %v15573_v49 = vld [vmem:[%s19268_s3 + $0x10] sm:$0xff] }
 0x274   :  { %10973 = vmatprep.subr.mxu0 %v15385_v58  ;;  %2687 = vst.msk [vmem:[#allocation2 + $0x170] sm:$0xff] %vm2644_vm5, %v2393_v22  ;;  %11005 = vmatprep.subr.mxu1 %v15395_v12  ;;  %v2395_v62 = vpop.permute.xlu1 %2394  ;;  %v1449_v55 = vsel %vm1401_vm2, %v1352_v37, %v19274_v23  ;;  %v15532_v22 = vld [vmem:[%s19268_s3 + $0x20] sm:$0xff]  ;;  %19344 = vst [vmem:[#allocation9_spill] sm:$0xff] %v15573_v49 }
 0x275   :  { %10926 = vmatprep.mubr.msk.f32.mxu0 %vm1514_vm1, %v15134_v38  ;;  %10974 = vmatpush3.msra.mxu0 %v15385_v58  ;;  %2688 = vst.msk [vmem:[#allocation2 + $0x178] sm:$0xff] %vm2644_vm5, %v2395_v62  ;;  %v1451_v38 = vsel %vm1401_vm2, %v1350_v61, %v1351_v7  ;;  %v12127_v61 = vld [vmem:[%s19267_s0 + $0x208] sm:$0xff]  ;;  %v15527_v7 = vld [vmem:[%s19268_s3 + $0x70] sm:$0xff]  ;;  %19342 = vst [vmem:[#allocation7_spill] sm:$0xff] %v15532_v22 }
 0x276   :  { %11006 = vmatpush3.msra.mxu1 %v15395_v12  ;;  %10975 = vmatprep.subr.mxu0 %v15409_v5  ;;  %1579 = vst.msk [vmem:[#allocation2 + $0x1e0] sm:$0xff] %vm129_vm0, %v1232_v36  ;;  %v791_v10 = vmul.f32 %v12127_v61, %v13367_v51  ;;  %v15553_v62 = vld [vmem:[%s19268_s3 + $0x18] sm:$0xff]  ;;  %v15565_v37 = vld [vmem:[%s19268_s3 + $0x60] sm:$0xff] }
 0x277   :  { %11007 = vmatprep.subr.mxu1 %v15414_v18  ;;  %2428 = vrot.lane.b32.xlu0 %v1452_v44, %s12175_s28  ;;  %v15545_v44 = vld [vmem:[%s19268_s3 + $0x68] sm:$0xff]  ;;  %19343 = vst [vmem:[#allocation8_spill] sm:$0xff] %v15553_v62 }
 0x278   :  { %10959 = vmatprep.mubr.msk.f32.mxu1 %vm1514_vm1, %v15424_v27  ;;  %10976 = vmatpush3.msra.mxu0 %v15409_v5  ;;  %v903_v13 = vadd.f32 %v791_v10, %v13438_v53 }
 0x279   :  { %11008 = vmatpush3.msra.mxu1 %v15414_v18  ;;  %2430 = vrot.lane.b32.xlu1 %v1451_v38, %s12175_s28  ;;  %v2397_v17 = vpop.permute.xlu0 %2396 }
 0x27a   :  { %10927 = vmatmul.mubr.msk.f32.gmra.mxu0 %vm1514_vm1, %v15156_v8  ;;  %10960 = vmatmul.mubr.msk.f32.gmra.mxu1 %vm1514_vm1, %v15444_v6  ;;  %v15481_v8 = vld [vmem:[%s19268_s3 + $0x30] sm:$0xff]  ;;  %2689 = vst.msk [vmem:[#allocation2 + $0x180] sm:$0xff] %vm2644_vm5, %v2397_v17  ;;  %v12129_v17 = vld [vmem:[%s19267_s0 + $0x218] sm:$0xff] }
 0x27b   :  { %10977 = vmatprep.subr.mxu0 %v15449_v15  ;;  %19340 = vst [vmem:[#allocation5_spill] sm:$0xff] %v15481_v8  ;;  %v2399_v54 = vpop.permute.xlu1 %2398  ;;  %11009 = vmatprep.subr.mxu1 %v15457_v29  ;;  %v15537_v14 = vpop.f32.mrf.mxu0  ;;  %v793_v9 = vmul.f32 %v12129_v17, %v13363_v32 }
 0x27c   :  { %10978 = vmatpush3.msra.mxu0 %v15449_v15  ;;  %2690 = vst.msk [vmem:[#allocation2 + $0x188] sm:$0xff] %vm2644_vm5, %v2399_v54  ;;  %11010 = vmatpush3.msra.mxu1 %v15457_v29  ;;  %v15588_v54 = vld [vmem:[%s19268_s3 + $0x8] sm:$0xff] }
 0x27d   :  { %10979 = vmatprep.subr.mxu0 %v15468_v30  ;;  %11011 = vmatprep.subr.mxu1 %v15481_v8  ;;  %v15575_v36 = vpop.f32.mrf.mxu0  ;;  %19345 = vst [vmem:[#allocation10_spill] sm:$0xff] %v15588_v54  ;;  %v905_v17 = vadd.f32 %v793_v9, %v13434_v50  ;;  %v19349_v9 = vrot.slane %v15200_v20, 7 }
 0x27e   :  { %2432 = vrot.lane.b32.xlu0 %v1450_v63, %s12175_s28  ;;  %10962 = vmatprep.mubr.msk.f32.mxu1 %vm1514_vm1, %v15489_v11  ;;  %v10595_v63 = vpop.f32.mrf.mxu1 }
 0x27f   :  { %10980 = vmatpush3.msra.mxu0 %v15468_v30  ;;  %11012 = vmatpush3.msra.mxu1 %v15481_v8 }
 0x280   :  { %2434 = vrot.lane.b32.xlu1 %v1449_v55, %s12175_s28  ;;  %v2401_v42 = vpop.permute.xlu0 %2400  ;;  %10963 = vmatmul.mubr.msk.f32.gmra.mxu1 %vm1514_vm1, %v15500_v35  ;;  %v15590_v55 = vmax.f32 %v903_v13, 0.0  ;;  %v3001_v23 = vpop.f32.mrf.mxu1 }
 0x281   :  { %10981 = vmatprep.subr.mxu0 %v15505_v41  ;;  %2691 = vst.msk [vmem:[#allocation2 + $0x190] sm:$0xff] %vm2644_vm5, %v2401_v42  ;;  %11013 = vmatprep.subr.mxu1 %v15513_v2  ;;  %v2403_v33 = vpop.permute.xlu1 %2402  ;;  %v1120_v42 = vrot.slane %v15188_v34, 7 }
 0x282   :  { %10982 = vmatpush3.msra.mxu0 %v15505_v41  ;;  %11014 = vmatpush3.msra.mxu1 %v15513_v2  ;;  %2692 = vst.msk [vmem:[#allocation2 + $0x198] sm:$0xff] %vm2644_vm5, %v2403_v33  ;;  %19346 = vst [vmem:[#allocation11_spill] sm:$0xff] %v15590_v55  ;;  %v15601_v33 = vld [vmem:[%s19268_s3 + $0x118] sm:$0xff] }
 0x283   :  { %11025 = vmatprep.mubr.msk.f32.mxu1 %vm1514_vm1, %v15186_v48  ;;  %10983 = vmatprep.subr.mxu0 %v15527_v7  ;;  %v12128_v48 = vld [vmem:[%s19267_s0 + $0x210] sm:$0xff]  ;;  %v1230_v34 = vsel %vm1176_vm3, %v1119_v25, %v1120_v42 }
 0x284   :  { %11015 = vmatprep.subr.mxu1 %v15532_v22  ;;  %v792_v38 = vmul.f32 %v12128_v48, %v13369_v19  ;;  %10984 = vmatpush3.msra.mxu0 %v15527_v7  ;;  %1581 = vst.msk [vmem:[#allocation2 + $0x1f0] sm:$0xff] %vm129_vm0, %v1230_v34  ;;  %v1229_v34 = vsel %vm1176_vm3, %v1120_v42, %v19349_v9 }
 0x285   :  { %11016 = vmatpush3.msra.mxu1 %v15532_v22  ;;  %10985 = vmatprep.subr.mxu0 %v15545_v44  ;;  %1582 = vst.msk [vmem:[#allocation2 + $0x1f8] sm:$0xff] %vm129_vm0, %v1229_v34  ;;  %v10598_v34 = vpop.f32.mrf.mxu1 }
 0x286   :  { %10989 = vmatprep.mubr.msk.f32.mxu0 %vm1514_vm1, %v15424_v27  ;;  %11017 = vmatprep.subr.mxu1 %v15553_v62  ;;  %v904_v61 = vadd.f32 %v792_v38, %v13444_v46  ;;  %v15619_v38 = vld [vmem:[%s19268_s3] sm:$0xff] }
 0x287   :  { %10986 = vmatpush3.msra.mxu0 %v15545_v44  ;;  %11018 = vmatpush3.msra.mxu1 %v15553_v62  ;;  %19347 = vst [vmem:[#allocation12_spill] sm:$0xff] %v15619_v38 }
 0x288   :  { %10987 = vmatprep.subr.mxu0 %v15565_v37  ;;  %v15593_v10 = vpop.f32.mrf.mxu0  ;;  %11019 = vmatprep.subr.mxu1 %v15573_v49  ;;  %v15631_v25 = vmax.f32 %v904_v61, 0.0  ;;  %v794_v61 = vmul.f32 %v12130_v1, %v13365_v4  ;;  %v15659_v1 = vmax.f32 %v905_v17, 0.0 }
 0x289   :  { %10988 = vmatpush3.msra.mxu0 %v15565_v37  ;;  %11020 = vmatpush3.msra.mxu1 %v15573_v49 }
 0x28a   :  { %1875 = vrot.lane.b32.xlu0 %v15426_v0, %s12174_s16  ;;  %v15606_v13 = vpop.f32.mrf.mxu0  ;;  %10990 = vmatmul.mubr.msk.f32.vlgmr.msra.gmra.mxu0 %vm1514_vm1, %v15444_v6  ;;  %19348 = vst [vmem:[#allocation13_spill] sm:$0xff] %v15631_v25  ;;  %19350 = vst [vmem:[#allocation14_spill] sm:$0xff] %v15659_v1  ;;  %v906_v17 = vadd.f32 %v794_v61, %v13436_v21  ;;  %v19351_v61 = vrot.slane %v15426_v0, 1 }
 0x28b   :  { %11021 = vmatprep.subr.mxu1 %v15588_v54  ;;  %11037 = vmatprep.subr.mxu0 %v15601_v33 }
 0x28c   :  { %1877 = vrot.lane.b32.xlu1 %v15590_v55, %s12174_s16  ;;  %v1844_v48 = vpop.permute.xlu0 %1843  ;;  %v15633_v3 = vpop.f32.mrf.mxu0  ;;  %10992 = vmatprep.mubr.msk.f32.mxu0 %vm1514_vm1, %v15489_v11 }
 0x28d   :  { %11022 = vmatpush3.msra.mxu1 %v15588_v54  ;;  %2132 = vst.msk [vmem:[#allocation2 + $0x1a0] sm:$0xff] %vm2083_vm4, %v1844_v48  ;;  %11038 = vmatpush3.msra.mxu0 %v15601_v33  ;;  %v15657_v54 = vld [vmem:[%s19268_s3 + $0x108] sm:$0xff]  ;;  %v1354_v48 = vrot.slane %v15590_v55, 1 }
 0x28e   :  { %11023 = vmatprep.subr.mxu1 %v15619_v38  ;;  %v1846_v42 = vpop.permute.xlu1 %1845  ;;  %v15650_v9 = vpop.f32.mrf.mxu0  ;;  %11039 = vmatprep.subr.mxu0 %v15629_v28 }
 0x28f   :  { %11024 = vmatpush3.msra.mxu1 %v15619_v38  ;;  %2133 = vst.msk [vmem:[#allocation2 + $0x1a8] sm:$0xff] %vm2083_vm4, %v1846_v42  ;;  %11040 = vmatpush3.msra.mxu0 %v15629_v28  ;;  %v15678_v42 = vld [vmem:[%s19268_s3 + $0x100] sm:$0xff]  ;;  %v1355_v38 = vrot.slane %v15631_v25, 1  ;;  %v1448_v2 = vsel %vm1401_vm2, %v19351_v61, %v1354_v48 }
 0x290   :  { %1879 = vrot.lane.b32.xlu0 %v15631_v25, %s12174_s16  ;;  %v15666_v49 = vpop.f32.mrf.mxu0  ;;  %10993 = vmatmul.mubr.msk.f32.gmra.mxu0 %vm1514_vm1, %v15500_v35  ;;  %v3011_v25 = vpop.f32.mrf.mxu1 }
 0x291   :  { %11026 = vmatmul.mubr.msk.f32.vlgmr.msra.gmra.mxu1 %vm1514_vm1, %v15198_v45  ;;  %11041 = vmatprep.subr.mxu0 %v15657_v54  ;;  %v3007_v45 = vadd.f32 %v10595_v63, %v15537_v14  ;;  %v15702_v14 = vmax.f32 %v906_v17, 0.0  ;;  %v1447_v61 = vsel %vm1401_vm2, %v1354_v48, %v1355_v38  ;;  %v1356_v17 = vrot.slane %v15659_v1, 1 }
 0x292   :  { %11073 = vmatprep.subr.mxu1 %v15290_v60  ;;  %v1848_v62 = vpop.permute.xlu0 %1847  ;;  %v15681_v22 = vpop.f32.mrf.mxu0  ;;  %1881 = vrot.lane.b32.xlu1 %v15659_v1, %s12174_s16  ;;  %v19352_v1 = vrot.slane %v15200_v20, 7 }
 0x293   :  { %11028 = vmatprep.mubr.msk.f32.mxu1 %vm1514_vm1, %v15229_v43  ;;  %2134 = vst.msk [vmem:[#allocation2 + $0x1b0] sm:$0xff] %vm2083_vm4, %v1848_v62  ;;  %11042 = vmatpush3.msra.mxu0 %v15657_v54  ;;  %v15700_v43 = vld [vmem:[%s19268_s3 + $0xf8] sm:$0xff]  ;;  %v10601_v48 = vpop.f32.mrf.mxu1  ;;  %v1446_v20 = vsel %vm1401_vm2, %v1355_v38, %v1356_v17 }
 0x294   :  { %11074 = vmatpush3.msra.mxu1 %v15290_v60  ;;  %v10631_v8 = vpop.f32.mrf.mxu0  ;;  %11043 = vmatprep.subr.mxu0 %v15678_v42  ;;  %v1850_v62 = vpop.permute.xlu1 %1849  ;;  %v3002_v60 = vadd.f32 %v3001_v23, %v15575_v36  ;;  %v3017_v23 = vadd.f32 %v10598_v34, %v15593_v10  ;;  %v15721_v36 = vld [vmem:[#allocation2 + $0x140] sm:$0xff] }
 0x295   :  { %11075 = vmatprep.subr.mxu1 %v15307_v31  ;;  %v3191_v63 = vadd.f32 %v10631_v8, %v3007_v45  ;;  %11044 = vmatpush3.msra.mxu0 %v15678_v42  ;;  %2135 = vst.msk [vmem:[#allocation2 + $0x1b8] sm:$0xff] %vm2083_vm4, %v1850_v62  ;;  %v1122_v8 = vrot.slane %v15266_v16, 7  ;;  %v12132_v16 = vld [vmem:[%s19267_s0 + $0x230] sm:$0xff]  ;;  %v1123_v45 = vrot.slane %v15279_v39, 7  ;;  %v15740_v62 = vld [vmem:[#allocation2 + $0x148] sm:$0xff] }
 0x296   :  { %11076 = vmatpush3.msra.mxu1 %v15307_v31  ;;  %v3151_v55 = vpop.f32.mrf.mxu0  ;;  %2436 = vrot.lane.b32.xlu0 %v1448_v2, %s12175_s28  ;;  %v12131_v2 = vld [vmem:[%s19267_s0 + $0x228] sm:$0xff] }
 0x297   :  { %11029 = vmatmul.mubr.msk.f32.gmra.mxu1 %vm1514_vm1, %v15244_v47  ;;  %3199 = vst [vmem:[%s19271_s4 + $0x8] sm:$0xff] %v3191_v63  ;;  %v3190_v31 = vadd.f32 %v3151_v55, %v3002_v60  ;;  %11045 = vmatprep.subr.mxu0 %v15700_v43  ;;  %v15726_v47 = vld [vmem:[%s19268_s3 + $0xf0] sm:$0xff]  ;;  %v795_v10 = vmul.f32 %v12131_v2, %v13367_v51  ;;  %v1357_v60 = vrot.slane %v15702_v14, 1 }
 0x298   :  { %11077 = vmatprep.subr.mxu1 %v15323_v40  ;;  %v796_v55 = vmul.f32 %v12132_v16, %v13369_v19  ;;  %v10634_v34 = vpop.f32.mrf.mxu0  ;;  %2438 = vrot.lane.b32.xlu1 %v1447_v61, %s12175_s28  ;;  %v2405_v63 = vpop.permute.xlu0 %2404  ;;  %v3012_v2 = vadd.f32 %v3011_v25, %v15606_v13  ;;  %v1228_v39 = vsel %vm1176_vm3, %v19352_v1, %v1122_v8  ;;  %v15772_v1 = vld [vmem:[%s19268_s3 + $0xe8] sm:$0xff] }
 0x299   :  { %11031 = vmatprep.mubr.msk.f32.mxu1 %vm1514_vm1, %v15424_v27  ;;  %3198 = vst [vmem:[%s19271_s4] sm:$0xff] %v3190_v31  ;;  %v3193_v16 = vadd.f32 %v10634_v34, %v3017_v23  ;;  %11046 = vmatpush3.msra.mxu0 %v15700_v43  ;;  %2693 = vst.msk [vmem:[#allocation2 + $0x1a0] sm:$0xff] %vm2644_vm5, %v2405_v63  ;;  %v1227_v13 = vsel %vm1176_vm3, %v1122_v8, %v1123_v45  ;;  %v3021_v61 = vpop.f32.mrf.mxu1  ;;  %v1124_v23 = vrot.slane %v15299_v26, 7 }
 0x29a   :  { %11078 = vmatpush3.msra.mxu1 %v15323_v40  ;;  %v3161_v27 = vpop.f32.mrf.mxu0  ;;  %1583 = vst.msk [vmem:[#allocation2 + $0x200] sm:$0xff] %vm129_vm0, %v1228_v39  ;;  %10995 = vmatprep.mubr.msk.f32.mxu0 %vm1514_vm1, %v15721_v36  ;;  %v2407_v25 = vpop.permute.xlu1 %2406  ;;  %1584 = vst.msk [vmem:[#allocation2 + $0x208] sm:$0xff] %vm129_vm0, %v1227_v13  ;;  %v907_v38 = vadd.f32 %v795_v10, %v13438_v53  ;;  %v1445_v31 = vsel %vm1401_vm2, %v1356_v17, %v1357_v60  ;;  %v1125_v10 = vrot.slane %v15313_v24, 7  ;;  %v19354_v24 = vld [vmem:[#allocation5_spill] sm:$0xff] }
 0x29b   :  { %11047 = vmatprep.subr.mxu0 %v15726_v47  ;;  %3201 = vst [vmem:[%s19271_s4 + $0x18] sm:$0xff] %v3193_v16  ;;  %v3192_v40 = vadd.f32 %v3161_v27, %v3012_v2  ;;  %11079 = vmatprep.subr.mxu1 %v15345_v56  ;;  %2694 = vst.msk [vmem:[#allocation2 + $0x1a8] sm:$0xff] %vm2644_vm5, %v2407_v25  ;;  %v908_v8 = vadd.f32 %v796_v55, %v13444_v46  ;;  %v10604_v26 = vpop.f32.mrf.mxu1  ;;  %v15801_v55 = vld [vmem:[%s19268_s3 + $0xe0] sm:$0xff] }
 0x29c   :  { %10996 = vmatmul.mubr.msk.f32.gmra.mxu0 %vm1514_vm1, %v15740_v62  ;;  %11080 = vmatpush3.msra.mxu1 %v15345_v56  ;;  %v3027_v34 = vadd.f32 %v10601_v48, %v15633_v3  ;;  %v1226_v17 = vsel %vm1176_vm3, %v1123_v45, %v1124_v23  ;;  %v15796_v3 = vld [vmem:[#allocation2 + $0x150] sm:$0xff]  ;;  %v3022_v48 = vadd.f32 %v3021_v61, %v15650_v9  ;;  %v15812_v45 = vld [vmem:[#allocation2 + $0x158] sm:$0xff]  ;;  %v15814_v2 = vmax.f32 %v907_v38, 0.0 }
 0x29d   :  { %11048 = vmatpush3.msra.mxu0 %v15726_v47  ;;  %3200 = vst [vmem:[%s19271_s4 + $0x10] sm:$0xff] %v3192_v40  ;;  %2440 = vrot.lane.b32.xlu0 %v1446_v20, %s12175_s28  ;;  %v10637_v56 = vpop.f32.mrf.mxu0  ;;  %1585 = vst.msk [vmem:[#allocation2 + $0x210] sm:$0xff] %vm129_vm0, %v1226_v17  ;;  %v15819_v9 = vmax.f32 %v908_v8, 0.0  ;;  %v3031_v13 = vpop.f32.mrf.mxu1  ;;  %v12133_v20 = vld [vmem:[%s19267_s0 + $0x238] sm:$0xff] }
 0x29e   :  { %11032 = vmatmul.mubr.msk.f32.gmra.mxu1 %vm1514_vm1, %v15444_v6  ;;  %11049 = vmatprep.subr.mxu0 %v15772_v1  ;;  %v3195_v63 = vadd.f32 %v10637_v56, %v3027_v34  ;;  %v1225_v6 = vsel %vm1176_vm3, %v1124_v23, %v1125_v10  ;;  %v797_v25 = vmul.f32 %v12133_v20, %v13363_v32  ;;  %v1358_v40 = vrot.slane %v15814_v2, 1  ;;  %v12134_v23 = vld [vmem:[%s19267_s0 + $0x240] sm:$0xff]  ;;  %v15879_v34 = vld [vmem:[%s19268_s3 + $0xc8] sm:$0xff] }
 0x29f   :  { %11081 = vmatprep.subr.mxu1 %v15385_v58  ;;  %2442 = vrot.lane.b32.xlu1 %v1445_v31, %s12175_s28  ;;  %v2409_v16 = vpop.permute.xlu0 %2408  ;;  %v3171_v39 = vpop.f32.mrf.mxu0  ;;  %1586 = vst.msk [vmem:[#allocation2 + $0x218] sm:$0xff] %vm129_vm0, %v1225_v6  ;;  %v1359_v61 = vrot.slane %v15819_v9, 1  ;;  %v798_v31 = vmul.f32 %v12134_v23, %v13365_v4  ;;  %v3037_v56 = vadd.f32 %v10604_v26, %v15666_v49  ;;  %v15901_v6 = vld [vmem:[%s19268_s3 + $0xc0] sm:$0xff] }
 0x2a0   :  { %11034 = vmatprep.mubr.msk.f32.mxu1 %vm1514_vm1, %v15489_v11  ;;  %11050 = vmatpush3.msra.mxu0 %v15772_v1  ;;  %2695 = vst.msk [vmem:[#allocation2 + $0x1b0] sm:$0xff] %vm2644_vm5, %v2409_v16  ;;  %3203 = vst [vmem:[%s19271_s4 + $0x28] sm:$0xff] %v3195_v63  ;;  %v3194_v11 = vadd.f32 %v3171_v39, %v3022_v48  ;;  %v15847_v38 = vpop.f32.mrf.mxu1  ;;  %v1444_v8 = vsel %vm1401_vm2, %v1357_v60, %v1358_v40 }
 0x2a1   :  { %11082 = vmatpush3.msra.mxu1 %v15385_v58  ;;  %10998 = vmatprep.mubr.msk.f32.mxu0 %vm1514_vm1, %v15796_v3  ;;  %v2411_v27 = vpop.permute.xlu1 %2410  ;;  %v15834_v58 = vld [vmem:[%s19268_s3 + $0xd8] sm:$0xff]  ;;  %v910_v60 = vadd.f32 %v798_v31, %v13436_v21  ;;  %v3032_v49 = vadd.f32 %v3031_v13, %v15681_v22  ;;  %v15943_v31 = vld [vmem:[#allocation2 + $0x160] sm:$0xff] }
 0x2a2   :  { %11051 = vmatprep.subr.mxu0 %v15801_v55  ;;  %11083 = vmatprep.subr.mxu1 %v15409_v5  ;;  %2696 = vst.msk [vmem:[#allocation2 + $0x1b8] sm:$0xff] %vm2644_vm5, %v2411_v27  ;;  %3202 = vst [vmem:[%s19271_s4 + $0x20] sm:$0xff] %v3194_v11  ;;  %v15882_v17 = vpop.f32.mrf.mxu1 }
 0x2a3   :  { %10999 = vmatmul.mubr.msk.f32.gmra.mxu0 %vm1514_vm1, %v15812_v45  ;;  %11084 = vmatpush3.msra.mxu1 %v15409_v5  ;;  %v15860_v5 = vld [vmem:[%s19268_s3 + $0xd0] sm:$0xff]  ;;  %v15918_v13 = vmax.f32 %v910_v60, 0.0  ;;  %v15961_v60 = vld [vmem:[#allocation2 + $0x168] sm:$0xff] }
 0x2a4   :  { %11052 = vmatpush3.msra.mxu0 %v15801_v55  ;;  %1883 = vrot.lane.b32.xlu0 %v15702_v14, %s12174_s16 }
 0x2a5   :  { %11035 = vmatmul.mubr.msk.f32.gmra.mxu1 %vm1514_vm1, %v15500_v35  ;;  %11053 = vmatprep.subr.mxu0 %v15834_v58  ;;  %v909_v35 = vadd.f32 %v797_v25, %v13434_v50 }
 0x2a6   :  { %11061 = vmatprep.mubr.msk.f32.mxu0 %vm1514_vm1, %v15721_v36  ;;  %11085 = vmatprep.subr.mxu1 %v15449_v15 }
 0x2a7   :  { %1885 = vrot.lane.b32.xlu1 %v15814_v2, %s12174_s16  ;;  %11054 = vmatpush3.msra.mxu0 %v15834_v58  ;;  %v15903_v16 = vmax.f32 %v909_v35, 0.0  ;;  %v1361_v35 = vrot.slane %v15918_v13, 1 }
 0x2a8   :  { %11086 = vmatpush3.msra.mxu1 %v15449_v15  ;;  %11055 = vmatprep.subr.mxu0 %v15860_v5  ;;  %v1443_v15 = vsel %vm1401_vm2, %v1358_v40, %v1359_v61  ;;  %v12135_v40 = vld [vmem:[%s19267_s0 + $0x248] sm:$0xff] }
 0x2a9   :  { %11087 = vmatprep.subr.mxu1 %v15468_v30  ;;  %v10640_v48 = vpop.f32.mrf.mxu0  ;;  %11056 = vmatpush3.msra.mxu0 %v15860_v5  ;;  %v15894_v63 = vpop.f32.mrf.mxu1  ;;  %v1360_v20 = vrot.slane %v15903_v16, 1 }
 0x2aa   :  { %11088 = vmatpush3.msra.mxu1 %v15468_v30  ;;  %v3197_v26 = vadd.f32 %v10640_v48, %v3037_v56  ;;  %2444 = vrot.lane.b32.xlu0 %v1444_v8, %s12175_s28  ;;  %v1852_v39 = vpop.permute.xlu0 %1851  ;;  %v12136_v8 = vld [vmem:[%s19267_s0 + $0x250] sm:$0xff] }
 0x2ab   :  { %11057 = vmatprep.subr.mxu0 %v15879_v34  ;;  %v3181_v30 = vpop.f32.mrf.mxu0  ;;  %11089 = vmatprep.subr.mxu1 %v15505_v41  ;;  %2136 = vst.msk [vmem:[#allocation2 + $0x1c0] sm:$0xff] %vm2083_vm4, %v1852_v39  ;;  %v15911_v27 = vpop.f32.mrf.mxu1  ;;  %v800_v56 = vmul.f32 %v12136_v8, %v13369_v19 }
 0x2ac   :  { %2446 = vrot.lane.b32.xlu1 %v1443_v15, %s12175_s28  ;;  %v1854_v22 = vpop.permute.xlu1 %1853  ;;  %3205 = vst [vmem:[%s19271_s4 + $0x38] sm:$0xff] %v3197_v26  ;;  %v3196_v11 = vadd.f32 %v3181_v30, %v3032_v49  ;;  %11058 = vmatpush3.msra.mxu0 %v15879_v34  ;;  %v1442_v15 = vsel %vm1401_vm2, %v1359_v61, %v1360_v20 }
 0x2ad   :  { %11090 = vmatpush3.msra.mxu1 %v15505_v41  ;;  %2137 = vst.msk [vmem:[#allocation2 + $0x1c8] sm:$0xff] %vm2083_vm4, %v1854_v22  ;;  %11059 = vmatprep.subr.mxu0 %v15901_v6  ;;  %v1441_v61 = vsel %vm1401_vm2, %v1360_v20, %v1361_v35  ;;  %v912_v49 = vadd.f32 %v800_v56, %v13444_v46 }
 0x2ae   :  { %11091 = vmatprep.subr.mxu1 %v15527_v7  ;;  %3204 = vst [vmem:[%s19271_s4 + $0x30] sm:$0xff] %v3196_v11  ;;  %11060 = vmatpush3.msra.mxu0 %v15901_v6 }
 0x2af   :  { %11092 = vmatpush3.msra.mxu1 %v15527_v7  ;;  %1887 = vrot.lane.b32.xlu0 %v15819_v9, %s12174_s16  ;;  %v1856_v41 = vpop.permute.xlu0 %1855  ;;  %v799_v7 = vmul.f32 %v12135_v40, %v13367_v51  ;;  %v15991_v22 = vmax.f32 %v912_v49, 0.0 }
 0x2b0   :  { %11062 = vmatmul.mubr.msk.f32.vlgmr.msra.gmra.mxu0 %vm1514_vm1, %v15740_v62  ;;  %v15930_v25 = vpop.f32.mrf.mxu1  ;;  %11093 = vmatprep.subr.mxu1 %v15545_v44  ;;  %2138 = vst.msk [vmem:[#allocation2 + $0x1d0] sm:$0xff] %vm2083_vm4, %v1856_v41 }
 0x2b1   :  { %11109 = vmatprep.subr.mxu0 %v15331_v57  ;;  %v1858_v23 = vpop.permute.xlu1 %1857  ;;  %1889 = vrot.lane.b32.xlu1 %v15903_v16, %s12174_s16 }
 0x2b2   :  { %11064 = vmatprep.mubr.msk.f32.mxu0 %vm1514_vm1, %v15796_v3  ;;  %2139 = vst.msk [vmem:[#allocation2 + $0x1d8] sm:$0xff] %vm2083_vm4, %v1858_v23  ;;  %11094 = vmatpush3.msra.mxu1 %v15545_v44  ;;  %v15957_v48 = vpop.f32.mrf.mxu1 }
 0x2b3   :  { %11110 = vmatpush3.msra.mxu0 %v15331_v57  ;;  %11095 = vmatprep.subr.mxu1 %v15565_v37  ;;  %v911_v57 = vadd.f32 %v799_v7, %v13438_v53  ;;  %v1126_v7 = vrot.slane %v15426_v0, 7  ;;  %v16019_v0 = vld [vmem:[#allocation2 + $0x178] sm:$0xff] }
 0x2b4   :  { %11111 = vmatprep.subr.mxu0 %v15358_v59  ;;  %11096 = vmatpush3.msra.mxu1 %v15565_v37 }
 0x2b5   :  { %11097 = vmatprep.mubr.msk.f32.mxu1 %vm1514_vm1, %v15943_v31  ;;  %v10703_v44 = vpop.f32.mrf.mxu0  ;;  %11112 = vmatpush3.msra.mxu0 %v15358_v59  ;;  %v1860_v26 = vpop.permute.xlu0 %1859  ;;  %v15986_v30 = vmax.f32 %v911_v57, 0.0 }
 0x2b6   :  { %2448 = vrot.lane.b32.xlu0 %v1442_v15, %s12175_s28  ;;  %11065 = vmatmul.mubr.msk.f32.gmra.mxu0 %vm1514_vm1, %v15812_v45  ;;  %2140 = vst.msk [vmem:[#allocation2 + $0x1e0] sm:$0xff] %vm2083_vm4, %v1860_v26  ;;  %v15979_v37 = vpop.f32.mrf.mxu1  ;;  %v3455_v40 = vadd.f32 %v10703_v44, %v15847_v38  ;;  %v1224_v44 = vsel %vm1176_vm3, %v1125_v10, %v1126_v7 }
 0x2b7   :  { %11098 = vmatmul.mubr.msk.f32.vlgmr.msra.gmra.mxu1 %vm1514_vm1, %v15961_v60  ;;  %11113 = vmatprep.subr.mxu0 %v15395_v12  ;;  %v1862_v59 = vpop.permute.xlu1 %1861  ;;  %v3449_v39 = vpop.f32.mrf.mxu0  ;;  %1587 = vst.msk [vmem:[#allocation2 + $0x220] sm:$0xff] %vm129_vm0, %v1224_v44 }
 0x2b8   :  { %11145 = vmatprep.subr.mxu1 %v15601_v33  ;;  %2450 = vrot.lane.b32.xlu1 %v1441_v61, %s12175_s28  ;;  %2141 = vst.msk [vmem:[#allocation2 + $0x1e8] sm:$0xff] %vm2083_vm4, %v1862_v59  ;;  %v15993_v11 = vpop.f32.mrf.mxu1  ;;  %v3450_v38 = vadd.f32 %v3449_v39, %v15882_v17  ;;  %v19353_v61 = vld [vmem:[#allocation11_spill] sm:$0xff] }
 0x2b9   :  { %11067 = vmatprep.mubr.msk.f32.mxu0 %vm1514_vm1, %v15943_v31  ;;  %11114 = vmatpush3.msra.mxu0 %v15395_v12  ;;  %v16003_v12 = vld [vmem:[#allocation2 + $0x170] sm:$0xff]  ;;  %v1127_v49 = vrot.slane %v19353_v61, 7  ;;  %v16076_v61 = vld [vmem:[#allocation2 + $0x188] sm:$0xff] }
 0x2ba   :  { %11146 = vmatpush3.msra.mxu1 %v15601_v33  ;;  %11115 = vmatprep.subr.mxu0 %v15414_v18  ;;  %v1362_v33 = vrot.slane %v15986_v30, 1 }
 0x2bb   :  { %11147 = vmatprep.subr.mxu1 %v15629_v28  ;;  %11116 = vmatpush3.msra.mxu0 %v15414_v18  ;;  %v1363_v18 = vrot.slane %v15991_v22, 1  ;;  %v1223_v59 = vsel %vm1176_vm3, %v1126_v7, %v1127_v49 }
 0x2bc   :  { %11148 = vmatpush3.msra.mxu1 %v15629_v28  ;;  %v10706_v20 = vpop.f32.mrf.mxu0  ;;  %1891 = vrot.lane.b32.xlu0 %v15918_v13, %s12174_s16  ;;  %v2413_v41 = vpop.permute.xlu0 %2412  ;;  %v12137_v28 = vld [vmem:[%s19267_s0 + $0x258] sm:$0xff]  ;;  %1588 = vst.msk [vmem:[#allocation2 + $0x228] sm:$0xff] %vm129_vm0, %v1223_v59 }
 0x2bd   :  { %11068 = vmatmul.mubr.msk.f32.gmra.mxu0 %vm1514_vm1, %v15961_v60  ;;  %11117 = vmatprep.subr.mxu0 %v15457_v29  ;;  %v801_v23 = vmul.f32 %v12137_v28, %v13363_v32  ;;  %2697 = vst.msk [vmem:[#allocation2 + $0x1c0] sm:$0xff] %vm2644_vm5, %v2413_v41  ;;  %v19355_v28 = vld [vmem:[#allocation13_spill] sm:$0xff] }
 0x2be   :  { %11149 = vmatprep.subr.mxu1 %v15657_v54  ;;  %v2415_v8 = vpop.permute.xlu1 %2414  ;;  %v10739_v56 = vpop.f32.mrf.mxu1  ;;  %1893 = vrot.lane.b32.xlu1 %v15986_v30, %s12174_s16 }
 0x2bf   :  { %11118 = vmatpush3.msra.mxu0 %v15457_v29  ;;  %2698 = vst.msk [vmem:[#allocation2 + $0x1c8] sm:$0xff] %vm2644_vm5, %v2415_v8  ;;  %v3638_v15 = vadd.f32 %v10739_v56, %v3455_v40  ;;  %v3459_v57 = vpop.f32.mrf.mxu0  ;;  %11150 = vmatpush3.msra.mxu1 %v15657_v54  ;;  %v12138_v29 = vld [vmem:[%s19267_s0 + $0x260] sm:$0xff]  ;;  %v1440_v54 = vsel %vm1401_vm2, %v1361_v35, %v1362_v33 }
 0x2c0   :  { %11100 = vmatprep.mubr.msk.f32.mxu1 %vm1514_vm1, %v16003_v12  ;;  %v802_v17 = vmul.f32 %v12138_v29, %v13365_v4  ;;  %v3598_v26 = vpop.f32.mrf.mxu1  ;;  %11119 = vmatprep.subr.mxu0 %v19354_v24  ;;  %v913_v39 = vadd.f32 %v801_v23, %v13434_v50  ;;  %v1439_v35 = vsel %vm1401_vm2, %v1362_v33, %v1363_v18  ;;  %v1128_v23 = vrot.slane %v19355_v28, 7  ;;  %v19356_v33 = vld [vmem:[#allocation6_spill] sm:$0xff]  ;;  %v16071_v8 = vld [vmem:[#allocation2 + $0x180] sm:$0xff]  ;;  %v12140_v28 = vld [vmem:[%s19267_s0 + $0x270] sm:$0xff] }
 0x2c1   :  { %11151 = vmatprep.subr.mxu1 %v15678_v42  ;;  %3646 = vst [vmem:[%s19271_s4 + $0x48] sm:$0xff] %v3638_v15  ;;  %v3637_v10 = vadd.f32 %v3598_v26, %v3450_v38  ;;  %11070 = vmatprep.mubr.msk.f32.mxu0 %vm1514_vm1, %v16003_v12  ;;  %v19357_v15 = vld [vmem:[#allocation14_spill] sm:$0xff] }
 0x2c2   :  { %11101 = vmatmul.mubr.msk.f32.gmra.mxu1 %vm1514_vm1, %v16019_v0  ;;  %11120 = vmatpush3.msra.mxu0 %v19354_v24  ;;  %v2417_v41 = vpop.permute.xlu0 %2416  ;;  %v914_v7 = vadd.f32 %v802_v17, %v13436_v21  ;;  %v1129_v44 = vrot.slane %v19357_v15, 7  ;;  %v16078_v29 = vmax.f32 %v913_v39, 0.0  ;;  %v1222_v17 = vsel %vm1176_vm3, %v1127_v49, %v1128_v23  ;;  %v19359_v39 = vld [vmem:[#allocation8_spill] sm:$0xff] }
 0x2c3   :  { %11152 = vmatpush3.msra.mxu1 %v15678_v42  ;;  %3645 = vst [vmem:[%s19271_s4 + $0x40] sm:$0xff] %v3637_v10  ;;  %v10709_v40 = vpop.f32.mrf.mxu0  ;;  %2452 = vrot.lane.b32.xlu0 %v1440_v54, %s12175_s28  ;;  %2699 = vst.msk [vmem:[#allocation2 + $0x1d0] sm:$0xff] %vm2644_vm5, %v2417_v41  ;;  %v3465_v42 = vadd.f32 %v10706_v20, %v15894_v63  ;;  %v3460_v63 = vadd.f32 %v3459_v57, %v15911_v27  ;;  %v19358_v27 = vld [vmem:[#allocation7_spill] sm:$0xff]  ;;  %v16238_v15 = vld [vmem:[%s19268_s3 + $0xa8] sm:$0xff] }
 0x2c4   :  { %11071 = vmatmul.mubr.msk.f32.gmra.mxu0 %vm1514_vm1, %v16019_v0  ;;  %11121 = vmatprep.subr.mxu0 %v19356_v33  ;;  %1589 = vst.msk [vmem:[#allocation2 + $0x230] sm:$0xff] %vm129_vm0, %v1222_v17  ;;  %v1221_v54 = vsel %vm1176_vm3, %v1128_v23, %v1129_v44  ;;  %v16095_v57 = vmax.f32 %v914_v7, 0.0  ;;  %v1364_v10 = vrot.slane %v16078_v29, 1  ;;  %v3475_v41 = vadd.f32 %v10709_v40, %v15930_v25 }
 0x2c5   :  { %11153 = vmatprep.subr.mxu1 %v15700_v43  ;;  %v2419_v56 = vpop.permute.xlu1 %2418  ;;  %v10742_v38 = vpop.f32.mrf.mxu1  ;;  %2454 = vrot.lane.b32.xlu1 %v1439_v35, %s12175_s28  ;;  %1590 = vst.msk [vmem:[#allocation2 + $0x238] sm:$0xff] %vm129_vm0, %v1221_v54  ;;  %v16117_v35 = vld [vmem:[#allocation2 + $0x190] sm:$0xff]  ;;  %v804_v23 = vmul.f32 %v12140_v28, %v13369_v19  ;;  %v19361_v54 = vld [vmem:[#allocation10_spill] sm:$0xff] }
 0x2c6   :  { %11122 = vmatpush3.msra.mxu0 %v19356_v33  ;;  %2700 = vst.msk [vmem:[#allocation2 + $0x1d8] sm:$0xff] %vm2644_vm5, %v2419_v56  ;;  %v3640_v20 = vadd.f32 %v10742_v38, %v3465_v42  ;;  %11133 = vmatprep.mubr.msk.f32.mxu0 %vm1514_vm1, %v15721_v36  ;;  %v3469_v26 = vpop.f32.mrf.mxu0  ;;  %v12139_v36 = vld [vmem:[%s19267_s0 + $0x268] sm:$0xff]  ;;  %v1365_v42 = vrot.slane %v16095_v57, 1  ;;  %v12141_v28 = vld [vmem:[%s19267_s0 + $0x278] sm:$0xff] }
 0x2c7   :  { %11154 = vmatpush3.msra.mxu1 %v15700_v43  ;;  %v3608_v24 = vpop.f32.mrf.mxu1  ;;  %11103 = vmatprep.mubr.msk.f32.mxu1 %vm1514_vm1, %v16071_v8  ;;  %v803_v49 = vmul.f32 %v12139_v36, %v13367_v51  ;;  %v3470_v40 = vadd.f32 %v3469_v26, %v15957_v48 }
 0x2c8   :  { %11123 = vmatprep.subr.mxu0 %v19358_v27  ;;  %3648 = vst [vmem:[%s19271_s4 + $0x58] sm:$0xff] %v3640_v20  ;;  %v3639_v43 = vadd.f32 %v3608_v24, %v3460_v63  ;;  %11155 = vmatprep.subr.mxu1 %v15726_v47  ;;  %v19360_v63 = vld [vmem:[#allocation9_spill] sm:$0xff]  ;;  %v1438_v20 = vsel %vm1401_vm2, %v1363_v18, %v1364_v10 }
 0x2c9   :  { %11104 = vmatmul.mubr.msk.f32.gmra.mxu1 %vm1514_vm1, %v16076_v61  ;;  %11124 = vmatpush3.msra.mxu0 %v19358_v27  ;;  %v10712_v7 = vpop.f32.mrf.mxu0  ;;  %v915_v25 = vadd.f32 %v803_v49, %v13438_v53  ;;  %v1437_v48 = vsel %vm1401_vm2, %v1364_v10, %v1365_v42  ;;  %v916_v18 = vadd.f32 %v804_v23, %v13444_v46  ;;  %v19362_v10 = vld [vmem:[#allocation12_spill] sm:$0xff] }
 0x2ca   :  { %11156 = vmatpush3.msra.mxu1 %v15726_v47  ;;  %v1864_v59 = vpop.permute.xlu0 %1863  ;;  %3647 = vst [vmem:[%s19271_s4 + $0x50] sm:$0xff] %v3639_v43  ;;  %1895 = vrot.lane.b32.xlu0 %v15991_v22, %s12174_s16  ;;  %v16124_v47 = vld [vmem:[#allocation2 + $0x198] sm:$0xff]  ;;  %v3485_v43 = vadd.f32 %v10712_v7, %v15979_v37  ;;  %v805_v23 = vmul.f32 %v12141_v28, %v13363_v32 }
 0x2cb   :  { %11125 = vmatprep.subr.mxu0 %v19359_v39  ;;  %2142 = vst.msk [vmem:[#allocation2 + $0x1f0] sm:$0xff] %vm2083_vm4, %v1864_v59  ;;  %11157 = vmatprep.subr.mxu1 %v15772_v1  ;;  %v10745_v56 = vpop.f32.mrf.mxu1  ;;  %v3479_v24 = vpop.f32.mrf.mxu0  ;;  %v16158_v27 = vmax.f32 %v915_v25, 0.0  ;;  %v16174_v59 = vmax.f32 %v916_v18, 0.0  ;;  %v1131_v25 = vrot.slane %v15814_v2, 7 }
 0x2cc   :  { %1897 = vrot.lane.b32.xlu1 %v16078_v29, %s12174_s16  ;;  %v1866_v33 = vpop.permute.xlu1 %1865  ;;  %11126 = vmatpush3.msra.mxu0 %v19359_v39  ;;  %v3642_v38 = vadd.f32 %v10745_v56, %v3475_v41  ;;  %v3480_v49 = vadd.f32 %v3479_v24, %v15993_v11  ;;  %v16181_v41 = vld [vmem:[%s19268_s3 + $0xb8] sm:$0xff] }
 0x2cd   :  { %11158 = vmatpush3.msra.mxu1 %v15772_v1  ;;  %2143 = vst.msk [vmem:[#allocation2 + $0x1f8] sm:$0xff] %vm2083_vm4, %v1866_v33  ;;  %11106 = vmatprep.mubr.msk.f32.mxu1 %vm1514_vm1, %v16117_v35  ;;  %v3618_v17 = vpop.f32.mrf.mxu1  ;;  %v1366_v7 = vrot.slane %v16158_v27, 1  ;;  %v1367_v33 = vrot.slane %v16174_v59, 1 }
 0x2ce   :  { %11127 = vmatprep.subr.mxu0 %v19360_v63  ;;  %11159 = vmatprep.subr.mxu1 %v15801_v55  ;;  %3650 = vst [vmem:[%s19271_s4 + $0x68] sm:$0xff] %v3642_v38  ;;  %v3641_v1 = vadd.f32 %v3618_v17, %v3470_v40 }
 0x2cf   :  { %11107 = vmatmul.mubr.msk.f32.gmra.mxu1 %vm1514_vm1, %v16124_v47  ;;  %11128 = vmatpush3.msra.mxu0 %v19360_v63  ;;  %v16263_v63 = vld [vmem:[%s19268_s3 + $0xa0] sm:$0xff] }
 0x2d0   :  { %11160 = vmatpush3.msra.mxu1 %v15801_v55  ;;  %v2421_v26 = vpop.permute.xlu0 %2420  ;;  %2456 = vrot.lane.b32.xlu0 %v1438_v20, %s12175_s28  ;;  %3649 = vst [vmem:[%s19271_s4 + $0x60] sm:$0xff] %v3641_v1 }
 0x2d1   :  { %11129 = vmatprep.subr.mxu0 %v19361_v54  ;;  %2701 = vst.msk [vmem:[#allocation2 + $0x1e0] sm:$0xff] %vm2644_vm5, %v2421_v26  ;;  %11161 = vmatprep.subr.mxu1 %v15834_v58  ;;  %v10748_v36 = vpop.f32.mrf.mxu1 }
 0x2d2   :  { %11169 = vmatprep.mubr.msk.f32.mxu1 %vm1514_vm1, %v16071_v8  ;;  %v2423_v55 = vpop.permute.xlu1 %2422  ;;  %2458 = vrot.lane.b32.xlu1 %v1437_v48, %s12175_s28  ;;  %v3644_v37 = vadd.f32 %v10748_v36, %v3485_v43  ;;  %v16292_v48 = vld [vmem:[%s19268_s3 + $0x48] sm:$0xff] }
 0x2d3   :  { %11130 = vmatpush3.msra.mxu0 %v19361_v54  ;;  %2702 = vst.msk [vmem:[#allocation2 + $0x1e8] sm:$0xff] %vm2644_vm5, %v2423_v55  ;;  %11162 = vmatpush3.msra.mxu1 %v15834_v58  ;;  %v3628_v39 = vpop.f32.mrf.mxu1  ;;  %v1132_v54 = vrot.slane %v15819_v9, 7  ;;  %v1133_v55 = vrot.slane %v15903_v16, 7  ;;  %v16314_v9 = vld [vmem:[%s19268_s3 + $0x90] sm:$0xff]  ;;  %v16327_v16 = vld [vmem:[#allocation2 + $0x1a0] sm:$0xff] }
 0x2d4   :  { %11131 = vmatprep.subr.mxu0 %v19362_v10  ;;  %11163 = vmatprep.subr.mxu1 %v15860_v5  ;;  %3652 = vst [vmem:[%s19271_s4 + $0x78] sm:$0xff] %v3644_v37  ;;  %v3643_v58 = vadd.f32 %v3628_v39, %v3480_v49  ;;  %v16343_v39 = vld [vmem:[#allocation2 + $0x1a8] sm:$0xff] }
 0x2d5   :  { %11132 = vmatpush3.msra.mxu0 %v19362_v10  ;;  %11164 = vmatpush3.msra.mxu1 %v15860_v5  ;;  %v1130_v5 = vrot.slane %v15702_v14, 7  ;;  %v1436_v14 = vsel %vm1401_vm2, %v1365_v42, %v1366_v7  ;;  %v917_v42 = vadd.f32 %v805_v23, %v13434_v50  ;;  %v1218_v49 = vsel %vm1176_vm3, %v1131_v25, %v1132_v54 }
 0x2d6   :  { %1899 = vrot.lane.b32.xlu0 %v16095_v57, %s12174_s16  ;;  %v1868_v11 = vpop.permute.xlu0 %1867  ;;  %11134 = vmatmul.mubr.msk.f32.vlgmr.msra.gmra.mxu0 %vm1514_vm1, %v15740_v62  ;;  %3651 = vst [vmem:[%s19271_s4 + $0x70] sm:$0xff] %v3643_v58  ;;  %v16208_v62 = vld [vmem:[%s19268_s3 + $0xb0] sm:$0xff]  ;;  %1593 = vst.msk [vmem:[#allocation2 + $0x250] sm:$0xff] %vm129_vm0, %v1218_v49  ;;  %v1217_v10 = vsel %vm1176_vm3, %v1132_v54, %v1133_v55  ;;  %v16353_v58 = vld [vmem:[%s19268_s3 + $0x88] sm:$0xff] }
 0x2d7   :  { %11165 = vmatprep.subr.mxu1 %v15879_v34  ;;  %2144 = vst.msk [vmem:[#allocation2 + $0x200] sm:$0xff] %vm2083_vm4, %v1868_v11  ;;  %11181 = vmatprep.subr.mxu0 %v16181_v41  ;;  %v1870_v56 = vpop.permute.xlu1 %1869  ;;  %v1220_v40 = vsel %vm1176_vm3, %v1129_v44, %v1130_v5  ;;  %v16243_v44 = vld [vmem:[%s19268_s3 + $0x58] sm:$0xff]  ;;  %v16274_v1 = vmax.f32 %v917_v42, 0.0  ;;  %v16410_v42 = vld [vmem:[%s19268_s3 + $0x28] sm:$0xff]  ;;  %v16434_v54 = vld [vmem:[%s19268_s3 + $0x20] sm:$0xff] }
 0x2d8   :  { %1901 = vrot.lane.b32.xlu1 %v16158_v27, %s12174_s16  ;;  %11136 = vmatprep.mubr.msk.f32.mxu0 %vm1514_vm1, %v15796_v3  ;;  %2145 = vst.msk [vmem:[#allocation2 + $0x208] sm:$0xff] %vm2083_vm4, %v1870_v56  ;;  %v12142_v3 = vld [vmem:[%s19267_s0 + $0x280] sm:$0xff]  ;;  %v16358_v11 = vld [vmem:[%s19268_s3 + $0x38] sm:$0xff]  ;;  %19367 = vst [vmem:[#allocation14_spill] sm:$0xff] %v16410_v42 }
 0x2d9   :  { %11166 = vmatpush3.msra.mxu1 %v15879_v34  ;;  %11182 = vmatpush3.msra.mxu0 %v16181_v41  ;;  %v806_v2 = vmul.f32 %v12142_v3, %v13365_v4  ;;  %1591 = vst.msk [vmem:[#allocation2 + $0x240] sm:$0xff] %vm129_vm0, %v1220_v40  ;;  %v1219_v34 = vsel %vm1176_vm3, %v1130_v5, %v1131_v25  ;;  %v1368_v26 = vrot.slane %v16274_v1, 1  ;;  %1594 = vst.msk [vmem:[#allocation2 + $0x258] sm:$0xff] %vm129_vm0, %v1217_v10  ;;  %v16373_v5 = vld [vmem:[%s19268_s3 + $0x80] sm:$0xff]  ;;  %v16396_v3 = vld [vmem:[#allocation2 + $0x1b8] sm:$0xff] }
 0x2da   :  { %11167 = vmatprep.subr.mxu1 %v15901_v6  ;;  %11183 = vmatprep.subr.mxu0 %v16208_v62  ;;  %1592 = vst.msk [vmem:[#allocation2 + $0x248] sm:$0xff] %vm129_vm0, %v1219_v34  ;;  %v16306_v43 = vpop.f32.mrf.mxu0  ;;  %19365 = vst [vmem:[#allocation13_spill] sm:$0xff] %v16358_v11  ;;  %v1134_v34 = vrot.slane %v15918_v13, 7  ;;  %v12144_v13 = vld [vmem:[%s19267_s0 + $0x290] sm:$0xff] }
 0x2db   :  { %11168 = vmatpush3.msra.mxu1 %v15901_v6  ;;  %11184 = vmatpush3.msra.mxu0 %v16208_v62  ;;  %v1435_v6 = vsel %vm1401_vm2, %v1366_v7, %v1367_v33  ;;  %v918_v20 = vadd.f32 %v806_v2, %v13436_v21  ;;  %v16401_v2 = vld [vmem:[%s19268_s3 + $0x78] sm:$0xff]  ;;  %19368 = vst [vmem:[#allocation7_spill] sm:$0xff] %v16434_v54 }
 0x2dc   :  { %2460 = vrot.lane.b32.xlu0 %v1436_v14, %s12175_s28  ;;  %v1872_v38 = vpop.permute.xlu0 %1871  ;;  %11137 = vmatmul.mubr.msk.f32.gmra.mxu0 %vm1514_vm1, %v15812_v45  ;;  %v16272_v45 = vld [vmem:[%s19268_s3 + $0x50] sm:$0xff]  ;;  %v16345_v7 = vpop.f32.mrf.mxu0  ;;  %v12143_v14 = vld [vmem:[%s19267_s0 + $0x288] sm:$0xff] }
 0x2dd   :  { %11170 = vmatmul.mubr.msk.f32.vlgmr.msra.gmra.mxu1 %vm1514_vm1, %v16076_v61  ;;  %2146 = vst.msk [vmem:[#allocation2 + $0x210] sm:$0xff] %vm2083_vm4, %v1872_v38  ;;  %11185 = vmatprep.subr.mxu0 %v16238_v15  ;;  %v1874_v17 = vpop.permute.xlu1 %1873  ;;  %v16294_v18 = vmax.f32 %v918_v20, 0.0  ;;  %v807_v40 = vmul.f32 %v12143_v14, %v13367_v51  ;;  %v808_v38 = vmul.f32 %v12144_v13, %v13369_v19 }
 0x2de   :  { %11217 = vmatprep.subr.mxu1 %v16243_v44  ;;  %2462 = vrot.lane.b32.xlu1 %v1435_v6, %s12175_s28  ;;  %2147 = vst.msk [vmem:[#allocation2 + $0x218] sm:$0xff] %vm2083_vm4, %v1874_v17  ;;  %v19296_v6 = vrot.slane %v15986_v30, 7 }
 0x2df   :  { %11139 = vmatprep.mubr.msk.f32.mxu0 %vm1514_vm1, %v15943_v31  ;;  %11172 = vmatprep.mubr.msk.f32.mxu1 %vm1514_vm1, %v16117_v35  ;;  %v16287_v31 = vld [vmem:[%s19268_s3 + $0x98] sm:$0xff]  ;;  %19363 = vst [vmem:[#allocation11_spill] sm:$0xff] %v16294_v18  ;;  %v19297_v37 = vrot.slane %v16294_v18, 1 }
 0x2e0   :  { %11186 = vmatpush3.msra.mxu0 %v16238_v15  ;;  %11218 = vmatpush3.msra.mxu1 %v16243_v44  ;;  %v16385_v25 = vpop.f32.mrf.mxu0  ;;  %v1215_v49 = vsel %vm1176_vm3, %v1134_v34, %v19296_v6  ;;  %v12145_v6 = vld [vmem:[%s19267_s0 + $0x298] sm:$0xff] }
 0x2e1   :  { %11187 = vmatprep.subr.mxu0 %v16263_v63  ;;  %11219 = vmatprep.subr.mxu1 %v16272_v45  ;;  %v1433_v28 = vsel %vm1401_vm2, %v1368_v26, %v19297_v37  ;;  %1596 = vst.msk [vmem:[#allocation2 + $0x268] sm:$0xff] %vm129_vm0, %v1215_v49  ;;  %v809_v37 = vmul.f32 %v12145_v6, %v13363_v32 }
 0x2e2   :  { %11188 = vmatpush3.msra.mxu0 %v16263_v63  ;;  %11220 = vmatpush3.msra.mxu1 %v16272_v45  ;;  %v16419_v17 = vpop.f32.mrf.mxu0 }
 0x2e3   :  { %1903 = vrot.lane.b32.xlu0 %v16174_v59, %s12174_s16  ;;  %v2425_v24 = vpop.permute.xlu0 %2424  ;;  %11140 = vmatmul.mubr.msk.f32.gmra.mxu0 %vm1514_vm1, %v15961_v60  ;;  %v16319_v60 = vld [vmem:[%s19268_s3 + $0x40] sm:$0xff] }
 0x2e4   :  { %11173 = vmatmul.mubr.msk.f32.gmra.mxu1 %vm1514_vm1, %v16124_v47  ;;  %2703 = vst.msk [vmem:[#allocation2 + $0x1f0] sm:$0xff] %vm2644_vm5, %v2425_v24  ;;  %11189 = vmatprep.subr.mxu0 %v16287_v31  ;;  %19364 = vst [vmem:[#allocation5_spill] sm:$0xff] %v16319_v60  ;;  %v2427_v36 = vpop.permute.xlu1 %2426  ;;  %v16429_v24 = vld [vmem:[%s19268_s3 + $0x70] sm:$0xff] }
 0x2e5   :  { %11221 = vmatprep.subr.mxu1 %v16292_v48  ;;  %1905 = vrot.lane.b32.xlu1 %v16274_v1, %s12174_s16  ;;  %2704 = vst.msk [vmem:[#allocation2 + $0x1f8] sm:$0xff] %vm2644_vm5, %v2427_v36  ;;  %v919_v36 = vadd.f32 %v807_v40, %v13438_v53 }
 0x2e6   :  { %11142 = vmatprep.mubr.msk.f32.mxu0 %vm1514_vm1, %v16003_v12  ;;  %11190 = vmatpush3.msra.mxu0 %v16287_v31  ;;  %v1434_v12 = vsel %vm1401_vm2, %v1367_v33, %v1368_v26  ;;  %v16381_v33 = vld [vmem:[%s19268_s3 + $0x30] sm:$0xff]  ;;  %v1216_v26 = vsel %vm1176_vm3, %v1133_v55, %v1134_v34  ;;  %v16438_v55 = vpop.f32.mrf.mxu1 }
 0x2e7   :  { %11222 = vmatpush3.msra.mxu1 %v16292_v48  ;;  %11191 = vmatprep.subr.mxu0 %v16314_v9  ;;  %19366 = vst [vmem:[#allocation6_spill] sm:$0xff] %v16381_v33  ;;  %1595 = vst.msk [vmem:[#allocation2 + $0x260] sm:$0xff] %vm129_vm0, %v1216_v26  ;;  %v16474_v14 = vmax.f32 %v919_v36, 0.0  ;;  %v16482_v34 = vld [vmem:[%s19268_s3 + $0x10] sm:$0xff]  ;;  %v16502_v26 = vld [vmem:[%s19268_s3 + $0x118] sm:$0xff] }
 0x2e8   :  { %11223 = vmatprep.subr.mxu1 %v16319_v60  ;;  %11175 = vmatprep.mubr.msk.f32.mxu1 %vm1514_vm1, %v16327_v16  ;;  %v3896_v40 = vpop.f32.mrf.mxu1  ;;  %19371 = vst [vmem:[#allocation10_spill] sm:$0xff] %v16482_v34 }
 0x2e9   :  { %11192 = vmatpush3.msra.mxu0 %v16314_v9  ;;  %11224 = vmatpush3.msra.mxu1 %v16319_v60  ;;  %v2429_v23 = vpop.permute.xlu0 %2428  ;;  %19370 = vst [vmem:[#allocation9_spill] sm:$0xff] %v16474_v14  ;;  %v1370_v36 = vrot.slane %v16474_v14, 1 }
 0x2ea   :  { %2464 = vrot.lane.b32.xlu0 %v1434_v12, %s12175_s28  ;;  %11143 = vmatmul.mubr.msk.f32.gmra.mxu0 %vm1514_vm1, %v16019_v0  ;;  %2705 = vst.msk [vmem:[#allocation2 + $0x200] sm:$0xff] %vm2644_vm5, %v2429_v23  ;;  %v16383_v0 = vld [vmem:[#allocation2 + $0x1b0] sm:$0xff]  ;;  %v16464_v23 = vld [vmem:[%s19268_s3 + $0x18] sm:$0xff]  ;;  %v16505_v49 = vpop.f32.mrf.mxu1 }
 0x2eb   :  { %11176 = vmatmul.mubr.msk.f32.gmra.mxu1 %vm1514_vm1, %v16343_v39  ;;  %11193 = vmatprep.subr.mxu0 %v16353_v58  ;;  %v2431_v56 = vpop.permute.xlu1 %2430  ;;  %19369 = vst [vmem:[#allocation8_spill] sm:$0xff] %v16464_v23 }
 0x2ec   :  { %11225 = vmatprep.subr.mxu1 %v16358_v11  ;;  %2466 = vrot.lane.b32.xlu1 %v1433_v28, %s12175_s28  ;;  %2706 = vst.msk [vmem:[#allocation2 + $0x208] sm:$0xff] %vm2644_vm5, %v2431_v56  ;;  %v16447_v12 = vpop.f32.mrf.mxu0  ;;  %v16456_v28 = vld [vmem:[%s19268_s3 + $0x68] sm:$0xff]  ;;  %v920_v56 = vadd.f32 %v808_v38, %v13444_v46 }
 0x2ed   :  { %11194 = vmatpush3.msra.mxu0 %v16353_v58  ;;  %11226 = vmatpush3.msra.mxu1 %v16358_v11  ;;  %v16493_v38 = vld [vmem:[%s19268_s3 + $0x8] sm:$0xff] }
 0x2ee   :  { %11195 = vmatprep.subr.mxu0 %v16373_v5  ;;  %11227 = vmatprep.subr.mxu1 %v16381_v33  ;;  %v16484_v13 = vpop.f32.mrf.mxu0  ;;  %19372 = vst [vmem:[#allocation12_spill] sm:$0xff] %v16493_v38 }
 0x2ef   :  { %11178 = vmatprep.mubr.msk.f32.mxu1 %vm1514_vm1, %v16383_v0  ;;  %11196 = vmatpush3.msra.mxu0 %v16373_v5 }
 0x2f0   :  { %11228 = vmatpush3.msra.mxu1 %v16381_v33  ;;  %v2433_v20 = vpop.permute.xlu0 %2432  ;;  %11197 = vmatprep.subr.mxu0 %v16401_v2  ;;  %v19374_v33 = vrot.slane %v15986_v30, 7  ;;  %v16565_v30 = vld [vmem:[%s19268_s3 + $0x108] sm:$0xff] }
 0x2f1   :  { %11179 = vmatmul.mubr.msk.f32.gmra.mxu1 %vm1514_vm1, %v16396_v3  ;;  %2707 = vst.msk [vmem:[#allocation2 + $0x210] sm:$0xff] %vm2644_vm5, %v2433_v20  ;;  %11229 = vmatprep.subr.mxu1 %v16410_v42  ;;  %v16495_v20 = vmax.f32 %v920_v56, 0.0  ;;  %v16518_v56 = vld [vmem:[%s19268_s3] sm:$0xff] }
 0x2f2   :  { %11198 = vmatpush3.msra.mxu0 %v16401_v2  ;;  %v2435_v10 = vpop.permute.xlu1 %2434  ;;  %11230 = vmatpush3.msra.mxu1 %v16410_v42 }
 0x2f3   :  { %11241 = vmatprep.mubr.msk.f32.mxu1 %vm1514_vm1, %v16071_v8  ;;  %2708 = vst.msk [vmem:[#allocation2 + $0x218] sm:$0xff] %vm2644_vm5, %v2435_v10  ;;  %11199 = vmatprep.subr.mxu0 %v16429_v24  ;;  %v16472_v8 = vld [vmem:[%s19268_s3 + $0x60] sm:$0xff]  ;;  %v16510_v10 = vpop.f32.mrf.mxu0 }
 0x2f4   :  { %11231 = vmatprep.subr.mxu1 %v16434_v54  ;;  %11200 = vmatpush3.msra.mxu0 %v16429_v24 }
 0x2f5   :  { %11232 = vmatpush3.msra.mxu1 %v16434_v54  ;;  %11201 = vmatprep.subr.mxu0 %v16456_v28  ;;  %v3906_v54 = vpop.f32.mrf.mxu1 }
 0x2f6   :  { %11205 = vmatprep.mubr.msk.f32.mxu0 %vm1514_vm1, %v16327_v16  ;;  %11233 = vmatprep.subr.mxu1 %v16464_v23 }
 0x2f7   :  { %11202 = vmatpush3.msra.mxu0 %v16456_v28  ;;  %11234 = vmatpush3.msra.mxu1 %v16464_v23  ;;  %v16531_v23 = vld [vmem:[%s19268_s3 + $0x110] sm:$0xff] }
 0x2f8   :  { %11203 = vmatprep.subr.mxu0 %v16472_v8  ;;  %11235 = vmatprep.subr.mxu1 %v16482_v34 }
 0x2f9   :  { %11204 = vmatpush3.msra.mxu0 %v16472_v8  ;;  %11236 = vmatpush3.msra.mxu1 %v16482_v34  ;;  %v1136_v34 = vrot.slane %v15991_v22, 7  ;;  %v19373_v22 = vrot.slane %v16294_v18, 1 }
 0x2fa   :  { %1907 = vrot.lane.b32.xlu0 %v16294_v18, %s12174_s16  ;;  %11206 = vmatmul.mubr.msk.f32.vlgmr.msra.gmra.mxu0 %vm1514_vm1, %v16343_v39  ;;  %v19375_v18 = vrot.slane %v16078_v29, 7 }
 0x2fb   :  { %11237 = vmatprep.subr.mxu1 %v16493_v38  ;;  %11253 = vmatprep.subr.mxu0 %v16502_v26  ;;  %v1432_v6 = vsel %vm1401_vm2, %v19373_v22, %v1370_v36  ;;  %v1214_v60 = vsel %vm1176_vm3, %v19374_v33, %v1136_v34  ;;  %v16553_v22 = vpop.f32.mrf.mxu0  ;;  %v921_v33 = vadd.f32 %v809_v37, %v13434_v50 }
 0x2fc   :  { %1909 = vrot.lane.b32.xlu1 %v16474_v14, %s12174_s16  ;;  %v1876_v42 = vpop.permute.xlu0 %1875  ;;  %11208 = vmatprep.mubr.msk.f32.mxu0 %vm1514_vm1, %v16383_v0  ;;  %v12146_v14 = vld [vmem:[%s19267_s0 + $0x2a0] sm:$0xff]  ;;  %1597 = vst.msk [vmem:[#allocation2 + $0x270] sm:$0xff] %vm129_vm0, %v1214_v60  ;;  %v3902_v60 = vadd.f32 %v16438_v55, %v16306_v43  ;;  %v3897_v37 = vadd.f32 %v3896_v40, %v16345_v7  ;;  %v16584_v55 = vpop.f32.mrf.mxu1 }
 0x2fd   :  { %11238 = vmatpush3.msra.mxu1 %v16493_v38  ;;  %v810_v11 = vmul.f32 %v12146_v14, %v13365_v4  ;;  %2148 = vst.msk [vmem:[#allocation2 + $0x220] sm:$0xff] %vm2083_vm4, %v1876_v42  ;;  %11254 = vmatpush3.msra.mxu0 %v16502_v26  ;;  %v1213_v42 = vsel %vm1176_vm3, %v1136_v34, %v19375_v18  ;;  %v19376_v18 = vrot.slane %v16495_v20, 1 }
 0x2fe   :  { %11239 = vmatprep.subr.mxu1 %v16518_v56  ;;  %v1878_v38 = vpop.permute.xlu1 %1877  ;;  %11255 = vmatprep.subr.mxu0 %v16531_v23  ;;  %1598 = vst.msk [vmem:[#allocation2 + $0x278] sm:$0xff] %vm129_vm0, %v1213_v42 }
 0x2ff   :  { %11240 = vmatpush3.msra.mxu1 %v16518_v56  ;;  %2149 = vst.msk [vmem:[#allocation2 + $0x228] sm:$0xff] %vm2083_vm4, %v1878_v38  ;;  %11256 = vmatpush3.msra.mxu0 %v16531_v23  ;;  %v1431_v14 = vsel %vm1401_vm2, %v1370_v36, %v19376_v18  ;;  %v10847_v34 = vpop.f32.mrf.mxu0  ;;  %v922_v43 = vadd.f32 %v810_v11, %v13436_v21  ;;  %v16591_v36 = vld [vmem:[%s19268_s3 + $0x100] sm:$0xff] }
 0x300   :  { %2468 = vrot.lane.b32.xlu0 %v1432_v6, %s12175_s28  ;;  %11209 = vmatmul.mubr.msk.f32.gmra.mxu0 %vm1514_vm1, %v16396_v3  ;;  %v4085_v38 = vadd.f32 %v10847_v34, %v3902_v60  ;;  %v3916_v60 = vpop.f32.mrf.mxu1 }
 0x301   :  { %11242 = vmatmul.mubr.msk.f32.vlgmr.msra.gmra.mxu1 %vm1514_vm1, %v16076_v61  ;;  %11257 = vmatprep.subr.mxu0 %v16565_v30  ;;  %v4045_v42 = vpop.f32.mrf.mxu0  ;;  %v16596_v61 = vmax.f32 %v921_v33, 0.0  ;;  %v16611_v11 = vmax.f32 %v922_v43, 0.0  ;;  %v3912_v33 = vadd.f32 %v16505_v49, %v16385_v25  ;;  %v3907_v49 = vadd.f32 %v3906_v54, %v16419_v17  ;;  %v16645_v54 = vld [vmem:[#allocation2 + $0x1c8] sm:$0xff] }
 0x302   :  { %11289 = vmatprep.subr.mxu1 %v16181_v41  ;;  %v1880_v6 = vpop.permute.xlu0 %1879  ;;  %2470 = vrot.lane.b32.xlu1 %v1431_v14, %s12175_s28  ;;  %4093 = vst [vmem:[%s19271_s4 + $0x88] sm:$0xff] %v4085_v38  ;;  %v4084_v7 = vadd.f32 %v4045_v42, %v3897_v37  ;;  %v16629_v14 = vld [vmem:[#allocation2 + $0x1c0] sm:$0xff]  ;;  %v1138_v17 = vrot.slane %v16095_v57, 7  ;;  %v12148_v38 = vld [vmem:[%s19267_s0 + $0x2b0] sm:$0xff] }
 0x303   :  { %11244 = vmatprep.mubr.msk.f32.mxu1 %vm1514_vm1, %v16117_v35  ;;  %2150 = vst.msk [vmem:[#allocation2 + $0x230] sm:$0xff] %vm2083_vm4, %v1880_v6  ;;  %11258 = vmatpush3.msra.mxu0 %v16565_v30  ;;  %v16609_v35 = vld [vmem:[%s19268_s3 + $0xf8] sm:$0xff]  ;;  %v1372_v25 = vrot.slane %v16596_v61, 1  ;;  %v1373_v37 = vrot.slane %v16611_v11, 1  ;;  %v812_v6 = vmul.f32 %v12148_v38, %v13369_v19 }
 0x304   :  { %11290 = vmatpush3.msra.mxu1 %v16181_v41  ;;  %11259 = vmatprep.subr.mxu0 %v16591_v36  ;;  %v1882_v40 = vpop.permute.xlu1 %1881  ;;  %4092 = vst [vmem:[%s19271_s4 + $0x80] sm:$0xff] %v4084_v7  ;;  %v10820_v7 = vpop.f32.mrf.mxu1 }
 0x305   :  { %11291 = vmatprep.subr.mxu1 %v16208_v62  ;;  %11260 = vmatpush3.msra.mxu0 %v16591_v36  ;;  %2151 = vst.msk [vmem:[#allocation2 + $0x238] sm:$0xff] %vm2083_vm4, %v1882_v40  ;;  %v1139_v40 = vrot.slane %v16158_v27, 7  ;;  %v924_v38 = vadd.f32 %v812_v6, %v13444_v46 }
 0x306   :  { %11292 = vmatpush3.msra.mxu1 %v16208_v62  ;;  %v10850_v41 = vpop.f32.mrf.mxu0  ;;  %1911 = vrot.lane.b32.xlu0 %v16495_v20, %s12174_s16  ;;  %v16634_v62 = vld [vmem:[%s19268_s3 + $0xf0] sm:$0xff] }
 0x307   :  { %11245 = vmatmul.mubr.msk.f32.gmra.mxu1 %vm1514_vm1, %v16124_v47  ;;  %v4087_v18 = vadd.f32 %v10850_v41, %v3912_v33  ;;  %11261 = vmatprep.subr.mxu0 %v16609_v35  ;;  %v12147_v47 = vld [vmem:[%s19267_s0 + $0x2a8] sm:$0xff]  ;;  %v19378_v41 = vrot.slane %v16495_v20, 1 }
 0x308   :  { %11293 = vmatprep.subr.mxu1 %v16238_v15  ;;  %v811_v34 = vmul.f32 %v12147_v47, %v13367_v51  ;;  %v4055_v43 = vpop.f32.mrf.mxu0  ;;  %1913 = vrot.lane.b32.xlu1 %v16596_v61, %s12174_s16  ;;  %v2437_v42 = vpop.permute.xlu0 %2436 }
 0x309   :  { %11247 = vmatprep.mubr.msk.f32.mxu1 %vm1514_vm1, %v16327_v16  ;;  %4095 = vst [vmem:[%s19271_s4 + $0x98] sm:$0xff] %v4087_v18  ;;  %v4086_v57 = vadd.f32 %v4055_v43, %v3907_v49  ;;  %11262 = vmatpush3.msra.mxu0 %v16609_v35  ;;  %2709 = vst.msk [vmem:[#allocation2 + $0x220] sm:$0xff] %vm2644_vm5, %v2437_v42  ;;  %v19377_v16 = vrot.slane %v16078_v29, 7  ;;  %v1430_v49 = vsel %vm1401_vm2, %v19378_v41, %v1372_v25  ;;  %v3926_v42 = vpop.f32.mrf.mxu1  ;;  %v12149_v41 = vld [vmem:[%s19267_s0 + $0x2b8] sm:$0xff] }
 0x30a   :  { %11294 = vmatpush3.msra.mxu1 %v16238_v15  ;;  %11211 = vmatprep.mubr.msk.f32.mxu0 %vm1514_vm1, %v16629_v14  ;;  %v2439_v18 = vpop.permute.xlu1 %2438  ;;  %v1211_v29 = vsel %vm1176_vm3, %v1138_v17, %v1139_v40  ;;  %v16684_v15 = vld [vmem:[%s19268_s3 + $0xe8] sm:$0xff]  ;;  %v923_v47 = vadd.f32 %v811_v34, %v13438_v53  ;;  %v3922_v43 = vadd.f32 %v16584_v55, %v16447_v12 }
 0x30b   :  { %v1212_v33 = vsel %vm1176_vm3, %v19377_v16, %v1138_v17  ;;  %11263 = vmatprep.subr.mxu0 %v16634_v62  ;;  %4094 = vst [vmem:[%s19271_s4 + $0x90] sm:$0xff] %v4086_v57  ;;  %11295 = vmatprep.subr.mxu1 %v16263_v63  ;;  %2710 = vst.msk [vmem:[#allocation2 + $0x228] sm:$0xff] %vm2644_vm5, %v2439_v18  ;;  %v1429_v17 = vsel %vm1401_vm2, %v1372_v25, %v1373_v37  ;;  %v16709_v25 = vld [vmem:[%s19268_s3 + $0xe0] sm:$0xff]  ;;  %v16711_v6 = vpop.f32.mrf.mxu1 }
 0x30c   :  { %1599 = vst.msk [vmem:[#allocation2 + $0x280] sm:$0xff] %vm129_vm0, %v1212_v33  ;;  %11212 = vmatmul.mubr.msk.f32.gmra.mxu0 %vm1514_vm1, %v16645_v54  ;;  %1600 = vst.msk [vmem:[#allocation2 + $0x288] sm:$0xff] %vm129_vm0, %v1211_v29  ;;  %11296 = vmatpush3.msra.mxu1 %v16263_v63  ;;  %v10853_v34 = vpop.f32.mrf.mxu0  ;;  %v3917_v12 = vadd.f32 %v3916_v60, %v16484_v13  ;;  %v16704_v63 = vld [vmem:[#allocation2 + $0x1d0] sm:$0xff]  ;;  %v16718_v13 = vmax.f32 %v923_v47, 0.0  ;;  %v16725_v33 = vmax.f32 %v924_v38, 0.0 }
 0x30d   :  { %11264 = vmatpush3.msra.mxu0 %v16634_v62  ;;  %2472 = vrot.lane.b32.xlu0 %v1430_v49, %s12175_s28  ;;  %v4089_v55 = vadd.f32 %v10853_v34, %v3922_v43  ;;  %v813_v49 = vmul.f32 %v12149_v41, %v13363_v32  ;;  %v3932_v18 = vadd.f32 %v10820_v7, %v16510_v10  ;;  %v16748_v29 = vpop.f32.mrf.mxu1 }
 0x30e   :  { %11248 = vmatmul.mubr.msk.f32.gmra.mxu1 %vm1514_vm1, %v16343_v39  ;;  %11265 = vmatprep.subr.mxu0 %v16684_v15  ;;  %v4065_v57 = vpop.f32.mrf.mxu0  ;;  %v16716_v39 = vld [vmem:[#allocation2 + $0x1d8] sm:$0xff]  ;;  %v1374_v47 = vrot.slane %v16718_v13, 1  ;;  %v1375_v38 = vrot.slane %v16725_v33, 1  ;;  %v3927_v10 = vadd.f32 %v3926_v42, %v16553_v22 }
 0x30f   :  { %11297 = vmatprep.subr.mxu1 %v16287_v31  ;;  %2474 = vrot.lane.b32.xlu1 %v1429_v17, %s12175_s28  ;;  %v2441_v60 = vpop.permute.xlu0 %2440  ;;  %4097 = vst [vmem:[%s19271_s4 + $0xa8] sm:$0xff] %v4089_v55  ;;  %v4088_v16 = vadd.f32 %v4065_v57, %v3917_v12  ;;  %v1140_v17 = vrot.slane %v16174_v59, 7  ;;  %v16769_v59 = vld [vmem:[%s19268_s3 + $0xd0] sm:$0xff]  ;;  %v925_v55 = vadd.f32 %v813_v49, %v13434_v50  ;;  %v16824_v49 = vld [vmem:[%s19268_s3 + $0xc0] sm:$0xff] }
 0x310   :  { %11250 = vmatprep.mubr.msk.f32.mxu1 %vm1514_vm1, %v16383_v0  ;;  %11266 = vmatpush3.msra.mxu0 %v16684_v15  ;;  %2711 = vst.msk [vmem:[#allocation2 + $0x230] sm:$0xff] %vm2644_vm5, %v2441_v60 }
 0x311   :  { %11298 = vmatpush3.msra.mxu1 %v16287_v31  ;;  %11214 = vmatprep.mubr.msk.f32.mxu0 %vm1514_vm1, %v16704_v63  ;;  %v2443_v0 = vpop.permute.xlu1 %2442  ;;  %4096 = vst [vmem:[%s19271_s4 + $0xa0] sm:$0xff] %v4088_v16  ;;  %v16740_v31 = vld [vmem:[%s19268_s3 + $0xd8] sm:$0xff]  ;;  %v16760_v34 = vpop.f32.mrf.mxu1  ;;  %v1210_v12 = vsel %vm1176_vm3, %v1139_v40, %v1140_v17  ;;  %v1428_v40 = vsel %vm1401_vm2, %v1373_v37, %v1374_v47  ;;  %v16800_v16 = vld [vmem:[%s19268_s3 + $0xc8] sm:$0xff] }
 0x312   :  { %11267 = vmatprep.subr.mxu0 %v16709_v25  ;;  %11299 = vmatprep.subr.mxu1 %v16314_v9  ;;  %2712 = vst.msk [vmem:[#allocation2 + $0x238] sm:$0xff] %vm2644_vm5, %v2443_v0 }
 0x313   :  { %11215 = vmatmul.mubr.msk.f32.gmra.mxu0 %vm1514_vm1, %v16716_v39  ;;  %11300 = vmatpush3.msra.mxu1 %v16314_v9  ;;  %v10856_v43 = vpop.f32.mrf.mxu0  ;;  %v1141_v9 = vrot.slane %v16274_v1, 7  ;;  %1601 = vst.msk [vmem:[#allocation2 + $0x290] sm:$0xff] %vm129_vm0, %v1210_v12  ;;  %v16813_v37 = vpop.f32.mrf.mxu1 }
 0x314   :  { %11268 = vmatpush3.msra.mxu0 %v16709_v25  ;;  %1915 = vrot.lane.b32.xlu0 %v16611_v11, %s12174_s16  ;;  %v4091_v7 = vadd.f32 %v10856_v43, %v3932_v18  ;;  %v16826_v18 = vmax.f32 %v925_v55, 0.0  ;;  %v12152_v55 = vld [vmem:[%s19267_s0 + $0x2d0] sm:$0xff] }
 0x315   :  { %11251 = vmatmul.mubr.msk.f32.gmra.mxu1 %vm1514_vm1, %v16396_v3  ;;  %11269 = vmatprep.subr.mxu0 %v16740_v31  ;;  %v12150_v3 = vld [vmem:[%s19267_s0 + $0x2c0] sm:$0xff]  ;;  %v4075_v42 = vpop.f32.mrf.mxu0  ;;  %v1209_v27 = vsel %vm1176_vm3, %v1140_v17, %v1141_v9 }
 0x316   :  { %11277 = vmatprep.mubr.msk.f32.mxu0 %vm1514_vm1, %v16629_v14  ;;  %v814_v22 = vmul.f32 %v12150_v3, %v13365_v4  ;;  %11301 = vmatprep.subr.mxu1 %v16353_v58  ;;  %v1884_v57 = vpop.permute.xlu0 %1883  ;;  %4099 = vst [vmem:[%s19271_s4 + $0xb8] sm:$0xff] %v4091_v7  ;;  %v4090_v60 = vadd.f32 %v4075_v42, %v3927_v10  ;;  %1602 = vst.msk [vmem:[#allocation2 + $0x298] sm:$0xff] %vm129_vm0, %v1209_v27  ;;  %v1376_v10 = vrot.slane %v16826_v18, 1  ;;  %v16859_v3 = vld [vmem:[#allocation2 + $0x1e0] sm:$0xff] }
 0x317   :  { %1917 = vrot.lane.b32.xlu1 %v16718_v13, %s12174_s16  ;;  %11270 = vmatpush3.msra.mxu0 %v16740_v31  ;;  %2152 = vst.msk [vmem:[#allocation2 + $0x240] sm:$0xff] %vm2083_vm4, %v1884_v57  ;;  %v816_v57 = vmul.f32 %v12152_v55, %v13369_v19 }
 0x318   :  { %11302 = vmatpush3.msra.mxu1 %v16353_v58  ;;  %11271 = vmatprep.subr.mxu0 %v16769_v59  ;;  %v1427_v58 = vsel %vm1401_vm2, %v1374_v47, %v1375_v38  ;;  %4098 = vst [vmem:[%s19271_s4 + $0xb0] sm:$0xff] %v4090_v60  ;;  %v926_v41 = vadd.f32 %v814_v22, %v13436_v21  ;;  %v16832_v47 = vpop.f32.mrf.mxu1 }
 0x319   :  { %11303 = vmatprep.subr.mxu1 %v16373_v5  ;;  %v1886_v0 = vpop.permute.xlu1 %1885  ;;  %11272 = vmatpush3.msra.mxu0 %v16769_v59  ;;  %v1426_v12 = vsel %vm1401_vm2, %v1375_v38, %v1376_v10 }
 0x31a   :  { %11304 = vmatpush3.msra.mxu1 %v16373_v5  ;;  %2153 = vst.msk [vmem:[#allocation2 + $0x248] sm:$0xff] %vm2083_vm4, %v1886_v0  ;;  %2476 = vrot.lane.b32.xlu0 %v1428_v40, %s12175_s28  ;;  %v16836_v43 = vmax.f32 %v926_v41, 0.0  ;;  %v16853_v7 = vpop.f32.mrf.mxu1 }
 0x31b   :  { %11273 = vmatprep.subr.mxu0 %v16800_v16  ;;  %11305 = vmatprep.subr.mxu1 %v16401_v2 }
 0x31c   :  { %2478 = vrot.lane.b32.xlu1 %v1427_v58, %s12175_s28  ;;  %11274 = vmatpush3.msra.mxu0 %v16800_v16  ;;  %v2445_v5 = vpop.permute.xlu0 %2444  ;;  %v1377_v22 = vrot.slane %v16836_v43, 1 }
 0x31d   :  { %11306 = vmatpush3.msra.mxu1 %v16401_v2  ;;  %11275 = vmatprep.subr.mxu0 %v16824_v49  ;;  %2713 = vst.msk [vmem:[#allocation2 + $0x240] sm:$0xff] %vm2644_vm5, %v2445_v5  ;;  %v12151_v2 = vld [vmem:[%s19267_s0 + $0x2c8] sm:$0xff]  ;;  %v19379_v5 = vld [vmem:[#allocation5_spill] sm:$0xff] }
 0x31e   :  { %11307 = vmatprep.subr.mxu1 %v16429_v24  ;;  %v2447_v17 = vpop.permute.xlu1 %2446  ;;  %11276 = vmatpush3.msra.mxu0 %v16824_v49  ;;  %v16882_v60 = vpop.f32.mrf.mxu1  ;;  %v1425_v27 = vsel %vm1401_vm2, %v1376_v10, %v1377_v22 }
 0x31f   :  { %11308 = vmatpush3.msra.mxu1 %v16429_v24  ;;  %2714 = vst.msk [vmem:[#allocation2 + $0x248] sm:$0xff] %vm2644_vm5, %v2447_v17  ;;  %1919 = vrot.lane.b32.xlu0 %v16725_v33, %s12174_s16  ;;  %v815_v24 = vmul.f32 %v12151_v2, %v13367_v51 }
 0x320   :  { %11278 = vmatmul.mubr.msk.f32.vlgmr.msra.gmra.mxu0 %vm1514_vm1, %v16645_v54  ;;  %11309 = vmatprep.subr.mxu1 %v16456_v28  ;;  %v16903_v41 = vpop.f32.mrf.mxu1 }
 0x321   :  { %11325 = vmatprep.subr.mxu0 %v16243_v44  ;;  %1921 = vrot.lane.b32.xlu1 %v16826_v18, %s12174_s16  ;;  %v1888_v42 = vpop.permute.xlu0 %1887  ;;  %v927_v38 = vadd.f32 %v815_v24, %v13438_v53 }
 0x322   :  { %11280 = vmatprep.mubr.msk.f32.mxu0 %vm1514_vm1, %v16704_v63  ;;  %11310 = vmatpush3.msra.mxu1 %v16456_v28  ;;  %2154 = vst.msk [vmem:[#allocation2 + $0x250] sm:$0xff] %vm2083_vm4, %v1888_v42  ;;  %v16875_v28 = vld [vmem:[#allocation2 + $0x1e8] sm:$0xff] }
 0x323   :  { %11326 = vmatpush3.msra.mxu0 %v16243_v44  ;;  %11311 = vmatprep.subr.mxu1 %v16472_v8  ;;  %v1890_v44 = vpop.permute.xlu1 %1889  ;;  %v16900_v0 = vmax.f32 %v927_v38, 0.0  ;;  %v16932_v38 = vld [vmem:[#allocation2 + $0x1f8] sm:$0xff] }
 0x324   :  { %11327 = vmatprep.subr.mxu0 %v16272_v45  ;;  %11312 = vmatpush3.msra.mxu1 %v16472_v8  ;;  %2155 = vst.msk [vmem:[#allocation2 + $0x258] sm:$0xff] %vm2083_vm4, %v1890_v44  ;;  %v928_v8 = vadd.f32 %v816_v57, %v13444_v46 }
 0x325   :  { %11313 = vmatprep.mubr.msk.f32.mxu1 %vm1514_vm1, %v16859_v3  ;;  %11328 = vmatpush3.msra.mxu0 %v16272_v45 }
 0x326   :  { %2480 = vrot.lane.b32.xlu0 %v1426_v12, %s12175_s28  ;;  %v10919_v40 = vpop.f32.mrf.mxu0  ;;  %11281 = vmatmul.mubr.msk.f32.gmra.mxu0 %vm1514_vm1, %v16716_v39  ;;  %v16909_v17 = vmax.f32 %v928_v8, 0.0  ;;  %v19380_v12 = vld [vmem:[#allocation13_spill] sm:$0xff] }
 0x327   :  { %11314 = vmatmul.mubr.msk.f32.vlgmr.msra.gmra.mxu1 %vm1514_vm1, %v16875_v28  ;;  %11329 = vmatprep.subr.mxu0 %v16292_v48  ;;  %v4349_v2 = vadd.f32 %v10919_v40, %v16711_v6 }
 0x328   :  { %11361 = vmatprep.subr.mxu1 %v16502_v26  ;;  %v2449_v45 = vpop.permute.xlu0 %2448  ;;  %v4343_v58 = vpop.f32.mrf.mxu0  ;;  %2482 = vrot.lane.b32.xlu1 %v1425_v27, %s12175_s28  ;;  %v1379_v27 = vrot.slane %v16909_v17, 1 }
 0x329   :  { %11283 = vmatprep.mubr.msk.f32.mxu0 %vm1514_vm1, %v16859_v3  ;;  %2715 = vst.msk [vmem:[#allocation2 + $0x250] sm:$0xff] %vm2644_vm5, %v2449_v45  ;;  %11330 = vmatpush3.msra.mxu0 %v16292_v48  ;;  %v16919_v48 = vld [vmem:[#allocation2 + $0x1f0] sm:$0xff]  ;;  %v4344_v55 = vadd.f32 %v4343_v58, %v16748_v29  ;;  %v19381_v45 = vld [vmem:[#allocation11_spill] sm:$0xff] }
 0x32a   :  { %11362 = vmatpush3.msra.mxu1 %v16502_v26  ;;  %11331 = vmatprep.subr.mxu0 %v19379_v5  ;;  %v2451_v10 = vpop.permute.xlu1 %2450  ;;  %v1378_v26 = vrot.slane %v16900_v0, 1  ;;  %v12154_v29 = vld [vmem:[%s19267_s0 + $0x2e0] sm:$0xff] }
 0x32b   :  { %11363 = vmatprep.subr.mxu1 %v16531_v23  ;;  %11332 = vmatpush3.msra.mxu0 %v19379_v5  ;;  %2716 = vst.msk [vmem:[#allocation2 + $0x258] sm:$0xff] %vm2644_vm5, %v2451_v10  ;;  %v1142_v5 = vrot.slane %v19381_v45, 7  ;;  %v818_v58 = vmul.f32 %v12154_v29, %v13365_v4  ;;  %v19384_v45 = vld [vmem:[#allocation14_spill] sm:$0xff] }
 0x32c   :  { %11364 = vmatpush3.msra.mxu1 %v16531_v23  ;;  %v10922_v24 = vpop.f32.mrf.mxu0  ;;  %1923 = vrot.lane.b32.xlu0 %v16836_v43, %s12174_s16  ;;  %v10955_v42 = vpop.f32.mrf.mxu1  ;;  %v12153_v23 = vld [vmem:[%s19267_s0 + $0x2d8] sm:$0xff] }
 0x32d   :  { %11284 = vmatmul.mubr.msk.f32.gmra.mxu0 %vm1514_vm1, %v16875_v28  ;;  %11333 = vmatprep.subr.mxu0 %v19380_v12  ;;  %v817_v6 = vmul.f32 %v12153_v23, %v13363_v32  ;;  %v4532_v57 = vadd.f32 %v10955_v42, %v4349_v2  ;;  %v19382_v2 = vld [vmem:[#allocation9_spill] sm:$0xff] }
 0x32e   :  { %11365 = vmatprep.subr.mxu1 %v16565_v30  ;;  %v4353_v44 = vpop.f32.mrf.mxu0  ;;  %1925 = vrot.lane.b32.xlu1 %v16900_v0, %s12174_s16  ;;  %v1892_v40 = vpop.permute.xlu0 %1891  ;;  %v1143_v42 = vrot.slane %v19382_v2, 7  ;;  %v19387_v2 = vld [vmem:[#allocation10_spill] sm:$0xff] }
 0x32f   :  { %11334 = vmatpush3.msra.mxu0 %v19380_v12  ;;  %v4492_v8 = vpop.f32.mrf.mxu1  ;;  %11366 = vmatpush3.msra.mxu1 %v16565_v30  ;;  %2156 = vst.msk [vmem:[#allocation2 + $0x260] sm:$0xff] %vm2083_vm4, %v1892_v40  ;;  %4540 = vst [vmem:[%s19271_s4 + $0xc8] sm:$0xff] %v4532_v57  ;;  %v19383_v12 = vld [vmem:[#allocation6_spill] sm:$0xff]  ;;  %v1424_v30 = vsel %vm1401_vm2, %v1377_v22, %v1378_v26  ;;  %v1208_v40 = vsel %vm1176_vm3, %v1141_v9, %v1142_v5 }
 0x330   :  { %11316 = vmatprep.mubr.msk.f32.mxu1 %vm1514_vm1, %v16919_v48  ;;  %v4531_v10 = vadd.f32 %v4492_v8, %v4344_v55  ;;  %11335 = vmatprep.subr.mxu0 %v19383_v12  ;;  %v1894_v23 = vpop.permute.xlu1 %1893  ;;  %v929_v55 = vadd.f32 %v817_v6, %v13434_v50  ;;  %1603 = vst.msk [vmem:[#allocation2 + $0x2a0] sm:$0xff] %vm129_vm0, %v1208_v40 }
 0x331   :  { %11367 = vmatprep.subr.mxu1 %v16591_v36  ;;  %11286 = vmatprep.mubr.msk.f32.mxu0 %vm1514_vm1, %v16919_v48  ;;  %2157 = vst.msk [vmem:[#allocation2 + $0x268] sm:$0xff] %vm2083_vm4, %v1894_v23  ;;  %v1207_v1 = vsel %vm1176_vm3, %v1142_v5, %v1143_v42  ;;  %v1423_v9 = vsel %vm1401_vm2, %v1378_v26, %v1379_v27 }
 0x332   :  { %11317 = vmatmul.mubr.msk.f32.gmra.mxu1 %vm1514_vm1, %v16932_v38  ;;  %4539 = vst [vmem:[%s19271_s4 + $0xc0] sm:$0xff] %v4531_v10  ;;  %11336 = vmatpush3.msra.mxu0 %v19383_v12  ;;  %v4359_v22 = vadd.f32 %v10922_v24, %v16760_v34  ;;  %1604 = vst.msk [vmem:[#allocation2 + $0x2a8] sm:$0xff] %vm129_vm0, %v1207_v1  ;;  %v930_v57 = vadd.f32 %v818_v58, %v13436_v21  ;;  %v16991_v24 = vld [vmem:[#allocation2 + $0x208] sm:$0xff]  ;;  %v16993_v5 = vmax.f32 %v929_v55, 0.0  ;;  %v19385_v10 = vld [vmem:[#allocation7_spill] sm:$0xff] }
 0x333   :  { %11368 = vmatpush3.msra.mxu1 %v16591_v36  ;;  %v10925_v6 = vpop.f32.mrf.mxu0  ;;  %2484 = vrot.lane.b32.xlu0 %v1424_v30, %s12175_s28  ;;  %v10958_v8 = vpop.f32.mrf.mxu1  ;;  %v16986_v36 = vld [vmem:[#allocation2 + $0x200] sm:$0xff]  ;;  %v4354_v26 = vadd.f32 %v4353_v44, %v16813_v37  ;;  %v1144_v55 = vrot.slane %v16495_v20, 7  ;;  %v19386_v1 = vld [vmem:[#allocation8_spill] sm:$0xff]  ;;  %v17036_v20 = vld [vmem:[#allocation2 + $0x218] sm:$0xff] }
 0x334   :  { %11287 = vmatmul.mubr.msk.f32.gmra.mxu0 %vm1514_vm1, %v16932_v38  ;;  %11337 = vmatprep.subr.mxu0 %v19384_v45  ;;  %v4534_v34 = vadd.f32 %v10958_v8, %v4359_v22  ;;  %v17005_v12 = vmax.f32 %v930_v57, 0.0  ;;  %v1380_v23 = vrot.slane %v16993_v5, 1  ;;  %v4369_v40 = vadd.f32 %v10925_v6, %v16832_v47  ;;  %v12156_v22 = vld [vmem:[%s19267_s0 + $0x2f0] sm:$0xff] }
 0x335   :  { %11369 = vmatprep.subr.mxu1 %v16609_v35  ;;  %2486 = vrot.lane.b32.xlu1 %v1423_v9, %s12175_s28  ;;  %v2453_v29 = vpop.permute.xlu0 %2452  ;;  %v4502_v58 = vpop.f32.mrf.mxu1  ;;  %v17026_v9 = vld [vmem:[#allocation2 + $0x210] sm:$0xff]  ;;  %v820_v57 = vmul.f32 %v12156_v22, %v13369_v19 }
 0x336   :  { %11338 = vmatpush3.msra.mxu0 %v19384_v45  ;;  %11349 = vmatprep.mubr.msk.f32.mxu0 %vm1514_vm1, %v16629_v14  ;;  %2717 = vst.msk [vmem:[#allocation2 + $0x260] sm:$0xff] %vm2644_vm5, %v2453_v29  ;;  %4542 = vst [vmem:[%s19271_s4 + $0xd8] sm:$0xff] %v4534_v34  ;;  %v4363_v37 = vpop.f32.mrf.mxu0  ;;  %v4533_v44 = vadd.f32 %v4502_v58, %v4354_v26  ;;  %v1145_v45 = vrot.slane %v16596_v61, 7  ;;  %v1381_v47 = vrot.slane %v17005_v12, 1 }
 0x337   :  { %11370 = vmatpush3.msra.mxu1 %v16609_v35  ;;  %11319 = vmatprep.mubr.msk.f32.mxu1 %vm1514_vm1, %v16986_v36  ;;  %v2455_v30 = vpop.permute.xlu1 %2454  ;;  %v12155_v35 = vld [vmem:[%s19267_s0 + $0x2e8] sm:$0xff]  ;;  %v4364_v6 = vadd.f32 %v4363_v37, %v16853_v7  ;;  %v1206_v34 = vsel %vm1176_vm3, %v1143_v42, %v1144_v55 }
 0x338   :  { %11339 = vmatprep.subr.mxu0 %v19385_v10  ;;  %11371 = vmatprep.subr.mxu1 %v16634_v62  ;;  %v819_v14 = vmul.f32 %v12155_v35, %v13367_v51  ;;  %2718 = vst.msk [vmem:[#allocation2 + $0x268] sm:$0xff] %vm2644_vm5, %v2455_v30  ;;  %4541 = vst [vmem:[%s19271_s4 + $0xd0] sm:$0xff] %v4533_v44  ;;  %v1205_v7 = vsel %vm1176_vm3, %v1144_v55, %v1145_v45 }
 0x339   :  { %11320 = vmatmul.mubr.msk.f32.gmra.mxu1 %vm1514_vm1, %v16991_v24  ;;  %11340 = vmatpush3.msra.mxu0 %v19385_v10  ;;  %1605 = vst.msk [vmem:[#allocation2 + $0x2b0] sm:$0xff] %vm129_vm0, %v1206_v34  ;;  %1606 = vst.msk [vmem:[#allocation2 + $0x2b8] sm:$0xff] %vm129_vm0, %v1205_v7  ;;  %v932_v30 = vadd.f32 %v820_v57, %v13444_v46  ;;  %v17102_v57 = vld [vmem:[%s19268_s3 + $0xb8] sm:$0xff]  ;;  %v1147_v34 = vrot.slane %v16718_v13, 7  ;;  %v17183_v7 = vld [vmem:[%s19268_s3 + $0xa0] sm:$0xff] }
 0x33a   :  { %11372 = vmatpush3.msra.mxu1 %v16634_v62  ;;  %1927 = vrot.lane.b32.xlu0 %v16909_v17, %s12174_s16  ;;  %v10928_v62 = vpop.f32.mrf.mxu0  ;;  %v10961_v8 = vpop.f32.mrf.mxu1  ;;  %v931_v29 = vadd.f32 %v819_v14, %v13438_v53  ;;  %v19388_v14 = vld [vmem:[#allocation12_spill] sm:$0xff] }
 0x33b   :  { %11341 = vmatprep.subr.mxu0 %v19386_v1  ;;  %11373 = vmatprep.subr.mxu1 %v16684_v15  ;;  %v4536_v26 = vadd.f32 %v10961_v8, %v4369_v40  ;;  %v4379_v35 = vadd.f32 %v10928_v62, %v16882_v60  ;;  %v17091_v22 = vmax.f32 %v932_v30, 0.0  ;;  %v1146_v8 = vrot.slane %v16611_v11, 7  ;;  %v17264_v13 = vld [vmem:[#allocation2 + $0x228] sm:$0xff] }
 0x33c   :  { %1929 = vrot.lane.b32.xlu1 %v16993_v5, %s12174_s16  ;;  %11342 = vmatpush3.msra.mxu0 %v19386_v1  ;;  %v1896_v58 = vpop.permute.xlu0 %1895  ;;  %v4512_v44 = vpop.f32.mrf.mxu1  ;;  %v17081_v40 = vmax.f32 %v931_v29, 0.0 }
 0x33d   :  { %11374 = vmatpush3.msra.mxu1 %v16684_v15  ;;  %11322 = vmatprep.mubr.msk.f32.mxu1 %vm1514_vm1, %v17026_v9  ;;  %v1422_v15 = vsel %vm1401_vm2, %v1379_v27, %v1380_v23  ;;  %2158 = vst.msk [vmem:[#allocation2 + $0x270] sm:$0xff] %vm2083_vm4, %v1896_v58  ;;  %4544 = vst [vmem:[%s19271_s4 + $0xe8] sm:$0xff] %v4536_v26  ;;  %v4535_v37 = vadd.f32 %v4512_v44, %v4364_v6  ;;  %v4373_v10 = vpop.f32.mrf.mxu0  ;;  %v17126_v6 = vld [vmem:[%s19268_s3 + $0xb0] sm:$0xff] }
 0x33e   :  { %11343 = vmatprep.subr.mxu0 %v19387_v2  ;;  %v1898_v42 = vpop.permute.xlu1 %1897  ;;  %11375 = vmatprep.subr.mxu1 %v16709_v25  ;;  %v1421_v27 = vsel %vm1401_vm2, %v1380_v23, %v1381_v47  ;;  %v4374_v23 = vadd.f32 %v4373_v10, %v16903_v41  ;;  %v1204_v29 = vsel %vm1176_vm3, %v1145_v45, %v1146_v8  ;;  %v17158_v45 = vld [vmem:[%s19268_s3 + $0xa8] sm:$0xff] }
 0x33f   :  { %11323 = vmatmul.mubr.msk.f32.gmra.mxu1 %vm1514_vm1, %v17036_v20  ;;  %2159 = vst.msk [vmem:[#allocation2 + $0x278] sm:$0xff] %vm2083_vm4, %v1898_v42  ;;  %11344 = vmatpush3.msra.mxu0 %v19387_v2  ;;  %4543 = vst [vmem:[%s19271_s4 + $0xe0] sm:$0xff] %v4535_v37  ;;  %v1203_v61 = vsel %vm1176_vm3, %v1146_v8, %v1147_v34  ;;  %v17212_v10 = vld [vmem:[%s19268_s3 + $0x48] sm:$0xff]  ;;  %v17296_v8 = vld [vmem:[%s19268_s3 + $0x80] sm:$0xff] }
 0x340   :  { %11376 = vmatpush3.msra.mxu1 %v16709_v25  ;;  %2488 = vrot.lane.b32.xlu0 %v1422_v15, %s12175_s28  ;;  %v10964_v25 = vpop.f32.mrf.mxu1  ;;  %1607 = vst.msk [vmem:[#allocation2 + $0x2c0] sm:$0xff] %vm129_vm0, %v1204_v29  ;;  %1608 = vst.msk [vmem:[#allocation2 + $0x2c8] sm:$0xff] %vm129_vm0, %v1203_v61  ;;  %v1151_v61 = vrot.slane %v16900_v0, 7  ;;  %v12160_v0 = vld [vmem:[%s19267_s0 + $0x310] sm:$0xff] }
 0x341   :  { %11345 = vmatprep.subr.mxu0 %v19388_v14  ;;  %11377 = vmatprep.subr.mxu1 %v16740_v31  ;;  %v4538_v55 = vadd.f32 %v10964_v25, %v4379_v35  ;;  %v17233_v25 = vld [vmem:[%s19268_s3 + $0x90] sm:$0xff] }
 0x342   :  { %11385 = vmatprep.mubr.msk.f32.mxu1 %vm1514_vm1, %v16986_v36  ;;  %2490 = vrot.lane.b32.xlu1 %v1421_v27, %s12175_s28  ;;  %v2457_v60 = vpop.permute.xlu0 %2456  ;;  %v4522_v1 = vpop.f32.mrf.mxu1 }
 0x343   :  { %11346 = vmatpush3.msra.mxu0 %v19388_v14  ;;  %11378 = vmatpush3.msra.mxu1 %v16740_v31  ;;  %2719 = vst.msk [vmem:[#allocation2 + $0x270] sm:$0xff] %vm2644_vm5, %v2457_v60  ;;  %4546 = vst [vmem:[%s19271_s4 + $0xf8] sm:$0xff] %v4538_v55  ;;  %v4537_v41 = vadd.f32 %v4522_v1, %v4374_v23  ;;  %v1382_v31 = vrot.slane %v17081_v40, 1  ;;  %v1148_v14 = vrot.slane %v16725_v33, 7  ;;  %v1149_v55 = vrot.slane %v16826_v18, 7  ;;  %v17245_v33 = vld [vmem:[#allocation2 + $0x220] sm:$0xff] }
 0x344   :  { %11347 = vmatprep.subr.mxu0 %v16518_v56  ;;  %11379 = vmatprep.subr.mxu1 %v16769_v59  ;;  %v2459_v62 = vpop.permute.xlu1 %2458 }
 0x345   :  { %11348 = vmatpush3.msra.mxu0 %v16518_v56  ;;  %11380 = vmatpush3.msra.mxu1 %v16769_v59  ;;  %2720 = vst.msk [vmem:[#allocation2 + $0x278] sm:$0xff] %vm2644_vm5, %v2459_v62  ;;  %4545 = vst [vmem:[%s19271_s4 + $0xf0] sm:$0xff] %v4537_v41  ;;  %v12157_v56 = vld [vmem:[%s19267_s0 + $0x2f8] sm:$0xff]  ;;  %v1420_v11 = vsel %vm1401_vm2, %v1381_v47, %v1382_v31  ;;  %v1202_v1 = vsel %vm1176_vm3, %v1147_v34, %v1148_v14  ;;  %v17275_v62 = vld [vmem:[%s19268_s3 + $0x88] sm:$0xff] }
 0x346   :  { %1931 = vrot.lane.b32.xlu0 %v17005_v12, %s12174_s16  ;;  %11350 = vmatmul.mubr.msk.f32.vlgmr.msra.gmra.mxu0 %vm1514_vm1, %v16645_v54  ;;  %v821_v59 = vmul.f32 %v12157_v56, %v13363_v32  ;;  %v1383_v54 = vrot.slane %v17091_v22, 1  ;;  %v17163_v47 = vld [vmem:[%s19268_s3 + $0x58] sm:$0xff]  ;;  %1609 = vst.msk [vmem:[#allocation2 + $0x2d0] sm:$0xff] %vm129_vm0, %v1202_v1 }
 0x347   :  { %11381 = vmatprep.subr.mxu1 %v16800_v16  ;;  %11397 = vmatprep.subr.mxu0 %v17102_v57  ;;  %v17280_v56 = vld [vmem:[%s19268_s3 + $0x38] sm:$0xff] }
 0x348   :  { %1933 = vrot.lane.b32.xlu1 %v17081_v40, %s12174_s16  ;;  %v1900_v26 = vpop.permute.xlu0 %1899  ;;  %11352 = vmatprep.mubr.msk.f32.mxu0 %vm1514_vm1, %v16704_v63  ;;  %v12158_v63 = vld [vmem:[%s19267_s0 + $0x300] sm:$0xff]  ;;  %v933_v44 = vadd.f32 %v821_v59, %v13434_v50  ;;  %19390 = vst [vmem:[#allocation13_spill] sm:$0xff] %v17280_v56 }
 0x349   :  { %11382 = vmatpush3.msra.mxu1 %v16800_v16  ;;  %2160 = vst.msk [vmem:[#allocation2 + $0x280] sm:$0xff] %vm2083_vm4, %v1900_v26  ;;  %11398 = vmatpush3.msra.mxu0 %v17102_v57  ;;  %v822_v16 = vmul.f32 %v12158_v63, %v13365_v4  ;;  %v17305_v26 = vld [vmem:[#allocation2 + $0x230] sm:$0xff]  ;;  %v1150_v63 = vrot.slane %v16836_v43, 7  ;;  %v17333_v43 = vld [vmem:[%s19268_s3 + $0x28] sm:$0xff] }
 0x34a   :  { %11383 = vmatprep.subr.mxu1 %v16824_v49  ;;  %v1902_v58 = vpop.permute.xlu1 %1901  ;;  %11399 = vmatprep.subr.mxu0 %v17126_v6  ;;  %v17194_v42 = vmax.f32 %v933_v44, 0.0  ;;  %v17225_v35 = vpop.f32.mrf.mxu0  ;;  %19392 = vst [vmem:[#allocation9_spill] sm:$0xff] %v17333_v43 }
 0x34b   :  { %11384 = vmatpush3.msra.mxu1 %v16824_v49  ;;  %2161 = vst.msk [vmem:[#allocation2 + $0x288] sm:$0xff] %vm2083_vm4, %v1902_v58  ;;  %11400 = vmatpush3.msra.mxu0 %v17126_v6  ;;  %v1419_v49 = vsel %vm1401_vm2, %v1382_v31, %v1383_v54  ;;  %v934_v2 = vadd.f32 %v822_v16, %v13436_v21  ;;  %v17319_v16 = vld [vmem:[#allocation2 + $0x238] sm:$0xff] }
 0x34c   :  { %2492 = vrot.lane.b32.xlu0 %v1420_v11, %s12175_s28  ;;  %11353 = vmatmul.mubr.msk.f32.gmra.mxu0 %vm1514_vm1, %v16716_v39  ;;  %v17192_v39 = vld [vmem:[%s19268_s3 + $0x50] sm:$0xff]  ;;  %v1384_v30 = vrot.slane %v17194_v42, 1  ;;  %v17266_v31 = vpop.f32.mrf.mxu0  ;;  %v12159_v11 = vld [vmem:[%s19267_s0 + $0x308] sm:$0xff]  ;;  %v17324_v58 = vld [vmem:[%s19268_s3 + $0x78] sm:$0xff] }
 0x34d   :  { %11386 = vmatmul.mubr.msk.f32.vlgmr.msra.gmra.mxu1 %vm1514_vm1, %v16991_v24  ;;  %11401 = vmatprep.subr.mxu0 %v17158_v45  ;;  %v17214_v27 = vmax.f32 %v934_v2, 0.0  ;;  %v823_v29 = vmul.f32 %v12159_v11, %v13367_v51  ;;  %v824_v2 = vmul.f32 %v12160_v0, %v13369_v19  ;;  %v17403_v11 = vld [vmem:[%s19268_s3 + $0x10] sm:$0xff]  ;;  %v1152_v0 = vrot.slane %v16909_v17, 7 }
 0x34e   :  { %11433 = vmatprep.subr.mxu1 %v17163_v47  ;;  %v2461_v15 = vpop.permute.xlu0 %2460  ;;  %2494 = vrot.lane.b32.xlu1 %v1419_v49, %s12175_s28  ;;  %v1418_v18 = vsel %vm1401_vm2, %v1383_v54, %v1384_v30  ;;  %v17303_v54 = vld [vmem:[%s19268_s3 + $0x30] sm:$0xff]  ;;  %v1200_v49 = vsel %vm1176_vm3, %v1149_v55, %v1150_v63  ;;  %19395 = vst [vmem:[#allocation7_spill] sm:$0xff] %v17403_v11 }
 0x34f   :  { %11355 = vmatprep.mubr.msk.f32.mxu0 %vm1514_vm1, %v16859_v3  ;;  %2721 = vst.msk [vmem:[#allocation2 + $0x280] sm:$0xff] %vm2644_vm5, %v2461_v15  ;;  %11388 = vmatprep.mubr.msk.f32.mxu1 %vm1514_vm1, %v17026_v9  ;;  %v17207_v3 = vld [vmem:[%s19268_s3 + $0x98] sm:$0xff]  ;;  %v19317_v60 = vrot.slane %v17214_v27, 1  ;;  %19391 = vst [vmem:[#allocation11_spill] sm:$0xff] %v17303_v54  ;;  %v1198_v17 = vsel %vm1176_vm3, %v1151_v61, %v1152_v0 }
 0x350   :  { %11402 = vmatpush3.msra.mxu0 %v17158_v45  ;;  %11434 = vmatpush3.msra.mxu1 %v17163_v47  ;;  %v2463_v37 = vpop.permute.xlu1 %2462  ;;  %v17307_v34 = vpop.f32.mrf.mxu0  ;;  %1611 = vst.msk [vmem:[#allocation2 + $0x2e0] sm:$0xff] %vm129_vm0, %v1200_v49  ;;  %1613 = vst.msk [vmem:[#allocation2 + $0x2f0] sm:$0xff] %vm129_vm0, %v1198_v17 }
 0x351   :  { %11403 = vmatprep.subr.mxu0 %v17183_v7  ;;  %11435 = vmatprep.subr.mxu1 %v17192_v39  ;;  %2722 = vst.msk [vmem:[#allocation2 + $0x288] sm:$0xff] %vm2644_vm5, %v2463_v37  ;;  %v1417_v59 = vsel %vm1401_vm2, %v1384_v30, %v19317_v60  ;;  %v17344_v15 = vpop.f32.mrf.mxu1  ;;  %v1199_v30 = vsel %vm1176_vm3, %v1150_v63, %v1151_v61  ;;  %v17414_v63 = vld [vmem:[%s19268_s3 + $0x8] sm:$0xff]  ;;  %v17443_v60 = vld [vmem:[%s19268_s3] sm:$0xff]  ;;  %v19399_v61 = vrot.slane %v16993_v5, 7 }
 0x352   :  { %11404 = vmatpush3.msra.mxu0 %v17183_v7  ;;  %11436 = vmatpush3.msra.mxu1 %v17192_v39  ;;  %v17346_v37 = vpop.f32.mrf.mxu0  ;;  %1612 = vst.msk [vmem:[#allocation2 + $0x2e8] sm:$0xff] %vm129_vm0, %v1199_v30  ;;  %19396 = vst [vmem:[#allocation8_spill] sm:$0xff] %v17414_v63 }
 0x353   :  { %1935 = vrot.lane.b32.xlu0 %v17091_v22, %s12174_s16  ;;  %11356 = vmatmul.mubr.msk.f32.gmra.mxu0 %vm1514_vm1, %v16875_v28  ;;  %v17238_v28 = vld [vmem:[%s19268_s3 + $0x40] sm:$0xff]  ;;  %19398 = vst [vmem:[#allocation12_spill] sm:$0xff] %v17443_v60 }
 0x354   :  { %11389 = vmatmul.mubr.msk.f32.gmra.mxu1 %vm1514_vm1, %v17036_v20  ;;  %11405 = vmatprep.subr.mxu0 %v17207_v3  ;;  %19389 = vst [vmem:[#allocation5_spill] sm:$0xff] %v17238_v28 }
 0x355   :  { %11437 = vmatprep.subr.mxu1 %v17212_v10  ;;  %v1904_v23 = vpop.permute.xlu0 %1903  ;;  %1937 = vrot.lane.b32.xlu1 %v17194_v42, %s12174_s16 }
 0x356   :  { %11358 = vmatprep.mubr.msk.f32.mxu0 %vm1514_vm1, %v16919_v48  ;;  %2162 = vst.msk [vmem:[#allocation2 + $0x290] sm:$0xff] %vm2083_vm4, %v1904_v23  ;;  %11406 = vmatpush3.msra.mxu0 %v17207_v3  ;;  %v1201_v48 = vsel %vm1176_vm3, %v1148_v14, %v1149_v55  ;;  %v17357_v14 = vld [vmem:[%s19268_s3 + $0x70] sm:$0xff]  ;;  %v17362_v23 = vld [vmem:[%s19268_s3 + $0x20] sm:$0xff]  ;;  %v935_v55 = vadd.f32 %v823_v29, %v13438_v53 }
 0x357   :  { %11438 = vmatpush3.msra.mxu1 %v17212_v10  ;;  %11407 = vmatprep.subr.mxu0 %v17233_v25  ;;  %v1906_v41 = vpop.permute.xlu1 %1905  ;;  %1610 = vst.msk [vmem:[#allocation2 + $0x2d8] sm:$0xff] %vm129_vm0, %v1201_v48  ;;  %19393 = vst [vmem:[#allocation6_spill] sm:$0xff] %v17362_v23  ;;  %v17383_v48 = vld [vmem:[%s19268_s3 + $0x18] sm:$0xff] }
 0x358   :  { %11439 = vmatprep.subr.mxu1 %v17238_v28  ;;  %11391 = vmatprep.mubr.msk.f32.mxu1 %vm1514_vm1, %v17245_v33  ;;  %2163 = vst.msk [vmem:[#allocation2 + $0x298] sm:$0xff] %vm2083_vm4, %v1906_v41  ;;  %19394 = vst [vmem:[#allocation14_spill] sm:$0xff] %v17383_v48  ;;  %v936_v41 = vadd.f32 %v824_v2, %v13444_v46  ;;  %v17426_v2 = vld [vmem:[%s19268_s3 + $0x118] sm:$0xff] }
 0x359   :  { %11408 = vmatpush3.msra.mxu0 %v17233_v25  ;;  %11440 = vmatpush3.msra.mxu1 %v17238_v28  ;;  %19397 = vst [vmem:[#allocation10_spill] sm:$0xff] %v17426_v2 }
 0x35a   :  { %2496 = vrot.lane.b32.xlu0 %v1418_v18, %s12175_s28  ;;  %11359 = vmatmul.mubr.msk.f32.gmra.mxu0 %vm1514_vm1, %v16932_v38  ;;  %v17376_v18 = vld [vmem:[%s19268_s3 + $0x68] sm:$0xff] }
 0x35b   :  { %11392 = vmatmul.mubr.msk.f32.gmra.mxu1 %vm1514_vm1, %v17264_v13  ;;  %11409 = vmatprep.subr.mxu0 %v17275_v62 }
 0x35c   :  { %11441 = vmatprep.subr.mxu1 %v17280_v56  ;;  %v2465_v38 = vpop.permute.xlu0 %2464  ;;  %2498 = vrot.lane.b32.xlu1 %v1417_v59, %s12175_s28  ;;  %v17368_v1 = vpop.f32.mrf.mxu0 }
 0x35d   :  { %11410 = vmatpush3.msra.mxu0 %v17275_v62  ;;  %2723 = vst.msk [vmem:[#allocation2 + $0x290] sm:$0xff] %vm2644_vm5, %v2465_v38  ;;  %11442 = vmatpush3.msra.mxu1 %v17280_v56  ;;  %v17386_v59 = vpop.f32.mrf.mxu1  ;;  %v17395_v38 = vmax.f32 %v935_v55, 0.0  ;;  %v12161_v55 = vld [vmem:[%s19267_s0 + $0x318] sm:$0xff] }
 0x35e   :  { %11411 = vmatprep.subr.mxu0 %v17296_v8  ;;  %11443 = vmatprep.subr.mxu1 %v17303_v54  ;;  %v2467_v44 = vpop.permute.xlu1 %2466  ;;  %v17405_v29 = vpop.f32.mrf.mxu0 }
 0x35f   :  { %11394 = vmatprep.mubr.msk.f32.mxu1 %vm1514_vm1, %v17305_v26  ;;  %11412 = vmatpush3.msra.mxu0 %v17296_v8  ;;  %2724 = vst.msk [vmem:[#allocation2 + $0x298] sm:$0xff] %vm2644_vm5, %v2467_v44  ;;  %v17416_v44 = vmax.f32 %v936_v41, 0.0  ;;  %v17418_v49 = vpop.f32.mrf.mxu1  ;;  %v1386_v30 = vrot.slane %v17395_v38, 1 }
 0x360   :  { %11444 = vmatpush3.msra.mxu1 %v17303_v54  ;;  %11413 = vmatprep.subr.mxu0 %v17324_v58 }
 0x361   :  { %11395 = vmatmul.mubr.msk.f32.gmra.mxu1 %vm1514_vm1, %v17319_v16  ;;  %11445 = vmatprep.subr.mxu1 %v17333_v43  ;;  %v17463_v54 = vpop.f32.mrf.mxu1 }
 0x362   :  { %11414 = vmatpush3.msra.mxu0 %v17324_v58  ;;  %11446 = vmatpush3.msra.mxu1 %v17333_v43 }
 0x363   :  { %11457 = vmatprep.mubr.msk.f32.mxu1 %vm1514_vm1, %v16986_v36  ;;  %11415 = vmatprep.subr.mxu0 %v17357_v14  ;;  %v17393_v36 = vld [vmem:[%s19268_s3 + $0x60] sm:$0xff]  ;;  %v17433_v41 = vpop.f32.mrf.mxu0  ;;  %v17499_v28 = vpop.f32.mrf.mxu1 }
 0x364   :  { %11447 = vmatprep.subr.mxu1 %v17362_v23  ;;  %11416 = vmatpush3.msra.mxu0 %v17357_v14 }
 0x365   :  { %11448 = vmatpush3.msra.mxu1 %v17362_v23  ;;  %11417 = vmatprep.subr.mxu0 %v17376_v18  ;;  %v17460_v23 = vld [vmem:[%s19268_s3 + $0x110] sm:$0xff]  ;;  %v17480_v56 = vpop.f32.mrf.mxu0 }
 0x366   :  { %11421 = vmatprep.mubr.msk.f32.mxu0 %vm1514_vm1, %v17245_v33  ;;  %11449 = vmatprep.subr.mxu1 %v17383_v48 }
 0x367   :  { %11418 = vmatpush3.msra.mxu0 %v17376_v18  ;;  %11450 = vmatpush3.msra.mxu1 %v17383_v48  ;;  %v1197_v48 = vsel %vm1176_vm3, %v1152_v0, %v19399_v61  ;;  %v19400_v0 = vrot.slane %v17214_v27, 1 }
 0x368   :  { %11419 = vmatprep.subr.mxu0 %v17393_v36  ;;  %11451 = vmatprep.subr.mxu1 %v17403_v11  ;;  %1614 = vst.msk [vmem:[#allocation2 + $0x2f8] sm:$0xff] %vm129_vm0, %v1197_v48  ;;  %v12162_v48 = vld [vmem:[%s19267_s0 + $0x320] sm:$0xff] }
 0x369   :  { %11420 = vmatpush3.msra.mxu0 %v17393_v36  ;;  %11452 = vmatpush3.msra.mxu1 %v17403_v11  ;;  %v825_v11 = vmul.f32 %v12161_v55, %v13363_v32  ;;  %v1416_v17 = vsel %vm1401_vm2, %v19400_v0, %v1386_v30  ;;  %v826_v61 = vmul.f32 %v12162_v48, %v13365_v4  ;;  %v19401_v48 = vrot.slane %v17416_v44, 1 }
 0x36a   :  { %1939 = vrot.lane.b32.xlu0 %v17214_v27, %s12174_s16  ;;  %11422 = vmatmul.mubr.msk.f32.vlgmr.msra.gmra.mxu0 %vm1514_vm1, %v17264_v13 }
 0x36b   :  { %11453 = vmatprep.subr.mxu1 %v17414_v63  ;;  %11469 = vmatprep.subr.mxu0 %v17426_v2  ;;  %v937_v0 = vadd.f32 %v825_v11, %v13434_v50  ;;  %v938_v11 = vadd.f32 %v826_v61, %v13436_v21 }
 0x36c   :  { %1941 = vrot.lane.b32.xlu1 %v17395_v38, %s12174_s16  ;;  %v1908_v55 = vpop.permute.xlu0 %1907  ;;  %11424 = vmatprep.mubr.msk.f32.mxu0 %vm1514_vm1, %v17305_v26 }
 0x36d   :  { %11454 = vmatpush3.msra.mxu1 %v17414_v63  ;;  %2164 = vst.msk [vmem:[#allocation2 + $0x2a0] sm:$0xff] %vm2083_vm4, %v1908_v55  ;;  %11470 = vmatpush3.msra.mxu0 %v17426_v2  ;;  %v17487_v55 = vld [vmem:[%s19268_s3 + $0x108] sm:$0xff]  ;;  %v4796_v63 = vadd.f32 %v17344_v15, %v17225_v35  ;;  %v4791_v35 = vadd.f32 %v17386_v59, %v17266_v31  ;;  %v17512_v15 = vld [vmem:[%s19268_s3 + $0x100] sm:$0xff]  ;;  %v17520_v31 = vmax.f32 %v937_v0, 0.0  ;;  %v17549_v0 = vld [vmem:[%s19268_s3 + $0xf8] sm:$0xff] }
 0x36e   :  { %11455 = vmatprep.subr.mxu1 %v17443_v60  ;;  %v1910_v43 = vpop.permute.xlu1 %1909  ;;  %11471 = vmatprep.subr.mxu0 %v17460_v23 }
 0x36f   :  { %11456 = vmatpush3.msra.mxu1 %v17443_v60  ;;  %2165 = vst.msk [vmem:[#allocation2 + $0x2a8] sm:$0xff] %vm2083_vm4, %v1910_v43  ;;  %11472 = vmatpush3.msra.mxu0 %v17460_v23  ;;  %v1415_v60 = vsel %vm1401_vm2, %v1386_v30, %v19401_v48  ;;  %v17551_v48 = vmax.f32 %v938_v11, 0.0 }
 0x370   :  { %2500 = vrot.lane.b32.xlu0 %v1416_v17, %s12175_s28  ;;  %v11063_v2 = vpop.f32.mrf.mxu0  ;;  %11425 = vmatmul.mubr.msk.f32.gmra.mxu0 %vm1514_vm1, %v17319_v16 }
 0x371   :  { %11458 = vmatmul.mubr.msk.f32.vlgmr.msra.gmra.mxu1 %vm1514_vm1, %v16991_v24  ;;  %v4979_v43 = vadd.f32 %v11063_v2, %v4796_v63  ;;  %11473 = vmatprep.subr.mxu0 %v17487_v55  ;;  %v17518_v24 = vld [vmem:[#allocation2 + $0x240] sm:$0xff]  ;;  %v1154_v63 = vrot.slane %v17005_v12, 7  ;;  %v17534_v2 = vld [vmem:[#allocation2 + $0x248] sm:$0xff]  ;;  %v19402_v12 = vrot.slane %v16993_v5, 7  ;;  %v4806_v5 = vadd.f32 %v17418_v49, %v17307_v34 }
 0x372   :  { %11505 = vmatprep.subr.mxu1 %v17102_v57  ;;  %v2469_v30 = vpop.permute.xlu0 %2468  ;;  %v4939_v17 = vpop.f32.mrf.mxu0  ;;  %2502 = vrot.lane.b32.xlu1 %v1415_v60, %s12175_s28  ;;  %v12163_v34 = vld [vmem:[%s19267_s0 + $0x328] sm:$0xff]  ;;  %v4801_v49 = vadd.f32 %v17463_v54, %v17346_v37  ;;  %v17593_v37 = vld [vmem:[#allocation2 + $0x250] sm:$0xff] }
 0x373   :  { %11460 = vmatprep.mubr.msk.f32.mxu1 %vm1514_vm1, %v17026_v9  ;;  %2725 = vst.msk [vmem:[#allocation2 + $0x2a0] sm:$0xff] %vm2644_vm5, %v2469_v30  ;;  %4987 = vst [vmem:[%s19271_s4 + $0x108] sm:$0xff] %v4979_v43  ;;  %v4978_v59 = vadd.f32 %v4939_v17, %v4791_v35  ;;  %11474 = vmatpush3.msra.mxu0 %v17487_v55  ;;  %v17529_v60 = vpop.f32.mrf.mxu1  ;;  %v1155_v9 = vrot.slane %v17081_v40, 7  ;;  %v1388_v43 = vrot.slane %v17520_v31, 1 }
 0x374   :  { %11506 = vmatpush3.msra.mxu1 %v17102_v57  ;;  %11475 = vmatprep.subr.mxu0 %v17512_v15  ;;  %v2471_v61 = vpop.permute.xlu1 %2470  ;;  %v1196_v57 = vsel %vm1176_vm3, %v19402_v12, %v1154_v63  ;;  %v1389_v12 = vrot.slane %v17551_v48, 1 }
 0x375   :  { %11507 = vmatprep.subr.mxu1 %v17126_v6  ;;  %4986 = vst [vmem:[%s19271_s4 + $0x100] sm:$0xff] %v4978_v59  ;;  %11427 = vmatprep.mubr.msk.f32.mxu0 %vm1514_vm1, %v17518_v24  ;;  %2726 = vst.msk [vmem:[#allocation2 + $0x2a8] sm:$0xff] %vm2644_vm5, %v2471_v61  ;;  %v1195_v35 = vsel %vm1176_vm3, %v1154_v63, %v1155_v9  ;;  %v17576_v30 = vpop.f32.mrf.mxu1  ;;  %v12164_v59 = vld [vmem:[%s19267_s0 + $0x330] sm:$0xff] }
 0x376   :  { %11476 = vmatpush3.msra.mxu0 %v17512_v15  ;;  %1615 = vst.msk [vmem:[#allocation2 + $0x300] sm:$0xff] %vm129_vm0, %v1196_v57  ;;  %11508 = vmatpush3.msra.mxu1 %v17126_v6  ;;  %v11066_v11 = vpop.f32.mrf.mxu0  ;;  %1616 = vst.msk [vmem:[#allocation2 + $0x308] sm:$0xff] %vm129_vm0, %v1195_v35  ;;  %v827_v6 = vmul.f32 %v12163_v34, %v13367_v51  ;;  %v828_v63 = vmul.f32 %v12164_v59, %v13369_v19 }
 0x377   :  { %1943 = vrot.lane.b32.xlu0 %v17416_v44, %s12174_s16  ;;  %11428 = vmatmul.mubr.msk.f32.gmra.mxu0 %vm1514_vm1, %v17534_v2  ;;  %v4981_v17 = vadd.f32 %v11066_v11, %v4806_v5  ;;  %v19403_v5 = vrot.slane %v17416_v44, 1  ;;  %v17608_v11 = vld [vmem:[#allocation2 + $0x258] sm:$0xff] }
 0x378   :  { %11461 = vmatmul.mubr.msk.f32.gmra.mxu1 %vm1514_vm1, %v17036_v20  ;;  %11477 = vmatprep.subr.mxu0 %v17549_v0  ;;  %v17583_v20 = vld [vmem:[%s19268_s3 + $0xf0] sm:$0xff]  ;;  %v1912_v61 = vpop.permute.xlu0 %1911  ;;  %v4949_v54 = vpop.f32.mrf.mxu0  ;;  %v939_v34 = vadd.f32 %v827_v6, %v13438_v53  ;;  %v940_v6 = vadd.f32 %v828_v63, %v13444_v46 }
 0x379   :  { %11509 = vmatprep.subr.mxu1 %v17158_v45  ;;  %1945 = vrot.lane.b32.xlu1 %v17520_v31, %s12174_s16  ;;  %2166 = vst.msk [vmem:[#allocation2 + $0x2b0] sm:$0xff] %vm2083_vm4, %v1912_v61  ;;  %4989 = vst [vmem:[%s19271_s4 + $0x118] sm:$0xff] %v4981_v17  ;;  %v4980_v57 = vadd.f32 %v4949_v54, %v4801_v49  ;;  %v4816_v49 = vadd.f32 %v17499_v28, %v17368_v1  ;;  %v4820_v17 = vpop.f32.mrf.mxu1  ;;  %v1156_v28 = vrot.slane %v17091_v22, 7 }
 0x37a   :  { %11463 = vmatprep.mubr.msk.f32.mxu1 %vm1514_vm1, %v17245_v33  ;;  %11478 = vmatpush3.msra.mxu0 %v17549_v0  ;;  %v1414_v33 = vsel %vm1401_vm2, %v19403_v5, %v1388_v43  ;;  %v1914_v35 = vpop.permute.xlu1 %1913  ;;  %v1413_v1 = vsel %vm1401_vm2, %v1388_v43, %v1389_v12  ;;  %v4811_v61 = vadd.f32 %v17529_v60, %v17405_v29  ;;  %v17651_v29 = vld [vmem:[%s19268_s3 + $0xe0] sm:$0xff]  ;;  %v17653_v60 = vmax.f32 %v939_v34, 0.0 }
 0x37b   :  { %11510 = vmatpush3.msra.mxu1 %v17158_v45  ;;  %11479 = vmatprep.subr.mxu0 %v17583_v20  ;;  %2167 = vst.msk [vmem:[#allocation2 + $0x2b8] sm:$0xff] %vm2083_vm4, %v1914_v35  ;;  %4988 = vst [vmem:[%s19271_s4 + $0x110] sm:$0xff] %v4980_v57  ;;  %v17623_v45 = vld [vmem:[%s19268_s3 + $0xe8] sm:$0xff]  ;;  %v1157_v57 = vrot.slane %v17194_v42, 7  ;;  %v17640_v22 = vpop.f32.mrf.mxu1  ;;  %v1194_v43 = vsel %vm1176_vm3, %v1155_v9, %v1156_v28  ;;  %v17666_v63 = vmax.f32 %v940_v6, 0.0 }
 0x37c   :  { %11511 = vmatprep.subr.mxu1 %v17183_v7  ;;  %11430 = vmatprep.mubr.msk.f32.mxu0 %vm1514_vm1, %v17593_v37  ;;  %1617 = vst.msk [vmem:[#allocation2 + $0x310] sm:$0xff] %vm129_vm0, %v1194_v43  ;;  %v4826_v34 = vadd.f32 %v17576_v30, %v17433_v41  ;;  %v17708_v30 = vld [vmem:[%s19268_s3 + $0xd0] sm:$0xff]  ;;  %v17730_v43 = vld [vmem:[%s19268_s3 + $0xc8] sm:$0xff] }
 0x37d   :  { %11480 = vmatpush3.msra.mxu0 %v17583_v20  ;;  %v11069_v59 = vpop.f32.mrf.mxu0  ;;  %11512 = vmatpush3.msra.mxu1 %v17183_v7  ;;  %v1193_v9 = vsel %vm1176_vm3, %v1156_v28, %v1157_v57  ;;  %v4821_v28 = vadd.f32 %v4820_v17, %v17480_v56 }
 0x37e   :  { %2504 = vrot.lane.b32.xlu0 %v1414_v33, %s12175_s28  ;;  %v4983_v54 = vadd.f32 %v11069_v59, %v4816_v49  ;;  %11431 = vmatmul.mubr.msk.f32.gmra.mxu0 %vm1514_vm1, %v17608_v11  ;;  %1618 = vst.msk [vmem:[#allocation2 + $0x318] sm:$0xff] %vm129_vm0, %v1193_v9  ;;  %v12165_v33 = vld [vmem:[%s19267_s0 + $0x338] sm:$0xff]  ;;  %v17690_v49 = vpop.f32.mrf.mxu1  ;;  %v1391_v59 = vrot.slane %v17666_v63, 1  ;;  %v17753_v9 = vld [vmem:[%s19268_s3 + $0xc0] sm:$0xff] }
 0x37f   :  { %11464 = vmatmul.mubr.msk.f32.gmra.mxu1 %vm1514_vm1, %v17264_v13  ;;  %v4959_v7 = vpop.f32.mrf.mxu0  ;;  %11481 = vmatprep.subr.mxu0 %v17623_v45  ;;  %v2473_v13 = vpop.permute.xlu0 %2472  ;;  %v829_v35 = vmul.f32 %v12165_v33, %v13363_v32 }
 0x380   :  { %11513 = vmatprep.subr.mxu1 %v17207_v3  ;;  %4991 = vst [vmem:[%s19271_s4 + $0x128] sm:$0xff] %v4983_v54  ;;  %v4982_v40 = vadd.f32 %v4959_v7, %v4811_v61  ;;  %2506 = vrot.lane.b32.xlu1 %v1413_v1, %s12175_s28  ;;  %2727 = vst.msk [vmem:[#allocation2 + $0x2b0] sm:$0xff] %vm2644_vm5, %v2473_v13 }
 0x381   :  { %11466 = vmatprep.mubr.msk.f32.mxu1 %vm1514_vm1, %v17305_v26  ;;  %11482 = vmatpush3.msra.mxu0 %v17623_v45  ;;  %v2475_v5 = vpop.permute.xlu1 %2474  ;;  %v17681_v26 = vld [vmem:[%s19268_s3 + $0xd8] sm:$0xff] }
 0x382   :  { %11493 = vmatprep.mubr.msk.f32.mxu0 %vm1514_vm1, %v17518_v24  ;;  %4990 = vst [vmem:[%s19271_s4 + $0x120] sm:$0xff] %v4982_v40  ;;  %11514 = vmatpush3.msra.mxu1 %v17207_v3  ;;  %2728 = vst.msk [vmem:[#allocation2 + $0x2b8] sm:$0xff] %vm2644_vm5, %v2475_v5  ;;  %v1390_v3 = vrot.slane %v17653_v60, 1  ;;  %v17700_v41 = vpop.f32.mrf.mxu1 }
 0x383   :  { %11483 = vmatprep.subr.mxu0 %v17651_v29  ;;  %11515 = vmatprep.subr.mxu1 %v17233_v25 }
 0x384   :  { %11484 = vmatpush3.msra.mxu0 %v17651_v29  ;;  %v11072_v6 = vpop.f32.mrf.mxu0  ;;  %11516 = vmatpush3.msra.mxu1 %v17233_v25  ;;  %v12166_v25 = vld [vmem:[%s19267_s0 + $0x340] sm:$0xff]  ;;  %v1412_v7 = vsel %vm1401_vm2, %v1389_v12, %v1390_v3  ;;  %v17742_v12 = vpop.f32.mrf.mxu1 }
 0x385   :  { %1947 = vrot.lane.b32.xlu0 %v17551_v48, %s12174_s16  ;;  %v4985_v1 = vadd.f32 %v11072_v6, %v4826_v34  ;;  %11467 = vmatmul.mubr.msk.f32.gmra.mxu1 %vm1514_vm1, %v17319_v16  ;;  %v830_v61 = vmul.f32 %v12166_v25, %v13365_v4  ;;  %v941_v16 = vadd.f32 %v829_v35, %v13434_v50  ;;  %v17765_v35 = vld [vmem:[#allocation2 + $0x260] sm:$0xff]  ;;  %v12167_v6 = vld [vmem:[%s19267_s0 + $0x348] sm:$0xff] }
 0x386   :  { %11485 = vmatprep.subr.mxu0 %v17681_v26  ;;  %v4969_v56 = vpop.f32.mrf.mxu0  ;;  %11517 = vmatprep.subr.mxu1 %v17275_v62  ;;  %v1916_v17 = vpop.permute.xlu0 %1915 }
 0x387   :  { %1949 = vrot.lane.b32.xlu1 %v17653_v60, %s12174_s16  ;;  %4993 = vst [vmem:[%s19271_s4 + $0x138] sm:$0xff] %v4985_v1  ;;  %v4984_v54 = vadd.f32 %v4969_v56, %v4821_v28  ;;  %11486 = vmatpush3.msra.mxu0 %v17681_v26  ;;  %2168 = vst.msk [vmem:[#allocation2 + $0x2c0] sm:$0xff] %vm2083_vm4, %v1916_v17  ;;  %v942_v40 = vadd.f32 %v830_v61, %v13436_v21  ;;  %v17755_v5 = vmax.f32 %v941_v16, 0.0  ;;  %v12168_v56 = vld [vmem:[%s19267_s0 + $0x350] sm:$0xff] }
 0x388   :  { %11518 = vmatpush3.msra.mxu1 %v17275_v62  ;;  %11487 = vmatprep.subr.mxu0 %v17708_v30  ;;  %v1411_v62 = vsel %vm1401_vm2, %v1390_v3, %v1391_v59  ;;  %v832_v16 = vmul.f32 %v12168_v56, %v13369_v19 }
 0x389   :  { %11519 = vmatprep.subr.mxu1 %v17296_v8  ;;  %v1918_v13 = vpop.permute.xlu1 %1917  ;;  %4992 = vst [vmem:[%s19271_s4 + $0x130] sm:$0xff] %v4984_v54  ;;  %11488 = vmatpush3.msra.mxu0 %v17708_v30  ;;  %v17761_v33 = vpop.f32.mrf.mxu1  ;;  %v17767_v34 = vmax.f32 %v942_v40, 0.0  ;;  %v1159_v54 = vrot.slane %v17395_v38, 7 }
 0x38a   :  { %11520 = vmatpush3.msra.mxu1 %v17296_v8  ;;  %2169 = vst.msk [vmem:[#allocation2 + $0x2c8] sm:$0xff] %vm2083_vm4, %v1918_v13  ;;  %2508 = vrot.lane.b32.xlu0 %v1412_v7, %s12175_s28  ;;  %v17815_v7 = vld [vmem:[#allocation2 + $0x268] sm:$0xff]  ;;  %v944_v42 = vadd.f32 %v832_v16, %v13444_v46 }
 0x38b   :  { %11489 = vmatprep.subr.mxu0 %v17730_v43  ;;  %11521 = vmatprep.subr.mxu1 %v17324_v58  ;;  %v17785_v28 = vpop.f32.mrf.mxu1  ;;  %v1393_v1 = vrot.slane %v17767_v34, 1 }
 0x38c   :  { %2510 = vrot.lane.b32.xlu1 %v1411_v62, %s12175_s28  ;;  %11490 = vmatpush3.msra.mxu0 %v17730_v43  ;;  %v2477_v8 = vpop.permute.xlu0 %2476  ;;  %v19404_v62 = vld [vmem:[#allocation10_spill] sm:$0xff] }
 0x38d   :  { %11522 = vmatpush3.msra.mxu1 %v17324_v58  ;;  %11491 = vmatprep.subr.mxu0 %v17753_v9  ;;  %2729 = vst.msk [vmem:[#allocation2 + $0x2c0] sm:$0xff] %vm2644_vm5, %v2477_v8  ;;  %v1392_v58 = vrot.slane %v17755_v5, 1 }
 0x38e   :  { %11523 = vmatprep.subr.mxu1 %v17357_v14  ;;  %v2479_v3 = vpop.permute.xlu1 %2478  ;;  %11492 = vmatpush3.msra.mxu0 %v17753_v9 }
 0x38f   :  { %11524 = vmatpush3.msra.mxu1 %v17357_v14  ;;  %2730 = vst.msk [vmem:[#allocation2 + $0x2c8] sm:$0xff] %vm2644_vm5, %v2479_v3  ;;  %1951 = vrot.lane.b32.xlu0 %v17666_v63, %s12174_s16  ;;  %v831_v14 = vmul.f32 %v12167_v6, %v13367_v51  ;;  %v1410_v61 = vsel %vm1401_vm2, %v1391_v59, %v1392_v58  ;;  %v17850_v6 = vld [vmem:[#allocation2 + $0x278] sm:$0xff] }
 0x390   :  { %11494 = vmatmul.mubr.msk.f32.vlgmr.msra.gmra.mxu0 %vm1514_vm1, %v17534_v2  ;;  %11525 = vmatprep.subr.mxu1 %v17376_v18 }
 0x391   :  { %11529 = vmatprep.mubr.msk.f32.mxu1 %vm1514_vm1, %v17765_v35  ;;  %11541 = vmatprep.subr.mxu0 %v17163_v47  ;;  %v1920_v25 = vpop.permute.xlu0 %1919  ;;  %v943_v59 = vadd.f32 %v831_v14, %v13438_v53 }
 0x392   :  { %1953 = vrot.lane.b32.xlu1 %v17755_v5, %s12174_s16  ;;  %11496 = vmatprep.mubr.msk.f32.mxu0 %vm1514_vm1, %v17593_v37  ;;  %2170 = vst.msk [vmem:[#allocation2 + $0x2d0] sm:$0xff] %vm2083_vm4, %v1920_v25  ;;  %v17855_v25 = vmax.f32 %v944_v42, 0.0 }
 0x393   :  { %11526 = vmatpush3.msra.mxu1 %v17376_v18  ;;  %11542 = vmatpush3.msra.mxu0 %v17163_v47  ;;  %v1922_v17 = vpop.permute.xlu1 %1921  ;;  %v1158_v18 = vrot.slane %v17214_v27, 7  ;;  %v17810_v47 = vpop.f32.mrf.mxu1  ;;  %v1409_v27 = vsel %vm1401_vm2, %v1392_v58, %v1393_v1  ;;  %v17841_v40 = vmax.f32 %v943_v59, 0.0  ;;  %v19405_v58 = vld [vmem:[#allocation5_spill] sm:$0xff]  ;;  %v1161_v59 = vrot.slane %v17520_v31, 7  ;;  %v19410_v31 = vld [vmem:[#allocation14_spill] sm:$0xff] }
 0x394   :  { %11527 = vmatprep.subr.mxu1 %v17393_v36  ;;  %11543 = vmatprep.subr.mxu0 %v17192_v39  ;;  %2171 = vst.msk [vmem:[#allocation2 + $0x2d8] sm:$0xff] %vm2083_vm4, %v1922_v17  ;;  %v1160_v17 = vrot.slane %v17416_v44, 7  ;;  %v18388_v52 = vld [vmem:[#allocation2 + $0x2c0] sm:$0xff] }
 0x395   :  { %11528 = vmatpush3.msra.mxu1 %v17393_v36  ;;  %11544 = vmatpush3.msra.mxu0 %v17192_v39  ;;  %v1192_v36 = vsel %vm1176_vm3, %v1157_v57, %v1158_v18  ;;  %v1191_v38 = vsel %vm1176_vm3, %v1158_v18, %v1159_v54  ;;  %v17839_v57 = vld [vmem:[#allocation2 + $0x270] sm:$0xff]  ;;  %v17844_v8 = vpop.f32.mrf.mxu1 }
 0x396   :  { %2512 = vrot.lane.b32.xlu0 %v1410_v61, %s12175_s28  ;;  %11497 = vmatmul.mubr.msk.f32.gmra.mxu0 %vm1514_vm1, %v17608_v11  ;;  %v11135_v39 = vpop.f32.mrf.mxu0  ;;  %1619 = vst.msk [vmem:[#allocation2 + $0x320] sm:$0xff] %vm129_vm0, %v1192_v36  ;;  %1620 = vst.msk [vmem:[#allocation2 + $0x328] sm:$0xff] %vm129_vm0, %v1191_v38  ;;  %v1394_v61 = vrot.slane %v17841_v40, 1  ;;  %v1395_v38 = vrot.slane %v17855_v25, 1 }
 0x397   :  { %11530 = vmatmul.mubr.msk.f32.vlgmr.msra.gmra.mxu1 %vm1514_vm1, %v17815_v7  ;;  %11545 = vmatprep.subr.mxu0 %v17212_v10 }
 0x398   :  { %11577 = vmatprep.subr.mxu1 %v19404_v62  ;;  %v2481_v13 = vpop.permute.xlu0 %2480  ;;  %2514 = vrot.lane.b32.xlu1 %v1409_v27, %s12175_s28  ;;  %v5237_v3 = vpop.f32.mrf.mxu0  ;;  %v19406_v27 = vld [vmem:[#allocation13_spill] sm:$0xff] }
 0x399   :  { %11499 = vmatprep.mubr.msk.f32.mxu0 %vm1514_vm1, %v17765_v35  ;;  %2731 = vst.msk [vmem:[#allocation2 + $0x2d0] sm:$0xff] %vm2644_vm5, %v2481_v13  ;;  %11546 = vmatpush3.msra.mxu0 %v17212_v10  ;;  %v5243_v10 = vadd.f32 %v11135_v39, %v17640_v22  ;;  %v12169_v22 = vld [vmem:[%s19267_s0 + $0x358] sm:$0xff]  ;;  %v5238_v36 = vadd.f32 %v5237_v3, %v17690_v49 }
 0x39a   :  { %11578 = vmatpush3.msra.mxu1 %v19404_v62  ;;  %11547 = vmatprep.subr.mxu0 %v19405_v58  ;;  %v2483_v14 = vpop.permute.xlu1 %2482  ;;  %v1190_v39 = vsel %vm1176_vm3, %v1159_v54, %v1160_v17  ;;  %v12170_v62 = vld [vmem:[%s19267_s0 + $0x360] sm:$0xff]  ;;  %v1189_v13 = vsel %vm1176_vm3, %v1160_v17, %v1161_v59 }
 0x39b   :  { %11579 = vmatprep.subr.mxu1 %v17460_v23  ;;  %11532 = vmatprep.mubr.msk.f32.mxu1 %vm1514_vm1, %v17839_v57  ;;  %2732 = vst.msk [vmem:[#allocation2 + $0x2d8] sm:$0xff] %vm2644_vm5, %v2483_v14  ;;  %v834_v42 = vmul.f32 %v12170_v62, %v13365_v4  ;;  %v1408_v4 = vsel %vm1401_vm2, %v1393_v1, %v1394_v61  ;;  %v19407_v14 = vld [vmem:[#allocation11_spill] sm:$0xff]  ;;  %v19409_v62 = vld [vmem:[#allocation6_spill] sm:$0xff] }
 0x39c   :  { %11548 = vmatpush3.msra.mxu0 %v19405_v58  ;;  %11580 = vmatpush3.msra.mxu1 %v17460_v23  ;;  %v11138_v56 = vpop.f32.mrf.mxu0  ;;  %v833_v23 = vmul.f32 %v12169_v22, %v13363_v32  ;;  %v17882_v32 = vld [vmem:[#allocation2 + $0x280] sm:$0xff]  ;;  %1621 = vst.msk [vmem:[#allocation2 + $0x330] sm:$0xff] %vm129_vm0, %v1190_v39  ;;  %1622 = vst.msk [vmem:[#allocation2 + $0x338] sm:$0xff] %vm129_vm0, %v1189_v13  ;;  %v1162_v39 = vrot.slane %v17551_v48, 7 }
 0x39d   :  { %1955 = vrot.lane.b32.xlu0 %v17767_v34, %s12174_s16  ;;  %v11171_v16 = vpop.f32.mrf.mxu1  ;;  %11500 = vmatmul.mubr.msk.f32.gmra.mxu0 %vm1514_vm1, %v17815_v7  ;;  %v946_v1 = vadd.f32 %v834_v42, %v13436_v21  ;;  %v17936_v21 = vld [vmem:[#allocation2 + $0x290] sm:$0xff]  ;;  %v17950_v42 = vld [vmem:[#allocation2 + $0x298] sm:$0xff] }
 0x39e   :  { %11533 = vmatmul.mubr.msk.f32.gmra.mxu1 %vm1514_vm1, %v17850_v6  ;;  %v5426_v18 = vadd.f32 %v11171_v16, %v5243_v10  ;;  %11549 = vmatprep.subr.mxu0 %v19406_v27  ;;  %v1924_v44 = vpop.permute.xlu0 %1923  ;;  %v5247_v49 = vpop.f32.mrf.mxu0  ;;  %v17907_v10 = vld [vmem:[#allocation2 + $0x288] sm:$0xff]  ;;  %v945_v16 = vadd.f32 %v833_v23, %v13434_v50  ;;  %v1407_v50 = vsel %vm1401_vm2, %v1394_v61, %v1395_v38 }
 0x39f   :  { %11581 = vmatprep.subr.mxu1 %v17487_v55  ;;  %1957 = vrot.lane.b32.xlu1 %v17841_v40, %s12174_s16  ;;  %2172 = vst.msk [vmem:[#allocation2 + $0x2e0] sm:$0xff] %vm2083_vm4, %v1924_v44  ;;  %v5386_v54 = vpop.f32.mrf.mxu1  ;;  %v5248_v61 = vadd.f32 %v5247_v49, %v17742_v12  ;;  %v17945_v12 = vmax.f32 %v946_v1, 0.0  ;;  %v12171_v49 = vld [vmem:[%s19267_s0 + $0x368] sm:$0xff] }
 0x3a0   :  { %11502 = vmatprep.mubr.msk.f32.mxu0 %vm1514_vm1, %v17839_v57  ;;  %5434 = vst [vmem:[%s19271_s4 + $0x148] sm:$0xff] %v5426_v18  ;;  %11550 = vmatpush3.msra.mxu0 %v19406_v27  ;;  %v1926_v3 = vpop.permute.xlu1 %1925  ;;  %v5425_v58 = vadd.f32 %v5386_v54, %v5238_v36 }
 0x3a1   :  { %11582 = vmatpush3.msra.mxu1 %v17487_v55  ;;  %11551 = vmatprep.subr.mxu0 %v19407_v14  ;;  %2173 = vst.msk [vmem:[#allocation2 + $0x2e8] sm:$0xff] %vm2083_vm4, %v1926_v3  ;;  %v5253_v55 = vadd.f32 %v11138_v56, %v17700_v41  ;;  %v19408_v56 = vld [vmem:[#allocation9_spill] sm:$0xff] }
 0x3a2   :  { %11583 = vmatprep.subr.mxu1 %v17512_v15  ;;  %11535 = vmatprep.mubr.msk.f32.mxu1 %vm1514_vm1, %v17882_v32  ;;  %5433 = vst [vmem:[%s19271_s4 + $0x140] sm:$0xff] %v5425_v58 }
 0x3a3   :  { %11552 = vmatpush3.msra.mxu0 %v19407_v14  ;;  %11584 = vmatpush3.msra.mxu1 %v17512_v15  ;;  %v11141_v17 = vpop.f32.mrf.mxu0  ;;  %v17931_v15 = vmax.f32 %v945_v16, 0.0 }
 0x3a4   :  { %2516 = vrot.lane.b32.xlu0 %v1408_v4, %s12175_s28  ;;  %v11174_v22 = vpop.f32.mrf.mxu1  ;;  %11503 = vmatmul.mubr.msk.f32.gmra.mxu0 %vm1514_vm1, %v17850_v6  ;;  %v5263_v54 = vadd.f32 %v11141_v17, %v17761_v33 }
 0x3a5   :  { %11536 = vmatmul.mubr.msk.f32.gmra.mxu1 %vm1514_vm1, %v17907_v10  ;;  %v5428_v41 = vadd.f32 %v11174_v22, %v5253_v55  ;;  %11553 = vmatprep.subr.mxu0 %v19408_v56  ;;  %v2485_v23 = vpop.permute.xlu0 %2484  ;;  %v5257_v18 = vpop.f32.mrf.mxu0  ;;  %v1396_v48 = vrot.slane %v17931_v15, 1 }
 0x3a6   :  { %11585 = vmatprep.subr.mxu1 %v17549_v0  ;;  %2518 = vrot.lane.b32.xlu1 %v1407_v50, %s12175_s28  ;;  %2733 = vst.msk [vmem:[#allocation2 + $0x2e0] sm:$0xff] %vm2644_vm5, %v2485_v23  ;;  %v5396_v27 = vpop.f32.mrf.mxu1  ;;  %v5258_v55 = vadd.f32 %v5257_v18, %v17785_v28  ;;  %v19411_v28 = vld [vmem:[#allocation7_spill] sm:$0xff]  ;;  %v19412_v23 = vld [vmem:[#allocation8_spill] sm:$0xff] }
 0x3a7   :  { %11554 = vmatpush3.msra.mxu0 %v19408_v56  ;;  %5436 = vst [vmem:[%s19271_s4 + $0x158] sm:$0xff] %v5428_v41  ;;  %11565 = vmatprep.mubr.msk.f32.mxu0 %vm1514_vm1, %v17518_v24  ;;  %v2487_v44 = vpop.permute.xlu1 %2486  ;;  %v5427_v36 = vadd.f32 %v5396_v27, %v5248_v61  ;;  %v835_v24 = vmul.f32 %v12171_v49, %v13367_v51  ;;  %v19413_v18 = vld [vmem:[#allocation12_spill] sm:$0xff] }
 0x3a8   :  { %11586 = vmatpush3.msra.mxu1 %v17549_v0  ;;  %11555 = vmatprep.subr.mxu0 %v19409_v62  ;;  %2734 = vst.msk [vmem:[#allocation2 + $0x2e8] sm:$0xff] %vm2644_vm5, %v2487_v44  ;;  %v1163_v0 = vrot.slane %v17653_v60, 7  ;;  %v1188_v51 = vsel %vm1176_vm3, %v1161_v59, %v1162_v39  ;;  %v1397_v59 = vrot.slane %v17945_v12, 1  ;;  %v1164_v44 = vrot.slane %v17666_v63, 7  ;;  %v18067_v60 = vld [vmem:[%s19268_s3 + $0xb0] sm:$0xff] }
 0x3a9   :  { %11587 = vmatprep.subr.mxu1 %v17583_v20  ;;  %11538 = vmatprep.mubr.msk.f32.mxu1 %vm1514_vm1, %v17936_v21  ;;  %5435 = vst [vmem:[%s19271_s4 + $0x150] sm:$0xff] %v5427_v36  ;;  %1623 = vst.msk [vmem:[#allocation2 + $0x340] sm:$0xff] %vm129_vm0, %v1188_v51  ;;  %v947_v14 = vadd.f32 %v835_v24, %v13438_v53  ;;  %v1167_v51 = vrot.slane %v17841_v40, 7 }
 0x3aa   :  { %11556 = vmatpush3.msra.mxu0 %v19409_v62  ;;  %11588 = vmatpush3.msra.mxu1 %v17583_v20  ;;  %v11144_v13 = vpop.f32.mrf.mxu0  ;;  %v1187_v33 = vsel %vm1176_vm3, %v1162_v39, %v1163_v0  ;;  %v12172_v20 = vld [vmem:[%s19267_s0 + $0x370] sm:$0xff]  ;;  %v1165_v62 = vrot.slane %v17755_v5, 7  ;;  %v1186_v63 = vsel %vm1176_vm3, %v1163_v0, %v1164_v44 }
 0x3ab   :  { %1959 = vrot.lane.b32.xlu0 %v17855_v25, %s12174_s16  ;;  %v11177_v4 = vpop.f32.mrf.mxu1  ;;  %11539 = vmatmul.mubr.msk.f32.gmra.mxu1 %vm1514_vm1, %v17950_v42  ;;  %v836_v3 = vmul.f32 %v12172_v20, %v13369_v19  ;;  %1624 = vst.msk [vmem:[#allocation2 + $0x348] sm:$0xff] %vm129_vm0, %v1187_v33  ;;  %v1406_v19 = vsel %vm1401_vm2, %v1395_v38, %v1396_v48  ;;  %v18016_v41 = vmax.f32 %v947_v14, 0.0  ;;  %1625 = vst.msk [vmem:[#allocation2 + $0x350] sm:$0xff] %vm129_vm0, %v1186_v63  ;;  %v19414_v33 = vld [vmem:[#allocation4_spill] sm:$0xff]  ;;  %v18159_v20 = vld [vmem:[%s19268_s3 + $0x90] sm:$0xff] }
 0x3ac   :  { %11557 = vmatprep.subr.mxu0 %v19410_v31  ;;  %v5430_v58 = vadd.f32 %v11177_v4, %v5263_v54  ;;  %11589 = vmatprep.subr.mxu1 %v17623_v45  ;;  %v1928_v16 = vpop.permute.xlu0 %1927  ;;  %v1405_v38 = vsel %vm1401_vm2, %v1396_v48, %v1397_v59  ;;  %v5273_v22 = vadd.f32 %v11144_v13, %v17810_v47  ;;  %v18108_v48 = vld [vmem:[%s19268_s3 + $0xa0] sm:$0xff]  ;;  %v18136_v13 = vld [vmem:[%s19268_s3 + $0x98] sm:$0xff]  ;;  %v18141_v4 = vld [vmem:[%s19268_s3 + $0x48] sm:$0xff]  ;;  %v1170_v63 = vrot.slane %v17945_v12, 7 }
 0x3ad   :  { %1961 = vrot.lane.b32.xlu1 %v17931_v15, %s12174_s16  ;;  %11558 = vmatpush3.msra.mxu0 %v19410_v31  ;;  %2174 = vst.msk [vmem:[#allocation2 + $0x2f0] sm:$0xff] %vm2083_vm4, %v1928_v16  ;;  %v5406_v53 = vpop.f32.mrf.mxu1  ;;  %v948_v17 = vadd.f32 %v836_v3, %v13444_v46  ;;  %v1398_v36 = vrot.slane %v18016_v41, 1  ;;  %v1400_v31 = vrot.slane %v19414_v33, 1  ;;  %v18164_v3 = vld [vmem:[%s19268_s3 + $0x40] sm:$0xff]  ;;  %v18179_v16 = vld [vmem:[#allocation2 + $0x2a8] sm:$0xff] }
 0x3ae   :  { %11590 = vmatpush3.msra.mxu1 %v17623_v45  ;;  %v1930_v50 = vpop.permute.xlu1 %1929  ;;  %5438 = vst [vmem:[%s19271_s4 + $0x168] sm:$0xff] %v5430_v58  ;;  %11601 = vmatprep.mubr.msk.f32.mxu1 %vm1514_vm1, %v17882_v32  ;;  %v5267_v45 = vpop.f32.mrf.mxu0  ;;  %v5429_v1 = vadd.f32 %v5406_v53, %v5258_v55  ;;  %v18170_v58 = vld [vmem:[#allocation2 + $0x2a0] sm:$0xff]  ;;  %v18195_v53 = vld [vmem:[%s19268_s3 + $0x38] sm:$0xff] }
 0x3af   :  { %11559 = vmatprep.subr.mxu0 %v19411_v28  ;;  %2175 = vst.msk [vmem:[#allocation2 + $0x2f8] sm:$0xff] %vm2083_vm4, %v1930_v50  ;;  %11591 = vmatprep.subr.mxu1 %v17651_v29  ;;  %v5268_v61 = vadd.f32 %v5267_v45, %v17844_v8  ;;  %v18028_v27 = vmax.f32 %v948_v17, 0.0  ;;  %v1404_v49 = vsel %vm1401_vm2, %v1397_v59, %v1398_v36  ;;  %v18190_v50 = vld [vmem:[%s19268_s3 + $0x88] sm:$0xff] }
 0x3b0   :  { %11560 = vmatpush3.msra.mxu0 %v19411_v28  ;;  %11592 = vmatpush3.msra.mxu1 %v17651_v29  ;;  %5437 = vst [vmem:[%s19271_s4 + $0x160] sm:$0xff] %v5429_v1  ;;  %v1169_v28 = vrot.slane %v17931_v15, 7  ;;  %v18214_v15 = vld [vmem:[%s19268_s3 + $0x80] sm:$0xff] }
 0x3b1   :  { %2520 = vrot.lane.b32.xlu0 %v1406_v19, %s12175_s28  ;;  %v11180_v56 = vpop.f32.mrf.mxu1  ;;  %11561 = vmatprep.subr.mxu0 %v19412_v23  ;;  %v1399_v5 = vrot.slane %v18028_v27, 1 }
 0x3b2   :  { %11593 = vmatprep.subr.mxu1 %v17681_v26  ;;  %v5432_v46 = vadd.f32 %v11180_v56, %v5273_v22  ;;  %2522 = vrot.lane.b32.xlu1 %v1405_v38, %s12175_s28  ;;  %v2489_v29 = vpop.permute.xlu0 %2488  ;;  %v18226_v22 = vld [vmem:[#allocation2 + $0x2b0] sm:$0xff] }
 0x3b3   :  { %11562 = vmatpush3.msra.mxu0 %v19412_v23  ;;  %v5416_v47 = vpop.f32.mrf.mxu1  ;;  %11594 = vmatpush3.msra.mxu1 %v17681_v26  ;;  %2735 = vst.msk [vmem:[#allocation2 + $0x2f0] sm:$0xff] %vm2644_vm5, %v2489_v29  ;;  %v18040_v26 = vld [vmem:[%s19268_s3 + $0xb8] sm:$0xff]  ;;  %v1403_v0 = vsel %vm1401_vm2, %v1398_v36, %v1399_v5  ;;  %v1402_v14 = vsel %vm1401_vm2, %v1399_v5, %v1400_v31  ;;  %v18249_v29 = vld [vmem:[%s19268_s3 + $0x28] sm:$0xff]  ;;  %v18270_v36 = vld [vmem:[%s19268_s3 + $0x20] sm:$0xff] }
 0x3b4   :  { %11563 = vmatprep.subr.mxu0 %v19413_v18  ;;  %5440 = vst [vmem:[%s19271_s4 + $0x178] sm:$0xff] %v5432_v46  ;;  %v5431_v8 = vadd.f32 %v5416_v47, %v5268_v61  ;;  %11595 = vmatprep.subr.mxu1 %v17708_v30  ;;  %v2491_v39 = vpop.permute.xlu1 %2490  ;;  %v18236_v61 = vld [vmem:[#allocation2 + $0x2b8] sm:$0xff] }
 0x3b5   :  { %11564 = vmatpush3.msra.mxu0 %v19413_v18  ;;  %11596 = vmatpush3.msra.mxu1 %v17708_v30  ;;  %2736 = vst.msk [vmem:[#allocation2 + $0x2f8] sm:$0xff] %vm2644_vm5, %v2491_v39  ;;  %v1185_v30 = vsel %vm1176_vm3, %v1164_v44, %v1165_v62  ;;  %v18241_v46 = vld [vmem:[%s19268_s3 + $0x78] sm:$0xff]  ;;  %v18262_v44 = vld [vmem:[%s19268_s3 + $0x70] sm:$0xff] }
 0x3b6   :  { %1963 = vrot.lane.b32.xlu0 %v17945_v12, %s12174_s16  ;;  %5439 = vst [vmem:[%s19271_s4 + $0x170] sm:$0xff] %v5431_v8  ;;  %11566 = vmatmul.mubr.msk.f32.vlgmr.msra.gmra.mxu0 %vm1514_vm1, %v17534_v2  ;;  %1626 = vst.msk [vmem:[#allocation2 + $0x358] sm:$0xff] %vm129_vm0, %v1185_v30  ;;  %v18288_v30 = vld [vmem:[%s19268_s3 + $0x18] sm:$0xff]  ;;  %v18296_v12 = vld [vmem:[%s19268_s3 + $0x60] sm:$0xff] }
 0x3b7   :  { %11597 = vmatprep.subr.mxu1 %v17730_v43  ;;  %11613 = vmatprep.subr.mxu0 %v18040_v26 }
 0x3b8   :  { %1965 = vrot.lane.b32.xlu1 %v18016_v41, %s12174_s16  ;;  %v1932_v2 = vpop.permute.xlu0 %1931  ;;  %11568 = vmatprep.mubr.msk.f32.mxu0 %vm1514_vm1, %v17593_v37  ;;  %v18086_v37 = vld [vmem:[%s19268_s3 + $0xa8] sm:$0xff] }
 0x3b9   :  { %11598 = vmatpush3.msra.mxu1 %v17730_v43  ;;  %2176 = vst.msk [vmem:[#allocation2 + $0x300] sm:$0xff] %vm2083_vm4, %v1932_v2  ;;  %11614 = vmatpush3.msra.mxu0 %v18040_v26  ;;  %v18091_v43 = vld [vmem:[%s19268_s3 + $0x58] sm:$0xff]  ;;  %v1171_v2 = vrot.slane %v18016_v41, 7  ;;  %v18305_v41 = vld [vmem:[%s19268_s3 + $0x10] sm:$0xff] }
 0x3ba   :  { %11599 = vmatprep.subr.mxu1 %v17753_v9  ;;  %v1934_v24 = vpop.permute.xlu1 %1933  ;;  %11615 = vmatprep.subr.mxu0 %v18067_v60  ;;  %v18152_v59 = vpop.f32.mrf.mxu0 }
 0x3bb   :  { %11600 = vmatpush3.msra.mxu1 %v17753_v9  ;;  %2177 = vst.msk [vmem:[#allocation2 + $0x308] sm:$0xff] %vm2083_vm4, %v1934_v24  ;;  %11616 = vmatpush3.msra.mxu0 %v18067_v60  ;;  %v1166_v9 = vrot.slane %v17767_v34, 7  ;;  %v1179_v24 = vsel %vm1176_vm3, %v1170_v63, %v1171_v2 }
 0x3bc   :  { %2524 = vrot.lane.b32.xlu0 %v1404_v49, %s12175_s28  ;;  %11569 = vmatmul.mubr.msk.f32.gmra.mxu0 %vm1514_vm1, %v17608_v11  ;;  %v18117_v11 = vld [vmem:[%s19268_s3 + $0x50] sm:$0xff]  ;;  %v18181_v19 = vpop.f32.mrf.mxu0  ;;  %1632 = vst.msk [vmem:[#allocation2 + $0x388] sm:$0xff] %vm129_vm0, %v1179_v24 }
 0x3bd   :  { %11602 = vmatmul.mubr.msk.f32.vlgmr.msra.gmra.mxu1 %vm1514_vm1, %v17907_v10  ;;  %11617 = vmatprep.subr.mxu0 %v18086_v37  ;;  %v1184_v34 = vsel %vm1176_vm3, %v1165_v62, %v1166_v9  ;;  %v18279_v62 = vld [vmem:[%s19268_s3 + $0x68] sm:$0xff] }
 0x3be   :  { %11649 = vmatprep.subr.mxu1 %v18091_v43  ;;  %v2493_v54 = vpop.permute.xlu0 %2492  ;;  %2526 = vrot.lane.b32.xlu1 %v1403_v0, %s12175_s28  ;;  %1627 = vst.msk [vmem:[#allocation2 + $0x360] sm:$0xff] %vm129_vm0, %v1184_v34  ;;  %v18320_v0 = vld [vmem:[%s19268_s3 + $0x8] sm:$0xff] }
 0x3bf   :  { %11571 = vmatprep.mubr.msk.f32.mxu0 %vm1514_vm1, %v17765_v35  ;;  %2737 = vst.msk [vmem:[#allocation2 + $0x300] sm:$0xff] %vm2644_vm5, %v2493_v54  ;;  %11604 = vmatprep.mubr.msk.f32.mxu1 %vm1514_vm1, %v17936_v21  ;;  %v1183_v35 = vsel %vm1176_vm3, %v1166_v9, %v1167_v51  ;;  %v18325_v9 = vld [vmem:[%s19268_s3 + $0x118] sm:$0xff] }
 0x3c0   :  { %11618 = vmatpush3.msra.mxu0 %v18086_v37  ;;  %11650 = vmatpush3.msra.mxu1 %v18091_v43  ;;  %v2495_v40 = vpop.permute.xlu1 %2494  ;;  %1628 = vst.msk [vmem:[#allocation2 + $0x368] sm:$0xff] %vm129_vm0, %v1183_v35  ;;  %v18228_v23 = vpop.f32.mrf.mxu0  ;;  %v18346_v35 = vld [vmem:[%s19268_s3 + $0x110] sm:$0xff] }
 0x3c1   :  { %11619 = vmatprep.subr.mxu0 %v18108_v48  ;;  %11651 = vmatprep.subr.mxu1 %v18117_v11  ;;  %2738 = vst.msk [vmem:[#allocation2 + $0x308] sm:$0xff] %vm2644_vm5, %v2495_v40  ;;  %v11243_v18 = vpop.f32.mrf.mxu1 }
 0x3c2   :  { %11620 = vmatpush3.msra.mxu0 %v18108_v48  ;;  %11652 = vmatpush3.msra.mxu1 %v18117_v11  ;;  %v18254_v8 = vpop.f32.mrf.mxu0 }
 0x3c3   :  { %1967 = vrot.lane.b32.xlu0 %v18028_v27, %s12174_s16  ;;  %11572 = vmatmul.mubr.msk.f32.gmra.mxu0 %vm1514_vm1, %v17815_v7  ;;  %v5684_v5 = vpop.f32.mrf.mxu1 }
 0x3c4   :  { %11605 = vmatmul.mubr.msk.f32.gmra.mxu1 %vm1514_vm1, %v17950_v42  ;;  %11621 = vmatprep.subr.mxu0 %v18136_v13 }
 0x3c5   :  { %11653 = vmatprep.subr.mxu1 %v18141_v4  ;;  %v1936_v7 = vpop.permute.xlu0 %1935  ;;  %1969 = vrot.lane.b32.xlu1 %v19414_v33, %s12174_s16 }
 0x3c6   :  { %11574 = vmatprep.mubr.msk.f32.mxu0 %vm1514_vm1, %v17839_v57  ;;  %2178 = vst.msk [vmem:[#allocation2 + $0x310] sm:$0xff] %vm2083_vm4, %v1936_v7  ;;  %11622 = vmatpush3.msra.mxu0 %v18136_v13  ;;  %v1168_v57 = vrot.slane %v17855_v25, 7  ;;  %v19415_v25 = vld [vmem:[#allocation3_spill] sm:$0xff]  ;;  %v18356_v7 = vld [vmem:[%s19268_s3 + $0x108] sm:$0xff] }
 0x3c7   :  { %11654 = vmatpush3.msra.mxu1 %v18141_v4  ;;  %11623 = vmatprep.subr.mxu0 %v18159_v20  ;;  %v1938_v55 = vpop.permute.xlu1 %1937  ;;  %v19416_v45 = vrot.slane %v19415_v25, 1  ;;  %v18327_v54 = vpop.f32.mrf.mxu1 }
 0x3c8   :  { %11655 = vmatprep.subr.mxu1 %v18164_v3  ;;  %11607 = vmatprep.mubr.msk.f32.mxu1 %vm1514_vm1, %v18170_v58  ;;  %2179 = vst.msk [vmem:[#allocation2 + $0x318] sm:$0xff] %vm2083_vm4, %v1938_v55  ;;  %v1182_v38 = vsel %vm1176_vm3, %v1167_v51, %v1168_v57  ;;  %v1181_v17 = vsel %vm1176_vm3, %v1168_v57, %v1169_v28  ;;  %v18337_v51 = vld [vmem:[%s19268_s3] sm:$0xff] }
 0x3c9   :  { %11624 = vmatpush3.msra.mxu0 %v18159_v20  ;;  %11656 = vmatpush3.msra.mxu1 %v18164_v3  ;;  %v1513_v1 = vsel %vm1401_vm2, %v1400_v31, %v19416_v45  ;;  %1629 = vst.msk [vmem:[#allocation2 + $0x370] sm:$0xff] %vm129_vm0, %v1182_v38  ;;  %1630 = vst.msk [vmem:[#allocation2 + $0x378] sm:$0xff] %vm129_vm0, %v1181_v17  ;;  %v5694_v31 = vpop.f32.mrf.mxu1  ;;  %v18393_v17 = vld [vmem:[#allocation2 + $0x2c8] sm:$0xff] }
 0x3ca   :  { %2528 = vrot.lane.b32.xlu0 %v1402_v14, %s12175_s28  ;;  %11575 = vmatmul.mubr.msk.f32.gmra.mxu0 %vm1514_vm1, %v17850_v6  ;;  %v18224_v6 = vld [vmem:[%s19268_s3 + $0x30] sm:$0xff]  ;;  %v1172_v14 = vrot.slane %v18028_v27, 7  ;;  %v19417_v27 = vrot.slane %v19414_v33, 7  ;;  %v5685_v33 = vadd.f32 %v5684_v5, %v18181_v19 }
 0x3cb   :  { %11608 = vmatmul.mubr.msk.f32.gmra.mxu1 %vm1514_vm1, %v18179_v16  ;;  %11625 = vmatprep.subr.mxu0 %v18190_v50  ;;  %v18429_v5 = vld [vmem:[#allocation2 + $0x2d0] sm:$0xff] }
 0x3cc   :  { %11657 = vmatprep.subr.mxu1 %v18195_v53  ;;  %v2497_v56 = vpop.permute.xlu0 %2496  ;;  %2530 = vrot.lane.b32.xlu1 %v1513_v1, %s12175_s28  ;;  %v18272_v39 = vpop.f32.mrf.mxu0  ;;  %v1178_v25 = vsel %vm1176_vm3, %v1171_v2, %v1172_v14  ;;  %v1177_v45 = vsel %vm1176_vm3, %v1172_v14, %v19417_v27  ;;  %v18433_v2 = vld [vmem:[#allocation2 + $0x2d8] sm:$0xff] }
 0x3cd   :  { %11626 = vmatpush3.msra.mxu0 %v18190_v50  ;;  %2739 = vst.msk [vmem:[#allocation2 + $0x310] sm:$0xff] %vm2644_vm5, %v2497_v56  ;;  %11658 = vmatpush3.msra.mxu1 %v18195_v53 }
 0x3ce   :  { %11627 = vmatprep.subr.mxu0 %v18214_v15  ;;  %11659 = vmatprep.subr.mxu1 %v18224_v6  ;;  %v2499_v47 = vpop.permute.xlu1 %2498  ;;  %v18307_v49 = vpop.f32.mrf.mxu0  ;;  %1633 = vst.msk [vmem:[#allocation2 + $0x390] sm:$0xff] %vm129_vm0, %v1178_v25  ;;  %1634 = vst.msk [vmem:[#allocation2 + $0x398] sm:$0xff] %vm129_vm0, %v1177_v45 }
 0x3cf   :  { %11610 = vmatprep.mubr.msk.f32.mxu1 %vm1514_vm1, %v18226_v22  ;;  %11628 = vmatpush3.msra.mxu0 %v18214_v15  ;;  %2740 = vst.msk [vmem:[#allocation2 + $0x318] sm:$0xff] %vm2644_vm5, %v2499_v47  ;;  %v11249_v1 = vpop.f32.mrf.mxu1 }
 0x3d0   :  { %11660 = vmatpush3.msra.mxu1 %v18224_v6  ;;  %11629 = vmatprep.subr.mxu0 %v18241_v46  ;;  %v5710_v14 = vadd.f32 %v11249_v1, %v18272_v39  ;;  %v18475_v39 = vld [vmem:[%s19268_s3 + $0xd8] sm:$0xff] }
 0x3d1   :  { %11611 = vmatmul.mubr.msk.f32.gmra.mxu1 %vm1514_vm1, %v18236_v61  ;;  %11637 = vmatprep.mubr.msk.f32.mxu0 %vm1514_vm1, %v18170_v58  ;;  %v5704_v19 = vpop.f32.mrf.mxu1 }
 0x3d2   :  { %11661 = vmatprep.subr.mxu1 %v18249_v29  ;;  %11630 = vmatpush3.msra.mxu0 %v18241_v46 }
 0x3d3   :  { %11662 = vmatpush3.msra.mxu1 %v18249_v29  ;;  %11673 = vmatprep.mubr.msk.f32.mxu1 %vm1514_vm1, %v17882_v32  ;;  %v1180_v32 = vsel %vm1176_vm3, %v1169_v28, %v1170_v63  ;;  %v18339_v34 = vpop.f32.mrf.mxu0  ;;  %v5690_v28 = vadd.f32 %v11243_v18, %v18152_v59  ;;  %v18421_v63 = vld [vmem:[%s19268_s3 + $0xf0] sm:$0xff] }
 0x3d4   :  { %11631 = vmatprep.subr.mxu0 %v18262_v44  ;;  %11663 = vmatprep.subr.mxu1 %v18270_v36  ;;  %1631 = vst.msk [vmem:[#allocation2 + $0x380] sm:$0xff] %vm129_vm0, %v1180_v32  ;;  %v5695_v32 = vadd.f32 %v5694_v31, %v18254_v8  ;;  %v18459_v8 = vld [vmem:[%s19268_s3 + $0xe0] sm:$0xff] }
 0x3d5   :  { %11632 = vmatpush3.msra.mxu0 %v18262_v44  ;;  %11664 = vmatpush3.msra.mxu1 %v18270_v36  ;;  %v18362_v57 = vpop.f32.mrf.mxu0  ;;  %v11252_v24 = vpop.f32.mrf.mxu1 }
 0x3d6   :  { %11633 = vmatprep.subr.mxu0 %v18279_v62  ;;  %11665 = vmatprep.subr.mxu1 %v18288_v30  ;;  %v5720_v1 = vadd.f32 %v11252_v24, %v18339_v34 }
 0x3d7   :  { %11634 = vmatpush3.msra.mxu0 %v18279_v62  ;;  %11666 = vmatpush3.msra.mxu1 %v18288_v30 }
 0x3d8   :  { %11635 = vmatprep.subr.mxu0 %v18296_v12  ;;  %11667 = vmatprep.subr.mxu1 %v18305_v41 }
 0x3d9   :  { %11636 = vmatpush3.msra.mxu0 %v18296_v12  ;;  %11668 = vmatpush3.msra.mxu1 %v18305_v41 }
 0x3da   :  { %11638 = vmatmul.mubr.msk.f32.vlgmr.msra.gmra.mxu0 %vm1514_vm1, %v18179_v16  ;;  %11669 = vmatprep.subr.mxu1 %v18320_v0 }
 0x3db   :  { %11685 = vmatprep.subr.mxu0 %v18325_v9  ;;  %11640 = vmatprep.mubr.msk.f32.mxu0 %vm1514_vm1, %v18226_v22 }
 0x3dc   :  { %11670 = vmatpush3.msra.mxu1 %v18320_v0  ;;  %v1940_v40 = vpop.permute.xlu0 %1939  ;;  %11686 = vmatpush3.msra.mxu0 %v18325_v9 }
 0x3dd   :  { %11671 = vmatprep.subr.mxu1 %v18337_v51  ;;  %2180 = vst.msk [vmem:[#allocation2 + $0x320] sm:$0xff] %vm2083_vm4, %v1940_v40  ;;  %11687 = vmatprep.subr.mxu0 %v18346_v35 }
 0x3de   :  { %11672 = vmatpush3.msra.mxu1 %v18337_v51  ;;  %v1942_v55 = vpop.permute.xlu1 %1941  ;;  %11688 = vmatpush3.msra.mxu0 %v18346_v35 }
 0x3df   :  { %11674 = vmatmul.mubr.msk.f32.vlgmr.msra.gmra.mxu1 %vm1514_vm1, %v17907_v10  ;;  %2181 = vst.msk [vmem:[#allocation2 + $0x328] sm:$0xff] %vm2083_vm4, %v1942_v55  ;;  %11641 = vmatmul.mubr.msk.f32.gmra.mxu0 %vm1514_vm1, %v18236_v61  ;;  %v18381_v10 = vld [vmem:[%s19268_s3 + $0x100] sm:$0xff]  ;;  %v5705_v55 = vadd.f32 %v5704_v19, %v18307_v49 }
 0x3e0   :  { %11689 = vmatprep.subr.mxu0 %v18356_v7  ;;  %v11279_v59 = vpop.f32.mrf.mxu0  ;;  %11721 = vmatprep.subr.mxu1 %v18040_v26 }
 0x3e1   :  { %11676 = vmatprep.mubr.msk.f32.mxu1 %vm1514_vm1, %v17936_v21  ;;  %v5873_v38 = vadd.f32 %v11279_v59, %v5690_v28  ;;  %11690 = vmatpush3.msra.mxu0 %v18356_v7  ;;  %v18400_v21 = vld [vmem:[%s19268_s3 + $0xf8] sm:$0xff] }
 0x3e2   :  { %11722 = vmatpush3.msra.mxu1 %v18040_v26  ;;  %v2501_v56 = vpop.permute.xlu0 %2500  ;;  %v5833_v47 = vpop.f32.mrf.mxu0  ;;  %11691 = vmatprep.subr.mxu0 %v18381_v10 }
 0x3e3   :  { %11723 = vmatprep.subr.mxu1 %v18067_v60  ;;  %2741 = vst.msk [vmem:[#allocation2 + $0x320] sm:$0xff] %vm2644_vm5, %v2501_v56  ;;  %5881 = vst [vmem:[%s19271_s4 + $0x188] sm:$0xff] %v5873_v38  ;;  %v5872_v26 = vadd.f32 %v5833_v47, %v5685_v33  ;;  %11643 = vmatprep.mubr.msk.f32.mxu0 %vm1514_vm1, %v18388_v52 }
 0x3e4   :  { %11692 = vmatpush3.msra.mxu0 %v18381_v10  ;;  %11724 = vmatpush3.msra.mxu1 %v18067_v60  ;;  %v2503_v18 = vpop.permute.xlu1 %2502  ;;  %v5700_v60 = vadd.f32 %v18327_v54, %v18228_v23 }
 0x3e5   :  { %11644 = vmatmul.mubr.msk.f32.gmra.mxu0 %vm1514_vm1, %v18393_v17  ;;  %5880 = vst [vmem:[%s19271_s4 + $0x180] sm:$0xff] %v5872_v26  ;;  %11677 = vmatmul.mubr.msk.f32.gmra.mxu1 %vm1514_vm1, %v17950_v42  ;;  %2742 = vst.msk [vmem:[#allocation2 + $0x328] sm:$0xff] %vm2644_vm5, %v2503_v18 }
 0x3e6   :  { %11693 = vmatprep.subr.mxu0 %v18400_v21  ;;  %11725 = vmatprep.subr.mxu1 %v18086_v37  ;;  %v11282_v42 = vpop.f32.mrf.mxu0 }
 0x3e7   :  { %11679 = vmatprep.mubr.msk.f32.mxu1 %vm1514_vm1, %v18170_v58  ;;  %11694 = vmatpush3.msra.mxu0 %v18400_v21  ;;  %v5875_v40 = vadd.f32 %v11282_v42, %v5700_v60  ;;  %v18441_v58 = vld [vmem:[%s19268_s3 + $0xe8] sm:$0xff] }
 0x3e8   :  { %11726 = vmatpush3.msra.mxu1 %v18086_v37  ;;  %11695 = vmatprep.subr.mxu0 %v18421_v63  ;;  %v5843_v54 = vpop.f32.mrf.mxu0  ;;  %v18559_v42 = vld [vmem:[#allocation2 + $0x2e8] sm:$0xff] }
 0x3e9   :  { %11727 = vmatprep.subr.mxu1 %v18108_v48  ;;  %v1944_v23 = vpop.permute.xlu0 %1943  ;;  %11646 = vmatprep.mubr.msk.f32.mxu0 %vm1514_vm1, %v18429_v5  ;;  %5883 = vst [vmem:[%s19271_s4 + $0x198] sm:$0xff] %v5875_v40  ;;  %v5874_v37 = vadd.f32 %v5843_v54, %v5695_v32  ;;  %v18580_v40 = vld [vmem:[#allocation2 + $0x2f8] sm:$0xff] }
 0x3ea   :  { %11696 = vmatpush3.msra.mxu0 %v18421_v63  ;;  %2182 = vst.msk [vmem:[#allocation2 + $0x330] sm:$0xff] %vm2083_vm4, %v1944_v23  ;;  %11728 = vmatpush3.msra.mxu1 %v18108_v48  ;;  %v5714_v48 = vpop.f32.mrf.mxu1 }
 0x3eb   :  { %11647 = vmatmul.mubr.msk.f32.gmra.mxu0 %vm1514_vm1, %v18433_v2  ;;  %11680 = vmatmul.mubr.msk.f32.gmra.mxu1 %vm1514_vm1, %v18179_v16  ;;  %v1946_v31 = vpop.permute.xlu1 %1945  ;;  %5882 = vst [vmem:[%s19271_s4 + $0x190] sm:$0xff] %v5874_v37  ;;  %v5715_v34 = vadd.f32 %v5714_v48, %v18362_v57  ;;  %v18533_v57 = vld [vmem:[#allocation2 + $0x2e0] sm:$0xff] }
 0x3ec   :  { %11697 = vmatprep.subr.mxu0 %v18441_v58  ;;  %11729 = vmatprep.subr.mxu1 %v18136_v13  ;;  %2183 = vst.msk [vmem:[#allocation2 + $0x338] sm:$0xff] %vm2083_vm4, %v1946_v31  ;;  %v18604_v31 = vld [vmem:[#allocation2 + $0x308] sm:$0xff] }
 0x3ed   :  { %11682 = vmatprep.mubr.msk.f32.mxu1 %vm1514_vm1, %v18226_v22  ;;  %v11285_v16 = vpop.f32.mrf.mxu0  ;;  %11698 = vmatpush3.msra.mxu0 %v18441_v58  ;;  %v18480_v22 = vpop.f32.mrf.mxu1 }
 0x3ee   :  { %11709 = vmatprep.mubr.msk.f32.mxu0 %vm1514_vm1, %v18388_v52  ;;  %v5877_v28 = vadd.f32 %v11285_v16, %v5710_v14  ;;  %11730 = vmatpush3.msra.mxu1 %v18136_v13  ;;  %v18492_v13 = vld [vmem:[%s19268_s3 + $0xd0] sm:$0xff] }
 0x3ef   :  { %11699 = vmatprep.subr.mxu0 %v18459_v8  ;;  %v5853_v25 = vpop.f32.mrf.mxu0  ;;  %11731 = vmatprep.subr.mxu1 %v18159_v20  ;;  %v18509_v59 = vpop.f32.mrf.mxu1 }
 0x3f0   :  { %11700 = vmatpush3.msra.mxu0 %v18459_v8  ;;  %v2505_v27 = vpop.permute.xlu0 %2504  ;;  %5885 = vst [vmem:[%s19271_s4 + $0x1a8] sm:$0xff] %v5877_v28  ;;  %v5876_v45 = vadd.f32 %v5853_v25, %v5705_v55  ;;  %11732 = vmatpush3.msra.mxu1 %v18159_v20  ;;  %v18506_v20 = vld [vmem:[%s19268_s3 + $0xc8] sm:$0xff]  ;;  %v18622_v55 = vld [vmem:[#allocation2 + $0x310] sm:$0xff] }
 0x3f1   :  { %11701 = vmatprep.subr.mxu0 %v18475_v39  ;;  %2743 = vst.msk [vmem:[#allocation2 + $0x330] sm:$0xff] %vm2644_vm5, %v2505_v27  ;;  %11683 = vmatmul.mubr.msk.f32.gmra.mxu1 %vm1514_vm1, %v18236_v61 }
 0x3f2   :  { %11733 = vmatprep.subr.mxu1 %v18190_v50  ;;  %5884 = vst [vmem:[%s19271_s4 + $0x1a0] sm:$0xff] %v5876_v45  ;;  %11702 = vmatpush3.msra.mxu0 %v18475_v39  ;;  %v2507_v49 = vpop.permute.xlu1 %2506  ;;  %v18522_v38 = vpop.f32.mrf.mxu1  ;;  %v18629_v45 = vld [vmem:[#allocation2 + $0x318] sm:$0xff] }
 0x3f3   :  { %11734 = vmatpush3.msra.mxu1 %v18190_v50  ;;  %11703 = vmatprep.subr.mxu0 %v18492_v13  ;;  %2744 = vst.msk [vmem:[#allocation2 + $0x338] sm:$0xff] %vm2644_vm5, %v2507_v49  ;;  %v18519_v50 = vld [vmem:[%s19268_s3 + $0xc0] sm:$0xff] }
 0x3f4   :  { %11735 = vmatprep.subr.mxu1 %v18214_v15  ;;  %v11288_v61 = vpop.f32.mrf.mxu0  ;;  %11704 = vmatpush3.msra.mxu0 %v18492_v13 }
 0x3f5   :  { %11736 = vmatpush3.msra.mxu1 %v18214_v15  ;;  %v5879_v33 = vadd.f32 %v11288_v61, %v5720_v1  ;;  %11705 = vmatprep.subr.mxu0 %v18506_v20 }
 0x3f6   :  { %11737 = vmatprep.subr.mxu1 %v18241_v46  ;;  %v5863_v56 = vpop.f32.mrf.mxu0  ;;  %11706 = vmatpush3.msra.mxu0 %v18506_v20 }
 0x3f7   :  { %11738 = vmatpush3.msra.mxu1 %v18241_v46  ;;  %v1948_v47 = vpop.permute.xlu0 %1947  ;;  %5887 = vst [vmem:[%s19271_s4 + $0x1b8] sm:$0xff] %v5879_v33  ;;  %v5878_v26 = vadd.f32 %v5863_v56, %v5715_v34  ;;  %11707 = vmatprep.subr.mxu0 %v18519_v50  ;;  %v18541_v46 = vpop.f32.mrf.mxu1 }
 0x3f8   :  { %11739 = vmatprep.subr.mxu1 %v18262_v44  ;;  %2184 = vst.msk [vmem:[#allocation2 + $0x340] sm:$0xff] %vm2083_vm4, %v1948_v47  ;;  %11708 = vmatpush3.msra.mxu0 %v18519_v50 }
 0x3f9   :  { %11740 = vmatpush3.msra.mxu1 %v18262_v44  ;;  %v1950_v19 = vpop.permute.xlu1 %1949  ;;  %5886 = vst [vmem:[%s19271_s4 + $0x1b0] sm:$0xff] %v5878_v26  ;;  %11710 = vmatmul.mubr.msk.f32.vlgmr.msra.gmra.mxu0 %vm1514_vm1, %v18393_v17  ;;  %v18555_v60 = vpop.f32.mrf.mxu1 }
 0x3fa   :  { %11741 = vmatprep.subr.mxu1 %v18279_v62  ;;  %2185 = vst.msk [vmem:[#allocation2 + $0x348] sm:$0xff] %vm2083_vm4, %v1950_v19  ;;  %11745 = vmatprep.mubr.msk.f32.mxu1 %vm1514_vm1, %v18533_v57 }
 0x3fb   :  { %11757 = vmatprep.subr.mxu0 %v18091_v43  ;;  %11712 = vmatprep.mubr.msk.f32.mxu0 %vm1514_vm1, %v18429_v5  ;;  %v18574_v24 = vpop.f32.mrf.mxu1 }
 0x3fc   :  { %11742 = vmatpush3.msra.mxu1 %v18279_v62  ;;  %11758 = vmatpush3.msra.mxu0 %v18091_v43  ;;  %v2509_v18 = vpop.permute.xlu0 %2508  ;;  %v18572_v43 = vld [vmem:[#allocation2 + $0x2f0] sm:$0xff] }
 0x3fd   :  { %11743 = vmatprep.subr.mxu1 %v18296_v12  ;;  %11759 = vmatprep.subr.mxu0 %v18117_v11  ;;  %2745 = vst.msk [vmem:[#allocation2 + $0x340] sm:$0xff] %vm2644_vm5, %v2509_v18 }
 0x3fe   :  { %11744 = vmatpush3.msra.mxu1 %v18296_v12  ;;  %v2511_v32 = vpop.permute.xlu1 %2510  ;;  %11760 = vmatpush3.msra.mxu0 %v18117_v11 }
 0x3ff   :  { %11746 = vmatmul.mubr.msk.f32.vlgmr.msra.gmra.mxu1 %vm1514_vm1, %v18559_v42  ;;  %2746 = vst.msk [vmem:[#allocation2 + $0x348] sm:$0xff] %vm2644_vm5, %v2511_v32  ;;  %11713 = vmatmul.mubr.msk.f32.gmra.mxu0 %vm1514_vm1, %v18433_v2 }
 0x400   :  { %11761 = vmatprep.subr.mxu0 %v18141_v4  ;;  %11793 = vmatprep.subr.mxu1 %v18325_v9 }
 0x401   :  { %11715 = vmatprep.mubr.msk.f32.mxu0 %vm1514_vm1, %v18533_v57  ;;  %11762 = vmatpush3.msra.mxu0 %v18141_v4  ;;  %v1952_v11 = vpop.permute.xlu0 %1951  ;;  %v18590_v4 = vpop.f32.mrf.mxu1 }
 0x402   :  { %11794 = vmatpush3.msra.mxu1 %v18325_v9  ;;  %11763 = vmatprep.subr.mxu0 %v18164_v3  ;;  %2186 = vst.msk [vmem:[#allocation2 + $0x350] sm:$0xff] %vm2083_vm4, %v1952_v11 }
 0x403   :  { %11795 = vmatprep.subr.mxu1 %v18346_v35  ;;  %11748 = vmatprep.mubr.msk.f32.mxu1 %vm1514_vm1, %v18572_v43  ;;  %v18607_v14 = vpop.f32.mrf.mxu1 }
 0x404   :  { %11764 = vmatpush3.msra.mxu0 %v18164_v3  ;;  %v1954_v23 = vpop.permute.xlu1 %1953  ;;  %11796 = vmatpush3.msra.mxu1 %v18346_v35  ;;  %v18598_v3 = vld [vmem:[#allocation2 + $0x300] sm:$0xff] }
 0x405   :  { %11716 = vmatmul.mubr.msk.f32.gmra.mxu0 %vm1514_vm1, %v18559_v42  ;;  %2187 = vst.msk [vmem:[#allocation2 + $0x358] sm:$0xff] %vm2083_vm4, %v1954_v23  ;;  %11749 = vmatmul.mubr.msk.f32.gmra.mxu1 %vm1514_vm1, %v18580_v40 }
 0x406   :  { %11765 = vmatprep.subr.mxu0 %v18195_v53  ;;  %11797 = vmatprep.subr.mxu1 %v18356_v7  ;;  %v11351_v54 = vpop.f32.mrf.mxu0 }
 0x407   :  { %11718 = vmatprep.mubr.msk.f32.mxu0 %vm1514_vm1, %v18572_v43  ;;  %11766 = vmatpush3.msra.mxu0 %v18195_v53  ;;  %v6137_v16 = vadd.f32 %v11351_v54, %v18480_v22  ;;  %v18687_v54 = vld [vmem:[%s19268_s3 + $0xb0] sm:$0xff] }
 0x408   :  { %11798 = vmatpush3.msra.mxu1 %v18356_v7  ;;  %v2513_v37 = vpop.permute.xlu0 %2512  ;;  %11767 = vmatprep.subr.mxu0 %v18224_v6  ;;  %v6131_v48 = vpop.f32.mrf.mxu0 }
 0x409   :  { %11799 = vmatprep.subr.mxu1 %v18381_v10  ;;  %2747 = vst.msk [vmem:[#allocation2 + $0x350] sm:$0xff] %vm2644_vm5, %v2513_v37  ;;  %11751 = vmatprep.mubr.msk.f32.mxu1 %vm1514_vm1, %v18598_v3  ;;  %v6132_v49 = vadd.f32 %v6131_v48, %v18509_v59 }
 0x40a   :  { %11768 = vmatpush3.msra.mxu0 %v18224_v6  ;;  %11800 = vmatpush3.msra.mxu1 %v18381_v10  ;;  %v2515_v53 = vpop.permute.xlu1 %2514 }
 0x40b   :  { %11719 = vmatmul.mubr.msk.f32.gmra.mxu0 %vm1514_vm1, %v18580_v40  ;;  %11752 = vmatmul.mubr.msk.f32.gmra.mxu1 %vm1514_vm1, %v18604_v31  ;;  %2748 = vst.msk [vmem:[#allocation2 + $0x358] sm:$0xff] %vm2644_vm5, %v2515_v53 }
 0x40c   :  { %11769 = vmatprep.subr.mxu0 %v18249_v29  ;;  %11801 = vmatprep.subr.mxu1 %v18400_v21  ;;  %v11354_v28 = vpop.f32.mrf.mxu0 }
 0x40d   :  { %11770 = vmatpush3.msra.mxu0 %v18249_v29  ;;  %v11387_v25 = vpop.f32.mrf.mxu1  ;;  %11781 = vmatprep.mubr.msk.f32.mxu0 %vm1514_vm1, %v18388_v52  ;;  %v6147_v34 = vadd.f32 %v11354_v28, %v18522_v38 }
 0x40e   :  { %11802 = vmatpush3.msra.mxu1 %v18400_v21  ;;  %v6320_v27 = vadd.f32 %v11387_v25, %v6137_v16  ;;  %11771 = vmatprep.subr.mxu0 %v18270_v36  ;;  %v6141_v52 = vpop.f32.mrf.mxu0 }
 0x40f   :  { %11803 = vmatprep.subr.mxu1 %v18421_v63  ;;  %v1956_v22 = vpop.permute.xlu0 %1955  ;;  %11754 = vmatprep.mubr.msk.f32.mxu1 %vm1514_vm1, %v18622_v55  ;;  %v6280_v1 = vpop.f32.mrf.mxu1  ;;  %v6142_v26 = vadd.f32 %v6141_v52, %v18541_v46  ;;  %v18670_v46 = vld [vmem:[%s19268_s3 + $0xb8] sm:$0xff] }
 0x410   :  { %11772 = vmatpush3.msra.mxu0 %v18270_v36  ;;  %2188 = vst.msk [vmem:[#allocation2 + $0x360] sm:$0xff] %vm2083_vm4, %v1956_v22  ;;  %6328 = vst [vmem:[%s19271_s4 + $0x1c8] sm:$0xff] %v6320_v27  ;;  %11804 = vmatpush3.msra.mxu1 %v18421_v63  ;;  %v6319_v61 = vadd.f32 %v6280_v1, %v6132_v49  ;;  %v18720_v22 = vld [vmem:[%s19268_s3 + $0xa0] sm:$0xff] }
 0x411   :  { %11773 = vmatprep.subr.mxu0 %v18288_v30  ;;  %11755 = vmatmul.mubr.msk.f32.gmra.mxu1 %vm1514_vm1, %v18629_v45  ;;  %v1958_v59 = vpop.permute.xlu1 %1957 }
 0x412   :  { %11805 = vmatprep.subr.mxu1 %v18441_v58  ;;  %11774 = vmatpush3.msra.mxu0 %v18288_v30  ;;  %2189 = vst.msk [vmem:[#allocation2 + $0x368] sm:$0xff] %vm2083_vm4, %v1958_v59  ;;  %6327 = vst [vmem:[%s19271_s4 + $0x1c0] sm:$0xff] %v6319_v61 }
 0x413   :  { %11806 = vmatpush3.msra.mxu1 %v18441_v58  ;;  %11817 = vmatprep.mubr.msk.f32.mxu1 %vm1514_vm1, %v18598_v3  ;;  %v11357_v33 = vpop.f32.mrf.mxu0 }
 0x414   :  { %11775 = vmatprep.subr.mxu0 %v18305_v41  ;;  %v11390_v56 = vpop.f32.mrf.mxu1  ;;  %11807 = vmatprep.subr.mxu1 %v18459_v8  ;;  %v6157_v23 = vadd.f32 %v11357_v33, %v18555_v60  ;;  %v18697_v60 = vld [vmem:[%s19268_s3 + $0xa8] sm:$0xff] }
 0x415   :  { %11776 = vmatpush3.msra.mxu0 %v18305_v41  ;;  %v6322_v47 = vadd.f32 %v11390_v56, %v6147_v34  ;;  %11808 = vmatpush3.msra.mxu1 %v18459_v8  ;;  %v6151_v19 = vpop.f32.mrf.mxu0  ;;  %v18766_v56 = vld [vmem:[%s19268_s3 + $0x90] sm:$0xff] }
 0x416   :  { %11777 = vmatprep.subr.mxu0 %v18320_v0  ;;  %v2517_v38 = vpop.permute.xlu0 %2516  ;;  %11809 = vmatprep.subr.mxu1 %v18475_v39  ;;  %v6290_v18 = vpop.f32.mrf.mxu1  ;;  %v6152_v16 = vadd.f32 %v6151_v19, %v18574_v24  ;;  %v18791_v19 = vld [vmem:[%s19268_s3 + $0x88] sm:$0xff] }
 0x417   :  { %11778 = vmatpush3.msra.mxu0 %v18320_v0  ;;  %2749 = vst.msk [vmem:[#allocation2 + $0x360] sm:$0xff] %vm2644_vm5, %v2517_v38  ;;  %6330 = vst [vmem:[%s19271_s4 + $0x1d8] sm:$0xff] %v6322_v47  ;;  %11810 = vmatpush3.msra.mxu1 %v18475_v39  ;;  %v6321_v32 = vadd.f32 %v6290_v18, %v6142_v26  ;;  %v18771_v47 = vld [vmem:[%s19268_s3 + $0x40] sm:$0xff]  ;;  %v18786_v26 = vld [vmem:[#allocation2 + $0x328] sm:$0xff] }
 0x418   :  { %11779 = vmatprep.subr.mxu0 %v18337_v51  ;;  %11811 = vmatprep.subr.mxu1 %v18492_v13  ;;  %v2519_v11 = vpop.permute.xlu1 %2518 }
 0x419   :  { %11780 = vmatpush3.msra.mxu0 %v18337_v51  ;;  %11812 = vmatpush3.msra.mxu1 %v18492_v13  ;;  %2750 = vst.msk [vmem:[#allocation2 + $0x368] sm:$0xff] %vm2644_vm5, %v2519_v11  ;;  %6329 = vst [vmem:[%s19271_s4 + $0x1d0] sm:$0xff] %v6321_v32  ;;  %v18809_v32 = vld [vmem:[#allocation2 + $0x330] sm:$0xff] }
 0x41a   :  { %11782 = vmatmul.mubr.msk.f32.vlgmr.msra.gmra.mxu0 %vm1514_vm1, %v18393_v17  ;;  %11813 = vmatprep.subr.mxu1 %v18506_v20  ;;  %v11360_v37 = vpop.f32.mrf.mxu0 }
 0x41b   :  { %11829 = vmatprep.subr.mxu0 %v18670_v46  ;;  %v11393_v48 = vpop.f32.mrf.mxu1  ;;  %11784 = vmatprep.mubr.msk.f32.mxu0 %vm1514_vm1, %v18429_v5  ;;  %v18705_v5 = vld [vmem:[%s19268_s3 + $0x58] sm:$0xff]  ;;  %v6167_v49 = vadd.f32 %v11360_v37, %v18590_v4 }
 0x41c   :  { %11814 = vmatpush3.msra.mxu1 %v18506_v20  ;;  %v6324_v17 = vadd.f32 %v11393_v48, %v6157_v23  ;;  %11830 = vmatpush3.msra.mxu0 %v18670_v46  ;;  %v6161_v25 = vpop.f32.mrf.mxu0  ;;  %v18823_v23 = vld [vmem:[#allocation2 + $0x338] sm:$0xff] }
 0x41d   :  { %11815 = vmatprep.subr.mxu1 %v18519_v50  ;;  %v1960_v53 = vpop.permute.xlu0 %1959  ;;  %11831 = vmatprep.subr.mxu0 %v18687_v54  ;;  %v6300_v28 = vpop.f32.mrf.mxu1  ;;  %v6162_v4 = vadd.f32 %v6161_v25, %v18607_v14  ;;  %v18751_v14 = vld [vmem:[%s19268_s3 + $0x48] sm:$0xff] }
 0x41e   :  { %11816 = vmatpush3.msra.mxu1 %v18519_v50  ;;  %2190 = vst.msk [vmem:[#allocation2 + $0x370] sm:$0xff] %vm2083_vm4, %v1960_v53  ;;  %6332 = vst [vmem:[%s19271_s4 + $0x1e8] sm:$0xff] %v6324_v17  ;;  %11832 = vmatpush3.msra.mxu0 %v18687_v54  ;;  %v6323_v27 = vadd.f32 %v6300_v28, %v6152_v16  ;;  %v9647_v53 = vld [vmem:[%s19268_s3 + $0x70] sm:$0xff] }
 0x41f   :  { %11818 = vmatmul.mubr.msk.f32.vlgmr.msra.gmra.mxu1 %vm1514_vm1, %v18604_v31  ;;  %v1962_v24 = vpop.permute.xlu1 %1961  ;;  %11785 = vmatmul.mubr.msk.f32.gmra.mxu0 %vm1514_vm1, %v18433_v2  ;;  %v18730_v2 = vld [vmem:[%s19268_s3 + $0x50] sm:$0xff] }
 0x420   :  { %11833 = vmatprep.subr.mxu0 %v18697_v60  ;;  %2191 = vst.msk [vmem:[#allocation2 + $0x378] sm:$0xff] %vm2083_vm4, %v1962_v24  ;;  %11865 = vmatprep.subr.mxu1 %v18705_v5  ;;  %6331 = vst [vmem:[%s19271_s4 + $0x1e0] sm:$0xff] %v6323_v27  ;;  %v9646_v24 = vld [vmem:[%s19268_s3 + $0x68] sm:$0xff] }
 0x421   :  { %11787 = vmatprep.mubr.msk.f32.mxu0 %vm1514_vm1, %v18533_v57  ;;  %v11396_v52 = vpop.f32.mrf.mxu1  ;;  %11820 = vmatprep.mubr.msk.f32.mxu1 %vm1514_vm1, %v18622_v55  ;;  %v18744_v57 = vld [vmem:[%s19268_s3 + $0x98] sm:$0xff] }
 0x422   :  { %11834 = vmatpush3.msra.mxu0 %v18697_v60  ;;  %v6326_v1 = vadd.f32 %v11396_v52, %v6167_v49  ;;  %11866 = vmatpush3.msra.mxu1 %v18705_v5 }
 0x423   :  { %11835 = vmatprep.subr.mxu0 %v18720_v22  ;;  %v2521_v61 = vpop.permute.xlu0 %2520  ;;  %v6310_v59 = vpop.f32.mrf.mxu1  ;;  %11867 = vmatprep.subr.mxu1 %v18730_v2 }
 0x424   :  { %11836 = vmatpush3.msra.mxu0 %v18720_v22  ;;  %2751 = vst.msk [vmem:[#allocation2 + $0x370] sm:$0xff] %vm2644_vm5, %v2521_v61  ;;  %6334 = vst [vmem:[%s19271_s4 + $0x1f8] sm:$0xff] %v6326_v1  ;;  %v6325_v34 = vadd.f32 %v6310_v59, %v6162_v4  ;;  %11868 = vmatpush3.msra.mxu1 %v18730_v2  ;;  %v2523_v33 = vpop.permute.xlu1 %2522  ;;  %v18993_v4 = vld [vmem:[#allocation2 + $0x368] sm:$0xff]  ;;  %v9684_v1 = vld [vmem:[%s19268_s3 + $0x118] sm:$0xff] }
 0x425   :  { %11788 = vmatmul.mubr.msk.f32.gmra.mxu0 %vm1514_vm1, %v18559_v42  ;;  %11821 = vmatmul.mubr.msk.f32.gmra.mxu1 %vm1514_vm1, %v18629_v45  ;;  %2752 = vst.msk [vmem:[#allocation2 + $0x378] sm:$0xff] %vm2644_vm5, %v2523_v33  ;;  %v18780_v42 = vld [vmem:[#allocation2 + $0x320] sm:$0xff] }
 0x426   :  { %11837 = vmatprep.subr.mxu0 %v18744_v57  ;;  %6333 = vst [vmem:[%s19271_s4 + $0x1f0] sm:$0xff] %v6325_v34  ;;  %11869 = vmatprep.subr.mxu1 %v18751_v14  ;;  %v9683_v34 = vld [vmem:[%s19268_s3 + $0x110] sm:$0xff] }
 0x427   :  { %11790 = vmatprep.mubr.msk.f32.mxu0 %vm1514_vm1, %v18572_v43  ;;  %11838 = vmatpush3.msra.mxu0 %v18744_v57  ;;  %v18800_v43 = vld [vmem:[%s19268_s3 + $0x38] sm:$0xff] }
 0x428   :  { %11870 = vmatpush3.msra.mxu1 %v18751_v14  ;;  %v1964_v38 = vpop.permute.xlu0 %1963  ;;  %11839 = vmatprep.subr.mxu0 %v18766_v56 }
 0x429   :  { %11871 = vmatprep.subr.mxu1 %v18771_v47  ;;  %2192 = vst.msk [vmem:[#allocation2 + $0x380] sm:$0xff] %vm2083_vm4, %v1964_v38  ;;  %11823 = vmatprep.mubr.msk.f32.mxu1 %vm1514_vm1, %v18780_v42 }
 0x42a   :  { %11840 = vmatpush3.msra.mxu0 %v18766_v56  ;;  %v1966_v18 = vpop.permute.xlu1 %1965  ;;  %11872 = vmatpush3.msra.mxu1 %v18771_v47 }
 0x42b   :  { %11791 = vmatmul.mubr.msk.f32.gmra.mxu0 %vm1514_vm1, %v18580_v40  ;;  %2193 = vst.msk [vmem:[#allocation2 + $0x388] sm:$0xff] %vm2083_vm4, %v1966_v18  ;;  %11824 = vmatmul.mubr.msk.f32.gmra.mxu1 %vm1514_vm1, %v18786_v26  ;;  %v18818_v40 = vld [vmem:[%s19268_s3 + $0x78] sm:$0xff] }
 0x42c   :  { %11841 = vmatprep.subr.mxu0 %v18791_v19  ;;  %11873 = vmatprep.subr.mxu1 %v18800_v43  ;;  %v19019_v38 = vld [vmem:[#allocation2 + $0x378] sm:$0xff] }
 0x42d   :  { %11842 = vmatpush3.msra.mxu0 %v18791_v19  ;;  %11874 = vmatpush3.msra.mxu1 %v18800_v43 }
 0x42e   :  { %11843 = vmatprep.subr.mxu0 %v18214_v15  ;;  %v2525_v11 = vpop.permute.xlu0 %2524  ;;  %11875 = vmatprep.subr.mxu1 %v18224_v6 }
 0x42f   :  { %11826 = vmatprep.mubr.msk.f32.mxu1 %vm1514_vm1, %v18809_v32  ;;  %2753 = vst.msk [vmem:[#allocation2 + $0x380] sm:$0xff] %vm2644_vm5, %v2525_v11  ;;  %11844 = vmatpush3.msra.mxu0 %v18214_v15  ;;  %v18840_v15 = vpop.f32.mrf.mxu0 }
 0x430   :  { %11853 = vmatprep.mubr.msk.f32.mxu0 %vm1514_vm1, %v18780_v42  ;;  %11876 = vmatpush3.msra.mxu1 %v18224_v6  ;;  %v2527_v37 = vpop.permute.xlu1 %2526 }
 0x431   :  { %11845 = vmatprep.subr.mxu0 %v18818_v40  ;;  %11827 = vmatmul.mubr.msk.f32.gmra.mxu1 %vm1514_vm1, %v18823_v23  ;;  %2754 = vst.msk [vmem:[#allocation2 + $0x388] sm:$0xff] %vm2644_vm5, %v2527_v37 }
 0x432   :  { %11877 = vmatprep.subr.mxu1 %v18249_v29  ;;  %11846 = vmatpush3.msra.mxu0 %v18818_v40 }
 0x433   :  { %11878 = vmatpush3.msra.mxu1 %v18249_v29  ;;  %11889 = vmatprep.mubr.msk.f32.mxu1 %vm1514_vm1, %v18598_v3  ;;  %v18851_v3 = vpop.f32.mrf.mxu0 }
 0x434   :  { %11847 = vmatprep.subr.mxu0 %v18262_v44  ;;  %11879 = vmatprep.subr.mxu1 %v18270_v36 }
 0x435   :  { %11848 = vmatpush3.msra.mxu0 %v18262_v44  ;;  %v1968_v6 = vpop.permute.xlu0 %1967  ;;  %11880 = vmatpush3.msra.mxu1 %v18270_v36  ;;  %v18864_v36 = vpop.f32.mrf.mxu0 }
 0x436   :  { %11849 = vmatprep.subr.mxu0 %v18279_v62  ;;  %2194 = vst.msk [vmem:[#allocation2 + $0x390] sm:$0xff] %vm2083_vm4, %v1968_v6  ;;  %11881 = vmatprep.subr.mxu1 %v18288_v30 }
 0x437   :  { %11850 = vmatpush3.msra.mxu0 %v18279_v62  ;;  %11882 = vmatpush3.msra.mxu1 %v18288_v30  ;;  %v1970_v29 = vpop.permute.xlu1 %1969  ;;  %v18878_v30 = vpop.f32.mrf.mxu0 }
 0x438   :  { %11851 = vmatprep.subr.mxu0 %v18296_v12  ;;  %11883 = vmatprep.subr.mxu1 %v18305_v41  ;;  %2195 = vst.msk [vmem:[#allocation2 + $0x398] sm:$0xff] %vm2083_vm4, %v1970_v29  ;;  %v19051_v6 = vld [vmem:[#allocation2 + $0x388] sm:$0xff] }
 0x439   :  { %11852 = vmatpush3.msra.mxu0 %v18296_v12  ;;  %11884 = vmatpush3.msra.mxu1 %v18305_v41  ;;  %v18883_v12 = vld [vmem:[#allocation2 + $0x340] sm:$0xff]  ;;  %v18887_v41 = vld [vmem:[#allocation2 + $0x348] sm:$0xff] }
 0x43a   :  { %11854 = vmatmul.mubr.msk.f32.vlgmr.msra.gmra.mxu0 %vm1514_vm1, %v18786_v26  ;;  %11885 = vmatprep.subr.mxu1 %v18320_v0  ;;  %v8583_v29 = vld [vmem:[%s19268_s3 + $0x28] sm:$0xff] }
 0x43b   :  { %11901 = vmatprep.subr.mxu0 %v18325_v9  ;;  %11856 = vmatprep.mubr.msk.f32.mxu0 %vm1514_vm1, %v18809_v32 }
 0x43c   :  { %11886 = vmatpush3.msra.mxu1 %v18320_v0  ;;  %v2529_v44 = vpop.permute.xlu0 %2528  ;;  %11902 = vmatpush3.msra.mxu0 %v18325_v9  ;;  %v11459_v0 = vpop.f32.mrf.mxu1 }
 0x43d   :  { %11887 = vmatprep.subr.mxu1 %v18337_v51  ;;  %2755 = vst.msk [vmem:[#allocation2 + $0x390] sm:$0xff] %vm2644_vm5, %v2529_v44  ;;  %11903 = vmatprep.subr.mxu0 %v18346_v35  ;;  %v18894_v9 = vpop.f32.mrf.mxu0  ;;  %v8582_v44 = vld [vmem:[%s19268_s3 + $0x20] sm:$0xff] }
 0x43e   :  { %11888 = vmatpush3.msra.mxu1 %v18337_v51  ;;  %11904 = vmatpush3.msra.mxu0 %v18346_v35  ;;  %v2531_v62 = vpop.permute.xlu1 %2530  ;;  %v18905_v51 = vld [vmem:[#allocation2 + $0x350] sm:$0xff]  ;;  %v6578_v35 = vpop.f32.mrf.mxu1 }
 0x43f   :  { %11890 = vmatmul.mubr.msk.f32.vlgmr.msra.gmra.mxu1 %vm1514_vm1, %v18604_v31  ;;  %11857 = vmatmul.mubr.msk.f32.gmra.mxu0 %vm1514_vm1, %v18823_v23  ;;  %2756 = vst.msk [vmem:[#allocation2 + $0x398] sm:$0xff] %vm2644_vm5, %v2531_v62 }
 0x440   :  { %11905 = vmatprep.subr.mxu0 %v18356_v7  ;;  %11937 = vmatprep.subr.mxu1 %v18670_v46 }
 0x441   :  { %11892 = vmatprep.mubr.msk.f32.mxu1 %vm1514_vm1, %v18622_v55  ;;  %11906 = vmatpush3.msra.mxu0 %v18356_v7  ;;  %v18909_v7 = vld [vmem:[#allocation2 + $0x358] sm:$0xff]  ;;  %v6584_v55 = vadd.f32 %v11459_v0, %v18840_v15 }
 0x442   :  { %11938 = vmatpush3.msra.mxu1 %v18670_v46  ;;  %11907 = vmatprep.subr.mxu0 %v18381_v10  ;;  %v8581_v0 = vld [vmem:[%s19268_s3 + $0x18] sm:$0xff] }
 0x443   :  { %11939 = vmatprep.subr.mxu1 %v18687_v54  ;;  %11859 = vmatprep.mubr.msk.f32.mxu0 %vm1514_vm1, %v18883_v12 }
 0x444   :  { %11908 = vmatpush3.msra.mxu0 %v18381_v10  ;;  %11940 = vmatpush3.msra.mxu1 %v18687_v54  ;;  %v18911_v10 = vpop.f32.mrf.mxu0  ;;  %v6579_v54 = vadd.f32 %v6578_v35, %v18851_v3  ;;  %v8592_v62 = vld [vmem:[#allocation2 + $0x390] sm:$0xff]  ;;  %v9678_v35 = vld [vmem:[%s19268_s3 + $0xe8] sm:$0xff] }
 0x445   :  { %11860 = vmatmul.mubr.msk.f32.gmra.mxu0 %vm1514_vm1, %v18887_v41  ;;  %11893 = vmatmul.mubr.msk.f32.gmra.mxu1 %vm1514_vm1, %v18629_v45 }
 0x446   :  { %11909 = vmatprep.subr.mxu0 %v18400_v21  ;;  %11941 = vmatprep.subr.mxu1 %v18697_v60  ;;  %v18918_v31 = vpop.f32.mrf.mxu0 }
 0x447   :  { %11895 = vmatprep.mubr.msk.f32.mxu1 %vm1514_vm1, %v18780_v42  ;;  %11910 = vmatpush3.msra.mxu0 %v18400_v21  ;;  %v11462_v21 = vpop.f32.mrf.mxu1 }
 0x448   :  { %11942 = vmatpush3.msra.mxu1 %v18697_v60  ;;  %11911 = vmatprep.subr.mxu0 %v18421_v63 }
 0x449   :  { %11943 = vmatprep.subr.mxu1 %v18720_v22  ;;  %11862 = vmatprep.mubr.msk.f32.mxu0 %vm1514_vm1, %v18905_v51  ;;  %v6588_v45 = vpop.f32.mrf.mxu1 }
 0x44a   :  { %11912 = vmatpush3.msra.mxu0 %v18421_v63  ;;  %11944 = vmatpush3.msra.mxu1 %v18720_v22  ;;  %v18932_v63 = vpop.f32.mrf.mxu0  ;;  %v6589_v25 = vadd.f32 %v6588_v45, %v18878_v30  ;;  %v9645_v22 = vld [vmem:[%s19268_s3 + $0x60] sm:$0xff] }
 0x44b   :  { %11863 = vmatmul.mubr.msk.f32.gmra.mxu0 %vm1514_vm1, %v18909_v7  ;;  %11896 = vmatmul.mubr.msk.f32.gmra.mxu1 %vm1514_vm1, %v18786_v26  ;;  %v9682_v26 = vld [vmem:[%s19268_s3 + $0x108] sm:$0xff]  ;;  %v8578_v45 = vld [vmem:[%s19268_s3] sm:$0xff] }
 0x44c   :  { %11913 = vmatprep.subr.mxu0 %v18441_v58  ;;  %11945 = vmatprep.subr.mxu1 %v18744_v57 }
 0x44d   :  { %11898 = vmatprep.mubr.msk.f32.mxu1 %vm1514_vm1, %v18809_v32  ;;  %11914 = vmatpush3.msra.mxu0 %v18441_v58  ;;  %v9649_v58 = vld [vmem:[%s19268_s3 + $0x80] sm:$0xff] }
 0x44e   :  { %11925 = vmatprep.mubr.msk.f32.mxu0 %vm1514_vm1, %v18883_v12  ;;  %11946 = vmatpush3.msra.mxu1 %v18744_v57  ;;  %v9681_v32 = vld [vmem:[%s19268_s3 + $0x100] sm:$0xff] }
 0x44f   :  { %11915 = vmatprep.subr.mxu0 %v18459_v8  ;;  %11947 = vmatprep.subr.mxu1 %v18766_v56 }
 0x450   :  { %11916 = vmatpush3.msra.mxu0 %v18459_v8  ;;  %v11495_v46 = vpop.f32.mrf.mxu0  ;;  %11948 = vmatpush3.msra.mxu1 %v18766_v56  ;;  %v11465_v8 = vpop.f32.mrf.mxu1 }
 0x451   :  { %11917 = vmatprep.subr.mxu0 %v18475_v39  ;;  %v6767_v48 = vadd.f32 %v11495_v46, %v6584_v55  ;;  %11899 = vmatmul.mubr.msk.f32.gmra.mxu1 %vm1514_vm1, %v18823_v23  ;;  %v6604_v52 = vadd.f32 %v11465_v8, %v18894_v9  ;;  %v8590_v23 = vld [vmem:[#allocation2 + $0x380] sm:$0xff]  ;;  %v8593_v9 = vld [vmem:[#allocation2 + $0x398] sm:$0xff] }
 0x452   :  { %11949 = vmatprep.subr.mxu1 %v18791_v19  ;;  %v6727_v17 = vpop.f32.mrf.mxu0  ;;  %11918 = vmatpush3.msra.mxu0 %v18475_v39  ;;  %v6594_v39 = vadd.f32 %v11462_v21, %v18864_v36  ;;  %v6598_v16 = vpop.f32.mrf.mxu1  ;;  %v9679_v36 = vld [vmem:[%s19268_s3 + $0xf0] sm:$0xff]  ;;  %v8579_v21 = vld [vmem:[%s19268_s3 + $0x8] sm:$0xff]  ;;  %v9676_v55 = vld [vmem:[%s19268_s3 + $0xd8] sm:$0xff] }
 0x453   :  { %11950 = vmatpush3.msra.mxu1 %v18791_v19  ;;  %6775 = vst [vmem:[%s19271_s4 + $0x208] sm:$0xff] %v6767_v48  ;;  %v6766_v60 = vadd.f32 %v6727_v17, %v6579_v54  ;;  %11919 = vmatprep.subr.mxu0 %v18492_v13  ;;  %v9674_v48 = vld [vmem:[%s19268_s3 + $0xc8] sm:$0xff] }
 0x454   :  { %11951 = vmatprep.subr.mxu1 %v9649_v58  ;;  %11920 = vmatpush3.msra.mxu0 %v18492_v13  ;;  %v18966_v13 = vld [vmem:[#allocation2 + $0x360] sm:$0xff] }
 0x455   :  { %11952 = vmatpush3.msra.mxu1 %v9649_v58  ;;  %6774 = vst [vmem:[%s19271_s4 + $0x200] sm:$0xff] %v6766_v60  ;;  %11921 = vmatprep.subr.mxu0 %v18506_v20  ;;  %v9675_v58 = vld [vmem:[%s19268_s3 + $0xd0] sm:$0xff]  ;;  %v9673_v60 = vld [vmem:[%s19268_s3 + $0xc0] sm:$0xff] }
 0x456   :  { %11953 = vmatprep.subr.mxu1 %v18818_v40  ;;  %11922 = vmatpush3.msra.mxu0 %v18506_v20  ;;  %v11498_v28 = vpop.f32.mrf.mxu0 }
 0x457   :  { %11954 = vmatpush3.msra.mxu1 %v18818_v40  ;;  %11923 = vmatprep.subr.mxu0 %v18519_v50  ;;  %v6769_v27 = vadd.f32 %v11498_v28, %v6594_v39 }
 0x458   :  { %11955 = vmatprep.subr.mxu1 %v9647_v53  ;;  %11924 = vmatpush3.msra.mxu0 %v18519_v50  ;;  %v6737_v20 = vpop.f32.mrf.mxu0  ;;  %v11468_v50 = vpop.f32.mrf.mxu1 }
 0x459   :  { %11956 = vmatpush3.msra.mxu1 %v9647_v53  ;;  %11961 = vmatprep.mubr.msk.f32.mxu1 %vm1514_vm1, %v18966_v13  ;;  %6777 = vst [vmem:[%s19271_s4 + $0x218] sm:$0xff] %v6769_v27  ;;  %v6768_v49 = vadd.f32 %v6737_v20, %v6589_v25  ;;  %v8856_v27 = vld [vmem:[#allocation2 + $0x3a0] sm:$0xff] }
 0x45a   :  { %11926 = vmatmul.mubr.msk.f32.vlgmr.msra.gmra.mxu0 %vm1514_vm1, %v18887_v41  ;;  %11957 = vmatprep.subr.mxu1 %v9646_v24  ;;  %v6608_v61 = vpop.f32.mrf.mxu1 }
 0x45b   :  { %11973 = vmatprep.subr.mxu0 %v18705_v5  ;;  %11928 = vmatprep.mubr.msk.f32.mxu0 %vm1514_vm1, %v18905_v51  ;;  %6776 = vst [vmem:[%s19271_s4 + $0x210] sm:$0xff] %v6768_v49  ;;  %v6609_v40 = vadd.f32 %v6608_v61, %v18932_v63  ;;  %v8858_v49 = vld [vmem:[#allocation2 + $0x3b0] sm:$0xff] }
 0x45c   :  { %11958 = vmatpush3.msra.mxu1 %v9646_v24  ;;  %11974 = vmatpush3.msra.mxu0 %v18705_v5  ;;  %v6599_v5 = vadd.f32 %v6598_v16, %v18911_v10  ;;  %v19012_v56 = vpop.f32.mrf.mxu1 }
 0x45d   :  { %11959 = vmatprep.subr.mxu1 %v9645_v22  ;;  %11975 = vmatprep.subr.mxu0 %v18730_v2  ;;  %v11501_v57 = vpop.f32.mrf.mxu0 }
 0x45e   :  { %11960 = vmatpush3.msra.mxu1 %v9645_v22  ;;  %11976 = vmatpush3.msra.mxu0 %v18730_v2  ;;  %v6771_v59 = vadd.f32 %v11501_v57, %v6604_v52  ;;  %v19010_v2 = vld [vmem:[#allocation2 + $0x370] sm:$0xff]  ;;  %v19033_v19 = vpop.f32.mrf.mxu1 }
 0x45f   :  { %11962 = vmatmul.mubr.msk.f32.vlgmr.msra.gmra.mxu1 %vm1514_vm1, %v18993_v4  ;;  %11929 = vmatmul.mubr.msk.f32.gmra.mxu0 %vm1514_vm1, %v18909_v7  ;;  %v6747_v33 = vpop.f32.mrf.mxu0 }
 0x460   :  { %11977 = vmatprep.subr.mxu0 %v18751_v14  ;;  %12009 = vmatprep.subr.mxu1 %v9684_v1  ;;  %6779 = vst [vmem:[%s19271_s4 + $0x228] sm:$0xff] %v6771_v59  ;;  %v6770_v42 = vadd.f32 %v6747_v33, %v6599_v5  ;;  %v19056_v3 = vpop.f32.mrf.mxu1  ;;  %v8859_v5 = vld [vmem:[#allocation2 + $0x3b8] sm:$0xff] }
 0x461   :  { %11931 = vmatprep.mubr.msk.f32.mxu0 %vm1514_vm1, %v18966_v13  ;;  %11978 = vmatpush3.msra.mxu0 %v18751_v14  ;;  %v6614_v14 = vadd.f32 %v11468_v50, %v18918_v31  ;;  %v9677_v31 = vld [vmem:[%s19268_s3 + $0xe0] sm:$0xff] }
 0x462   :  { %12010 = vmatpush3.msra.mxu1 %v9684_v1  ;;  %11979 = vmatprep.subr.mxu0 %v18771_v47  ;;  %6778 = vst [vmem:[%s19271_s4 + $0x220] sm:$0xff] %v6770_v42  ;;  %v19075_v30 = vpop.f32.mrf.mxu1 }
 0x463   :  { %12011 = vmatprep.subr.mxu1 %v9683_v34  ;;  %11964 = vmatprep.mubr.msk.f32.mxu1 %vm1514_vm1, %v19010_v2 }
 0x464   :  { %11980 = vmatpush3.msra.mxu0 %v18771_v47  ;;  %12012 = vmatpush3.msra.mxu1 %v9683_v34  ;;  %v11504_v18 = vpop.f32.mrf.mxu0  ;;  %v8584_v47 = vld [vmem:[%s19268_s3 + $0x30] sm:$0xff] }
 0x465   :  { %11932 = vmatmul.mubr.msk.f32.gmra.mxu0 %vm1514_vm1, %v18993_v4  ;;  %11965 = vmatmul.mubr.msk.f32.gmra.mxu1 %vm1514_vm1, %v19019_v38  ;;  %v6773_v11 = vadd.f32 %v11504_v18, %v6614_v14  ;;  %v19085_v10 = vpop.f32.mrf.mxu1 }
 0x466   :  { %11981 = vmatprep.subr.mxu0 %v18800_v43  ;;  %12013 = vmatprep.subr.mxu1 %v9682_v26  ;;  %v6757_v37 = vpop.f32.mrf.mxu0 }
 0x467   :  { %11934 = vmatprep.mubr.msk.f32.mxu0 %vm1514_vm1, %v19010_v2  ;;  %11982 = vmatpush3.msra.mxu0 %v18800_v43  ;;  %6781 = vst [vmem:[%s19271_s4 + $0x238] sm:$0xff] %v6773_v11  ;;  %v6772_v15 = vadd.f32 %v6757_v37, %v6609_v40  ;;  %v9680_v43 = vld [vmem:[%s19268_s3 + $0xf8] sm:$0xff]  ;;  %v19098_v63 = vpop.f32.mrf.mxu1 }
 0x468   :  { %12014 = vmatpush3.msra.mxu1 %v9682_v26  ;;  %11983 = vmatprep.subr.mxu0 %v8584_v47 }
 0x469   :  { %12015 = vmatprep.subr.mxu1 %v9681_v32  ;;  %11967 = vmatprep.mubr.msk.f32.mxu1 %vm1514_vm1, %v8590_v23  ;;  %6780 = vst [vmem:[%s19271_s4 + $0x230] sm:$0xff] %v6772_v15 }
 0x46a   :  { %11984 = vmatpush3.msra.mxu0 %v8584_v47  ;;  %12016 = vmatpush3.msra.mxu1 %v9681_v32 }
 0x46b   :  { %11935 = vmatmul.mubr.msk.f32.gmra.mxu0 %vm1514_vm1, %v19019_v38  ;;  %11968 = vmatmul.mubr.msk.f32.gmra.mxu1 %vm1514_vm1, %v19051_v6  ;;  %v19107_v46 = vpop.f32.mrf.mxu1 }
 0x46c   :  { %11985 = vmatprep.subr.mxu0 %v8583_v29  ;;  %12017 = vmatprep.subr.mxu1 %v9680_v43 }
 0x46d   :  { %11986 = vmatpush3.msra.mxu0 %v8583_v29  ;;  %11997 = vmatprep.mubr.msk.f32.mxu0 %vm1514_vm1, %v18883_v12  ;;  %v8580_v12 = vld [vmem:[%s19268_s3 + $0x10] sm:$0xff]  ;;  %v6938_v17 = vpop.f32.mrf.mxu1 }
 0x46e   :  { %12018 = vmatpush3.msra.mxu1 %v9680_v43  ;;  %11987 = vmatprep.subr.mxu0 %v8582_v44 }
 0x46f   :  { %12019 = vmatprep.subr.mxu1 %v9679_v36  ;;  %11970 = vmatprep.mubr.msk.f32.mxu1 %vm1514_vm1, %v8592_v62 }
 0x470   :  { %11988 = vmatpush3.msra.mxu0 %v8582_v44  ;;  %12020 = vmatpush3.msra.mxu1 %v9679_v36 }
 0x471   :  { %11989 = vmatprep.subr.mxu0 %v8581_v0  ;;  %11971 = vmatmul.mubr.msk.f32.gmra.mxu1 %vm1514_vm1, %v8593_v9 }
 0x472   :  { %12021 = vmatprep.subr.mxu1 %v9678_v35  ;;  %11990 = vmatpush3.msra.mxu0 %v8581_v0 }
 0x473   :  { %12022 = vmatpush3.msra.mxu1 %v9678_v35  ;;  %12033 = vmatprep.mubr.msk.f32.mxu1 %vm1514_vm1, %v8590_v23 }
 0x474   :  { %11991 = vmatprep.subr.mxu0 %v8580_v12  ;;  %12023 = vmatprep.subr.mxu1 %v9677_v31 }
 0x475   :  { %11992 = vmatpush3.msra.mxu0 %v8580_v12  ;;  %12024 = vmatpush3.msra.mxu1 %v9677_v31 }
 0x476   :  { %11993 = vmatprep.subr.mxu0 %v8579_v21  ;;  %12025 = vmatprep.subr.mxu1 %v9676_v55  ;;  %v11567_v54 = vpop.f32.mrf.mxu0 }
 0x477   :  { %11994 = vmatpush3.msra.mxu0 %v8579_v21  ;;  %12026 = vmatpush3.msra.mxu1 %v9676_v55  ;;  %v7031_v53 = vadd.f32 %v11567_v54, %v19012_v56 }
 0x478   :  { %11995 = vmatprep.subr.mxu0 %v8578_v45  ;;  %12027 = vmatprep.subr.mxu1 %v9675_v58  ;;  %v7025_v8 = vpop.f32.mrf.mxu0 }
 0x479   :  { %11996 = vmatpush3.msra.mxu0 %v8578_v45  ;;  %12028 = vmatpush3.msra.mxu1 %v9675_v58 }
 0x47a   :  { %11998 = vmatmul.mubr.msk.f32.vlgmr.msra.gmra.mxu0 %vm1514_vm1, %v18887_v41  ;;  %12029 = vmatprep.subr.mxu1 %v9674_v48  ;;  %v7026_v41 = vadd.f32 %v7025_v8, %v19033_v19 }
 0x47b   :  { %12000 = vmatprep.mubr.msk.f32.mxu0 %vm1514_vm1, %v18905_v51  ;;  %12030 = vmatpush3.msra.mxu1 %v9674_v48 }
 0x47c   :  { %12031 = vmatprep.subr.mxu1 %v9673_v60  ;;  %v11570_v39 = vpop.f32.mrf.mxu0 }
 0x47d   :  { %v11603_v16 = vpop.f32.mrf.mxu1  ;;  %12032 = vmatpush3.msra.mxu1 %v9673_v60 }
 0x47e   :  { %12001 = vmatmul.mubr.msk.f32.gmra.mxu0 %vm1514_vm1, %v18909_v7  ;;  %v7214_v28 = vadd.f32 %v11603_v16, %v7031_v53  ;;  %12034 = vmatmul.mubr.msk.f32.vlgmr.msra.gmra.mxu1 %vm1514_vm1, %v19051_v6  ;;  %v7035_v24 = vpop.f32.mrf.mxu0  ;;  %v7041_v7 = vadd.f32 %v11570_v39, %v19056_v3 }
 0x47f   :  { %12003 = vmatprep.mubr.msk.f32.mxu0 %vm1514_vm1, %v18966_v13  ;;  %v7174_v51 = vpop.f32.mrf.mxu1  ;;  %12036 = vmatprep.mubr.msk.f32.mxu1 %vm1514_vm1, %v8592_v62  ;;  %v8857_v13 = vld [vmem:[#allocation2 + $0x3a8] sm:$0xff]  ;;  %v7036_v50 = vadd.f32 %v7035_v24, %v19075_v30 }
 0x480   :  { %7222 = vst [vmem:[%s19271_s4 + $0x248] sm:$0xff] %v7214_v28  ;;  %v7213_v25 = vadd.f32 %v7174_v51, %v7026_v41 }
 0x482   :  { %12004 = vmatmul.mubr.msk.f32.gmra.mxu0 %vm1514_vm1, %v18993_v4  ;;  %7221 = vst [vmem:[%s19271_s4 + $0x240] sm:$0xff] %v7213_v25  ;;  %12037 = vmatmul.mubr.msk.f32.gmra.mxu1 %vm1514_vm1, %v8593_v9 }
 0x483   :  { %12006 = vmatprep.mubr.msk.f32.mxu0 %vm1514_vm1, %v19010_v2  ;;  %12039 = vmatprep.mubr.msk.f32.mxu1 %vm1514_vm1, %v8856_v27  ;;  %v11573_v20 = vpop.f32.mrf.mxu0 }
 0x484   :  { %v11606_v22 = vpop.f32.mrf.mxu1  ;;  %v7051_v61 = vadd.f32 %v11573_v20, %v19085_v10 }
 0x485   :  { %v7216_v52 = vadd.f32 %v11606_v22, %v7041_v7  ;;  %v7045_v1 = vpop.f32.mrf.mxu0 }
 0x486   :  { %12007 = vmatmul.mubr.msk.f32.gmra.mxu0 %vm1514_vm1, %v19019_v38  ;;  %v7184_v4 = vpop.f32.mrf.mxu1  ;;  %12040 = vmatmul.mubr.msk.f32.gmra.mxu1 %vm1514_vm1, %v8857_v13  ;;  %v7046_v33 = vadd.f32 %v7045_v1, %v19098_v63 }
 0x487   :  { %7224 = vst [vmem:[%s19271_s4 + $0x258] sm:$0xff] %v7216_v52  ;;  %v7215_v57 = vadd.f32 %v7184_v4, %v7036_v50  ;;  %12042 = vmatprep.mubr.msk.f32.mxu1 %vm1514_vm1, %v8858_v49 }
 0x489   :  { %7223 = vst [vmem:[%s19271_s4 + $0x250] sm:$0xff] %v7215_v57 }
 0x48a   :  { %12043 = vmatmul.mubr.msk.f32.gmra.mxu1 %vm1514_vm1, %v8859_v5  ;;  %v11576_v59 = vpop.f32.mrf.mxu0 }
 0x48b   :  { %v11609_v34 = vpop.f32.mrf.mxu1  ;;  %v7061_v26 = vadd.f32 %v11576_v59, %v19107_v46 }
 0x48c   :  { %v7218_v2 = vadd.f32 %v11609_v34, %v7051_v61  ;;  %v7055_v38 = vpop.f32.mrf.mxu0 }
 0x48d   :  { %v7194_v56 = vpop.f32.mrf.mxu1  ;;  %v7056_v19 = vadd.f32 %v7055_v38, %v6938_v17 }
 0x48e   :  { %7226 = vst [vmem:[%s19271_s4 + $0x268] sm:$0xff] %v7218_v2  ;;  %v7217_v42 = vadd.f32 %v7194_v56, %v7046_v33 }
 0x490   :  { %7225 = vst [vmem:[%s19271_s4 + $0x260] sm:$0xff] %v7217_v42 }
 0x491   :  { %v11612_v14 = vpop.f32.mrf.mxu1 }
 0x492   :  { %v7220_v18 = vadd.f32 %v11612_v14, %v7061_v26 }
 0x493   :  { %v7204_v47 = vpop.f32.mrf.mxu1 }
 0x494   :  { %7228 = vst [vmem:[%s19271_s4 + $0x278] sm:$0xff] %v7220_v18  ;;  %v7219_v32 = vadd.f32 %v7204_v47, %v7056_v19 }
 0x496   :  { %7227 = vst [vmem:[%s19271_s4 + $0x270] sm:$0xff] %v7219_v32 }
 0x49a   :  { %v11639_v40 = vpop.f32.mrf.mxu0 }
 0x49c   :  { %v7355_v11 = vpop.f32.mrf.mxu0 }
 0x49f   :  { %v11675_v23 = vpop.f32.mrf.mxu1  ;;  %v11642_v37 = vpop.f32.mrf.mxu0 }
 0x4a0   :  { %v7478_v0 = vadd.f32 %v11675_v23, %v11639_v40 }
 0x4a1   :  { %v7472_v15 = vpop.f32.mrf.mxu1  ;;  %v7365_v6 = vpop.f32.mrf.mxu0 }
 0x4a2   :  { %v7473_v10 = vadd.f32 %v7472_v15, %v7355_v11 }
 0x4a5   :  { %v11678_v29 = vpop.f32.mrf.mxu1  ;;  %v11645_v3 = vpop.f32.mrf.mxu0 }
 0x4a6   :  { %v7488_v55 = vadd.f32 %v11678_v29, %v11642_v37 }
 0x4a7   :  { %v7482_v43 = vpop.f32.mrf.mxu1  ;;  %v7375_v44 = vpop.f32.mrf.mxu0 }
 0x4a8   :  { %v7483_v46 = vadd.f32 %v7482_v43, %v7365_v6 }
 0x4ab   :  { %v11648_v36 = vpop.f32.mrf.mxu0  ;;  %v11681_v62 = vpop.f32.mrf.mxu1 }
 0x4ac   :  { %v7498_v60 = vadd.f32 %v11681_v62, %v11645_v3 }
 0x4ad   :  { %v7385_v30 = vpop.f32.mrf.mxu0  ;;  %v7492_v9 = vpop.f32.mrf.mxu1 }
 0x4ae   :  { %v7493_v39 = vadd.f32 %v7492_v9, %v7375_v44 }
 0x4b1   :  { %v11684_v21 = vpop.f32.mrf.mxu1 }
 0x4b2   :  { %v7508_v24 = vadd.f32 %v11684_v21, %v11648_v36 }
 0x4b3   :  { %v7502_v58 = vpop.f32.mrf.mxu1 }
 0x4b4   :  { %v7503_v7 = vadd.f32 %v7502_v58, %v7385_v30 }
 0x4b9   :  { %v11711_v35 = vpop.f32.mrf.mxu0 }
 0x4ba   :  { %v7661_v12 = vadd.f32 %v11711_v35, %v7478_v0 }
 0x4bb   :  { %v7621_v31 = vpop.f32.mrf.mxu0 }
 0x4bc   :  { %7669 = vst [vmem:[%s19271_s4 + $0x288] sm:$0xff] %v7661_v12  ;;  %v7660_v63 = vadd.f32 %v7621_v31, %v7473_v10 }
 0x4be   :  { %7668 = vst [vmem:[%s19271_s4 + $0x280] sm:$0xff] %v7660_v63 }
 0x4bf   :  { %v11714_v45 = vpop.f32.mrf.mxu0  ;;  %v11747_v17 = vpop.f32.mrf.mxu1 }
 0x4c0   :  { %v7663_v54 = vadd.f32 %v11714_v45, %v7488_v55 }
 0x4c1   :  { %v7631_v48 = vpop.f32.mrf.mxu0  ;;  %v7802_v41 = vpop.f32.mrf.mxu1 }
 0x4c2   :  { %7671 = vst [vmem:[%s19271_s4 + $0x298] sm:$0xff] %v7663_v54  ;;  %v7662_v8 = vadd.f32 %v7631_v48, %v7483_v46 }
 0x4c4   :  { %7670 = vst [vmem:[%s19271_s4 + $0x290] sm:$0xff] %v7662_v8 }
 0x4c5   :  { %v11717_v53 = vpop.f32.mrf.mxu0  ;;  %v11750_v25 = vpop.f32.mrf.mxu1 }
 0x4c6   :  { %v7665_v16 = vadd.f32 %v11717_v53, %v7498_v60 }
 0x4c7   :  { %v7641_v28 = vpop.f32.mrf.mxu0  ;;  %v7812_v49 = vpop.f32.mrf.mxu1 }
 0x4c8   :  { %7673 = vst [vmem:[%s19271_s4 + $0x2a8] sm:$0xff] %v7665_v16  ;;  %v7664_v51 = vadd.f32 %v7641_v28, %v7493_v39 }
 0x4ca   :  { %7672 = vst [vmem:[%s19271_s4 + $0x2a0] sm:$0xff] %v7664_v51 }
 0x4cb   :  { %v11720_v27 = vpop.f32.mrf.mxu0  ;;  %v11753_v50 = vpop.f32.mrf.mxu1 }
 0x4cc   :  { %v7667_v13 = vadd.f32 %v11720_v27, %v7508_v24 }
 0x4cd   :  { %v7651_v20 = vpop.f32.mrf.mxu0  ;;  %v7822_v52 = vpop.f32.mrf.mxu1 }
 0x4ce   :  { %7675 = vst [vmem:[%s19271_s4 + $0x2b8] sm:$0xff] %v7667_v13  ;;  %v7666_v22 = vadd.f32 %v7651_v20, %v7503_v7 }
 0x4d0   :  { %7674 = vst [vmem:[%s19271_s4 + $0x2b0] sm:$0xff] %v7666_v22 }
 0x4d1   :  { %v11756_v4 = vpop.f32.mrf.mxu1 }
 0x4d3   :  { %v7832_v57 = vpop.f32.mrf.mxu1 }
 0x4da   :  { %v11783_v1 = vpop.f32.mrf.mxu0 }
 0x4db   :  { %v7925_v61 = vadd.f32 %v11783_v1, %v11747_v17 }
 0x4dc   :  { %v7919_v5 = vpop.f32.mrf.mxu0 }
 0x4dd   :  { %v7920_v34 = vadd.f32 %v7919_v5, %v7802_v41 }
 0x4df   :  { %v11819_v59 = vpop.f32.mrf.mxu1  ;;  %v11786_v33 = vpop.f32.mrf.mxu0 }
 0x4e0   :  { %v8108_v2 = vadd.f32 %v11819_v59, %v7925_v61  ;;  %v7935_v26 = vadd.f32 %v11786_v33, %v11750_v25 }
 0x4e1   :  { %v8068_v56 = vpop.f32.mrf.mxu1  ;;  %v7929_v42 = vpop.f32.mrf.mxu0 }
 0x4e2   :  { %8116 = vst [vmem:[%s19271_s4 + $0x2c8] sm:$0xff] %v8108_v2  ;;  %v8107_v38 = vadd.f32 %v8068_v56, %v7920_v34  ;;  %v7930_v18 = vadd.f32 %v7929_v42, %v7812_v49 }
 0x4e4   :  { %8115 = vst [vmem:[%s19271_s4 + $0x2c0] sm:$0xff] %v8107_v38 }
 0x4e5   :  { %v11789_v14 = vpop.f32.mrf.mxu0  ;;  %v11822_v19 = vpop.f32.mrf.mxu1 }
 0x4e6   :  { %v8110_v47 = vadd.f32 %v11822_v19, %v7935_v26  ;;  %v7945_v23 = vadd.f32 %v11789_v14, %v11753_v50 }
 0x4e7   :  { %v7939_v32 = vpop.f32.mrf.mxu0  ;;  %v8078_v40 = vpop.f32.mrf.mxu1 }
 0x4e8   :  { %8118 = vst [vmem:[%s19271_s4 + $0x2d8] sm:$0xff] %v8110_v47  ;;  %v8109_v11 = vadd.f32 %v8078_v40, %v7930_v18  ;;  %v7940_v6 = vadd.f32 %v7939_v32, %v7822_v52 }
 0x4ea   :  { %8117 = vst [vmem:[%s19271_s4 + $0x2d0] sm:$0xff] %v8109_v11 }
 0x4eb   :  { %v11792_v37 = vpop.f32.mrf.mxu0  ;;  %v11825_v15 = vpop.f32.mrf.mxu1 }
 0x4ec   :  { %v8112_v29 = vadd.f32 %v11825_v15, %v7945_v23  ;;  %v7955_v36 = vadd.f32 %v11792_v37, %v11756_v4 }
 0x4ed   :  { %v8088_v3 = vpop.f32.mrf.mxu1  ;;  %v7949_v44 = vpop.f32.mrf.mxu0 }
 0x4ee   :  { %8120 = vst [vmem:[%s19271_s4 + $0x2e8] sm:$0xff] %v8112_v29  ;;  %v8111_v43 = vadd.f32 %v8088_v3, %v7940_v6  ;;  %v7950_v30 = vadd.f32 %v7949_v44, %v7832_v57 }
 0x4f0   :  { %8119 = vst [vmem:[%s19271_s4 + $0x2e0] sm:$0xff] %v8111_v43 }
 0x4f1   :  { %v11828_v62 = vpop.f32.mrf.mxu1 }
 0x4f2   :  { %v8114_v0 = vadd.f32 %v11828_v62, %v7955_v36 }
 0x4f3   :  { %v8098_v9 = vpop.f32.mrf.mxu1 }
 0x4f4   :  { %8122 = vst [vmem:[%s19271_s4 + $0x2f8] sm:$0xff] %v8114_v0  ;;  %v8113_v35 = vadd.f32 %v8098_v9, %v7950_v30 }
 0x4f6   :  { %8121 = vst [vmem:[%s19271_s4 + $0x2f0] sm:$0xff] %v8113_v35 }
 0x4fa   :  { %v11855_v10 = vpop.f32.mrf.mxu0 }
 0x4fc   :  { %v8249_v12 = vpop.f32.mrf.mxu0 }
 0x4ff   :  { %v11858_v31 = vpop.f32.mrf.mxu0  ;;  %v11891_v21 = vpop.f32.mrf.mxu1 }
 0x500   :  { %v8372_v60 = vadd.f32 %v11891_v21, %v11855_v10 }
 0x501   :  { %v8259_v63 = vpop.f32.mrf.mxu0  ;;  %v8366_v55 = vpop.f32.mrf.mxu1 }
 0x502   :  { %v8367_v39 = vadd.f32 %v8366_v55, %v8249_v12 }
 0x505   :  { %v11861_v45 = vpop.f32.mrf.mxu0  ;;  %v11894_v46 = vpop.f32.mrf.mxu1 }
 0x506   :  { %v8382_v24 = vadd.f32 %v11894_v46, %v11858_v31 }
 0x507   :  { %v8269_v58 = vpop.f32.mrf.mxu0  ;;  %v8376_v54 = vpop.f32.mrf.mxu1 }
 0x508   :  { %v8377_v7 = vadd.f32 %v8376_v54, %v8259_v63 }
 0x50b   :  { %v11864_v48 = vpop.f32.mrf.mxu0  ;;  %v11897_v17 = vpop.f32.mrf.mxu1 }
 0x50c   :  { %v8392_v50 = vadd.f32 %v11897_v17, %v11861_v45 }
 0x50d   :  { %v8279_v8 = vpop.f32.mrf.mxu0  ;;  %v8386_v16 = vpop.f32.mrf.mxu1 }
 0x50e   :  { %v8387_v1 = vadd.f32 %v8386_v16, %v8269_v58 }
 0x511   :  { %v11900_v25 = vpop.f32.mrf.mxu1 }
 0x512   :  { %v8402_v34 = vadd.f32 %v11900_v25, %v11864_v48 }
 0x513   :  { %v8396_v22 = vpop.f32.mrf.mxu1 }
 0x514   :  { %v8397_v2 = vadd.f32 %v8396_v22, %v8279_v8 }
 0x51a   :  { %v11927_v53 = vpop.f32.mrf.mxu0 }
 0x51b   :  { %v8555_v41 = vadd.f32 %v11927_v53, %v8372_v60 }
 0x51c   :  { %v8515_v28 = vpop.f32.mrf.mxu0 }
 0x51d   :  { %8563 = vst [vmem:[%s19271_s4 + $0x308] sm:$0xff] %v8555_v41  ;;  %v8554_v51 = vadd.f32 %v8515_v28, %v8367_v39 }
 0x51f   :  { %8562 = vst [vmem:[%s19271_s4 + $0x300] sm:$0xff] %v8554_v51  ;;  %v11930_v27 = vpop.f32.mrf.mxu0  ;;  %v11963_v52 = vpop.f32.mrf.mxu1 }
 0x520   :  { %v8557_v13 = vadd.f32 %v11930_v27, %v8382_v24 }
 0x521   :  { %v8525_v20 = vpop.f32.mrf.mxu0  ;;  %v8696_v59 = vpop.f32.mrf.mxu1 }
 0x522   :  { %8565 = vst [vmem:[%s19271_s4 + $0x318] sm:$0xff] %v8557_v13  ;;  %v8556_v49 = vadd.f32 %v8525_v20, %v8377_v7 }
 0x524   :  { %8564 = vst [vmem:[%s19271_s4 + $0x310] sm:$0xff] %v8556_v49 }
 0x525   :  { %v11933_v4 = vpop.f32.mrf.mxu0  ;;  %v11966_v42 = vpop.f32.mrf.mxu1 }
 0x526   :  { %v8559_v57 = vadd.f32 %v11933_v4, %v8392_v50 }
 0x527   :  { %v8535_v5 = vpop.f32.mrf.mxu0  ;;  %v8706_v14 = vpop.f32.mrf.mxu1 }
 0x528   :  { %8567 = vst [vmem:[%s19271_s4 + $0x328] sm:$0xff] %v8559_v57  ;;  %v8558_v61 = vadd.f32 %v8535_v5, %v8387_v1 }
 0x52a   :  { %8566 = vst [vmem:[%s19271_s4 + $0x320] sm:$0xff] %v8558_v61 }
 0x52b   :  { %v11936_v33 = vpop.f32.mrf.mxu0  ;;  %v11969_v19 = vpop.f32.mrf.mxu1 }
 0x52c   :  { %v8561_v56 = vadd.f32 %v11936_v33, %v8402_v34 }
 0x52d   :  { %v8545_v38 = vpop.f32.mrf.mxu0  ;;  %v8716_v18 = vpop.f32.mrf.mxu1 }
 0x52e   :  { %8569 = vst [vmem:[%s19271_s4 + $0x338] sm:$0xff] %v8561_v56  ;;  %v8560_v26 = vadd.f32 %v8545_v38, %v8397_v2 }
 0x530   :  { %8568 = vst [vmem:[%s19271_s4 + $0x330] sm:$0xff] %v8560_v26 }
 0x531   :  { %v11972_v47 = vpop.f32.mrf.mxu1 }
 0x533   :  { %v8726_v11 = vpop.f32.mrf.mxu1 }
 0x53a   :  { %v11999_v32 = vpop.f32.mrf.mxu0 }
 0x53b   :  { %v8819_v23 = vadd.f32 %v11999_v32, %v11963_v52 }
 0x53c   :  { %v8813_v40 = vpop.f32.mrf.mxu0 }
 0x53d   :  { %v8814_v6 = vadd.f32 %v8813_v40, %v8696_v59 }
 0x53e   :  { %v12002_v37 = vpop.f32.mrf.mxu0  ;;  %v12035_v15 = vpop.f32.mrf.mxu1 }
 0x53f   :  { %v9002_v29 = vadd.f32 %v12035_v15, %v8819_v23  ;;  %v8829_v44 = vadd.f32 %v12002_v37, %v11966_v42 }
 0x540   :  { %v8823_v3 = vpop.f32.mrf.mxu0  ;;  %v8962_v43 = vpop.f32.mrf.mxu1 }
 0x541   :  { %9010 = vst [vmem:[%s19271_s4 + $0x348] sm:$0xff] %v9002_v29  ;;  %v9001_v36 = vadd.f32 %v8962_v43, %v8814_v6  ;;  %v8824_v0 = vadd.f32 %v8823_v3, %v8706_v14 }
 0x542   :  { %v12005_v62 = vpop.f32.mrf.mxu0  ;;  %v12038_v30 = vpop.f32.mrf.mxu1 }
 0x543   :  { %9009 = vst [vmem:[%s19271_s4 + $0x340] sm:$0xff] %v9001_v36  ;;  %v9004_v9 = vadd.f32 %v12038_v30, %v8829_v44  ;;  %v8839_v12 = vadd.f32 %v12005_v62, %v11969_v19 }
 0x544   :  { %v8833_v35 = vpop.f32.mrf.mxu0  ;;  %v8972_v10 = vpop.f32.mrf.mxu1 }
 0x545   :  { %9012 = vst [vmem:[%s19271_s4 + $0x358] sm:$0xff] %v9004_v9  ;;  %v9003_v31 = vadd.f32 %v8972_v10, %v8824_v0  ;;  %v8834_v55 = vadd.f32 %v8833_v35, %v8716_v18 }
 0x546   :  { %v12008_v21 = vpop.f32.mrf.mxu0  ;;  %v12041_v63 = vpop.f32.mrf.mxu1 }
 0x547   :  { %9011 = vst [vmem:[%s19271_s4 + $0x350] sm:$0xff] %v9003_v31  ;;  %v9006_v45 = vadd.f32 %v12041_v63, %v8839_v12  ;;  %v8849_v54 = vadd.f32 %v12008_v21, %v11972_v47 }
 0x548   :  { %v8843_v46 = vpop.f32.mrf.mxu0  ;;  %v8982_v58 = vpop.f32.mrf.mxu1 }
 0x549   :  { %9014 = vst [vmem:[%s19271_s4 + $0x368] sm:$0xff] %v9006_v45  ;;  %v9005_v48 = vadd.f32 %v8982_v58, %v8834_v55  ;;  %v8844_v8 = vadd.f32 %v8843_v46, %v8726_v11 }
 0x54a   :  { %v12044_v17 = vpop.f32.mrf.mxu1 }
 0x54b   :  { %9013 = vst [vmem:[%s19271_s4 + $0x360] sm:$0xff] %v9005_v48  ;;  %v9008_v60 = vadd.f32 %v12044_v17, %v8849_v54 }
 0x54c   :  { %v8992_v53 = vpop.f32.mrf.mxu1 }
 0x54d   :  { %9016 = vst [vmem:[%s19271_s4 + $0x378] sm:$0xff] %v9008_v60  ;;  %v9007_v39 = vadd.f32 %v8992_v53, %v8844_v8 }
 0x54f   :  { %9015 = vst [vmem:[%s19271_s4 + $0x370] sm:$0xff] %v9007_v39 }

</bundles_post_ra>
